<compile_context>
chip_gen: v7x
topology: tpu7x:2x2x1
jax: 0.10.0
libtpu: 0.0.40
codegen_flags: <defaults>
</compile_context>

<pallas_src>
import math

import jax
import jax.numpy as jnp
from jax.experimental import pallas as pl
from jax.experimental.pallas import tpu as pltpu

SCALE = 4.0        # InputEmbedding scale
EMB_PAD = 128      # lane-padded embedding width (embedding_dim <= 128)
H2N_PAD = 128      # lane-padded output-slab width (5 normal cols + 2 pos cols)
POS_COL = 5        # slab columns 5..6 carry predicted absolute positions

_VMEM = pl.BlockSpec(memory_space=pltpu.MemorySpace.VMEM)


# ---------------------------------------------------------------------------
# One fused step: InputEmbedding -> LSTMCell -> Hidden2Normal (raw), NaN-masked.
# Returns (h_out, c_out, slab, pos); slab is (N, 128) with raw normal params in
# cols 0..4 and the absolute position (obs2 + mu) packed into cols 5..6.
# ---------------------------------------------------------------------------
def _lstm_step(obs1, obs2, h, c, w_emb, b_emb, whh_ref, wih_ref, b_gates,
               wh2n_ref, b_h2n):
    H = h.shape[1]
    # track_mask: valid iff neither observation has a NaN x-coordinate
    mask = jnp.logical_not(jnp.isnan(obs1[:, 0:1]) | jnp.isnan(obs2[:, 0:1]))   # (N,1)

    vel = jnp.where(mask, obs2 - obs1, 0.0)                                     # (N,2)
    sv = SCALE * vel
    # InputEmbedding: ReLU(Linear(scale*vel)); K=2 contraction stays on the VPU.
    emb = jnp.maximum(sv[:, 0:1] * w_emb[0:1, :] + sv[:, 1:2] * w_emb[1:2, :] + b_emb,
                      0.0)                                                      # (N,128)

    # LSTMCell gates: two accumulating bf16 MXU dots, f32 accumulation.
    # torch.nn.LSTMCell gate order (i, f, g, o); weights packed as (fan_in, 4H).
    gates = (jnp.dot(h.astype(jnp.bfloat16), whh_ref[...],
                     preferred_element_type=jnp.float32)
             + jnp.dot(emb.astype(jnp.bfloat16), wih_ref[...],
                       preferred_element_type=jnp.float32)
             + b_gates)                                                         # (N,4H)

    i_g = jax.nn.sigmoid(gates[:, 0 * H:1 * H])
    f_g = jax.nn.sigmoid(gates[:, 1 * H:2 * H])
    g_g = jnp.tanh(gates[:, 2 * H:3 * H])
    o_g = jax.nn.sigmoid(gates[:, 3 * H:4 * H])
    c_new = f_g * c + i_g * g_g
    h_new = o_g * jnp.tanh(c_new)

    # Hidden2Normal linear only (raw); sigma/rho squashing happens in wrapper.
    raw = (jnp.dot(h_new.astype(jnp.bfloat16), wh2n_ref[...],
                   preferred_element_type=jnp.float32) + b_h2n)                 # (N,128)
    raw = jnp.where(mask, raw, jnp.nan)

    h_out = jnp.where(mask, h_new, h)
    c_out = jnp.where(mask, c_new, c)

    pos = obs2 + raw[:, :2]                                                     # NaN on masked rows
    col = jax.lax.broadcasted_iota(jnp.int32, raw.shape, 1)
    slab = jnp.where(col == POS_COL, pos[:, 0:1],
                     jnp.where(col == POS_COL + 1, pos[:, 1:2], raw))
    return h_out, c_out, slab, pos


# ---------------------------------------------------------------------------
# Fully fused forward kernel (gridless, everything resident in VMEM).
#   training/has_truth are static -> teacher forcing resolved at trace time.
# ---------------------------------------------------------------------------
def _make_forward_kernel(training, has_truth):
    def kernel(observed_ref, truth_ref, prim_ref, eps_ref,
               w_emb_ref, b_emb_ref,
               obs_whh_ref, obs_wih_ref, obs_b_ref,
               *rest):
        if training:
            (pred_whh_ref, pred_wih_ref, pred_b_ref,
             dec_whh_ref, dec_wih_ref, dec_b_ref,
             wh2n_ref, bh2n_ref,
             wmua_ref, wmub_ref, bmu_ref,
             wvara_ref, wvarb_ref, bvar_ref,
             wdec_ref, bdec_ref,
             slab_ref, zdistr_ref) = rest
        else:
            (dec_whh_ref, dec_wih_ref, dec_b_ref,
             wh2n_ref, bh2n_ref,
             wdec_ref, bdec_ref,
             slab_ref) = rest

        N = prim_ref.shape[0]
        H = obs_whh_ref.shape[0]
        L = wdec_ref.shape[0]
        T_obs = observed_ref.shape[0] - 1
        T_dec = truth_ref.shape[0] - 1

        w_emb = w_emb_ref[...]
        b_emb = b_emb_ref[...]
        b_h2n = bh2n_ref[...]
        prim = prim_ref[...] > 0.5                      # (N,1) primary-track mask

        zeros_h = jnp.zeros((N, H), jnp.float32)
        nan_pos = jnp.full((N, 2), jnp.nan, jnp.float32)

        # ---------------- phase 1: observation encoder ----------------
        h, c = zeros_h, zeros_h
        pos_m2, pos_m1 = nan_pos, nan_pos
        obs_b = obs_b_ref[...]
        for t in range(T_obs):
            h, c, slab, pos = _lstm_step(observed_ref[t], observed_ref[t + 1], h, c,
                                         w_emb, b_emb, obs_whh_ref, obs_wih_ref,
                                         obs_b, wh2n_ref, b_h2n)
            slab_ref[t] = slab
            pos_m2, pos_m1 = pos_m1, pos
        h_obs, c_obs = h, c

        # ------- phase 2: prediction-truth encoder + VAEEncoder (training) -------
        if training:
            h, c = zeros_h, zeros_h
            pred_b = pred_b_ref[...]
            for t in range(T_dec):
                h, c, _, _ = _lstm_step(truth_ref[t], truth_ref[t + 1], h, c,
                                        w_emb, b_emb, pred_whh_ref, pred_wih_ref,
                                        pred_b, wh2n_ref, b_h2n)
            # VAEEncoder on [h_obs | h_pred]: split matmuls (no concat).
            hb = h_obs.astype(jnp.bfloat16)
            hpb = h.astype(jnp.bfloat16)
            z_mu = jnp.maximum(
                jnp.dot(hb, wmua_ref[...], preferred_element_type=jnp.float32)
                + jnp.dot(hpb, wmub_ref[...], preferred_element_type=jnp.float32)
                + bmu_ref[...], 0.0)
            z_var = 0.01 + jnp.maximum(
                jnp.dot(hb, wvara_ref[...], preferred_element_type=jnp.float32)
                + jnp.dot(hpb, wvarb_ref[...], preferred_element_type=jnp.float32)
                + bvar_ref[...], 0.0)
            zdistr_ref[:, 0:L] = z_mu
            zdistr_ref[:, L:2 * L] = z_var
            z_val = z_mu + jnp.exp(0.5 * z_var) * eps_ref[...]
        else:
            # z_mu_obs = 0, z_var_log_obs = 1  ->  z = exp(0.5) * eps
            z_val = math.exp(0.5) * eps_ref[...]

        # ---------------- phase 3: add_noise + decoder ----------------
        dec_gate = jnp.maximum(
            jnp.dot(z_val.astype(jnp.bfloat16), wdec_ref[...],
                    preferred_element_type=jnp.float32) + bdec_ref[...], 0.0)
        h = h_obs * dec_gate
        c = c_obs
        dec_b = dec_b_ref[...]
        for t in range(T_dec):
            # teacher forcing: rows with no truth (static flag) or primary rows
            # are replaced by previously predicted positions.
            if has_truth[t]:
                obs1 = jnp.where(prim, pos_m2, truth_ref[t])
            else:
                obs1 = pos_m2
            if has_truth[t + 1]:
                obs2 = jnp.where(prim, pos_m1, truth_ref[t + 1])
            else:
                obs2 = pos_m1
            h, c, slab, pos = _lstm_step(obs1, obs2, h, c,
                                         w_emb, b_emb, dec_whh_ref, dec_wih_ref,
                                         dec_b, wh2n_ref, b_h2n)
            slab_ref[T_obs + t] = slab
            pos_m2, pos_m1 = pos_m1, pos

    return kernel


# ---------------------------------------------------------------------------
# Parameter initialization (PyTorch-default-like uniform ranges)
# ---------------------------------------------------------------------------
def _linear(key, fan_in, fan_out):
    k = 1.0 / math.sqrt(fan_in)
    kw, kb = jax.random.split(key)
    w = jax.random.uniform(kw, (fan_in, fan_out), jnp.float32, -k, k)
    b = jax.random.uniform(kb, (1, fan_out), jnp.float32, -k, k)
    return w, b


def _lstm_cell(key, emb_dim, hidden):
    # torch.nn.LSTMCell weights: gate order (i, f, g, o); packed here as
    # (fan_in, 4H).  Loading real PyTorch checkpoints requires transposing
    # weight_ih / weight_hh from (4H, fan_in) and keeping torch's gate order.
    k = 1.0 / math.sqrt(hidden)
    k1, k2, k3, k4 = jax.random.split(key, 4)
    w_ih = jax.random.uniform(k1, (emb_dim, 4 * hidden), jnp.float32, -k, k)
    w_hh = jax.random.uniform(k2, (hidden, 4 * hidden), jnp.float32, -k, k)
    b_ih = jax.random.uniform(k3, (1, 4 * hidden), jnp.float32, -k, k)
    b_hh = jax.random.uniform(k4, (1, 4 * hidden), jnp.float32, -k, k)
    w_ih_p = jnp.zeros((EMB_PAD, 4 * hidden), jnp.float32).at[:emb_dim].set(w_ih)
    return {'w_hh': w_hh.astype(jnp.bfloat16),
            'w_ih': w_ih_p.astype(jnp.bfloat16),
            'b': b_ih + b_hh}


def init_params(key, embedding_dim=64, hidden_dim=128, latent_dim=128):
    assert embedding_dim <= EMB_PAD
    ks = jax.random.split(key, 8)

    w_emb, b_emb = _linear(ks[0], 2, embedding_dim)
    w_emb = jnp.zeros((2, EMB_PAD), jnp.float32).at[:, :embedding_dim].set(w_emb)
    b_emb = jnp.zeros((1, EMB_PAD), jnp.float32).at[:, :embedding_dim].set(b_emb)

    w_h2n, b_h2n = _linear(ks[1], hidden_dim, 5)
    w_h2n = (jnp.zeros((hidden_dim, H2N_PAD), jnp.float32)
             .at[:, :5].set(w_h2n).astype(jnp.bfloat16))
    b_h2n = jnp.zeros((1, H2N_PAD), jnp.float32).at[:, :5].set(b_h2n)

    w_mu, b_mu = _linear(ks[5], 2 * hidden_dim, latent_dim)
    w_var, b_var = _linear(ks[6], 2 * hidden_dim, latent_dim)
    w_dec, b_dec = _linear(ks[7], latent_dim, hidden_dim)

    return {
        'embedding_dim': embedding_dim, 'hidden_dim': hidden_dim,
        'latent_dim': latent_dim,
        'w_emb': w_emb, 'b_emb': b_emb,
        'w_h2n': w_h2n, 'b_h2n': b_h2n,
        'obs_encoder': _lstm_cell(ks[2], embedding_dim, hidden_dim),
        'pred_encoder': _lstm_cell(ks[3], embedding_dim, hidden_dim),
        'decoder': _lstm_cell(ks[4], embedding_dim, hidden_dim),
        'w_mu_a': w_mu[:hidden_dim].astype(jnp.bfloat16),
        'w_mu_b': w_mu[hidden_dim:].astype(jnp.bfloat16),
        'b_mu': b_mu,
        'w_var_a': w_var[:hidden_dim].astype(jnp.bfloat16),
        'w_var_b': w_var[hidden_dim:].astype(jnp.bfloat16),
        'b_var': b_var,
        'w_dec': w_dec.astype(jnp.bfloat16), 'b_dec': b_dec,
    }


# ---------------------------------------------------------------------------
# Full VAE.forward
# ---------------------------------------------------------------------------
def vae_forward(params, observed, goals, batch_split, key,
                prediction_truth=None, n_predict=None, training=False,
                num_modes=1):
    assert (prediction_truth is None) + (n_predict is None) == 1
    del goals  # goal_flag=False -> unused
    obs_len, num_tracks, _ = observed.shape
    assert obs_len >= 3
    H = params['hidden_dim']
    L = params['latent_dim']

    # pad the track axis to a multiple of 8 sublanes with NaN rows (neutralized
    # by the in-kernel track mask); outputs are sliced back to num_tracks.
    n_pad = (-num_tracks) % 8
    Np = num_tracks + n_pad
    observed_p = jnp.pad(observed.astype(jnp.float32),
                         ((0, 0), (0, n_pad), (0, 0)), constant_values=jnp.nan)

    primaries = jnp.asarray(list(batch_split[:-1]), dtype=jnp.int32)
    primary_mask = jnp.zeros((Np, 1), jnp.float32).at[primaries, 0].set(1.0)

    # prediction_truth := [observed[-1]] + given truth (or Nones for inference)
    if n_predict is not None:
        T_dec = n_predict - 1
        truth_seq = jnp.concatenate(
            [observed_p[-1:], jnp.full((T_dec, Np, 2), jnp.nan, jnp.float32)], axis=0)
        has_truth = (1,) + (0,) * T_dec
    else:
        T_dec = int(prediction_truth.shape[0])
        pt_p = jnp.pad(prediction_truth.astype(jnp.float32),
                       ((0, 0), (0, n_pad), (0, 0)), constant_values=jnp.nan)
        truth_seq = jnp.concatenate([observed_p[-1:], pt_p], axis=0)
        has_truth = (1,) * (T_dec + 1)

    T_obs = obs_len - 1
    T_total = T_obs + T_dec

    oc, dc = params['obs_encoder'], params['decoder']
    pre_args = [observed_p, truth_seq, primary_mask]          # eps inserted after
    post_args = [params['w_emb'], params['b_emb'],
                 oc['w_hh'], oc['w_ih'], oc['b']]
    if training:
        pc = params['pred_encoder']
        post_args += [pc['w_hh'], pc['w_ih'], pc['b']]
    post_args += [dc['w_hh'], dc['w_ih'], dc['b'],
                  params['w_h2n'], params['b_h2n']]
    if training:
        post_args += [params['w_mu_a'], params['w_mu_b'], params['b_mu'],
                      params['w_var_a'], params['w_var_b'], params['b_var']]
    post_args += [params['w_dec'], params['b_dec']]
    n_in = len(pre_args) + 1 + len(post_args)

    if training:
        out_shape = (jax.ShapeDtypeStruct((T_total, Np, H2N_PAD), jnp.float32),
                     jax.ShapeDtypeStruct((Np, 2 * L), jnp.float32))
        out_specs = (_VMEM, _VMEM)
    else:
        out_shape = jax.ShapeDtypeStruct((T_total, Np, H2N_PAD), jnp.float32)
        out_specs = _VMEM

    fused_call = pl.pallas_call(
        _make_forward_kernel(training, has_truth),
        out_shape=out_shape,
        in_specs=[_VMEM] * n_in,
        out_specs=out_specs,
    )

    rel_pred_scene, pred_scene = [], []
    z_distr_xy = None
    for _k in range(num_modes):
        key, sub = jax.random.split(key)
        eps = jax.random.normal(sub, (Np, L), jnp.float32)
        outs = fused_call(*pre_args, eps, *post_args)
        if training:
            slab, zdistr = outs
            z_distr_xy = zdistr[:num_tracks]
        else:
            slab = outs
        raw = slab[:, :num_tracks, :5]
        # Hidden2Normal squashing on the sliced tensor (out-of-kernel, 5 lanes):
        # [mu_x, mu_y, 0.01+0.2*sigmoid, 0.01+0.2*sigmoid, 0.7*sigmoid]
        normals = jnp.concatenate(
            [raw[..., 0:2],
             0.01 + 0.2 * jax.nn.sigmoid(raw[..., 2:4]),
             0.7 * jax.nn.sigmoid(raw[..., 4:5])], axis=-1)
        rel_pred_scene.append(normals)
        pred_scene.append(slab[:, :num_tracks, POS_COL:POS_COL + 2])

    z_distr_x = None   # self.desire == True
    return rel_pred_scene, pred_scene, z_distr_xy, z_distr_x


if __name__ == "__main__":
    key = jax.random.PRNGKey(0)
    kp, kobs, kgoal, kpred, kn1, kn2 = jax.random.split(key, 6)

    E, Hd, L = 64, 128, 128          # module defaults
    obs_len, num_tracks = 9, 6
    n_predict = 5
    batch_split = [0, 3, 6]

    params = init_params(kp, E, Hd, L)
    observed = jax.random.normal(kobs, (obs_len, num_tracks, 2), jnp.float32)
    goals = jax.random.normal(kgoal, (num_tracks, 2), jnp.float32)

    # eval / inference path (n_predict given)
    rel, pred, zxy, zx = vae_forward(params, observed, goals, batch_split, kn1,
                                     n_predict=n_predict)
    jax.block_until_ready((rel, pred))
    assert rel[0].shape == (obs_len - 1 + n_predict - 1, num_tracks, 5)
    assert pred[0].shape == (obs_len - 1 + n_predict - 1, num_tracks, 2)
    assert zxy is None and zx is None
    assert bool(jnp.all(jnp.isfinite(rel[0]))) and bool(jnp.all(jnp.isfinite(pred[0])))

    # training / teacher-forcing path (prediction_truth given)
    prediction_truth = jax.random.normal(kpred, (4, num_tracks, 2), jnp.float32)
    rel_t, pred_t, zxy_t, zx_t = vae_forward(params, observed, goals, batch_split, kn2,
                                             prediction_truth=prediction_truth,
                                             training=True)
    jax.block_until_ready((rel_t, pred_t, zxy_t))
    assert rel_t[0].shape == (obs_len - 1 + 4, num_tracks, 5)
    assert pred_t[0].shape == (obs_len - 1 + 4, num_tracks, 2)
    assert zxy_t.shape == (num_tracks, 2 * L)
    assert zx_t is None
    assert bool(jnp.all(jnp.isfinite(rel_t[0]))) and bool(jnp.all(jnp.isfinite(zxy_t)))

    print("KERNEL_OK")
</pallas_src>

<mosaic_0001>
module attributes {stable_mosaic.version = 11 : i64} {
  func.func @kernel(%arg0: memref<9x8x2xf32, #tpu.memory_space<vmem>>, %arg1: memref<5x8x2xf32, #tpu.memory_space<vmem>>, %arg2: memref<8x1xf32, #tpu.memory_space<vmem>>, %arg3: memref<8x128xf32, #tpu.memory_space<vmem>>, %arg4: memref<2x128xf32, #tpu.memory_space<vmem>>, %arg5: memref<1x128xf32, #tpu.memory_space<vmem>>, %arg6: memref<128x512xbf16, #tpu.memory_space<vmem>>, %arg7: memref<128x512xbf16, #tpu.memory_space<vmem>>, %arg8: memref<1x512xf32, #tpu.memory_space<vmem>>, %arg9: memref<128x512xbf16, #tpu.memory_space<vmem>>, %arg10: memref<128x512xbf16, #tpu.memory_space<vmem>>, %arg11: memref<1x512xf32, #tpu.memory_space<vmem>>, %arg12: memref<128x128xbf16, #tpu.memory_space<vmem>>, %arg13: memref<1x128xf32, #tpu.memory_space<vmem>>, %arg14: memref<128x128xbf16, #tpu.memory_space<vmem>>, %arg15: memref<1x128xf32, #tpu.memory_space<vmem>>, %arg16: memref<12x8x128xf32, #tpu.memory_space<vmem>>) attributes {dimension_semantics = [], scalar_prefetch = 0 : i64, scratch_operands = 0 : i64, tpu.core_type = #tpu.core_type<tc>} {
    %c0 = arith.constant 0 : index
    %c0_0 = arith.constant 0 : index
    %0 = vector.load %arg4[%c0, %c0_0] : memref<2x128xf32, #tpu.memory_space<vmem>>, vector<2x128xf32>
    %c0_1 = arith.constant 0 : index
    %c0_2 = arith.constant 0 : index
    %1 = vector.load %arg5[%c0_1, %c0_2] : memref<1x128xf32, #tpu.memory_space<vmem>>, vector<1x128xf32>
    %c0_3 = arith.constant 0 : index
    %c0_4 = arith.constant 0 : index
    %2 = vector.load %arg13[%c0_3, %c0_4] : memref<1x128xf32, #tpu.memory_space<vmem>>, vector<1x128xf32>
    %c0_5 = arith.constant 0 : index
    %c0_6 = arith.constant 0 : index
    %3 = vector.load %arg2[%c0_5, %c0_6] : memref<8x1xf32, #tpu.memory_space<vmem>>, vector<8x1xf32>
    %cst = arith.constant 5.000000e-01 : f32
    %4 = vector.broadcast %cst : f32 to vector<8x1xf32>
    %5 = arith.cmpf ogt, %3, %4 : vector<8x1xf32>
    %cst_7 = arith.constant 0.000000e+00 : f32
    %6 = vector.broadcast %cst_7 : f32 to vector<8x128xf32>
    %c0_8 = arith.constant 0 : index
    %c0_9 = arith.constant 0 : index
    %7 = vector.load %arg8[%c0_8, %c0_9] : memref<1x512xf32, #tpu.memory_space<vmem>>, vector<1x512xf32>
    %c0_10 = arith.constant 0 : index
    %c0_11 = arith.constant 0 : index
    %c0_12 = arith.constant 0 : index
    %8 = vector.load %arg0[%c0_10, %c0_11, %c0_12] : memref<9x8x2xf32, #tpu.memory_space<vmem>>, vector<1x8x2xf32>
    %9 = vector.shape_cast %8 : vector<1x8x2xf32> to vector<8x2xf32>
    %c1 = arith.constant 1 : index
    %c0_13 = arith.constant 0 : index
    %c0_14 = arith.constant 0 : index
    %10 = vector.load %arg0[%c1, %c0_13, %c0_14] : memref<9x8x2xf32, #tpu.memory_space<vmem>>, vector<1x8x2xf32>
    %11 = vector.shape_cast %10 : vector<1x8x2xf32> to vector<8x2xf32>
    %12 = vector.extract_strided_slice %9 {offsets = [0, 0], sizes = [8, 1], strides = [1, 1]} : vector<8x2xf32> to vector<8x1xf32>
    %13 = arith.cmpf one, %12, %12 : vector<8x1xf32>
    %14 = vector.extract_strided_slice %11 {offsets = [0, 0], sizes = [8, 1], strides = [1, 1]} : vector<8x2xf32> to vector<8x1xf32>
    %15 = arith.cmpf one, %14, %14 : vector<8x1xf32>
    %16 = arith.ori %13, %15 : vector<8x1xi1>
    %cst_15 = arith.constant dense<true> : vector<8x1xi1>
    %17 = arith.xori %16, %cst_15 : vector<8x1xi1>
    %18 = arith.subf %11, %9 : vector<8x2xf32>
    %cst_16 = arith.constant 0.000000e+00 : f32
    %19 = vector.shape_cast %17 : vector<8x1xi1> to vector<8x1xi1>
    %20 = vector.broadcast %19 : vector<8x1xi1> to vector<8x2xi1>
    %21 = vector.broadcast %cst_16 : f32 to vector<8x2xf32>
    %22 = arith.select %20, %18, %21 : vector<8x2xi1>, vector<8x2xf32>
    %cst_17 = arith.constant 4.000000e+00 : f32
    %23 = vector.broadcast %cst_17 : f32 to vector<8x2xf32>
    %24 = arith.mulf %23, %22 : vector<8x2xf32>
    %25 = vector.extract_strided_slice %24 {offsets = [0, 0], sizes = [8, 1], strides = [1, 1]} : vector<8x2xf32> to vector<8x1xf32>
    %26 = vector.extract_strided_slice %0 {offsets = [0, 0], sizes = [1, 128], strides = [1, 1]} : vector<2x128xf32> to vector<1x128xf32>
    %27 = vector.broadcast %25 : vector<8x1xf32> to vector<8x128xf32>
    %28 = vector.broadcast %26 : vector<1x128xf32> to vector<8x128xf32>
    %29 = arith.mulf %27, %28 : vector<8x128xf32>
    %30 = vector.extract_strided_slice %24 {offsets = [0, 1], sizes = [8, 1], strides = [1, 1]} : vector<8x2xf32> to vector<8x1xf32>
    %31 = vector.extract_strided_slice %0 {offsets = [1, 0], sizes = [1, 128], strides = [1, 1]} : vector<2x128xf32> to vector<1x128xf32>
    %32 = vector.broadcast %30 : vector<8x1xf32> to vector<8x128xf32>
    %33 = vector.broadcast %31 : vector<1x128xf32> to vector<8x128xf32>
    %34 = arith.mulf %32, %33 : vector<8x128xf32>
    %35 = arith.addf %29, %34 : vector<8x128xf32>
    %36 = vector.broadcast %1 : vector<1x128xf32> to vector<8x128xf32>
    %37 = arith.addf %35, %36 : vector<8x128xf32>
    %cst_18 = arith.constant 0.000000e+00 : f32
    %38 = vector.broadcast %cst_18 : f32 to vector<8x128xf32>
    %39 = arith.maximumf %37, %38 : vector<8x128xf32>
    %40 = arith.truncf %6 : vector<8x128xf32> to vector<8x128xbf16>
    %c0_19 = arith.constant 0 : index
    %c0_20 = arith.constant 0 : index
    %41 = vector.load %arg6[%c0_19, %c0_20] : memref<128x512xbf16, #tpu.memory_space<vmem>>, vector<128x512xbf16>
    %cst_21 = arith.constant dense<0.000000e+00> : vector<8x512xf32>
    %42 = tpu.matmul %40, %41, %cst_21 {dimension_numbers = #tpu.dot_dimension_numbers<[1], [0], [0], [1], [0, 0, 1, 1], [], []>} : vector<8x128xbf16>, vector<128x512xbf16>, vector<8x512xf32> -> vector<8x512xf32>
    %43 = arith.truncf %39 : vector<8x128xf32> to vector<8x128xbf16>
    %c0_22 = arith.constant 0 : index
    %c0_23 = arith.constant 0 : index
    %44 = vector.load %arg7[%c0_22, %c0_23] : memref<128x512xbf16, #tpu.memory_space<vmem>>, vector<128x512xbf16>
    %cst_24 = arith.constant dense<0.000000e+00> : vector<8x512xf32>
    %45 = tpu.matmul %43, %44, %cst_24 {dimension_numbers = #tpu.dot_dimension_numbers<[1], [0], [0], [1], [0, 0, 1, 1], [], []>} : vector<8x128xbf16>, vector<128x512xbf16>, vector<8x512xf32> -> vector<8x512xf32>
    %46 = arith.addf %42, %45 : vector<8x512xf32>
    %47 = vector.broadcast %7 : vector<1x512xf32> to vector<8x512xf32>
    %48 = arith.addf %46, %47 : vector<8x512xf32>
    %49 = vector.extract_strided_slice %48 {offsets = [0, 0], sizes = [8, 128], strides = [1, 1]} : vector<8x512xf32> to vector<8x128xf32>
    %50 = arith.negf %49 : vector<8x128xf32>
    %51 = math.exp %50 : vector<8x128xf32>
    %cst_25 = arith.constant 1.000000e+00 : f32
    %52 = vector.broadcast %cst_25 : f32 to vector<8x128xf32>
    %53 = arith.addf %52, %51 : vector<8x128xf32>
    %54 = arith.divf %52, %53 : vector<8x128xf32>
    %55 = vector.extract_strided_slice %48 {offsets = [0, 128], sizes = [8, 128], strides = [1, 1]} : vector<8x512xf32> to vector<8x128xf32>
    %56 = arith.negf %55 : vector<8x128xf32>
    %57 = math.exp %56 : vector<8x128xf32>
    %cst_26 = arith.constant 1.000000e+00 : f32
    %58 = vector.broadcast %cst_26 : f32 to vector<8x128xf32>
    %59 = arith.addf %58, %57 : vector<8x128xf32>
    %60 = arith.divf %58, %59 : vector<8x128xf32>
    %61 = vector.extract_strided_slice %48 {offsets = [0, 256], sizes = [8, 128], strides = [1, 1]} : vector<8x512xf32> to vector<8x128xf32>
    %62 = math.tanh %61 : vector<8x128xf32>
    %63 = vector.extract_strided_slice %48 {offsets = [0, 384], sizes = [8, 128], strides = [1, 1]} : vector<8x512xf32> to vector<8x128xf32>
    %64 = arith.negf %63 : vector<8x128xf32>
    %65 = math.exp %64 : vector<8x128xf32>
    %cst_27 = arith.constant 1.000000e+00 : f32
    %66 = vector.broadcast %cst_27 : f32 to vector<8x128xf32>
    %67 = arith.addf %66, %65 : vector<8x128xf32>
    %68 = arith.divf %66, %67 : vector<8x128xf32>
    %69 = arith.mulf %60, %6 : vector<8x128xf32>
    %70 = arith.mulf %54, %62 : vector<8x128xf32>
    %71 = arith.addf %69, %70 : vector<8x128xf32>
    %72 = math.tanh %71 : vector<8x128xf32>
    %73 = arith.mulf %68, %72 : vector<8x128xf32>
    %74 = arith.truncf %73 : vector<8x128xf32> to vector<8x128xbf16>
    %c0_28 = arith.constant 0 : index
    %c0_29 = arith.constant 0 : index
    %75 = vector.load %arg12[%c0_28, %c0_29] : memref<128x128xbf16, #tpu.memory_space<vmem>>, vector<128x128xbf16>
    %cst_30 = arith.constant dense<0.000000e+00> : vector<8x128xf32>
    %76 = tpu.matmul %74, %75, %cst_30 {dimension_numbers = #tpu.dot_dimension_numbers<[1], [0], [0], [1], [0, 0, 1, 1], [], []>} : vector<8x128xbf16>, vector<128x128xbf16>, vector<8x128xf32> -> vector<8x128xf32>
    %77 = vector.broadcast %2 : vector<1x128xf32> to vector<8x128xf32>
    %78 = arith.addf %76, %77 : vector<8x128xf32>
    %cst_31 = arith.constant 0x7FC00000 : f32
    %79 = vector.shape_cast %17 : vector<8x1xi1> to vector<8x1xi1>
    %80 = vector.broadcast %79 : vector<8x1xi1> to vector<8x128xi1>
    %81 = vector.broadcast %cst_31 : f32 to vector<8x128xf32>
    %82 = arith.select %80, %78, %81 : vector<8x128xi1>, vector<8x128xf32>
    %83 = vector.shape_cast %17 : vector<8x1xi1> to vector<8x1xi1>
    %84 = vector.broadcast %83 : vector<8x1xi1> to vector<8x128xi1>
    %85 = arith.select %84, %73, %6 : vector<8x128xi1>, vector<8x128xf32>
    %86 = vector.shape_cast %17 : vector<8x1xi1> to vector<8x1xi1>
    %87 = vector.broadcast %86 : vector<8x1xi1> to vector<8x128xi1>
    %88 = arith.select %87, %71, %6 : vector<8x128xi1>, vector<8x128xf32>
    %89 = vector.extract_strided_slice %82 {offsets = [0, 0], sizes = [8, 2], strides = [1, 1]} : vector<8x128xf32> to vector<8x2xf32>
    %90 = arith.addf %11, %89 : vector<8x2xf32>
    %91 = tpu.iota {dimensions = array<i32: 1>} : vector<8x128xi32>
    %c5_i32 = arith.constant 5 : i32
    %92 = vector.broadcast %c5_i32 : i32 to vector<8x128xi32>
    %93 = arith.cmpi eq, %91, %92 : vector<8x128xi32>
    %94 = vector.extract_strided_slice %90 {offsets = [0, 0], sizes = [8, 1], strides = [1, 1]} : vector<8x2xf32> to vector<8x1xf32>
    %c6_i32 = arith.constant 6 : i32
    %95 = vector.broadcast %c6_i32 : i32 to vector<8x128xi32>
    %96 = arith.cmpi eq, %91, %95 : vector<8x128xi32>
    %97 = vector.extract_strided_slice %90 {offsets = [0, 1], sizes = [8, 1], strides = [1, 1]} : vector<8x2xf32> to vector<8x1xf32>
    %98 = vector.shape_cast %97 : vector<8x1xf32> to vector<8x1xf32>
    %99 = vector.broadcast %98 : vector<8x1xf32> to vector<8x128xf32>
    %100 = arith.select %96, %99, %82 : vector<8x128xi1>, vector<8x128xf32>
    %101 = vector.shape_cast %94 : vector<8x1xf32> to vector<8x1xf32>
    %102 = vector.broadcast %101 : vector<8x1xf32> to vector<8x128xf32>
    %103 = arith.select %93, %102, %100 : vector<8x128xi1>, vector<8x128xf32>
    %c0_32 = arith.constant 0 : index
    %c0_33 = arith.constant 0 : index
    %c0_34 = arith.constant 0 : index
    %104 = vector.load %arg16[%c0_32, %c0_33, %c0_34] : memref<12x8x128xf32, #tpu.memory_space<vmem>>, vector<1x8x128xf32>
    %105 = vector.shape_cast %104 : vector<1x8x128xf32> to vector<8x128xf32>
    %106 = vector.shape_cast %103 : vector<8x128xf32> to vector<1x8x128xf32>
    tpu.vector_store %arg16[%c0_32, %c0_33, %c0_34], %106 {strides = array<i32>} : memref<12x8x128xf32, #tpu.memory_space<vmem>>, vector<1x8x128xf32>,
    %c1_35 = arith.constant 1 : index
    %c0_36 = arith.constant 0 : index
    %c0_37 = arith.constant 0 : index
    %107 = vector.load %arg0[%c1_35, %c0_36, %c0_37] : memref<9x8x2xf32, #tpu.memory_space<vmem>>, vector<1x8x2xf32>
    %108 = vector.shape_cast %107 : vector<1x8x2xf32> to vector<8x2xf32>
    %c2 = arith.constant 2 : index
    %c0_38 = arith.constant 0 : index
    %c0_39 = arith.constant 0 : index
    %109 = vector.load %arg0[%c2, %c0_38, %c0_39] : memref<9x8x2xf32, #tpu.memory_space<vmem>>, vector<1x8x2xf32>
    %110 = vector.shape_cast %109 : vector<1x8x2xf32> to vector<8x2xf32>
    %111 = vector.extract_strided_slice %108 {offsets = [0, 0], sizes = [8, 1], strides = [1, 1]} : vector<8x2xf32> to vector<8x1xf32>
    %112 = arith.cmpf one, %111, %111 : vector<8x1xf32>
    %113 = vector.extract_strided_slice %110 {offsets = [0, 0], sizes = [8, 1], strides = [1, 1]} : vector<8x2xf32> to vector<8x1xf32>
    %114 = arith.cmpf one, %113, %113 : vector<8x1xf32>
    %115 = arith.ori %112, %114 : vector<8x1xi1>
    %cst_40 = arith.constant dense<true> : vector<8x1xi1>
    %116 = arith.xori %115, %cst_40 : vector<8x1xi1>
    %117 = arith.subf %110, %108 : vector<8x2xf32>
    %cst_41 = arith.constant 0.000000e+00 : f32
    %118 = vector.shape_cast %116 : vector<8x1xi1> to vector<8x1xi1>
    %119 = vector.broadcast %118 : vector<8x1xi1> to vector<8x2xi1>
    %120 = vector.broadcast %cst_41 : f32 to vector<8x2xf32>
    %121 = arith.select %119, %117, %120 : vector<8x2xi1>, vector<8x2xf32>
    %cst_42 = arith.constant 4.000000e+00 : f32
    %122 = vector.broadcast %cst_42 : f32 to vector<8x2xf32>
    %123 = arith.mulf %122, %121 : vector<8x2xf32>
    %124 = vector.extract_strided_slice %123 {offsets = [0, 0], sizes = [8, 1], strides = [1, 1]} : vector<8x2xf32> to vector<8x1xf32>
    %125 = vector.extract_strided_slice %0 {offsets = [0, 0], sizes = [1, 128], strides = [1, 1]} : vector<2x128xf32> to vector<1x128xf32>
    %126 = vector.broadcast %124 : vector<8x1xf32> to vector<8x128xf32>
    %127 = vector.broadcast %125 : vector<1x128xf32> to vector<8x128xf32>
    %128 = arith.mulf %126, %127 : vector<8x128xf32>
    %129 = vector.extract_strided_slice %123 {offsets = [0, 1], sizes = [8, 1], strides = [1, 1]} : vector<8x2xf32> to vector<8x1xf32>
    %130 = vector.extract_strided_slice %0 {offsets = [1, 0], sizes = [1, 128], strides = [1, 1]} : vector<2x128xf32> to vector<1x128xf32>
    %131 = vector.broadcast %129 : vector<8x1xf32> to vector<8x128xf32>
    %132 = vector.broadcast %130 : vector<1x128xf32> to vector<8x128xf32>
    %133 = arith.mulf %131, %132 : vector<8x128xf32>
    %134 = arith.addf %128, %133 : vector<8x128xf32>
    %135 = vector.broadcast %1 : vector<1x128xf32> to vector<8x128xf32>
    %136 = arith.addf %134, %135 : vector<8x128xf32>
    %cst_43 = arith.constant 0.000000e+00 : f32
    %137 = vector.broadcast %cst_43 : f32 to vector<8x128xf32>
    %138 = arith.maximumf %136, %137 : vector<8x128xf32>
    %139 = arith.truncf %85 : vector<8x128xf32> to vector<8x128xbf16>
    %c0_44 = arith.constant 0 : index
    %c0_45 = arith.constant 0 : index
    %140 = vector.load %arg6[%c0_44, %c0_45] : memref<128x512xbf16, #tpu.memory_space<vmem>>, vector<128x512xbf16>
    %cst_46 = arith.constant dense<0.000000e+00> : vector<8x512xf32>
    %141 = tpu.matmul %139, %140, %cst_46 {dimension_numbers = #tpu.dot_dimension_numbers<[1], [0], [0], [1], [0, 0, 1, 1], [], []>} : vector<8x128xbf16>, vector<128x512xbf16>, vector<8x512xf32> -> vector<8x512xf32>
    %142 = arith.truncf %138 : vector<8x128xf32> to vector<8x128xbf16>
    %c0_47 = arith.constant 0 : index
    %c0_48 = arith.constant 0 : index
    %143 = vector.load %arg7[%c0_47, %c0_48] : memref<128x512xbf16, #tpu.memory_space<vmem>>, vector<128x512xbf16>
    %cst_49 = arith.constant dense<0.000000e+00> : vector<8x512xf32>
    %144 = tpu.matmul %142, %143, %cst_49 {dimension_numbers = #tpu.dot_dimension_numbers<[1], [0], [0], [1], [0, 0, 1, 1], [], []>} : vector<8x128xbf16>, vector<128x512xbf16>, vector<8x512xf32> -> vector<8x512xf32>
    %145 = arith.addf %141, %144 : vector<8x512xf32>
    %146 = vector.broadcast %7 : vector<1x512xf32> to vector<8x512xf32>
    %147 = arith.addf %145, %146 : vector<8x512xf32>
    %148 = vector.extract_strided_slice %147 {offsets = [0, 0], sizes = [8, 128], strides = [1, 1]} : vector<8x512xf32> to vector<8x128xf32>
    %149 = arith.negf %148 : vector<8x128xf32>
    %150 = math.exp %149 : vector<8x128xf32>
    %cst_50 = arith.constant 1.000000e+00 : f32
    %151 = vector.broadcast %cst_50 : f32 to vector<8x128xf32>
    %152 = arith.addf %151, %150 : vector<8x128xf32>
    %153 = arith.divf %151, %152 : vector<8x128xf32>
    %154 = vector.extract_strided_slice %147 {offsets = [0, 128], sizes = [8, 128], strides = [1, 1]} : vector<8x512xf32> to vector<8x128xf32>
    %155 = arith.negf %154 : vector<8x128xf32>
    %156 = math.exp %155 : vector<8x128xf32>
    %cst_51 = arith.constant 1.000000e+00 : f32
    %157 = vector.broadcast %cst_51 : f32 to vector<8x128xf32>
    %158 = arith.addf %157, %156 : vector<8x128xf32>
    %159 = arith.divf %157, %158 : vector<8x128xf32>
    %160 = vector.extract_strided_slice %147 {offsets = [0, 256], sizes = [8, 128], strides = [1, 1]} : vector<8x512xf32> to vector<8x128xf32>
    %161 = math.tanh %160 : vector<8x128xf32>
    %162 = vector.extract_strided_slice %147 {offsets = [0, 384], sizes = [8, 128], strides = [1, 1]} : vector<8x512xf32> to vector<8x128xf32>
    %163 = arith.negf %162 : vector<8x128xf32>
    %164 = math.exp %163 : vector<8x128xf32>
    %cst_52 = arith.constant 1.000000e+00 : f32
    %165 = vector.broadcast %cst_52 : f32 to vector<8x128xf32>
    %166 = arith.addf %165, %164 : vector<8x128xf32>
    %167 = arith.divf %165, %166 : vector<8x128xf32>
    %168 = arith.mulf %159, %88 : vector<8x128xf32>
    %169 = arith.mulf %153, %161 : vector<8x128xf32>
    %170 = arith.addf %168, %169 : vector<8x128xf32>
    %171 = math.tanh %170 : vector<8x128xf32>
    %172 = arith.mulf %167, %171 : vector<8x128xf32>
    %173 = arith.truncf %172 : vector<8x128xf32> to vector<8x128xbf16>
    %c0_53 = arith.constant 0 : index
    %c0_54 = arith.constant 0 : index
    %174 = vector.load %arg12[%c0_53, %c0_54] : memref<128x128xbf16, #tpu.memory_space<vmem>>, vector<128x128xbf16>
    %cst_55 = arith.constant dense<0.000000e+00> : vector<8x128xf32>
    %175 = tpu.matmul %173, %174, %cst_55 {dimension_numbers = #tpu.dot_dimension_numbers<[1], [0], [0], [1], [0, 0, 1, 1], [], []>} : vector<8x128xbf16>, vector<128x128xbf16>, vector<8x128xf32> -> vector<8x128xf32>
    %176 = vector.broadcast %2 : vector<1x128xf32> to vector<8x128xf32>
    %177 = arith.addf %175, %176 : vector<8x128xf32>
    %cst_56 = arith.constant 0x7FC00000 : f32
    %178 = vector.shape_cast %116 : vector<8x1xi1> to vector<8x1xi1>
    %179 = vector.broadcast %178 : vector<8x1xi1> to vector<8x128xi1>
    %180 = vector.broadcast %cst_56 : f32 to vector<8x128xf32>
    %181 = arith.select %179, %177, %180 : vector<8x128xi1>, vector<8x128xf32>
    %182 = vector.shape_cast %116 : vector<8x1xi1> to vector<8x1xi1>
    %183 = vector.broadcast %182 : vector<8x1xi1> to vector<8x128xi1>
    %184 = arith.select %183, %172, %85 : vector<8x128xi1>, vector<8x128xf32>
    %185 = vector.shape_cast %116 : vector<8x1xi1> to vector<8x1xi1>
    %186 = vector.broadcast %185 : vector<8x1xi1> to vector<8x128xi1>
    %187 = arith.select %186, %170, %88 : vector<8x128xi1>, vector<8x128xf32>
    %188 = vector.extract_strided_slice %181 {offsets = [0, 0], sizes = [8, 2], strides = [1, 1]} : vector<8x128xf32> to vector<8x2xf32>
    %189 = arith.addf %110, %188 : vector<8x2xf32>
    %190 = tpu.iota {dimensions = array<i32: 1>} : vector<8x128xi32>
    %c5_i32_57 = arith.constant 5 : i32
    %191 = vector.broadcast %c5_i32_57 : i32 to vector<8x128xi32>
    %192 = arith.cmpi eq, %190, %191 : vector<8x128xi32>
    %193 = vector.extract_strided_slice %189 {offsets = [0, 0], sizes = [8, 1], strides = [1, 1]} : vector<8x2xf32> to vector<8x1xf32>
    %c6_i32_58 = arith.constant 6 : i32
    %194 = vector.broadcast %c6_i32_58 : i32 to vector<8x128xi32>
    %195 = arith.cmpi eq, %190, %194 : vector<8x128xi32>
    %196 = vector.extract_strided_slice %189 {offsets = [0, 1], sizes = [8, 1], strides = [1, 1]} : vector<8x2xf32> to vector<8x1xf32>
    %197 = vector.shape_cast %196 : vector<8x1xf32> to vector<8x1xf32>
    %198 = vector.broadcast %197 : vector<8x1xf32> to vector<8x128xf32>
    %199 = arith.select %195, %198, %181 : vector<8x128xi1>, vector<8x128xf32>
    %200 = vector.shape_cast %193 : vector<8x1xf32> to vector<8x1xf32>
    %201 = vector.broadcast %200 : vector<8x1xf32> to vector<8x128xf32>
    %202 = arith.select %192, %201, %199 : vector<8x128xi1>, vector<8x128xf32>
    %c1_59 = arith.constant 1 : index
    %c0_60 = arith.constant 0 : index
    %c0_61 = arith.constant 0 : index
    %203 = vector.load %arg16[%c1_59, %c0_60, %c0_61] : memref<12x8x128xf32, #tpu.memory_space<vmem>>, vector<1x8x128xf32>
    %204 = vector.shape_cast %203 : vector<1x8x128xf32> to vector<8x128xf32>
    %205 = vector.shape_cast %202 : vector<8x128xf32> to vector<1x8x128xf32>
    tpu.vector_store %arg16[%c1_59, %c0_60, %c0_61], %205 {strides = array<i32>} : memref<12x8x128xf32, #tpu.memory_space<vmem>>, vector<1x8x128xf32>,
    %c2_62 = arith.constant 2 : index
    %c0_63 = arith.constant 0 : index
    %c0_64 = arith.constant 0 : index
    %206 = vector.load %arg0[%c2_62, %c0_63, %c0_64] : memref<9x8x2xf32, #tpu.memory_space<vmem>>, vector<1x8x2xf32>
    %207 = vector.shape_cast %206 : vector<1x8x2xf32> to vector<8x2xf32>
    %c3 = arith.constant 3 : index
    %c0_65 = arith.constant 0 : index
    %c0_66 = arith.constant 0 : index
    %208 = vector.load %arg0[%c3, %c0_65, %c0_66] : memref<9x8x2xf32, #tpu.memory_space<vmem>>, vector<1x8x2xf32>
    %209 = vector.shape_cast %208 : vector<1x8x2xf32> to vector<8x2xf32>
    %210 = vector.extract_strided_slice %207 {offsets = [0, 0], sizes = [8, 1], strides = [1, 1]} : vector<8x2xf32> to vector<8x1xf32>
    %211 = arith.cmpf one, %210, %210 : vector<8x1xf32>
    %212 = vector.extract_strided_slice %209 {offsets = [0, 0], sizes = [8, 1], strides = [1, 1]} : vector<8x2xf32> to vector<8x1xf32>
    %213 = arith.cmpf one, %212, %212 : vector<8x1xf32>
    %214 = arith.ori %211, %213 : vector<8x1xi1>
    %cst_67 = arith.constant dense<true> : vector<8x1xi1>
    %215 = arith.xori %214, %cst_67 : vector<8x1xi1>
    %216 = arith.subf %209, %207 : vector<8x2xf32>
    %cst_68 = arith.constant 0.000000e+00 : f32
    %217 = vector.shape_cast %215 : vector<8x1xi1> to vector<8x1xi1>
    %218 = vector.broadcast %217 : vector<8x1xi1> to vector<8x2xi1>
    %219 = vector.broadcast %cst_68 : f32 to vector<8x2xf32>
    %220 = arith.select %218, %216, %219 : vector<8x2xi1>, vector<8x2xf32>
    %cst_69 = arith.constant 4.000000e+00 : f32
    %221 = vector.broadcast %cst_69 : f32 to vector<8x2xf32>
    %222 = arith.mulf %221, %220 : vector<8x2xf32>
    %223 = vector.extract_strided_slice %222 {offsets = [0, 0], sizes = [8, 1], strides = [1, 1]} : vector<8x2xf32> to vector<8x1xf32>
    %224 = vector.extract_strided_slice %0 {offsets = [0, 0], sizes = [1, 128], strides = [1, 1]} : vector<2x128xf32> to vector<1x128xf32>
    %225 = vector.broadcast %223 : vector<8x1xf32> to vector<8x128xf32>
    %226 = vector.broadcast %224 : vector<1x128xf32> to vector<8x128xf32>
    %227 = arith.mulf %225, %226 : vector<8x128xf32>
    %228 = vector.extract_strided_slice %222 {offsets = [0, 1], sizes = [8, 1], strides = [1, 1]} : vector<8x2xf32> to vector<8x1xf32>
    %229 = vector.extract_strided_slice %0 {offsets = [1, 0], sizes = [1, 128], strides = [1, 1]} : vector<2x128xf32> to vector<1x128xf32>
    %230 = vector.broadcast %228 : vector<8x1xf32> to vector<8x128xf32>
    %231 = vector.broadcast %229 : vector<1x128xf32> to vector<8x128xf32>
    %232 = arith.mulf %230, %231 : vector<8x128xf32>
    %233 = arith.addf %227, %232 : vector<8x128xf32>
    %234 = vector.broadcast %1 : vector<1x128xf32> to vector<8x128xf32>
    %235 = arith.addf %233, %234 : vector<8x128xf32>
    %cst_70 = arith.constant 0.000000e+00 : f32
    %236 = vector.broadcast %cst_70 : f32 to vector<8x128xf32>
    %237 = arith.maximumf %235, %236 : vector<8x128xf32>
    %238 = arith.truncf %184 : vector<8x128xf32> to vector<8x128xbf16>
    %c0_71 = arith.constant 0 : index
    %c0_72 = arith.constant 0 : index
    %239 = vector.load %arg6[%c0_71, %c0_72] : memref<128x512xbf16, #tpu.memory_space<vmem>>, vector<128x512xbf16>
    %cst_73 = arith.constant dense<0.000000e+00> : vector<8x512xf32>
    %240 = tpu.matmul %238, %239, %cst_73 {dimension_numbers = #tpu.dot_dimension_numbers<[1], [0], [0], [1], [0, 0, 1, 1], [], []>} : vector<8x128xbf16>, vector<128x512xbf16>, vector<8x512xf32> -> vector<8x512xf32>
    %241 = arith.truncf %237 : vector<8x128xf32> to vector<8x128xbf16>
    %c0_74 = arith.constant 0 : index
    %c0_75 = arith.constant 0 : index
    %242 = vector.load %arg7[%c0_74, %c0_75] : memref<128x512xbf16, #tpu.memory_space<vmem>>, vector<128x512xbf16>
    %cst_76 = arith.constant dense<0.000000e+00> : vector<8x512xf32>
    %243 = tpu.matmul %241, %242, %cst_76 {dimension_numbers = #tpu.dot_dimension_numbers<[1], [0], [0], [1], [0, 0, 1, 1], [], []>} : vector<8x128xbf16>, vector<128x512xbf16>, vector<8x512xf32> -> vector<8x512xf32>
    %244 = arith.addf %240, %243 : vector<8x512xf32>
    %245 = vector.broadcast %7 : vector<1x512xf32> to vector<8x512xf32>
    %246 = arith.addf %244, %245 : vector<8x512xf32>
    %247 = vector.extract_strided_slice %246 {offsets = [0, 0], sizes = [8, 128], strides = [1, 1]} : vector<8x512xf32> to vector<8x128xf32>
    %248 = arith.negf %247 : vector<8x128xf32>
    %249 = math.exp %248 : vector<8x128xf32>
    %cst_77 = arith.constant 1.000000e+00 : f32
    %250 = vector.broadcast %cst_77 : f32 to vector<8x128xf32>
    %251 = arith.addf %250, %249 : vector<8x128xf32>
    %252 = arith.divf %250, %251 : vector<8x128xf32>
    %253 = vector.extract_strided_slice %246 {offsets = [0, 128], sizes = [8, 128], strides = [1, 1]} : vector<8x512xf32> to vector<8x128xf32>
    %254 = arith.negf %253 : vector<8x128xf32>
    %255 = math.exp %254 : vector<8x128xf32>
    %cst_78 = arith.constant 1.000000e+00 : f32
    %256 = vector.broadcast %cst_78 : f32 to vector<8x128xf32>
    %257 = arith.addf %256, %255 : vector<8x128xf32>
    %258 = arith.divf %256, %257 : vector<8x128xf32>
    %259 = vector.extract_strided_slice %246 {offsets = [0, 256], sizes = [8, 128], strides = [1, 1]} : vector<8x512xf32> to vector<8x128xf32>
    %260 = math.tanh %259 : vector<8x128xf32>
    %261 = vector.extract_strided_slice %246 {offsets = [0, 384], sizes = [8, 128], strides = [1, 1]} : vector<8x512xf32> to vector<8x128xf32>
    %262 = arith.negf %261 : vector<8x128xf32>
    %263 = math.exp %262 : vector<8x128xf32>
    %cst_79 = arith.constant 1.000000e+00 : f32
    %264 = vector.broadcast %cst_79 : f32 to vector<8x128xf32>
    %265 = arith.addf %264, %263 : vector<8x128xf32>
    %266 = arith.divf %264, %265 : vector<8x128xf32>
    %267 = arith.mulf %258, %187 : vector<8x128xf32>
    %268 = arith.mulf %252, %260 : vector<8x128xf32>
    %269 = arith.addf %267, %268 : vector<8x128xf32>
    %270 = math.tanh %269 : vector<8x128xf32>
    %271 = arith.mulf %266, %270 : vector<8x128xf32>
    %272 = arith.truncf %271 : vector<8x128xf32> to vector<8x128xbf16>
    %c0_80 = arith.constant 0 : index
    %c0_81 = arith.constant 0 : index
    %273 = vector.load %arg12[%c0_80, %c0_81] : memref<128x128xbf16, #tpu.memory_space<vmem>>, vector<128x128xbf16>
    %cst_82 = arith.constant dense<0.000000e+00> : vector<8x128xf32>
    %274 = tpu.matmul %272, %273, %cst_82 {dimension_numbers = #tpu.dot_dimension_numbers<[1], [0], [0], [1], [0, 0, 1, 1], [], []>} : vector<8x128xbf16>, vector<128x128xbf16>, vector<8x128xf32> -> vector<8x128xf32>
    %275 = vector.broadcast %2 : vector<1x128xf32> to vector<8x128xf32>
    %276 = arith.addf %274, %275 : vector<8x128xf32>
    %cst_83 = arith.constant 0x7FC00000 : f32
    %277 = vector.shape_cast %215 : vector<8x1xi1> to vector<8x1xi1>
    %278 = vector.broadcast %277 : vector<8x1xi1> to vector<8x128xi1>
    %279 = vector.broadcast %cst_83 : f32 to vector<8x128xf32>
    %280 = arith.select %278, %276, %279 : vector<8x128xi1>, vector<8x128xf32>
    %281 = vector.shape_cast %215 : vector<8x1xi1> to vector<8x1xi1>
    %282 = vector.broadcast %281 : vector<8x1xi1> to vector<8x128xi1>
    %283 = arith.select %282, %271, %184 : vector<8x128xi1>, vector<8x128xf32>
    %284 = vector.shape_cast %215 : vector<8x1xi1> to vector<8x1xi1>
    %285 = vector.broadcast %284 : vector<8x1xi1> to vector<8x128xi1>
    %286 = arith.select %285, %269, %187 : vector<8x128xi1>, vector<8x128xf32>
    %287 = vector.extract_strided_slice %280 {offsets = [0, 0], sizes = [8, 2], strides = [1, 1]} : vector<8x128xf32> to vector<8x2xf32>
    %288 = arith.addf %209, %287 : vector<8x2xf32>
    %289 = tpu.iota {dimensions = array<i32: 1>} : vector<8x128xi32>
    %c5_i32_84 = arith.constant 5 : i32
    %290 = vector.broadcast %c5_i32_84 : i32 to vector<8x128xi32>
    %291 = arith.cmpi eq, %289, %290 : vector<8x128xi32>
    %292 = vector.extract_strided_slice %288 {offsets = [0, 0], sizes = [8, 1], strides = [1, 1]} : vector<8x2xf32> to vector<8x1xf32>
    %c6_i32_85 = arith.constant 6 : i32
    %293 = vector.broadcast %c6_i32_85 : i32 to vector<8x128xi32>
    %294 = arith.cmpi eq, %289, %293 : vector<8x128xi32>
    %295 = vector.extract_strided_slice %288 {offsets = [0, 1], sizes = [8, 1], strides = [1, 1]} : vector<8x2xf32> to vector<8x1xf32>
    %296 = vector.shape_cast %295 : vector<8x1xf32> to vector<8x1xf32>
    %297 = vector.broadcast %296 : vector<8x1xf32> to vector<8x128xf32>
    %298 = arith.select %294, %297, %280 : vector<8x128xi1>, vector<8x128xf32>
    %299 = vector.shape_cast %292 : vector<8x1xf32> to vector<8x1xf32>
    %300 = vector.broadcast %299 : vector<8x1xf32> to vector<8x128xf32>
    %301 = arith.select %291, %300, %298 : vector<8x128xi1>, vector<8x128xf32>
    %c2_86 = arith.constant 2 : index
    %c0_87 = arith.constant 0 : index
    %c0_88 = arith.constant 0 : index
    %302 = vector.load %arg16[%c2_86, %c0_87, %c0_88] : memref<12x8x128xf32, #tpu.memory_space<vmem>>, vector<1x8x128xf32>
    %303 = vector.shape_cast %302 : vector<1x8x128xf32> to vector<8x128xf32>
    %304 = vector.shape_cast %301 : vector<8x128xf32> to vector<1x8x128xf32>
    tpu.vector_store %arg16[%c2_86, %c0_87, %c0_88], %304 {strides = array<i32>} : memref<12x8x128xf32, #tpu.memory_space<vmem>>, vector<1x8x128xf32>,
    %c3_89 = arith.constant 3 : index
    %c0_90 = arith.constant 0 : index
    %c0_91 = arith.constant 0 : index
    %305 = vector.load %arg0[%c3_89, %c0_90, %c0_91] : memref<9x8x2xf32, #tpu.memory_space<vmem>>, vector<1x8x2xf32>
    %306 = vector.shape_cast %305 : vector<1x8x2xf32> to vector<8x2xf32>
    %c4 = arith.constant 4 : index
    %c0_92 = arith.constant 0 : index
    %c0_93 = arith.constant 0 : index
    %307 = vector.load %arg0[%c4, %c0_92, %c0_93] : memref<9x8x2xf32, #tpu.memory_space<vmem>>, vector<1x8x2xf32>
    %308 = vector.shape_cast %307 : vector<1x8x2xf32> to vector<8x2xf32>
    %309 = vector.extract_strided_slice %306 {offsets = [0, 0], sizes = [8, 1], strides = [1, 1]} : vector<8x2xf32> to vector<8x1xf32>
    %310 = arith.cmpf one, %309, %309 : vector<8x1xf32>
    %311 = vector.extract_strided_slice %308 {offsets = [0, 0], sizes = [8, 1], strides = [1, 1]} : vector<8x2xf32> to vector<8x1xf32>
    %312 = arith.cmpf one, %311, %311 : vector<8x1xf32>
    %313 = arith.ori %310, %312 : vector<8x1xi1>
    %cst_94 = arith.constant dense<true> : vector<8x1xi1>
    %314 = arith.xori %313, %cst_94 : vector<8x1xi1>
    %315 = arith.subf %308, %306 : vector<8x2xf32>
    %cst_95 = arith.constant 0.000000e+00 : f32
    %316 = vector.shape_cast %314 : vector<8x1xi1> to vector<8x1xi1>
    %317 = vector.broadcast %316 : vector<8x1xi1> to vector<8x2xi1>
    %318 = vector.broadcast %cst_95 : f32 to vector<8x2xf32>
    %319 = arith.select %317, %315, %318 : vector<8x2xi1>, vector<8x2xf32>
    %cst_96 = arith.constant 4.000000e+00 : f32
    %320 = vector.broadcast %cst_96 : f32 to vector<8x2xf32>
    %321 = arith.mulf %320, %319 : vector<8x2xf32>
    %322 = vector.extract_strided_slice %321 {offsets = [0, 0], sizes = [8, 1], strides = [1, 1]} : vector<8x2xf32> to vector<8x1xf32>
    %323 = vector.extract_strided_slice %0 {offsets = [0, 0], sizes = [1, 128], strides = [1, 1]} : vector<2x128xf32> to vector<1x128xf32>
    %324 = vector.broadcast %322 : vector<8x1xf32> to vector<8x128xf32>
    %325 = vector.broadcast %323 : vector<1x128xf32> to vector<8x128xf32>
    %326 = arith.mulf %324, %325 : vector<8x128xf32>
    %327 = vector.extract_strided_slice %321 {offsets = [0, 1], sizes = [8, 1], strides = [1, 1]} : vector<8x2xf32> to vector<8x1xf32>
    %328 = vector.extract_strided_slice %0 {offsets = [1, 0], sizes = [1, 128], strides = [1, 1]} : vector<2x128xf32> to vector<1x128xf32>
    %329 = vector.broadcast %327 : vector<8x1xf32> to vector<8x128xf32>
    %330 = vector.broadcast %328 : vector<1x128xf32> to vector<8x128xf32>
    %331 = arith.mulf %329, %330 : vector<8x128xf32>
    %332 = arith.addf %326, %331 : vector<8x128xf32>
    %333 = vector.broadcast %1 : vector<1x128xf32> to vector<8x128xf32>
    %334 = arith.addf %332, %333 : vector<8x128xf32>
    %cst_97 = arith.constant 0.000000e+00 : f32
    %335 = vector.broadcast %cst_97 : f32 to vector<8x128xf32>
    %336 = arith.maximumf %334, %335 : vector<8x128xf32>
    %337 = arith.truncf %283 : vector<8x128xf32> to vector<8x128xbf16>
    %c0_98 = arith.constant 0 : index
    %c0_99 = arith.constant 0 : index
    %338 = vector.load %arg6[%c0_98, %c0_99] : memref<128x512xbf16, #tpu.memory_space<vmem>>, vector<128x512xbf16>
    %cst_100 = arith.constant dense<0.000000e+00> : vector<8x512xf32>
    %339 = tpu.matmul %337, %338, %cst_100 {dimension_numbers = #tpu.dot_dimension_numbers<[1], [0], [0], [1], [0, 0, 1, 1], [], []>} : vector<8x128xbf16>, vector<128x512xbf16>, vector<8x512xf32> -> vector<8x512xf32>
    %340 = arith.truncf %336 : vector<8x128xf32> to vector<8x128xbf16>
    %c0_101 = arith.constant 0 : index
    %c0_102 = arith.constant 0 : index
    %341 = vector.load %arg7[%c0_101, %c0_102] : memref<128x512xbf16, #tpu.memory_space<vmem>>, vector<128x512xbf16>
    %cst_103 = arith.constant dense<0.000000e+00> : vector<8x512xf32>
    %342 = tpu.matmul %340, %341, %cst_103 {dimension_numbers = #tpu.dot_dimension_numbers<[1], [0], [0], [1], [0, 0, 1, 1], [], []>} : vector<8x128xbf16>, vector<128x512xbf16>, vector<8x512xf32> -> vector<8x512xf32>
    %343 = arith.addf %339, %342 : vector<8x512xf32>
    %344 = vector.broadcast %7 : vector<1x512xf32> to vector<8x512xf32>
    %345 = arith.addf %343, %344 : vector<8x512xf32>
    %346 = vector.extract_strided_slice %345 {offsets = [0, 0], sizes = [8, 128], strides = [1, 1]} : vector<8x512xf32> to vector<8x128xf32>
    %347 = arith.negf %346 : vector<8x128xf32>
    %348 = math.exp %347 : vector<8x128xf32>
    %cst_104 = arith.constant 1.000000e+00 : f32
    %349 = vector.broadcast %cst_104 : f32 to vector<8x128xf32>
    %350 = arith.addf %349, %348 : vector<8x128xf32>
    %351 = arith.divf %349, %350 : vector<8x128xf32>
    %352 = vector.extract_strided_slice %345 {offsets = [0, 128], sizes = [8, 128], strides = [1, 1]} : vector<8x512xf32> to vector<8x128xf32>
    %353 = arith.negf %352 : vector<8x128xf32>
    %354 = math.exp %353 : vector<8x128xf32>
    %cst_105 = arith.constant 1.000000e+00 : f32
    %355 = vector.broadcast %cst_105 : f32 to vector<8x128xf32>
    %356 = arith.addf %355, %354 : vector<8x128xf32>
    %357 = arith.divf %355, %356 : vector<8x128xf32>
    %358 = vector.extract_strided_slice %345 {offsets = [0, 256], sizes = [8, 128], strides = [1, 1]} : vector<8x512xf32> to vector<8x128xf32>
    %359 = math.tanh %358 : vector<8x128xf32>
    %360 = vector.extract_strided_slice %345 {offsets = [0, 384], sizes = [8, 128], strides = [1, 1]} : vector<8x512xf32> to vector<8x128xf32>
    %361 = arith.negf %360 : vector<8x128xf32>
    %362 = math.exp %361 : vector<8x128xf32>
    %cst_106 = arith.constant 1.000000e+00 : f32
    %363 = vector.broadcast %cst_106 : f32 to vector<8x128xf32>
    %364 = arith.addf %363, %362 : vector<8x128xf32>
    %365 = arith.divf %363, %364 : vector<8x128xf32>
    %366 = arith.mulf %357, %286 : vector<8x128xf32>
    %367 = arith.mulf %351, %359 : vector<8x128xf32>
    %368 = arith.addf %366, %367 : vector<8x128xf32>
    %369 = math.tanh %368 : vector<8x128xf32>
    %370 = arith.mulf %365, %369 : vector<8x128xf32>
    %371 = arith.truncf %370 : vector<8x128xf32> to vector<8x128xbf16>
    %c0_107 = arith.constant 0 : index
    %c0_108 = arith.constant 0 : index
    %372 = vector.load %arg12[%c0_107, %c0_108] : memref<128x128xbf16, #tpu.memory_space<vmem>>, vector<128x128xbf16>
    %cst_109 = arith.constant dense<0.000000e+00> : vector<8x128xf32>
    %373 = tpu.matmul %371, %372, %cst_109 {dimension_numbers = #tpu.dot_dimension_numbers<[1], [0], [0], [1], [0, 0, 1, 1], [], []>} : vector<8x128xbf16>, vector<128x128xbf16>, vector<8x128xf32> -> vector<8x128xf32>
    %374 = vector.broadcast %2 : vector<1x128xf32> to vector<8x128xf32>
    %375 = arith.addf %373, %374 : vector<8x128xf32>
    %cst_110 = arith.constant 0x7FC00000 : f32
    %376 = vector.shape_cast %314 : vector<8x1xi1> to vector<8x1xi1>
    %377 = vector.broadcast %376 : vector<8x1xi1> to vector<8x128xi1>
    %378 = vector.broadcast %cst_110 : f32 to vector<8x128xf32>
    %379 = arith.select %377, %375, %378 : vector<8x128xi1>, vector<8x128xf32>
    %380 = vector.shape_cast %314 : vector<8x1xi1> to vector<8x1xi1>
    %381 = vector.broadcast %380 : vector<8x1xi1> to vector<8x128xi1>
    %382 = arith.select %381, %370, %283 : vector<8x128xi1>, vector<8x128xf32>
    %383 = vector.shape_cast %314 : vector<8x1xi1> to vector<8x1xi1>
    %384 = vector.broadcast %383 : vector<8x1xi1> to vector<8x128xi1>
    %385 = arith.select %384, %368, %286 : vector<8x128xi1>, vector<8x128xf32>
    %386 = vector.extract_strided_slice %379 {offsets = [0, 0], sizes = [8, 2], strides = [1, 1]} : vector<8x128xf32> to vector<8x2xf32>
    %387 = arith.addf %308, %386 : vector<8x2xf32>
    %388 = tpu.iota {dimensions = array<i32: 1>} : vector<8x128xi32>
    %c5_i32_111 = arith.constant 5 : i32
    %389 = vector.broadcast %c5_i32_111 : i32 to vector<8x128xi32>
    %390 = arith.cmpi eq, %388, %389 : vector<8x128xi32>
    %391 = vector.extract_strided_slice %387 {offsets = [0, 0], sizes = [8, 1], strides = [1, 1]} : vector<8x2xf32> to vector<8x1xf32>
    %c6_i32_112 = arith.constant 6 : i32
    %392 = vector.broadcast %c6_i32_112 : i32 to vector<8x128xi32>
    %393 = arith.cmpi eq, %388, %392 : vector<8x128xi32>
    %394 = vector.extract_strided_slice %387 {offsets = [0, 1], sizes = [8, 1], strides = [1, 1]} : vector<8x2xf32> to vector<8x1xf32>
    %395 = vector.shape_cast %394 : vector<8x1xf32> to vector<8x1xf32>
    %396 = vector.broadcast %395 : vector<8x1xf32> to vector<8x128xf32>
    %397 = arith.select %393, %396, %379 : vector<8x128xi1>, vector<8x128xf32>
    %398 = vector.shape_cast %391 : vector<8x1xf32> to vector<8x1xf32>
    %399 = vector.broadcast %398 : vector<8x1xf32> to vector<8x128xf32>
    %400 = arith.select %390, %399, %397 : vector<8x128xi1>, vector<8x128xf32>
    %c3_113 = arith.constant 3 : index
    %c0_114 = arith.constant 0 : index
    %c0_115 = arith.constant 0 : index
    %401 = vector.load %arg16[%c3_113, %c0_114, %c0_115] : memref<12x8x128xf32, #tpu.memory_space<vmem>>, vector<1x8x128xf32>
    %402 = vector.shape_cast %401 : vector<1x8x128xf32> to vector<8x128xf32>
    %403 = vector.shape_cast %400 : vector<8x128xf32> to vector<1x8x128xf32>
    tpu.vector_store %arg16[%c3_113, %c0_114, %c0_115], %403 {strides = array<i32>} : memref<12x8x128xf32, #tpu.memory_space<vmem>>, vector<1x8x128xf32>,
    %c4_116 = arith.constant 4 : index
    %c0_117 = arith.constant 0 : index
    %c0_118 = arith.constant 0 : index
    %404 = vector.load %arg0[%c4_116, %c0_117, %c0_118] : memref<9x8x2xf32, #tpu.memory_space<vmem>>, vector<1x8x2xf32>
    %405 = vector.shape_cast %404 : vector<1x8x2xf32> to vector<8x2xf32>
    %c5 = arith.constant 5 : index
    %c0_119 = arith.constant 0 : index
    %c0_120 = arith.constant 0 : index
    %406 = vector.load %arg0[%c5, %c0_119, %c0_120] : memref<9x8x2xf32, #tpu.memory_space<vmem>>, vector<1x8x2xf32>
    %407 = vector.shape_cast %406 : vector<1x8x2xf32> to vector<8x2xf32>
    %408 = vector.extract_strided_slice %405 {offsets = [0, 0], sizes = [8, 1], strides = [1, 1]} : vector<8x2xf32> to vector<8x1xf32>
    %409 = arith.cmpf one, %408, %408 : vector<8x1xf32>
    %410 = vector.extract_strided_slice %407 {offsets = [0, 0], sizes = [8, 1], strides = [1, 1]} : vector<8x2xf32> to vector<8x1xf32>
    %411 = arith.cmpf one, %410, %410 : vector<8x1xf32>
    %412 = arith.ori %409, %411 : vector<8x1xi1>
    %cst_121 = arith.constant dense<true> : vector<8x1xi1>
    %413 = arith.xori %412, %cst_121 : vector<8x1xi1>
    %414 = arith.subf %407, %405 : vector<8x2xf32>
    %cst_122 = arith.constant 0.000000e+00 : f32
    %415 = vector.shape_cast %413 : vector<8x1xi1> to vector<8x1xi1>
    %416 = vector.broadcast %415 : vector<8x1xi1> to vector<8x2xi1>
    %417 = vector.broadcast %cst_122 : f32 to vector<8x2xf32>
    %418 = arith.select %416, %414, %417 : vector<8x2xi1>, vector<8x2xf32>
    %cst_123 = arith.constant 4.000000e+00 : f32
    %419 = vector.broadcast %cst_123 : f32 to vector<8x2xf32>
    %420 = arith.mulf %419, %418 : vector<8x2xf32>
    %421 = vector.extract_strided_slice %420 {offsets = [0, 0], sizes = [8, 1], strides = [1, 1]} : vector<8x2xf32> to vector<8x1xf32>
    %422 = vector.extract_strided_slice %0 {offsets = [0, 0], sizes = [1, 128], strides = [1, 1]} : vector<2x128xf32> to vector<1x128xf32>
    %423 = vector.broadcast %421 : vector<8x1xf32> to vector<8x128xf32>
    %424 = vector.broadcast %422 : vector<1x128xf32> to vector<8x128xf32>
    %425 = arith.mulf %423, %424 : vector<8x128xf32>
    %426 = vector.extract_strided_slice %420 {offsets = [0, 1], sizes = [8, 1], strides = [1, 1]} : vector<8x2xf32> to vector<8x1xf32>
    %427 = vector.extract_strided_slice %0 {offsets = [1, 0], sizes = [1, 128], strides = [1, 1]} : vector<2x128xf32> to vector<1x128xf32>
    %428 = vector.broadcast %426 : vector<8x1xf32> to vector<8x128xf32>
    %429 = vector.broadcast %427 : vector<1x128xf32> to vector<8x128xf32>
    %430 = arith.mulf %428, %429 : vector<8x128xf32>
    %431 = arith.addf %425, %430 : vector<8x128xf32>
    %432 = vector.broadcast %1 : vector<1x128xf32> to vector<8x128xf32>
    %433 = arith.addf %431, %432 : vector<8x128xf32>
    %cst_124 = arith.constant 0.000000e+00 : f32
    %434 = vector.broadcast %cst_124 : f32 to vector<8x128xf32>
    %435 = arith.maximumf %433, %434 : vector<8x128xf32>
    %436 = arith.truncf %382 : vector<8x128xf32> to vector<8x128xbf16>
    %c0_125 = arith.constant 0 : index
    %c0_126 = arith.constant 0 : index
    %437 = vector.load %arg6[%c0_125, %c0_126] : memref<128x512xbf16, #tpu.memory_space<vmem>>, vector<128x512xbf16>
    %cst_127 = arith.constant dense<0.000000e+00> : vector<8x512xf32>
    %438 = tpu.matmul %436, %437, %cst_127 {dimension_numbers = #tpu.dot_dimension_numbers<[1], [0], [0], [1], [0, 0, 1, 1], [], []>} : vector<8x128xbf16>, vector<128x512xbf16>, vector<8x512xf32> -> vector<8x512xf32>
    %439 = arith.truncf %435 : vector<8x128xf32> to vector<8x128xbf16>
    %c0_128 = arith.constant 0 : index
    %c0_129 = arith.constant 0 : index
    %440 = vector.load %arg7[%c0_128, %c0_129] : memref<128x512xbf16, #tpu.memory_space<vmem>>, vector<128x512xbf16>
    %cst_130 = arith.constant dense<0.000000e+00> : vector<8x512xf32>
    %441 = tpu.matmul %439, %440, %cst_130 {dimension_numbers = #tpu.dot_dimension_numbers<[1], [0], [0], [1], [0, 0, 1, 1], [], []>} : vector<8x128xbf16>, vector<128x512xbf16>, vector<8x512xf32> -> vector<8x512xf32>
    %442 = arith.addf %438, %441 : vector<8x512xf32>
    %443 = vector.broadcast %7 : vector<1x512xf32> to vector<8x512xf32>
    %444 = arith.addf %442, %443 : vector<8x512xf32>
    %445 = vector.extract_strided_slice %444 {offsets = [0, 0], sizes = [8, 128], strides = [1, 1]} : vector<8x512xf32> to vector<8x128xf32>
    %446 = arith.negf %445 : vector<8x128xf32>
    %447 = math.exp %446 : vector<8x128xf32>
    %cst_131 = arith.constant 1.000000e+00 : f32
    %448 = vector.broadcast %cst_131 : f32 to vector<8x128xf32>
    %449 = arith.addf %448, %447 : vector<8x128xf32>
    %450 = arith.divf %448, %449 : vector<8x128xf32>
    %451 = vector.extract_strided_slice %444 {offsets = [0, 128], sizes = [8, 128], strides = [1, 1]} : vector<8x512xf32> to vector<8x128xf32>
    %452 = arith.negf %451 : vector<8x128xf32>
    %453 = math.exp %452 : vector<8x128xf32>
    %cst_132 = arith.constant 1.000000e+00 : f32
    %454 = vector.broadcast %cst_132 : f32 to vector<8x128xf32>
    %455 = arith.addf %454, %453 : vector<8x128xf32>
    %456 = arith.divf %454, %455 : vector<8x128xf32>
    %457 = vector.extract_strided_slice %444 {offsets = [0, 256], sizes = [8, 128], strides = [1, 1]} : vector<8x512xf32> to vector<8x128xf32>
    %458 = math.tanh %457 : vector<8x128xf32>
    %459 = vector.extract_strided_slice %444 {offsets = [0, 384], sizes = [8, 128], strides = [1, 1]} : vector<8x512xf32> to vector<8x128xf32>
    %460 = arith.negf %459 : vector<8x128xf32>
    %461 = math.exp %460 : vector<8x128xf32>
    %cst_133 = arith.constant 1.000000e+00 : f32
    %462 = vector.broadcast %cst_133 : f32 to vector<8x128xf32>
    %463 = arith.addf %462, %461 : vector<8x128xf32>
    %464 = arith.divf %462, %463 : vector<8x128xf32>
    %465 = arith.mulf %456, %385 : vector<8x128xf32>
    %466 = arith.mulf %450, %458 : vector<8x128xf32>
    %467 = arith.addf %465, %466 : vector<8x128xf32>
    %468 = math.tanh %467 : vector<8x128xf32>
    %469 = arith.mulf %464, %468 : vector<8x128xf32>
    %470 = arith.truncf %469 : vector<8x128xf32> to vector<8x128xbf16>
    %c0_134 = arith.constant 0 : index
    %c0_135 = arith.constant 0 : index
    %471 = vector.load %arg12[%c0_134, %c0_135] : memref<128x128xbf16, #tpu.memory_space<vmem>>, vector<128x128xbf16>
    %cst_136 = arith.constant dense<0.000000e+00> : vector<8x128xf32>
    %472 = tpu.matmul %470, %471, %cst_136 {dimension_numbers = #tpu.dot_dimension_numbers<[1], [0], [0], [1], [0, 0, 1, 1], [], []>} : vector<8x128xbf16>, vector<128x128xbf16>, vector<8x128xf32> -> vector<8x128xf32>
    %473 = vector.broadcast %2 : vector<1x128xf32> to vector<8x128xf32>
    %474 = arith.addf %472, %473 : vector<8x128xf32>
    %cst_137 = arith.constant 0x7FC00000 : f32
    %475 = vector.shape_cast %413 : vector<8x1xi1> to vector<8x1xi1>
    %476 = vector.broadcast %475 : vector<8x1xi1> to vector<8x128xi1>
    %477 = vector.broadcast %cst_137 : f32 to vector<8x128xf32>
    %478 = arith.select %476, %474, %477 : vector<8x128xi1>, vector<8x128xf32>
    %479 = vector.shape_cast %413 : vector<8x1xi1> to vector<8x1xi1>
    %480 = vector.broadcast %479 : vector<8x1xi1> to vector<8x128xi1>
    %481 = arith.select %480, %469, %382 : vector<8x128xi1>, vector<8x128xf32>
    %482 = vector.shape_cast %413 : vector<8x1xi1> to vector<8x1xi1>
    %483 = vector.broadcast %482 : vector<8x1xi1> to vector<8x128xi1>
    %484 = arith.select %483, %467, %385 : vector<8x128xi1>, vector<8x128xf32>
    %485 = vector.extract_strided_slice %478 {offsets = [0, 0], sizes = [8, 2], strides = [1, 1]} : vector<8x128xf32> to vector<8x2xf32>
    %486 = arith.addf %407, %485 : vector<8x2xf32>
    %487 = tpu.iota {dimensions = array<i32: 1>} : vector<8x128xi32>
    %c5_i32_138 = arith.constant 5 : i32
    %488 = vector.broadcast %c5_i32_138 : i32 to vector<8x128xi32>
    %489 = arith.cmpi eq, %487, %488 : vector<8x128xi32>
    %490 = vector.extract_strided_slice %486 {offsets = [0, 0], sizes = [8, 1], strides = [1, 1]} : vector<8x2xf32> to vector<8x1xf32>
    %c6_i32_139 = arith.constant 6 : i32
    %491 = vector.broadcast %c6_i32_139 : i32 to vector<8x128xi32>
    %492 = arith.cmpi eq, %487, %491 : vector<8x128xi32>
    %493 = vector.extract_strided_slice %486 {offsets = [0, 1], sizes = [8, 1], strides = [1, 1]} : vector<8x2xf32> to vector<8x1xf32>
    %494 = vector.shape_cast %493 : vector<8x1xf32> to vector<8x1xf32>
    %495 = vector.broadcast %494 : vector<8x1xf32> to vector<8x128xf32>
    %496 = arith.select %492, %495, %478 : vector<8x128xi1>, vector<8x128xf32>
    %497 = vector.shape_cast %490 : vector<8x1xf32> to vector<8x1xf32>
    %498 = vector.broadcast %497 : vector<8x1xf32> to vector<8x128xf32>
    %499 = arith.select %489, %498, %496 : vector<8x128xi1>, vector<8x128xf32>
    %c4_140 = arith.constant 4 : index
    %c0_141 = arith.constant 0 : index
    %c0_142 = arith.constant 0 : index
    %500 = vector.load %arg16[%c4_140, %c0_141, %c0_142] : memref<12x8x128xf32, #tpu.memory_space<vmem>>, vector<1x8x128xf32>
    %501 = vector.shape_cast %500 : vector<1x8x128xf32> to vector<8x128xf32>
    %502 = vector.shape_cast %499 : vector<8x128xf32> to vector<1x8x128xf32>
    tpu.vector_store %arg16[%c4_140, %c0_141, %c0_142], %502 {strides = array<i32>} : memref<12x8x128xf32, #tpu.memory_space<vmem>>, vector<1x8x128xf32>,
    %c5_143 = arith.constant 5 : index
    %c0_144 = arith.constant 0 : index
    %c0_145 = arith.constant 0 : index
    %503 = vector.load %arg0[%c5_143, %c0_144, %c0_145] : memref<9x8x2xf32, #tpu.memory_space<vmem>>, vector<1x8x2xf32>
    %504 = vector.shape_cast %503 : vector<1x8x2xf32> to vector<8x2xf32>
    %c6 = arith.constant 6 : index
    %c0_146 = arith.constant 0 : index
    %c0_147 = arith.constant 0 : index
    %505 = vector.load %arg0[%c6, %c0_146, %c0_147] : memref<9x8x2xf32, #tpu.memory_space<vmem>>, vector<1x8x2xf32>
    %506 = vector.shape_cast %505 : vector<1x8x2xf32> to vector<8x2xf32>
    %507 = vector.extract_strided_slice %504 {offsets = [0, 0], sizes = [8, 1], strides = [1, 1]} : vector<8x2xf32> to vector<8x1xf32>
    %508 = arith.cmpf one, %507, %507 : vector<8x1xf32>
    %509 = vector.extract_strided_slice %506 {offsets = [0, 0], sizes = [8, 1], strides = [1, 1]} : vector<8x2xf32> to vector<8x1xf32>
    %510 = arith.cmpf one, %509, %509 : vector<8x1xf32>
    %511 = arith.ori %508, %510 : vector<8x1xi1>
    %cst_148 = arith.constant dense<true> : vector<8x1xi1>
    %512 = arith.xori %511, %cst_148 : vector<8x1xi1>
    %513 = arith.subf %506, %504 : vector<8x2xf32>
    %cst_149 = arith.constant 0.000000e+00 : f32
    %514 = vector.shape_cast %512 : vector<8x1xi1> to vector<8x1xi1>
    %515 = vector.broadcast %514 : vector<8x1xi1> to vector<8x2xi1>
    %516 = vector.broadcast %cst_149 : f32 to vector<8x2xf32>
    %517 = arith.select %515, %513, %516 : vector<8x2xi1>, vector<8x2xf32>
    %cst_150 = arith.constant 4.000000e+00 : f32
    %518 = vector.broadcast %cst_150 : f32 to vector<8x2xf32>
    %519 = arith.mulf %518, %517 : vector<8x2xf32>
    %520 = vector.extract_strided_slice %519 {offsets = [0, 0], sizes = [8, 1], strides = [1, 1]} : vector<8x2xf32> to vector<8x1xf32>
    %521 = vector.extract_strided_slice %0 {offsets = [0, 0], sizes = [1, 128], strides = [1, 1]} : vector<2x128xf32> to vector<1x128xf32>
    %522 = vector.broadcast %520 : vector<8x1xf32> to vector<8x128xf32>
    %523 = vector.broadcast %521 : vector<1x128xf32> to vector<8x128xf32>
    %524 = arith.mulf %522, %523 : vector<8x128xf32>
    %525 = vector.extract_strided_slice %519 {offsets = [0, 1], sizes = [8, 1], strides = [1, 1]} : vector<8x2xf32> to vector<8x1xf32>
    %526 = vector.extract_strided_slice %0 {offsets = [1, 0], sizes = [1, 128], strides = [1, 1]} : vector<2x128xf32> to vector<1x128xf32>
    %527 = vector.broadcast %525 : vector<8x1xf32> to vector<8x128xf32>
    %528 = vector.broadcast %526 : vector<1x128xf32> to vector<8x128xf32>
    %529 = arith.mulf %527, %528 : vector<8x128xf32>
    %530 = arith.addf %524, %529 : vector<8x128xf32>
    %531 = vector.broadcast %1 : vector<1x128xf32> to vector<8x128xf32>
    %532 = arith.addf %530, %531 : vector<8x128xf32>
    %cst_151 = arith.constant 0.000000e+00 : f32
    %533 = vector.broadcast %cst_151 : f32 to vector<8x128xf32>
    %534 = arith.maximumf %532, %533 : vector<8x128xf32>
    %535 = arith.truncf %481 : vector<8x128xf32> to vector<8x128xbf16>
    %c0_152 = arith.constant 0 : index
    %c0_153 = arith.constant 0 : index
    %536 = vector.load %arg6[%c0_152, %c0_153] : memref<128x512xbf16, #tpu.memory_space<vmem>>, vector<128x512xbf16>
    %cst_154 = arith.constant dense<0.000000e+00> : vector<8x512xf32>
    %537 = tpu.matmul %535, %536, %cst_154 {dimension_numbers = #tpu.dot_dimension_numbers<[1], [0], [0], [1], [0, 0, 1, 1], [], []>} : vector<8x128xbf16>, vector<128x512xbf16>, vector<8x512xf32> -> vector<8x512xf32>
    %538 = arith.truncf %534 : vector<8x128xf32> to vector<8x128xbf16>
    %c0_155 = arith.constant 0 : index
    %c0_156 = arith.constant 0 : index
    %539 = vector.load %arg7[%c0_155, %c0_156] : memref<128x512xbf16, #tpu.memory_space<vmem>>, vector<128x512xbf16>
    %cst_157 = arith.constant dense<0.000000e+00> : vector<8x512xf32>
    %540 = tpu.matmul %538, %539, %cst_157 {dimension_numbers = #tpu.dot_dimension_numbers<[1], [0], [0], [1], [0, 0, 1, 1], [], []>} : vector<8x128xbf16>, vector<128x512xbf16>, vector<8x512xf32> -> vector<8x512xf32>
    %541 = arith.addf %537, %540 : vector<8x512xf32>
    %542 = vector.broadcast %7 : vector<1x512xf32> to vector<8x512xf32>
    %543 = arith.addf %541, %542 : vector<8x512xf32>
    %544 = vector.extract_strided_slice %543 {offsets = [0, 0], sizes = [8, 128], strides = [1, 1]} : vector<8x512xf32> to vector<8x128xf32>
    %545 = arith.negf %544 : vector<8x128xf32>
    %546 = math.exp %545 : vector<8x128xf32>
    %cst_158 = arith.constant 1.000000e+00 : f32
    %547 = vector.broadcast %cst_158 : f32 to vector<8x128xf32>
    %548 = arith.addf %547, %546 : vector<8x128xf32>
    %549 = arith.divf %547, %548 : vector<8x128xf32>
    %550 = vector.extract_strided_slice %543 {offsets = [0, 128], sizes = [8, 128], strides = [1, 1]} : vector<8x512xf32> to vector<8x128xf32>
    %551 = arith.negf %550 : vector<8x128xf32>
    %552 = math.exp %551 : vector<8x128xf32>
    %cst_159 = arith.constant 1.000000e+00 : f32
    %553 = vector.broadcast %cst_159 : f32 to vector<8x128xf32>
    %554 = arith.addf %553, %552 : vector<8x128xf32>
    %555 = arith.divf %553, %554 : vector<8x128xf32>
    %556 = vector.extract_strided_slice %543 {offsets = [0, 256], sizes = [8, 128], strides = [1, 1]} : vector<8x512xf32> to vector<8x128xf32>
    %557 = math.tanh %556 : vector<8x128xf32>
    %558 = vector.extract_strided_slice %543 {offsets = [0, 384], sizes = [8, 128], strides = [1, 1]} : vector<8x512xf32> to vector<8x128xf32>
    %559 = arith.negf %558 : vector<8x128xf32>
    %560 = math.exp %559 : vector<8x128xf32>
    %cst_160 = arith.constant 1.000000e+00 : f32
    %561 = vector.broadcast %cst_160 : f32 to vector<8x128xf32>
    %562 = arith.addf %561, %560 : vector<8x128xf32>
    %563 = arith.divf %561, %562 : vector<8x128xf32>
    %564 = arith.mulf %555, %484 : vector<8x128xf32>
    %565 = arith.mulf %549, %557 : vector<8x128xf32>
    %566 = arith.addf %564, %565 : vector<8x128xf32>
    %567 = math.tanh %566 : vector<8x128xf32>
    %568 = arith.mulf %563, %567 : vector<8x128xf32>
    %569 = arith.truncf %568 : vector<8x128xf32> to vector<8x128xbf16>
    %c0_161 = arith.constant 0 : index
    %c0_162 = arith.constant 0 : index
    %570 = vector.load %arg12[%c0_161, %c0_162] : memref<128x128xbf16, #tpu.memory_space<vmem>>, vector<128x128xbf16>
    %cst_163 = arith.constant dense<0.000000e+00> : vector<8x128xf32>
    %571 = tpu.matmul %569, %570, %cst_163 {dimension_numbers = #tpu.dot_dimension_numbers<[1], [0], [0], [1], [0, 0, 1, 1], [], []>} : vector<8x128xbf16>, vector<128x128xbf16>, vector<8x128xf32> -> vector<8x128xf32>
    %572 = vector.broadcast %2 : vector<1x128xf32> to vector<8x128xf32>
    %573 = arith.addf %571, %572 : vector<8x128xf32>
    %cst_164 = arith.constant 0x7FC00000 : f32
    %574 = vector.shape_cast %512 : vector<8x1xi1> to vector<8x1xi1>
    %575 = vector.broadcast %574 : vector<8x1xi1> to vector<8x128xi1>
    %576 = vector.broadcast %cst_164 : f32 to vector<8x128xf32>
    %577 = arith.select %575, %573, %576 : vector<8x128xi1>, vector<8x128xf32>
    %578 = vector.shape_cast %512 : vector<8x1xi1> to vector<8x1xi1>
    %579 = vector.broadcast %578 : vector<8x1xi1> to vector<8x128xi1>
    %580 = arith.select %579, %568, %481 : vector<8x128xi1>, vector<8x128xf32>
    %581 = vector.shape_cast %512 : vector<8x1xi1> to vector<8x1xi1>
    %582 = vector.broadcast %581 : vector<8x1xi1> to vector<8x128xi1>
    %583 = arith.select %582, %566, %484 : vector<8x128xi1>, vector<8x128xf32>
    %584 = vector.extract_strided_slice %577 {offsets = [0, 0], sizes = [8, 2], strides = [1, 1]} : vector<8x128xf32> to vector<8x2xf32>
    %585 = arith.addf %506, %584 : vector<8x2xf32>
    %586 = tpu.iota {dimensions = array<i32: 1>} : vector<8x128xi32>
    %c5_i32_165 = arith.constant 5 : i32
    %587 = vector.broadcast %c5_i32_165 : i32 to vector<8x128xi32>
    %588 = arith.cmpi eq, %586, %587 : vector<8x128xi32>
    %589 = vector.extract_strided_slice %585 {offsets = [0, 0], sizes = [8, 1], strides = [1, 1]} : vector<8x2xf32> to vector<8x1xf32>
    %c6_i32_166 = arith.constant 6 : i32
    %590 = vector.broadcast %c6_i32_166 : i32 to vector<8x128xi32>
    %591 = arith.cmpi eq, %586, %590 : vector<8x128xi32>
    %592 = vector.extract_strided_slice %585 {offsets = [0, 1], sizes = [8, 1], strides = [1, 1]} : vector<8x2xf32> to vector<8x1xf32>
    %593 = vector.shape_cast %592 : vector<8x1xf32> to vector<8x1xf32>
    %594 = vector.broadcast %593 : vector<8x1xf32> to vector<8x128xf32>
    %595 = arith.select %591, %594, %577 : vector<8x128xi1>, vector<8x128xf32>
    %596 = vector.shape_cast %589 : vector<8x1xf32> to vector<8x1xf32>
    %597 = vector.broadcast %596 : vector<8x1xf32> to vector<8x128xf32>
    %598 = arith.select %588, %597, %595 : vector<8x128xi1>, vector<8x128xf32>
    %c5_167 = arith.constant 5 : index
    %c0_168 = arith.constant 0 : index
    %c0_169 = arith.constant 0 : index
    %599 = vector.load %arg16[%c5_167, %c0_168, %c0_169] : memref<12x8x128xf32, #tpu.memory_space<vmem>>, vector<1x8x128xf32>
    %600 = vector.shape_cast %599 : vector<1x8x128xf32> to vector<8x128xf32>
    %601 = vector.shape_cast %598 : vector<8x128xf32> to vector<1x8x128xf32>
    tpu.vector_store %arg16[%c5_167, %c0_168, %c0_169], %601 {strides = array<i32>} : memref<12x8x128xf32, #tpu.memory_space<vmem>>, vector<1x8x128xf32>,
    %c6_170 = arith.constant 6 : index
    %c0_171 = arith.constant 0 : index
    %c0_172 = arith.constant 0 : index
    %602 = vector.load %arg0[%c6_170, %c0_171, %c0_172] : memref<9x8x2xf32, #tpu.memory_space<vmem>>, vector<1x8x2xf32>
    %603 = vector.shape_cast %602 : vector<1x8x2xf32> to vector<8x2xf32>
    %c7 = arith.constant 7 : index
    %c0_173 = arith.constant 0 : index
    %c0_174 = arith.constant 0 : index
    %604 = vector.load %arg0[%c7, %c0_173, %c0_174] : memref<9x8x2xf32, #tpu.memory_space<vmem>>, vector<1x8x2xf32>
    %605 = vector.shape_cast %604 : vector<1x8x2xf32> to vector<8x2xf32>
    %606 = vector.extract_strided_slice %603 {offsets = [0, 0], sizes = [8, 1], strides = [1, 1]} : vector<8x2xf32> to vector<8x1xf32>
    %607 = arith.cmpf one, %606, %606 : vector<8x1xf32>
    %608 = vector.extract_strided_slice %605 {offsets = [0, 0], sizes = [8, 1], strides = [1, 1]} : vector<8x2xf32> to vector<8x1xf32>
    %609 = arith.cmpf one, %608, %608 : vector<8x1xf32>
    %610 = arith.ori %607, %609 : vector<8x1xi1>
    %cst_175 = arith.constant dense<true> : vector<8x1xi1>
    %611 = arith.xori %610, %cst_175 : vector<8x1xi1>
    %612 = arith.subf %605, %603 : vector<8x2xf32>
    %cst_176 = arith.constant 0.000000e+00 : f32
    %613 = vector.shape_cast %611 : vector<8x1xi1> to vector<8x1xi1>
    %614 = vector.broadcast %613 : vector<8x1xi1> to vector<8x2xi1>
    %615 = vector.broadcast %cst_176 : f32 to vector<8x2xf32>
    %616 = arith.select %614, %612, %615 : vector<8x2xi1>, vector<8x2xf32>
    %cst_177 = arith.constant 4.000000e+00 : f32
    %617 = vector.broadcast %cst_177 : f32 to vector<8x2xf32>
    %618 = arith.mulf %617, %616 : vector<8x2xf32>
    %619 = vector.extract_strided_slice %618 {offsets = [0, 0], sizes = [8, 1], strides = [1, 1]} : vector<8x2xf32> to vector<8x1xf32>
    %620 = vector.extract_strided_slice %0 {offsets = [0, 0], sizes = [1, 128], strides = [1, 1]} : vector<2x128xf32> to vector<1x128xf32>
    %621 = vector.broadcast %619 : vector<8x1xf32> to vector<8x128xf32>
    %622 = vector.broadcast %620 : vector<1x128xf32> to vector<8x128xf32>
    %623 = arith.mulf %621, %622 : vector<8x128xf32>
    %624 = vector.extract_strided_slice %618 {offsets = [0, 1], sizes = [8, 1], strides = [1, 1]} : vector<8x2xf32> to vector<8x1xf32>
    %625 = vector.extract_strided_slice %0 {offsets = [1, 0], sizes = [1, 128], strides = [1, 1]} : vector<2x128xf32> to vector<1x128xf32>
    %626 = vector.broadcast %624 : vector<8x1xf32> to vector<8x128xf32>
    %627 = vector.broadcast %625 : vector<1x128xf32> to vector<8x128xf32>
    %628 = arith.mulf %626, %627 : vector<8x128xf32>
    %629 = arith.addf %623, %628 : vector<8x128xf32>
    %630 = vector.broadcast %1 : vector<1x128xf32> to vector<8x128xf32>
    %631 = arith.addf %629, %630 : vector<8x128xf32>
    %cst_178 = arith.constant 0.000000e+00 : f32
    %632 = vector.broadcast %cst_178 : f32 to vector<8x128xf32>
    %633 = arith.maximumf %631, %632 : vector<8x128xf32>
    %634 = arith.truncf %580 : vector<8x128xf32> to vector<8x128xbf16>
    %c0_179 = arith.constant 0 : index
    %c0_180 = arith.constant 0 : index
    %635 = vector.load %arg6[%c0_179, %c0_180] : memref<128x512xbf16, #tpu.memory_space<vmem>>, vector<128x512xbf16>
    %cst_181 = arith.constant dense<0.000000e+00> : vector<8x512xf32>
    %636 = tpu.matmul %634, %635, %cst_181 {dimension_numbers = #tpu.dot_dimension_numbers<[1], [0], [0], [1], [0, 0, 1, 1], [], []>} : vector<8x128xbf16>, vector<128x512xbf16>, vector<8x512xf32> -> vector<8x512xf32>
    %637 = arith.truncf %633 : vector<8x128xf32> to vector<8x128xbf16>
    %c0_182 = arith.constant 0 : index
    %c0_183 = arith.constant 0 : index
    %638 = vector.load %arg7[%c0_182, %c0_183] : memref<128x512xbf16, #tpu.memory_space<vmem>>, vector<128x512xbf16>
    %cst_184 = arith.constant dense<0.000000e+00> : vector<8x512xf32>
    %639 = tpu.matmul %637, %638, %cst_184 {dimension_numbers = #tpu.dot_dimension_numbers<[1], [0], [0], [1], [0, 0, 1, 1], [], []>} : vector<8x128xbf16>, vector<128x512xbf16>, vector<8x512xf32> -> vector<8x512xf32>
    %640 = arith.addf %636, %639 : vector<8x512xf32>
    %641 = vector.broadcast %7 : vector<1x512xf32> to vector<8x512xf32>
    %642 = arith.addf %640, %641 : vector<8x512xf32>
    %643 = vector.extract_strided_slice %642 {offsets = [0, 0], sizes = [8, 128], strides = [1, 1]} : vector<8x512xf32> to vector<8x128xf32>
    %644 = arith.negf %643 : vector<8x128xf32>
    %645 = math.exp %644 : vector<8x128xf32>
    %cst_185 = arith.constant 1.000000e+00 : f32
    %646 = vector.broadcast %cst_185 : f32 to vector<8x128xf32>
    %647 = arith.addf %646, %645 : vector<8x128xf32>
    %648 = arith.divf %646, %647 : vector<8x128xf32>
    %649 = vector.extract_strided_slice %642 {offsets = [0, 128], sizes = [8, 128], strides = [1, 1]} : vector<8x512xf32> to vector<8x128xf32>
    %650 = arith.negf %649 : vector<8x128xf32>
    %651 = math.exp %650 : vector<8x128xf32>
    %cst_186 = arith.constant 1.000000e+00 : f32
    %652 = vector.broadcast %cst_186 : f32 to vector<8x128xf32>
    %653 = arith.addf %652, %651 : vector<8x128xf32>
    %654 = arith.divf %652, %653 : vector<8x128xf32>
    %655 = vector.extract_strided_slice %642 {offsets = [0, 256], sizes = [8, 128], strides = [1, 1]} : vector<8x512xf32> to vector<8x128xf32>
    %656 = math.tanh %655 : vector<8x128xf32>
    %657 = vector.extract_strided_slice %642 {offsets = [0, 384], sizes = [8, 128], strides = [1, 1]} : vector<8x512xf32> to vector<8x128xf32>
    %658 = arith.negf %657 : vector<8x128xf32>
    %659 = math.exp %658 : vector<8x128xf32>
    %cst_187 = arith.constant 1.000000e+00 : f32
    %660 = vector.broadcast %cst_187 : f32 to vector<8x128xf32>
    %661 = arith.addf %660, %659 : vector<8x128xf32>
    %662 = arith.divf %660, %661 : vector<8x128xf32>
    %663 = arith.mulf %654, %583 : vector<8x128xf32>
    %664 = arith.mulf %648, %656 : vector<8x128xf32>
    %665 = arith.addf %663, %664 : vector<8x128xf32>
    %666 = math.tanh %665 : vector<8x128xf32>
    %667 = arith.mulf %662, %666 : vector<8x128xf32>
    %668 = arith.truncf %667 : vector<8x128xf32> to vector<8x128xbf16>
    %c0_188 = arith.constant 0 : index
    %c0_189 = arith.constant 0 : index
    %669 = vector.load %arg12[%c0_188, %c0_189] : memref<128x128xbf16, #tpu.memory_space<vmem>>, vector<128x128xbf16>
    %cst_190 = arith.constant dense<0.000000e+00> : vector<8x128xf32>
    %670 = tpu.matmul %668, %669, %cst_190 {dimension_numbers = #tpu.dot_dimension_numbers<[1], [0], [0], [1], [0, 0, 1, 1], [], []>} : vector<8x128xbf16>, vector<128x128xbf16>, vector<8x128xf32> -> vector<8x128xf32>
    %671 = vector.broadcast %2 : vector<1x128xf32> to vector<8x128xf32>
    %672 = arith.addf %670, %671 : vector<8x128xf32>
    %cst_191 = arith.constant 0x7FC00000 : f32
    %673 = vector.shape_cast %611 : vector<8x1xi1> to vector<8x1xi1>
    %674 = vector.broadcast %673 : vector<8x1xi1> to vector<8x128xi1>
    %675 = vector.broadcast %cst_191 : f32 to vector<8x128xf32>
    %676 = arith.select %674, %672, %675 : vector<8x128xi1>, vector<8x128xf32>
    %677 = vector.shape_cast %611 : vector<8x1xi1> to vector<8x1xi1>
    %678 = vector.broadcast %677 : vector<8x1xi1> to vector<8x128xi1>
    %679 = arith.select %678, %667, %580 : vector<8x128xi1>, vector<8x128xf32>
    %680 = vector.shape_cast %611 : vector<8x1xi1> to vector<8x1xi1>
    %681 = vector.broadcast %680 : vector<8x1xi1> to vector<8x128xi1>
    %682 = arith.select %681, %665, %583 : vector<8x128xi1>, vector<8x128xf32>
    %683 = vector.extract_strided_slice %676 {offsets = [0, 0], sizes = [8, 2], strides = [1, 1]} : vector<8x128xf32> to vector<8x2xf32>
    %684 = arith.addf %605, %683 : vector<8x2xf32>
    %685 = tpu.iota {dimensions = array<i32: 1>} : vector<8x128xi32>
    %c5_i32_192 = arith.constant 5 : i32
    %686 = vector.broadcast %c5_i32_192 : i32 to vector<8x128xi32>
    %687 = arith.cmpi eq, %685, %686 : vector<8x128xi32>
    %688 = vector.extract_strided_slice %684 {offsets = [0, 0], sizes = [8, 1], strides = [1, 1]} : vector<8x2xf32> to vector<8x1xf32>
    %c6_i32_193 = arith.constant 6 : i32
    %689 = vector.broadcast %c6_i32_193 : i32 to vector<8x128xi32>
    %690 = arith.cmpi eq, %685, %689 : vector<8x128xi32>
    %691 = vector.extract_strided_slice %684 {offsets = [0, 1], sizes = [8, 1], strides = [1, 1]} : vector<8x2xf32> to vector<8x1xf32>
    %692 = vector.shape_cast %691 : vector<8x1xf32> to vector<8x1xf32>
    %693 = vector.broadcast %692 : vector<8x1xf32> to vector<8x128xf32>
    %694 = arith.select %690, %693, %676 : vector<8x128xi1>, vector<8x128xf32>
    %695 = vector.shape_cast %688 : vector<8x1xf32> to vector<8x1xf32>
    %696 = vector.broadcast %695 : vector<8x1xf32> to vector<8x128xf32>
    %697 = arith.select %687, %696, %694 : vector<8x128xi1>, vector<8x128xf32>
    %c6_194 = arith.constant 6 : index
    %c0_195 = arith.constant 0 : index
    %c0_196 = arith.constant 0 : index
    %698 = vector.load %arg16[%c6_194, %c0_195, %c0_196] : memref<12x8x128xf32, #tpu.memory_space<vmem>>, vector<1x8x128xf32>
    %699 = vector.shape_cast %698 : vector<1x8x128xf32> to vector<8x128xf32>
    %700 = vector.shape_cast %697 : vector<8x128xf32> to vector<1x8x128xf32>
    tpu.vector_store %arg16[%c6_194, %c0_195, %c0_196], %700 {strides = array<i32>} : memref<12x8x128xf32, #tpu.memory_space<vmem>>, vector<1x8x128xf32>,
    %c7_197 = arith.constant 7 : index
    %c0_198 = arith.constant 0 : index
    %c0_199 = arith.constant 0 : index
    %701 = vector.load %arg0[%c7_197, %c0_198, %c0_199] : memref<9x8x2xf32, #tpu.memory_space<vmem>>, vector<1x8x2xf32>
    %702 = vector.shape_cast %701 : vector<1x8x2xf32> to vector<8x2xf32>
    %c8 = arith.constant 8 : index
    %c0_200 = arith.constant 0 : index
    %c0_201 = arith.constant 0 : index
    %703 = vector.load %arg0[%c8, %c0_200, %c0_201] : memref<9x8x2xf32, #tpu.memory_space<vmem>>, vector<1x8x2xf32>
    %704 = vector.shape_cast %703 : vector<1x8x2xf32> to vector<8x2xf32>
    %705 = vector.extract_strided_slice %702 {offsets = [0, 0], sizes = [8, 1], strides = [1, 1]} : vector<8x2xf32> to vector<8x1xf32>
    %706 = arith.cmpf one, %705, %705 : vector<8x1xf32>
    %707 = vector.extract_strided_slice %704 {offsets = [0, 0], sizes = [8, 1], strides = [1, 1]} : vector<8x2xf32> to vector<8x1xf32>
    %708 = arith.cmpf one, %707, %707 : vector<8x1xf32>
    %709 = arith.ori %706, %708 : vector<8x1xi1>
    %cst_202 = arith.constant dense<true> : vector<8x1xi1>
    %710 = arith.xori %709, %cst_202 : vector<8x1xi1>
    %711 = arith.subf %704, %702 : vector<8x2xf32>
    %cst_203 = arith.constant 0.000000e+00 : f32
    %712 = vector.shape_cast %710 : vector<8x1xi1> to vector<8x1xi1>
    %713 = vector.broadcast %712 : vector<8x1xi1> to vector<8x2xi1>
    %714 = vector.broadcast %cst_203 : f32 to vector<8x2xf32>
    %715 = arith.select %713, %711, %714 : vector<8x2xi1>, vector<8x2xf32>
    %cst_204 = arith.constant 4.000000e+00 : f32
    %716 = vector.broadcast %cst_204 : f32 to vector<8x2xf32>
    %717 = arith.mulf %716, %715 : vector<8x2xf32>
    %718 = vector.extract_strided_slice %717 {offsets = [0, 0], sizes = [8, 1], strides = [1, 1]} : vector<8x2xf32> to vector<8x1xf32>
    %719 = vector.extract_strided_slice %0 {offsets = [0, 0], sizes = [1, 128], strides = [1, 1]} : vector<2x128xf32> to vector<1x128xf32>
    %720 = vector.broadcast %718 : vector<8x1xf32> to vector<8x128xf32>
    %721 = vector.broadcast %719 : vector<1x128xf32> to vector<8x128xf32>
    %722 = arith.mulf %720, %721 : vector<8x128xf32>
    %723 = vector.extract_strided_slice %717 {offsets = [0, 1], sizes = [8, 1], strides = [1, 1]} : vector<8x2xf32> to vector<8x1xf32>
    %724 = vector.extract_strided_slice %0 {offsets = [1, 0], sizes = [1, 128], strides = [1, 1]} : vector<2x128xf32> to vector<1x128xf32>
    %725 = vector.broadcast %723 : vector<8x1xf32> to vector<8x128xf32>
    %726 = vector.broadcast %724 : vector<1x128xf32> to vector<8x128xf32>
    %727 = arith.mulf %725, %726 : vector<8x128xf32>
    %728 = arith.addf %722, %727 : vector<8x128xf32>
    %729 = vector.broadcast %1 : vector<1x128xf32> to vector<8x128xf32>
    %730 = arith.addf %728, %729 : vector<8x128xf32>
    %cst_205 = arith.constant 0.000000e+00 : f32
    %731 = vector.broadcast %cst_205 : f32 to vector<8x128xf32>
    %732 = arith.maximumf %730, %731 : vector<8x128xf32>
    %733 = arith.truncf %679 : vector<8x128xf32> to vector<8x128xbf16>
    %c0_206 = arith.constant 0 : index
    %c0_207 = arith.constant 0 : index
    %734 = vector.load %arg6[%c0_206, %c0_207] : memref<128x512xbf16, #tpu.memory_space<vmem>>, vector<128x512xbf16>
    %cst_208 = arith.constant dense<0.000000e+00> : vector<8x512xf32>
    %735 = tpu.matmul %733, %734, %cst_208 {dimension_numbers = #tpu.dot_dimension_numbers<[1], [0], [0], [1], [0, 0, 1, 1], [], []>} : vector<8x128xbf16>, vector<128x512xbf16>, vector<8x512xf32> -> vector<8x512xf32>
    %736 = arith.truncf %732 : vector<8x128xf32> to vector<8x128xbf16>
    %c0_209 = arith.constant 0 : index
    %c0_210 = arith.constant 0 : index
    %737 = vector.load %arg7[%c0_209, %c0_210] : memref<128x512xbf16, #tpu.memory_space<vmem>>, vector<128x512xbf16>
    %cst_211 = arith.constant dense<0.000000e+00> : vector<8x512xf32>
    %738 = tpu.matmul %736, %737, %cst_211 {dimension_numbers = #tpu.dot_dimension_numbers<[1], [0], [0], [1], [0, 0, 1, 1], [], []>} : vector<8x128xbf16>, vector<128x512xbf16>, vector<8x512xf32> -> vector<8x512xf32>
    %739 = arith.addf %735, %738 : vector<8x512xf32>
    %740 = vector.broadcast %7 : vector<1x512xf32> to vector<8x512xf32>
    %741 = arith.addf %739, %740 : vector<8x512xf32>
    %742 = vector.extract_strided_slice %741 {offsets = [0, 0], sizes = [8, 128], strides = [1, 1]} : vector<8x512xf32> to vector<8x128xf32>
    %743 = arith.negf %742 : vector<8x128xf32>
    %744 = math.exp %743 : vector<8x128xf32>
    %cst_212 = arith.constant 1.000000e+00 : f32
    %745 = vector.broadcast %cst_212 : f32 to vector<8x128xf32>
    %746 = arith.addf %745, %744 : vector<8x128xf32>
    %747 = arith.divf %745, %746 : vector<8x128xf32>
    %748 = vector.extract_strided_slice %741 {offsets = [0, 128], sizes = [8, 128], strides = [1, 1]} : vector<8x512xf32> to vector<8x128xf32>
    %749 = arith.negf %748 : vector<8x128xf32>
    %750 = math.exp %749 : vector<8x128xf32>
    %cst_213 = arith.constant 1.000000e+00 : f32
    %751 = vector.broadcast %cst_213 : f32 to vector<8x128xf32>
    %752 = arith.addf %751, %750 : vector<8x128xf32>
    %753 = arith.divf %751, %752 : vector<8x128xf32>
    %754 = vector.extract_strided_slice %741 {offsets = [0, 256], sizes = [8, 128], strides = [1, 1]} : vector<8x512xf32> to vector<8x128xf32>
    %755 = math.tanh %754 : vector<8x128xf32>
    %756 = vector.extract_strided_slice %741 {offsets = [0, 384], sizes = [8, 128], strides = [1, 1]} : vector<8x512xf32> to vector<8x128xf32>
    %757 = arith.negf %756 : vector<8x128xf32>
    %758 = math.exp %757 : vector<8x128xf32>
    %cst_214 = arith.constant 1.000000e+00 : f32
    %759 = vector.broadcast %cst_214 : f32 to vector<8x128xf32>
    %760 = arith.addf %759, %758 : vector<8x128xf32>
    %761 = arith.divf %759, %760 : vector<8x128xf32>
    %762 = arith.mulf %753, %682 : vector<8x128xf32>
    %763 = arith.mulf %747, %755 : vector<8x128xf32>
    %764 = arith.addf %762, %763 : vector<8x128xf32>
    %765 = math.tanh %764 : vector<8x128xf32>
    %766 = arith.mulf %761, %765 : vector<8x128xf32>
    %767 = arith.truncf %766 : vector<8x128xf32> to vector<8x128xbf16>
    %c0_215 = arith.constant 0 : index
    %c0_216 = arith.constant 0 : index
    %768 = vector.load %arg12[%c0_215, %c0_216] : memref<128x128xbf16, #tpu.memory_space<vmem>>, vector<128x128xbf16>
    %cst_217 = arith.constant dense<0.000000e+00> : vector<8x128xf32>
    %769 = tpu.matmul %767, %768, %cst_217 {dimension_numbers = #tpu.dot_dimension_numbers<[1], [0], [0], [1], [0, 0, 1, 1], [], []>} : vector<8x128xbf16>, vector<128x128xbf16>, vector<8x128xf32> -> vector<8x128xf32>
    %770 = vector.broadcast %2 : vector<1x128xf32> to vector<8x128xf32>
    %771 = arith.addf %769, %770 : vector<8x128xf32>
    %cst_218 = arith.constant 0x7FC00000 : f32
    %772 = vector.shape_cast %710 : vector<8x1xi1> to vector<8x1xi1>
    %773 = vector.broadcast %772 : vector<8x1xi1> to vector<8x128xi1>
    %774 = vector.broadcast %cst_218 : f32 to vector<8x128xf32>
    %775 = arith.select %773, %771, %774 : vector<8x128xi1>, vector<8x128xf32>
    %776 = vector.shape_cast %710 : vector<8x1xi1> to vector<8x1xi1>
    %777 = vector.broadcast %776 : vector<8x1xi1> to vector<8x128xi1>
    %778 = arith.select %777, %766, %679 : vector<8x128xi1>, vector<8x128xf32>
    %779 = vector.shape_cast %710 : vector<8x1xi1> to vector<8x1xi1>
    %780 = vector.broadcast %779 : vector<8x1xi1> to vector<8x128xi1>
    %781 = arith.select %780, %764, %682 : vector<8x128xi1>, vector<8x128xf32>
    %782 = vector.extract_strided_slice %775 {offsets = [0, 0], sizes = [8, 2], strides = [1, 1]} : vector<8x128xf32> to vector<8x2xf32>
    %783 = arith.addf %704, %782 : vector<8x2xf32>
    %784 = tpu.iota {dimensions = array<i32: 1>} : vector<8x128xi32>
    %c5_i32_219 = arith.constant 5 : i32
    %785 = vector.broadcast %c5_i32_219 : i32 to vector<8x128xi32>
    %786 = arith.cmpi eq, %784, %785 : vector<8x128xi32>
    %787 = vector.extract_strided_slice %783 {offsets = [0, 0], sizes = [8, 1], strides = [1, 1]} : vector<8x2xf32> to vector<8x1xf32>
    %c6_i32_220 = arith.constant 6 : i32
    %788 = vector.broadcast %c6_i32_220 : i32 to vector<8x128xi32>
    %789 = arith.cmpi eq, %784, %788 : vector<8x128xi32>
    %790 = vector.extract_strided_slice %783 {offsets = [0, 1], sizes = [8, 1], strides = [1, 1]} : vector<8x2xf32> to vector<8x1xf32>
    %791 = vector.shape_cast %790 : vector<8x1xf32> to vector<8x1xf32>
    %792 = vector.broadcast %791 : vector<8x1xf32> to vector<8x128xf32>
    %793 = arith.select %789, %792, %775 : vector<8x128xi1>, vector<8x128xf32>
    %794 = vector.shape_cast %787 : vector<8x1xf32> to vector<8x1xf32>
    %795 = vector.broadcast %794 : vector<8x1xf32> to vector<8x128xf32>
    %796 = arith.select %786, %795, %793 : vector<8x128xi1>, vector<8x128xf32>
    %c7_221 = arith.constant 7 : index
    %c0_222 = arith.constant 0 : index
    %c0_223 = arith.constant 0 : index
    %797 = vector.load %arg16[%c7_221, %c0_222, %c0_223] : memref<12x8x128xf32, #tpu.memory_space<vmem>>, vector<1x8x128xf32>
    %798 = vector.shape_cast %797 : vector<1x8x128xf32> to vector<8x128xf32>
    %799 = vector.shape_cast %796 : vector<8x128xf32> to vector<1x8x128xf32>
    tpu.vector_store %arg16[%c7_221, %c0_222, %c0_223], %799 {strides = array<i32>} : memref<12x8x128xf32, #tpu.memory_space<vmem>>, vector<1x8x128xf32>,
    %c0_224 = arith.constant 0 : index
    %c0_225 = arith.constant 0 : index
    %800 = vector.load %arg3[%c0_224, %c0_225] : memref<8x128xf32, #tpu.memory_space<vmem>>, vector<8x128xf32>
    %cst_226 = arith.constant 1.64872122 : f32
    %801 = vector.broadcast %cst_226 : f32 to vector<8x128xf32>
    %802 = arith.mulf %801, %800 : vector<8x128xf32>
    %803 = arith.truncf %802 : vector<8x128xf32> to vector<8x128xbf16>
    %c0_227 = arith.constant 0 : index
    %c0_228 = arith.constant 0 : index
    %804 = vector.load %arg14[%c0_227, %c0_228] : memref<128x128xbf16, #tpu.memory_space<vmem>>, vector<128x128xbf16>
    %cst_229 = arith.constant dense<0.000000e+00> : vector<8x128xf32>
    %805 = tpu.matmul %803, %804, %cst_229 {dimension_numbers = #tpu.dot_dimension_numbers<[1], [0], [0], [1], [0, 0, 1, 1], [], []>} : vector<8x128xbf16>, vector<128x128xbf16>, vector<8x128xf32> -> vector<8x128xf32>
    %c0_230 = arith.constant 0 : index
    %c0_231 = arith.constant 0 : index
    %806 = vector.load %arg15[%c0_230, %c0_231] : memref<1x128xf32, #tpu.memory_space<vmem>>, vector<1x128xf32>
    %807 = vector.broadcast %806 : vector<1x128xf32> to vector<8x128xf32>
    %808 = arith.addf %805, %807 : vector<8x128xf32>
    %cst_232 = arith.constant 0.000000e+00 : f32
    %809 = vector.broadcast %cst_232 : f32 to vector<8x128xf32>
    %810 = arith.maximumf %808, %809 : vector<8x128xf32>
    %811 = arith.mulf %778, %810 : vector<8x128xf32>
    %c0_233 = arith.constant 0 : index
    %c0_234 = arith.constant 0 : index
    %812 = vector.load %arg11[%c0_233, %c0_234] : memref<1x512xf32, #tpu.memory_space<vmem>>, vector<1x512xf32>
    %c0_235 = arith.constant 0 : index
    %c0_236 = arith.constant 0 : index
    %c0_237 = arith.constant 0 : index
    %813 = vector.load %arg1[%c0_235, %c0_236, %c0_237] : memref<5x8x2xf32, #tpu.memory_space<vmem>>, vector<1x8x2xf32>
    %814 = vector.shape_cast %813 : vector<1x8x2xf32> to vector<8x2xf32>
    %815 = vector.shape_cast %5 : vector<8x1xi1> to vector<8x1xi1>
    %816 = vector.broadcast %815 : vector<8x1xi1> to vector<8x2xi1>
    %817 = arith.select %816, %684, %814 : vector<8x2xi1>, vector<8x2xf32>
    %818 = vector.extract_strided_slice %817 {offsets = [0, 0], sizes = [8, 1], strides = [1, 1]} : vector<8x2xf32> to vector<8x1xf32>
    %819 = arith.cmpf one, %818, %818 : vector<8x1xf32>
    %820 = vector.extract_strided_slice %783 {offsets = [0, 0], sizes = [8, 1], strides = [1, 1]} : vector<8x2xf32> to vector<8x1xf32>
    %821 = arith.cmpf one, %820, %820 : vector<8x1xf32>
    %822 = arith.ori %819, %821 : vector<8x1xi1>
    %cst_238 = arith.constant dense<true> : vector<8x1xi1>
    %823 = arith.xori %822, %cst_238 : vector<8x1xi1>
    %824 = arith.subf %783, %817 : vector<8x2xf32>
    %cst_239 = arith.constant 0.000000e+00 : f32
    %825 = vector.shape_cast %823 : vector<8x1xi1> to vector<8x1xi1>
    %826 = vector.broadcast %825 : vector<8x1xi1> to vector<8x2xi1>
    %827 = vector.broadcast %cst_239 : f32 to vector<8x2xf32>
    %828 = arith.select %826, %824, %827 : vector<8x2xi1>, vector<8x2xf32>
    %cst_240 = arith.constant 4.000000e+00 : f32
    %829 = vector.broadcast %cst_240 : f32 to vector<8x2xf32>
    %830 = arith.mulf %829, %828 : vector<8x2xf32>
    %831 = vector.extract_strided_slice %830 {offsets = [0, 0], sizes = [8, 1], strides = [1, 1]} : vector<8x2xf32> to vector<8x1xf32>
    %832 = vector.extract_strided_slice %0 {offsets = [0, 0], sizes = [1, 128], strides = [1, 1]} : vector<2x128xf32> to vector<1x128xf32>
    %833 = vector.broadcast %831 : vector<8x1xf32> to vector<8x128xf32>
    %834 = vector.broadcast %832 : vector<1x128xf32> to vector<8x128xf32>
    %835 = arith.mulf %833, %834 : vector<8x128xf32>
    %836 = vector.extract_strided_slice %830 {offsets = [0, 1], sizes = [8, 1], strides = [1, 1]} : vector<8x2xf32> to vector<8x1xf32>
    %837 = vector.extract_strided_slice %0 {offsets = [1, 0], sizes = [1, 128], strides = [1, 1]} : vector<2x128xf32> to vector<1x128xf32>
    %838 = vector.broadcast %836 : vector<8x1xf32> to vector<8x128xf32>
    %839 = vector.broadcast %837 : vector<1x128xf32> to vector<8x128xf32>
    %840 = arith.mulf %838, %839 : vector<8x128xf32>
    %841 = arith.addf %835, %840 : vector<8x128xf32>
    %842 = vector.broadcast %1 : vector<1x128xf32> to vector<8x128xf32>
    %843 = arith.addf %841, %842 : vector<8x128xf32>
    %cst_241 = arith.constant 0.000000e+00 : f32
    %844 = vector.broadcast %cst_241 : f32 to vector<8x128xf32>
    %845 = arith.maximumf %843, %844 : vector<8x128xf32>
    %846 = arith.truncf %811 : vector<8x128xf32> to vector<8x128xbf16>
    %c0_242 = arith.constant 0 : index
    %c0_243 = arith.constant 0 : index
    %847 = vector.load %arg9[%c0_242, %c0_243] : memref<128x512xbf16, #tpu.memory_space<vmem>>, vector<128x512xbf16>
    %cst_244 = arith.constant dense<0.000000e+00> : vector<8x512xf32>
    %848 = tpu.matmul %846, %847, %cst_244 {dimension_numbers = #tpu.dot_dimension_numbers<[1], [0], [0], [1], [0, 0, 1, 1], [], []>} : vector<8x128xbf16>, vector<128x512xbf16>, vector<8x512xf32> -> vector<8x512xf32>
    %849 = arith.truncf %845 : vector<8x128xf32> to vector<8x128xbf16>
    %c0_245 = arith.constant 0 : index
    %c0_246 = arith.constant 0 : index
    %850 = vector.load %arg10[%c0_245, %c0_246] : memref<128x512xbf16, #tpu.memory_space<vmem>>, vector<128x512xbf16>
    %cst_247 = arith.constant dense<0.000000e+00> : vector<8x512xf32>
    %851 = tpu.matmul %849, %850, %cst_247 {dimension_numbers = #tpu.dot_dimension_numbers<[1], [0], [0], [1], [0, 0, 1, 1], [], []>} : vector<8x128xbf16>, vector<128x512xbf16>, vector<8x512xf32> -> vector<8x512xf32>
    %852 = arith.addf %848, %851 : vector<8x512xf32>
    %853 = vector.broadcast %812 : vector<1x512xf32> to vector<8x512xf32>
    %854 = arith.addf %852, %853 : vector<8x512xf32>
    %855 = vector.extract_strided_slice %854 {offsets = [0, 0], sizes = [8, 128], strides = [1, 1]} : vector<8x512xf32> to vector<8x128xf32>
    %856 = arith.negf %855 : vector<8x128xf32>
    %857 = math.exp %856 : vector<8x128xf32>
    %cst_248 = arith.constant 1.000000e+00 : f32
    %858 = vector.broadcast %cst_248 : f32 to vector<8x128xf32>
    %859 = arith.addf %858, %857 : vector<8x128xf32>
    %860 = arith.divf %858, %859 : vector<8x128xf32>
    %861 = vector.extract_strided_slice %854 {offsets = [0, 128], sizes = [8, 128], strides = [1, 1]} : vector<8x512xf32> to vector<8x128xf32>
    %862 = arith.negf %861 : vector<8x128xf32>
    %863 = math.exp %862 : vector<8x128xf32>
    %cst_249 = arith.constant 1.000000e+00 : f32
    %864 = vector.broadcast %cst_249 : f32 to vector<8x128xf32>
    %865 = arith.addf %864, %863 : vector<8x128xf32>
    %866 = arith.divf %864, %865 : vector<8x128xf32>
    %867 = vector.extract_strided_slice %854 {offsets = [0, 256], sizes = [8, 128], strides = [1, 1]} : vector<8x512xf32> to vector<8x128xf32>
    %868 = math.tanh %867 : vector<8x128xf32>
    %869 = vector.extract_strided_slice %854 {offsets = [0, 384], sizes = [8, 128], strides = [1, 1]} : vector<8x512xf32> to vector<8x128xf32>
    %870 = arith.negf %869 : vector<8x128xf32>
    %871 = math.exp %870 : vector<8x128xf32>
    %cst_250 = arith.constant 1.000000e+00 : f32
    %872 = vector.broadcast %cst_250 : f32 to vector<8x128xf32>
    %873 = arith.addf %872, %871 : vector<8x128xf32>
    %874 = arith.divf %872, %873 : vector<8x128xf32>
    %875 = arith.mulf %866, %781 : vector<8x128xf32>
    %876 = arith.mulf %860, %868 : vector<8x128xf32>
    %877 = arith.addf %875, %876 : vector<8x128xf32>
    %878 = math.tanh %877 : vector<8x128xf32>
    %879 = arith.mulf %874, %878 : vector<8x128xf32>
    %880 = arith.truncf %879 : vector<8x128xf32> to vector<8x128xbf16>
    %c0_251 = arith.constant 0 : index
    %c0_252 = arith.constant 0 : index
    %881 = vector.load %arg12[%c0_251, %c0_252] : memref<128x128xbf16, #tpu.memory_space<vmem>>, vector<128x128xbf16>
    %cst_253 = arith.constant dense<0.000000e+00> : vector<8x128xf32>
    %882 = tpu.matmul %880, %881, %cst_253 {dimension_numbers = #tpu.dot_dimension_numbers<[1], [0], [0], [1], [0, 0, 1, 1], [], []>} : vector<8x128xbf16>, vector<128x128xbf16>, vector<8x128xf32> -> vector<8x128xf32>
    %883 = vector.broadcast %2 : vector<1x128xf32> to vector<8x128xf32>
    %884 = arith.addf %882, %883 : vector<8x128xf32>
    %cst_254 = arith.constant 0x7FC00000 : f32
    %885 = vector.shape_cast %823 : vector<8x1xi1> to vector<8x1xi1>
    %886 = vector.broadcast %885 : vector<8x1xi1> to vector<8x128xi1>
    %887 = vector.broadcast %cst_254 : f32 to vector<8x128xf32>
    %888 = arith.select %886, %884, %887 : vector<8x128xi1>, vector<8x128xf32>
    %889 = vector.shape_cast %823 : vector<8x1xi1> to vector<8x1xi1>
    %890 = vector.broadcast %889 : vector<8x1xi1> to vector<8x128xi1>
    %891 = arith.select %890, %879, %811 : vector<8x128xi1>, vector<8x128xf32>
    %892 = vector.shape_cast %823 : vector<8x1xi1> to vector<8x1xi1>
    %893 = vector.broadcast %892 : vector<8x1xi1> to vector<8x128xi1>
    %894 = arith.select %893, %877, %781 : vector<8x128xi1>, vector<8x128xf32>
    %895 = vector.extract_strided_slice %888 {offsets = [0, 0], sizes = [8, 2], strides = [1, 1]} : vector<8x128xf32> to vector<8x2xf32>
    %896 = arith.addf %783, %895 : vector<8x2xf32>
    %897 = tpu.iota {dimensions = array<i32: 1>} : vector<8x128xi32>
    %c5_i32_255 = arith.constant 5 : i32
    %898 = vector.broadcast %c5_i32_255 : i32 to vector<8x128xi32>
    %899 = arith.cmpi eq, %897, %898 : vector<8x128xi32>
    %900 = vector.extract_strided_slice %896 {offsets = [0, 0], sizes = [8, 1], strides = [1, 1]} : vector<8x2xf32> to vector<8x1xf32>
    %c6_i32_256 = arith.constant 6 : i32
    %901 = vector.broadcast %c6_i32_256 : i32 to vector<8x128xi32>
    %902 = arith.cmpi eq, %897, %901 : vector<8x128xi32>
    %903 = vector.extract_strided_slice %896 {offsets = [0, 1], sizes = [8, 1], strides = [1, 1]} : vector<8x2xf32> to vector<8x1xf32>
    %904 = vector.shape_cast %903 : vector<8x1xf32> to vector<8x1xf32>
    %905 = vector.broadcast %904 : vector<8x1xf32> to vector<8x128xf32>
    %906 = arith.select %902, %905, %888 : vector<8x128xi1>, vector<8x128xf32>
    %907 = vector.shape_cast %900 : vector<8x1xf32> to vector<8x1xf32>
    %908 = vector.broadcast %907 : vector<8x1xf32> to vector<8x128xf32>
    %909 = arith.select %899, %908, %906 : vector<8x128xi1>, vector<8x128xf32>
    %c8_257 = arith.constant 8 : index
    %c0_258 = arith.constant 0 : index
    %c0_259 = arith.constant 0 : index
    %910 = vector.load %arg16[%c8_257, %c0_258, %c0_259] : memref<12x8x128xf32, #tpu.memory_space<vmem>>, vector<1x8x128xf32>
    %911 = vector.shape_cast %910 : vector<1x8x128xf32> to vector<8x128xf32>
    %912 = vector.shape_cast %909 : vector<8x128xf32> to vector<1x8x128xf32>
    tpu.vector_store %arg16[%c8_257, %c0_258, %c0_259], %912 {strides = array<i32>} : memref<12x8x128xf32, #tpu.memory_space<vmem>>, vector<1x8x128xf32>,
    %913 = vector.extract_strided_slice %783 {offsets = [0, 0], sizes = [8, 1], strides = [1, 1]} : vector<8x2xf32> to vector<8x1xf32>
    %914 = arith.cmpf one, %913, %913 : vector<8x1xf32>
    %915 = vector.extract_strided_slice %896 {offsets = [0, 0], sizes = [8, 1], strides = [1, 1]} : vector<8x2xf32> to vector<8x1xf32>
    %916 = arith.cmpf one, %915, %915 : vector<8x1xf32>
    %917 = arith.ori %914, %916 : vector<8x1xi1>
    %cst_260 = arith.constant dense<true> : vector<8x1xi1>
    %918 = arith.xori %917, %cst_260 : vector<8x1xi1>
    %919 = arith.subf %896, %783 : vector<8x2xf32>
    %cst_261 = arith.constant 0.000000e+00 : f32
    %920 = vector.shape_cast %918 : vector<8x1xi1> to vector<8x1xi1>
    %921 = vector.broadcast %920 : vector<8x1xi1> to vector<8x2xi1>
    %922 = vector.broadcast %cst_261 : f32 to vector<8x2xf32>
    %923 = arith.select %921, %919, %922 : vector<8x2xi1>, vector<8x2xf32>
    %cst_262 = arith.constant 4.000000e+00 : f32
    %924 = vector.broadcast %cst_262 : f32 to vector<8x2xf32>
    %925 = arith.mulf %924, %923 : vector<8x2xf32>
    %926 = vector.extract_strided_slice %925 {offsets = [0, 0], sizes = [8, 1], strides = [1, 1]} : vector<8x2xf32> to vector<8x1xf32>
    %927 = vector.extract_strided_slice %0 {offsets = [0, 0], sizes = [1, 128], strides = [1, 1]} : vector<2x128xf32> to vector<1x128xf32>
    %928 = vector.broadcast %926 : vector<8x1xf32> to vector<8x128xf32>
    %929 = vector.broadcast %927 : vector<1x128xf32> to vector<8x128xf32>
    %930 = arith.mulf %928, %929 : vector<8x128xf32>
    %931 = vector.extract_strided_slice %925 {offsets = [0, 1], sizes = [8, 1], strides = [1, 1]} : vector<8x2xf32> to vector<8x1xf32>
    %932 = vector.extract_strided_slice %0 {offsets = [1, 0], sizes = [1, 128], strides = [1, 1]} : vector<2x128xf32> to vector<1x128xf32>
    %933 = vector.broadcast %931 : vector<8x1xf32> to vector<8x128xf32>
    %934 = vector.broadcast %932 : vector<1x128xf32> to vector<8x128xf32>
    %935 = arith.mulf %933, %934 : vector<8x128xf32>
    %936 = arith.addf %930, %935 : vector<8x128xf32>
    %937 = vector.broadcast %1 : vector<1x128xf32> to vector<8x128xf32>
    %938 = arith.addf %936, %937 : vector<8x128xf32>
    %cst_263 = arith.constant 0.000000e+00 : f32
    %939 = vector.broadcast %cst_263 : f32 to vector<8x128xf32>
    %940 = arith.maximumf %938, %939 : vector<8x128xf32>
    %941 = arith.truncf %891 : vector<8x128xf32> to vector<8x128xbf16>
    %c0_264 = arith.constant 0 : index
    %c0_265 = arith.constant 0 : index
    %942 = vector.load %arg9[%c0_264, %c0_265] : memref<128x512xbf16, #tpu.memory_space<vmem>>, vector<128x512xbf16>
    %cst_266 = arith.constant dense<0.000000e+00> : vector<8x512xf32>
    %943 = tpu.matmul %941, %942, %cst_266 {dimension_numbers = #tpu.dot_dimension_numbers<[1], [0], [0], [1], [0, 0, 1, 1], [], []>} : vector<8x128xbf16>, vector<128x512xbf16>, vector<8x512xf32> -> vector<8x512xf32>
    %944 = arith.truncf %940 : vector<8x128xf32> to vector<8x128xbf16>
    %c0_267 = arith.constant 0 : index
    %c0_268 = arith.constant 0 : index
    %945 = vector.load %arg10[%c0_267, %c0_268] : memref<128x512xbf16, #tpu.memory_space<vmem>>, vector<128x512xbf16>
    %cst_269 = arith.constant dense<0.000000e+00> : vector<8x512xf32>
    %946 = tpu.matmul %944, %945, %cst_269 {dimension_numbers = #tpu.dot_dimension_numbers<[1], [0], [0], [1], [0, 0, 1, 1], [], []>} : vector<8x128xbf16>, vector<128x512xbf16>, vector<8x512xf32> -> vector<8x512xf32>
    %947 = arith.addf %943, %946 : vector<8x512xf32>
    %948 = vector.broadcast %812 : vector<1x512xf32> to vector<8x512xf32>
    %949 = arith.addf %947, %948 : vector<8x512xf32>
    %950 = vector.extract_strided_slice %949 {offsets = [0, 0], sizes = [8, 128], strides = [1, 1]} : vector<8x512xf32> to vector<8x128xf32>
    %951 = arith.negf %950 : vector<8x128xf32>
    %952 = math.exp %951 : vector<8x128xf32>
    %cst_270 = arith.constant 1.000000e+00 : f32
    %953 = vector.broadcast %cst_270 : f32 to vector<8x128xf32>
    %954 = arith.addf %953, %952 : vector<8x128xf32>
    %955 = arith.divf %953, %954 : vector<8x128xf32>
    %956 = vector.extract_strided_slice %949 {offsets = [0, 128], sizes = [8, 128], strides = [1, 1]} : vector<8x512xf32> to vector<8x128xf32>
    %957 = arith.negf %956 : vector<8x128xf32>
    %958 = math.exp %957 : vector<8x128xf32>
    %cst_271 = arith.constant 1.000000e+00 : f32
    %959 = vector.broadcast %cst_271 : f32 to vector<8x128xf32>
    %960 = arith.addf %959, %958 : vector<8x128xf32>
    %961 = arith.divf %959, %960 : vector<8x128xf32>
    %962 = vector.extract_strided_slice %949 {offsets = [0, 256], sizes = [8, 128], strides = [1, 1]} : vector<8x512xf32> to vector<8x128xf32>
    %963 = math.tanh %962 : vector<8x128xf32>
    %964 = vector.extract_strided_slice %949 {offsets = [0, 384], sizes = [8, 128], strides = [1, 1]} : vector<8x512xf32> to vector<8x128xf32>
    %965 = arith.negf %964 : vector<8x128xf32>
    %966 = math.exp %965 : vector<8x128xf32>
    %cst_272 = arith.constant 1.000000e+00 : f32
    %967 = vector.broadcast %cst_272 : f32 to vector<8x128xf32>
    %968 = arith.addf %967, %966 : vector<8x128xf32>
    %969 = arith.divf %967, %968 : vector<8x128xf32>
    %970 = arith.mulf %961, %894 : vector<8x128xf32>
    %971 = arith.mulf %955, %963 : vector<8x128xf32>
    %972 = arith.addf %970, %971 : vector<8x128xf32>
    %973 = math.tanh %972 : vector<8x128xf32>
    %974 = arith.mulf %969, %973 : vector<8x128xf32>
    %975 = arith.truncf %974 : vector<8x128xf32> to vector<8x128xbf16>
    %c0_273 = arith.constant 0 : index
    %c0_274 = arith.constant 0 : index
    %976 = vector.load %arg12[%c0_273, %c0_274] : memref<128x128xbf16, #tpu.memory_space<vmem>>, vector<128x128xbf16>
    %cst_275 = arith.constant dense<0.000000e+00> : vector<8x128xf32>
    %977 = tpu.matmul %975, %976, %cst_275 {dimension_numbers = #tpu.dot_dimension_numbers<[1], [0], [0], [1], [0, 0, 1, 1], [], []>} : vector<8x128xbf16>, vector<128x128xbf16>, vector<8x128xf32> -> vector<8x128xf32>
    %978 = vector.broadcast %2 : vector<1x128xf32> to vector<8x128xf32>
    %979 = arith.addf %977, %978 : vector<8x128xf32>
    %cst_276 = arith.constant 0x7FC00000 : f32
    %980 = vector.shape_cast %918 : vector<8x1xi1> to vector<8x1xi1>
    %981 = vector.broadcast %980 : vector<8x1xi1> to vector<8x128xi1>
    %982 = vector.broadcast %cst_276 : f32 to vector<8x128xf32>
    %983 = arith.select %981, %979, %982 : vector<8x128xi1>, vector<8x128xf32>
    %984 = vector.shape_cast %918 : vector<8x1xi1> to vector<8x1xi1>
    %985 = vector.broadcast %984 : vector<8x1xi1> to vector<8x128xi1>
    %986 = arith.select %985, %974, %891 : vector<8x128xi1>, vector<8x128xf32>
    %987 = vector.shape_cast %918 : vector<8x1xi1> to vector<8x1xi1>
    %988 = vector.broadcast %987 : vector<8x1xi1> to vector<8x128xi1>
    %989 = arith.select %988, %972, %894 : vector<8x128xi1>, vector<8x128xf32>
    %990 = vector.extract_strided_slice %983 {offsets = [0, 0], sizes = [8, 2], strides = [1, 1]} : vector<8x128xf32> to vector<8x2xf32>
    %991 = arith.addf %896, %990 : vector<8x2xf32>
    %992 = tpu.iota {dimensions = array<i32: 1>} : vector<8x128xi32>
    %c5_i32_277 = arith.constant 5 : i32
    %993 = vector.broadcast %c5_i32_277 : i32 to vector<8x128xi32>
    %994 = arith.cmpi eq, %992, %993 : vector<8x128xi32>
    %995 = vector.extract_strided_slice %991 {offsets = [0, 0], sizes = [8, 1], strides = [1, 1]} : vector<8x2xf32> to vector<8x1xf32>
    %c6_i32_278 = arith.constant 6 : i32
    %996 = vector.broadcast %c6_i32_278 : i32 to vector<8x128xi32>
    %997 = arith.cmpi eq, %992, %996 : vector<8x128xi32>
    %998 = vector.extract_strided_slice %991 {offsets = [0, 1], sizes = [8, 1], strides = [1, 1]} : vector<8x2xf32> to vector<8x1xf32>
    %999 = vector.shape_cast %998 : vector<8x1xf32> to vector<8x1xf32>
    %1000 = vector.broadcast %999 : vector<8x1xf32> to vector<8x128xf32>
    %1001 = arith.select %997, %1000, %983 : vector<8x128xi1>, vector<8x128xf32>
    %1002 = vector.shape_cast %995 : vector<8x1xf32> to vector<8x1xf32>
    %1003 = vector.broadcast %1002 : vector<8x1xf32> to vector<8x128xf32>
    %1004 = arith.select %994, %1003, %1001 : vector<8x128xi1>, vector<8x128xf32>
    %c9 = arith.constant 9 : index
    %c0_279 = arith.constant 0 : index
    %c0_280 = arith.constant 0 : index
    %1005 = vector.load %arg16[%c9, %c0_279, %c0_280] : memref<12x8x128xf32, #tpu.memory_space<vmem>>, vector<1x8x128xf32>
    %1006 = vector.shape_cast %1005 : vector<1x8x128xf32> to vector<8x128xf32>
    %1007 = vector.shape_cast %1004 : vector<8x128xf32> to vector<1x8x128xf32>
    tpu.vector_store %arg16[%c9, %c0_279, %c0_280], %1007 {strides = array<i32>} : memref<12x8x128xf32, #tpu.memory_space<vmem>>, vector<1x8x128xf32>,
    %1008 = vector.extract_strided_slice %896 {offsets = [0, 0], sizes = [8, 1], strides = [1, 1]} : vector<8x2xf32> to vector<8x1xf32>
    %1009 = arith.cmpf one, %1008, %1008 : vector<8x1xf32>
    %1010 = vector.extract_strided_slice %991 {offsets = [0, 0], sizes = [8, 1], strides = [1, 1]} : vector<8x2xf32> to vector<8x1xf32>
    %1011 = arith.cmpf one, %1010, %1010 : vector<8x1xf32>
    %1012 = arith.ori %1009, %1011 : vector<8x1xi1>
    %cst_281 = arith.constant dense<true> : vector<8x1xi1>
    %1013 = arith.xori %1012, %cst_281 : vector<8x1xi1>
    %1014 = arith.subf %991, %896 : vector<8x2xf32>
    %cst_282 = arith.constant 0.000000e+00 : f32
    %1015 = vector.shape_cast %1013 : vector<8x1xi1> to vector<8x1xi1>
    %1016 = vector.broadcast %1015 : vector<8x1xi1> to vector<8x2xi1>
    %1017 = vector.broadcast %cst_282 : f32 to vector<8x2xf32>
    %1018 = arith.select %1016, %1014, %1017 : vector<8x2xi1>, vector<8x2xf32>
    %cst_283 = arith.constant 4.000000e+00 : f32
    %1019 = vector.broadcast %cst_283 : f32 to vector<8x2xf32>
    %1020 = arith.mulf %1019, %1018 : vector<8x2xf32>
    %1021 = vector.extract_strided_slice %1020 {offsets = [0, 0], sizes = [8, 1], strides = [1, 1]} : vector<8x2xf32> to vector<8x1xf32>
    %1022 = vector.extract_strided_slice %0 {offsets = [0, 0], sizes = [1, 128], strides = [1, 1]} : vector<2x128xf32> to vector<1x128xf32>
    %1023 = vector.broadcast %1021 : vector<8x1xf32> to vector<8x128xf32>
    %1024 = vector.broadcast %1022 : vector<1x128xf32> to vector<8x128xf32>
    %1025 = arith.mulf %1023, %1024 : vector<8x128xf32>
    %1026 = vector.extract_strided_slice %1020 {offsets = [0, 1], sizes = [8, 1], strides = [1, 1]} : vector<8x2xf32> to vector<8x1xf32>
    %1027 = vector.extract_strided_slice %0 {offsets = [1, 0], sizes = [1, 128], strides = [1, 1]} : vector<2x128xf32> to vector<1x128xf32>
    %1028 = vector.broadcast %1026 : vector<8x1xf32> to vector<8x128xf32>
    %1029 = vector.broadcast %1027 : vector<1x128xf32> to vector<8x128xf32>
    %1030 = arith.mulf %1028, %1029 : vector<8x128xf32>
    %1031 = arith.addf %1025, %1030 : vector<8x128xf32>
    %1032 = vector.broadcast %1 : vector<1x128xf32> to vector<8x128xf32>
    %1033 = arith.addf %1031, %1032 : vector<8x128xf32>
    %cst_284 = arith.constant 0.000000e+00 : f32
    %1034 = vector.broadcast %cst_284 : f32 to vector<8x128xf32>
    %1035 = arith.maximumf %1033, %1034 : vector<8x128xf32>
    %1036 = arith.truncf %986 : vector<8x128xf32> to vector<8x128xbf16>
    %c0_285 = arith.constant 0 : index
    %c0_286 = arith.constant 0 : index
    %1037 = vector.load %arg9[%c0_285, %c0_286] : memref<128x512xbf16, #tpu.memory_space<vmem>>, vector<128x512xbf16>
    %cst_287 = arith.constant dense<0.000000e+00> : vector<8x512xf32>
    %1038 = tpu.matmul %1036, %1037, %cst_287 {dimension_numbers = #tpu.dot_dimension_numbers<[1], [0], [0], [1], [0, 0, 1, 1], [], []>} : vector<8x128xbf16>, vector<128x512xbf16>, vector<8x512xf32> -> vector<8x512xf32>
    %1039 = arith.truncf %1035 : vector<8x128xf32> to vector<8x128xbf16>
    %c0_288 = arith.constant 0 : index
    %c0_289 = arith.constant 0 : index
    %1040 = vector.load %arg10[%c0_288, %c0_289] : memref<128x512xbf16, #tpu.memory_space<vmem>>, vector<128x512xbf16>
    %cst_290 = arith.constant dense<0.000000e+00> : vector<8x512xf32>
    %1041 = tpu.matmul %1039, %1040, %cst_290 {dimension_numbers = #tpu.dot_dimension_numbers<[1], [0], [0], [1], [0, 0, 1, 1], [], []>} : vector<8x128xbf16>, vector<128x512xbf16>, vector<8x512xf32> -> vector<8x512xf32>
    %1042 = arith.addf %1038, %1041 : vector<8x512xf32>
    %1043 = vector.broadcast %812 : vector<1x512xf32> to vector<8x512xf32>
    %1044 = arith.addf %1042, %1043 : vector<8x512xf32>
    %1045 = vector.extract_strided_slice %1044 {offsets = [0, 0], sizes = [8, 128], strides = [1, 1]} : vector<8x512xf32> to vector<8x128xf32>
    %1046 = arith.negf %1045 : vector<8x128xf32>
    %1047 = math.exp %1046 : vector<8x128xf32>
    %cst_291 = arith.constant 1.000000e+00 : f32
    %1048 = vector.broadcast %cst_291 : f32 to vector<8x128xf32>
    %1049 = arith.addf %1048, %1047 : vector<8x128xf32>
    %1050 = arith.divf %1048, %1049 : vector<8x128xf32>
    %1051 = vector.extract_strided_slice %1044 {offsets = [0, 128], sizes = [8, 128], strides = [1, 1]} : vector<8x512xf32> to vector<8x128xf32>
    %1052 = arith.negf %1051 : vector<8x128xf32>
    %1053 = math.exp %1052 : vector<8x128xf32>
    %cst_292 = arith.constant 1.000000e+00 : f32
    %1054 = vector.broadcast %cst_292 : f32 to vector<8x128xf32>
    %1055 = arith.addf %1054, %1053 : vector<8x128xf32>
    %1056 = arith.divf %1054, %1055 : vector<8x128xf32>
    %1057 = vector.extract_strided_slice %1044 {offsets = [0, 256], sizes = [8, 128], strides = [1, 1]} : vector<8x512xf32> to vector<8x128xf32>
    %1058 = math.tanh %1057 : vector<8x128xf32>
    %1059 = vector.extract_strided_slice %1044 {offsets = [0, 384], sizes = [8, 128], strides = [1, 1]} : vector<8x512xf32> to vector<8x128xf32>
    %1060 = arith.negf %1059 : vector<8x128xf32>
    %1061 = math.exp %1060 : vector<8x128xf32>
    %cst_293 = arith.constant 1.000000e+00 : f32
    %1062 = vector.broadcast %cst_293 : f32 to vector<8x128xf32>
    %1063 = arith.addf %1062, %1061 : vector<8x128xf32>
    %1064 = arith.divf %1062, %1063 : vector<8x128xf32>
    %1065 = arith.mulf %1056, %989 : vector<8x128xf32>
    %1066 = arith.mulf %1050, %1058 : vector<8x128xf32>
    %1067 = arith.addf %1065, %1066 : vector<8x128xf32>
    %1068 = math.tanh %1067 : vector<8x128xf32>
    %1069 = arith.mulf %1064, %1068 : vector<8x128xf32>
    %1070 = arith.truncf %1069 : vector<8x128xf32> to vector<8x128xbf16>
    %c0_294 = arith.constant 0 : index
    %c0_295 = arith.constant 0 : index
    %1071 = vector.load %arg12[%c0_294, %c0_295] : memref<128x128xbf16, #tpu.memory_space<vmem>>, vector<128x128xbf16>
    %cst_296 = arith.constant dense<0.000000e+00> : vector<8x128xf32>
    %1072 = tpu.matmul %1070, %1071, %cst_296 {dimension_numbers = #tpu.dot_dimension_numbers<[1], [0], [0], [1], [0, 0, 1, 1], [], []>} : vector<8x128xbf16>, vector<128x128xbf16>, vector<8x128xf32> -> vector<8x128xf32>
    %1073 = vector.broadcast %2 : vector<1x128xf32> to vector<8x128xf32>
    %1074 = arith.addf %1072, %1073 : vector<8x128xf32>
    %cst_297 = arith.constant 0x7FC00000 : f32
    %1075 = vector.shape_cast %1013 : vector<8x1xi1> to vector<8x1xi1>
    %1076 = vector.broadcast %1075 : vector<8x1xi1> to vector<8x128xi1>
    %1077 = vector.broadcast %cst_297 : f32 to vector<8x128xf32>
    %1078 = arith.select %1076, %1074, %1077 : vector<8x128xi1>, vector<8x128xf32>
    %1079 = vector.shape_cast %1013 : vector<8x1xi1> to vector<8x1xi1>
    %1080 = vector.broadcast %1079 : vector<8x1xi1> to vector<8x128xi1>
    %1081 = arith.select %1080, %1069, %986 : vector<8x128xi1>, vector<8x128xf32>
    %1082 = vector.shape_cast %1013 : vector<8x1xi1> to vector<8x1xi1>
    %1083 = vector.broadcast %1082 : vector<8x1xi1> to vector<8x128xi1>
    %1084 = arith.select %1083, %1067, %989 : vector<8x128xi1>, vector<8x128xf32>
    %1085 = vector.extract_strided_slice %1078 {offsets = [0, 0], sizes = [8, 2], strides = [1, 1]} : vector<8x128xf32> to vector<8x2xf32>
    %1086 = arith.addf %991, %1085 : vector<8x2xf32>
    %1087 = tpu.iota {dimensions = array<i32: 1>} : vector<8x128xi32>
    %c5_i32_298 = arith.constant 5 : i32
    %1088 = vector.broadcast %c5_i32_298 : i32 to vector<8x128xi32>
    %1089 = arith.cmpi eq, %1087, %1088 : vector<8x128xi32>
    %1090 = vector.extract_strided_slice %1086 {offsets = [0, 0], sizes = [8, 1], strides = [1, 1]} : vector<8x2xf32> to vector<8x1xf32>
    %c6_i32_299 = arith.constant 6 : i32
    %1091 = vector.broadcast %c6_i32_299 : i32 to vector<8x128xi32>
    %1092 = arith.cmpi eq, %1087, %1091 : vector<8x128xi32>
    %1093 = vector.extract_strided_slice %1086 {offsets = [0, 1], sizes = [8, 1], strides = [1, 1]} : vector<8x2xf32> to vector<8x1xf32>
    %1094 = vector.shape_cast %1093 : vector<8x1xf32> to vector<8x1xf32>
    %1095 = vector.broadcast %1094 : vector<8x1xf32> to vector<8x128xf32>
    %1096 = arith.select %1092, %1095, %1078 : vector<8x128xi1>, vector<8x128xf32>
    %1097 = vector.shape_cast %1090 : vector<8x1xf32> to vector<8x1xf32>
    %1098 = vector.broadcast %1097 : vector<8x1xf32> to vector<8x128xf32>
    %1099 = arith.select %1089, %1098, %1096 : vector<8x128xi1>, vector<8x128xf32>
    %c10 = arith.constant 10 : index
    %c0_300 = arith.constant 0 : index
    %c0_301 = arith.constant 0 : index
    %1100 = vector.load %arg16[%c10, %c0_300, %c0_301] : memref<12x8x128xf32, #tpu.memory_space<vmem>>, vector<1x8x128xf32>
    %1101 = vector.shape_cast %1100 : vector<1x8x128xf32> to vector<8x128xf32>
    %1102 = vector.shape_cast %1099 : vector<8x128xf32> to vector<1x8x128xf32>
    tpu.vector_store %arg16[%c10, %c0_300, %c0_301], %1102 {strides = array<i32>} : memref<12x8x128xf32, #tpu.memory_space<vmem>>, vector<1x8x128xf32>,
    %1103 = vector.extract_strided_slice %991 {offsets = [0, 0], sizes = [8, 1], strides = [1, 1]} : vector<8x2xf32> to vector<8x1xf32>
    %1104 = arith.cmpf one, %1103, %1103 : vector<8x1xf32>
    %1105 = vector.extract_strided_slice %1086 {offsets = [0, 0], sizes = [8, 1], strides = [1, 1]} : vector<8x2xf32> to vector<8x1xf32>
    %1106 = arith.cmpf one, %1105, %1105 : vector<8x1xf32>
    %1107 = arith.ori %1104, %1106 : vector<8x1xi1>
    %cst_302 = arith.constant dense<true> : vector<8x1xi1>
    %1108 = arith.xori %1107, %cst_302 : vector<8x1xi1>
    %1109 = arith.subf %1086, %991 : vector<8x2xf32>
    %cst_303 = arith.constant 0.000000e+00 : f32
    %1110 = vector.shape_cast %1108 : vector<8x1xi1> to vector<8x1xi1>
    %1111 = vector.broadcast %1110 : vector<8x1xi1> to vector<8x2xi1>
    %1112 = vector.broadcast %cst_303 : f32 to vector<8x2xf32>
    %1113 = arith.select %1111, %1109, %1112 : vector<8x2xi1>, vector<8x2xf32>
    %cst_304 = arith.constant 4.000000e+00 : f32
    %1114 = vector.broadcast %cst_304 : f32 to vector<8x2xf32>
    %1115 = arith.mulf %1114, %1113 : vector<8x2xf32>
    %1116 = vector.extract_strided_slice %1115 {offsets = [0, 0], sizes = [8, 1], strides = [1, 1]} : vector<8x2xf32> to vector<8x1xf32>
    %1117 = vector.extract_strided_slice %0 {offsets = [0, 0], sizes = [1, 128], strides = [1, 1]} : vector<2x128xf32> to vector<1x128xf32>
    %1118 = vector.broadcast %1116 : vector<8x1xf32> to vector<8x128xf32>
    %1119 = vector.broadcast %1117 : vector<1x128xf32> to vector<8x128xf32>
    %1120 = arith.mulf %1118, %1119 : vector<8x128xf32>
    %1121 = vector.extract_strided_slice %1115 {offsets = [0, 1], sizes = [8, 1], strides = [1, 1]} : vector<8x2xf32> to vector<8x1xf32>
    %1122 = vector.extract_strided_slice %0 {offsets = [1, 0], sizes = [1, 128], strides = [1, 1]} : vector<2x128xf32> to vector<1x128xf32>
    %1123 = vector.broadcast %1121 : vector<8x1xf32> to vector<8x128xf32>
    %1124 = vector.broadcast %1122 : vector<1x128xf32> to vector<8x128xf32>
    %1125 = arith.mulf %1123, %1124 : vector<8x128xf32>
    %1126 = arith.addf %1120, %1125 : vector<8x128xf32>
    %1127 = vector.broadcast %1 : vector<1x128xf32> to vector<8x128xf32>
    %1128 = arith.addf %1126, %1127 : vector<8x128xf32>
    %cst_305 = arith.constant 0.000000e+00 : f32
    %1129 = vector.broadcast %cst_305 : f32 to vector<8x128xf32>
    %1130 = arith.maximumf %1128, %1129 : vector<8x128xf32>
    %1131 = arith.truncf %1081 : vector<8x128xf32> to vector<8x128xbf16>
    %c0_306 = arith.constant 0 : index
    %c0_307 = arith.constant 0 : index
    %1132 = vector.load %arg9[%c0_306, %c0_307] : memref<128x512xbf16, #tpu.memory_space<vmem>>, vector<128x512xbf16>
    %cst_308 = arith.constant dense<0.000000e+00> : vector<8x512xf32>
    %1133 = tpu.matmul %1131, %1132, %cst_308 {dimension_numbers = #tpu.dot_dimension_numbers<[1], [0], [0], [1], [0, 0, 1, 1], [], []>} : vector<8x128xbf16>, vector<128x512xbf16>, vector<8x512xf32> -> vector<8x512xf32>
    %1134 = arith.truncf %1130 : vector<8x128xf32> to vector<8x128xbf16>
    %c0_309 = arith.constant 0 : index
    %c0_310 = arith.constant 0 : index
    %1135 = vector.load %arg10[%c0_309, %c0_310] : memref<128x512xbf16, #tpu.memory_space<vmem>>, vector<128x512xbf16>
    %cst_311 = arith.constant dense<0.000000e+00> : vector<8x512xf32>
    %1136 = tpu.matmul %1134, %1135, %cst_311 {dimension_numbers = #tpu.dot_dimension_numbers<[1], [0], [0], [1], [0, 0, 1, 1], [], []>} : vector<8x128xbf16>, vector<128x512xbf16>, vector<8x512xf32> -> vector<8x512xf32>
    %1137 = arith.addf %1133, %1136 : vector<8x512xf32>
    %1138 = vector.broadcast %812 : vector<1x512xf32> to vector<8x512xf32>
    %1139 = arith.addf %1137, %1138 : vector<8x512xf32>
    %1140 = vector.extract_strided_slice %1139 {offsets = [0, 0], sizes = [8, 128], strides = [1, 1]} : vector<8x512xf32> to vector<8x128xf32>
    %1141 = arith.negf %1140 : vector<8x128xf32>
    %1142 = math.exp %1141 : vector<8x128xf32>
    %cst_312 = arith.constant 1.000000e+00 : f32
    %1143 = vector.broadcast %cst_312 : f32 to vector<8x128xf32>
    %1144 = arith.addf %1143, %1142 : vector<8x128xf32>
    %1145 = arith.divf %1143, %1144 : vector<8x128xf32>
    %1146 = vector.extract_strided_slice %1139 {offsets = [0, 128], sizes = [8, 128], strides = [1, 1]} : vector<8x512xf32> to vector<8x128xf32>
    %1147 = arith.negf %1146 : vector<8x128xf32>
    %1148 = math.exp %1147 : vector<8x128xf32>
    %cst_313 = arith.constant 1.000000e+00 : f32
    %1149 = vector.broadcast %cst_313 : f32 to vector<8x128xf32>
    %1150 = arith.addf %1149, %1148 : vector<8x128xf32>
    %1151 = arith.divf %1149, %1150 : vector<8x128xf32>
    %1152 = vector.extract_strided_slice %1139 {offsets = [0, 256], sizes = [8, 128], strides = [1, 1]} : vector<8x512xf32> to vector<8x128xf32>
    %1153 = math.tanh %1152 : vector<8x128xf32>
    %1154 = vector.extract_strided_slice %1139 {offsets = [0, 384], sizes = [8, 128], strides = [1, 1]} : vector<8x512xf32> to vector<8x128xf32>
    %1155 = arith.negf %1154 : vector<8x128xf32>
    %1156 = math.exp %1155 : vector<8x128xf32>
    %cst_314 = arith.constant 1.000000e+00 : f32
    %1157 = vector.broadcast %cst_314 : f32 to vector<8x128xf32>
    %1158 = arith.addf %1157, %1156 : vector<8x128xf32>
    %1159 = arith.divf %1157, %1158 : vector<8x128xf32>
    %1160 = arith.mulf %1151, %1084 : vector<8x128xf32>
    %1161 = arith.mulf %1145, %1153 : vector<8x128xf32>
    %1162 = arith.addf %1160, %1161 : vector<8x128xf32>
    %1163 = math.tanh %1162 : vector<8x128xf32>
    %1164 = arith.mulf %1159, %1163 : vector<8x128xf32>
    %1165 = arith.truncf %1164 : vector<8x128xf32> to vector<8x128xbf16>
    %c0_315 = arith.constant 0 : index
    %c0_316 = arith.constant 0 : index
    %1166 = vector.load %arg12[%c0_315, %c0_316] : memref<128x128xbf16, #tpu.memory_space<vmem>>, vector<128x128xbf16>
    %cst_317 = arith.constant dense<0.000000e+00> : vector<8x128xf32>
    %1167 = tpu.matmul %1165, %1166, %cst_317 {dimension_numbers = #tpu.dot_dimension_numbers<[1], [0], [0], [1], [0, 0, 1, 1], [], []>} : vector<8x128xbf16>, vector<128x128xbf16>, vector<8x128xf32> -> vector<8x128xf32>
    %1168 = vector.broadcast %2 : vector<1x128xf32> to vector<8x128xf32>
    %1169 = arith.addf %1167, %1168 : vector<8x128xf32>
    %cst_318 = arith.constant 0x7FC00000 : f32
    %1170 = vector.shape_cast %1108 : vector<8x1xi1> to vector<8x1xi1>
    %1171 = vector.broadcast %1170 : vector<8x1xi1> to vector<8x128xi1>
    %1172 = vector.broadcast %cst_318 : f32 to vector<8x128xf32>
    %1173 = arith.select %1171, %1169, %1172 : vector<8x128xi1>, vector<8x128xf32>
    %1174 = vector.extract_strided_slice %1173 {offsets = [0, 0], sizes = [8, 2], strides = [1, 1]} : vector<8x128xf32> to vector<8x2xf32>
    %1175 = arith.addf %1086, %1174 : vector<8x2xf32>
    %1176 = tpu.iota {dimensions = array<i32: 1>} : vector<8x128xi32>
    %c5_i32_319 = arith.constant 5 : i32
    %1177 = vector.broadcast %c5_i32_319 : i32 to vector<8x128xi32>
    %1178 = arith.cmpi eq, %1176, %1177 : vector<8x128xi32>
    %1179 = vector.extract_strided_slice %1175 {offsets = [0, 0], sizes = [8, 1], strides = [1, 1]} : vector<8x2xf32> to vector<8x1xf32>
    %c6_i32_320 = arith.constant 6 : i32
    %1180 = vector.broadcast %c6_i32_320 : i32 to vector<8x128xi32>
    %1181 = arith.cmpi eq, %1176, %1180 : vector<8x128xi32>
    %1182 = vector.extract_strided_slice %1175 {offsets = [0, 1], sizes = [8, 1], strides = [1, 1]} : vector<8x2xf32> to vector<8x1xf32>
    %1183 = vector.shape_cast %1182 : vector<8x1xf32> to vector<8x1xf32>
    %1184 = vector.broadcast %1183 : vector<8x1xf32> to vector<8x128xf32>
    %1185 = arith.select %1181, %1184, %1173 : vector<8x128xi1>, vector<8x128xf32>
    %1186 = vector.shape_cast %1179 : vector<8x1xf32> to vector<8x1xf32>
    %1187 = vector.broadcast %1186 : vector<8x1xf32> to vector<8x128xf32>
    %1188 = arith.select %1178, %1187, %1185 : vector<8x128xi1>, vector<8x128xf32>
    %c11 = arith.constant 11 : index
    %c0_321 = arith.constant 0 : index
    %c0_322 = arith.constant 0 : index
    %1189 = vector.load %arg16[%c11, %c0_321, %c0_322] : memref<12x8x128xf32, #tpu.memory_space<vmem>>, vector<1x8x128xf32>
    %1190 = vector.shape_cast %1189 : vector<1x8x128xf32> to vector<8x128xf32>
    %1191 = vector.shape_cast %1188 : vector<8x128xf32> to vector<1x8x128xf32>
    tpu.vector_store %arg16[%c11, %c0_321, %c0_322], %1191 {strides = array<i32>} : memref<12x8x128xf32, #tpu.memory_space<vmem>>, vector<1x8x128xf32>,
    return
  }
}

</mosaic_0001>

<bundles_post_ra>
// kernel: tpu_custom_call.1
= control target key start
LH: loop header
LB: loop body
LE: loop exit
PB: predicated region body
PF: predicated region fallthrough
CT: control target
= control target key end

     0   :  { %s14438_s0 = inlined_call_operand.vmem [shape: f32[9,8,2], index: 0, kind: input, shape index: {}]   ;;  %s14439_s1 = inlined_call_operand.vmem [shape: f32[5,8,2], index: 1, kind: input, shape index: {}]   ;;  %s14440_s2 = inlined_call_operand.vmem [shape: f32[8,1], index: 2, kind: input, shape index: {}]   ;;  %s14441_s3 = inlined_call_operand.vmem [shape: f32[8,128], index: 3, kind: input, shape index: {}]   ;;  %s14442_s4 = inlined_call_operand.vmem [shape: f32[2,128], index: 4, kind: input, shape index: {}]   ;;  %s14443_s5 = inlined_call_operand.vmem [shape: f32[1,128], index: 5, kind: input, shape index: {}]   ;;  %s14444_s6 = inlined_call_operand.hbm [shape: bf16[128,512], index: 6, kind: input, shape index: {}]   ;;  %s14445_s7 = inlined_call_operand.hbm [shape: bf16[128,512], index: 7, kind: input, shape index: {}]   ;;  %s14446_s8 = inlined_call_operand.vmem [shape: f32[1,512], index: 8, kind: input, shape index: {}]   ;;  %s14447_s9 = inlined_call_operand.hbm [shape: bf16[128,512], index: 9, kind: input, shape index: {}]   ;;  %s14448_s10 = inlined_call_operand.hbm [shape: bf16[128,512], index: 10, kind: input, shape index: {}]   ;;  %s14449_s11 = inlined_call_operand.vmem [shape: f32[1,512], index: 11, kind: input, shape index: {}]   ;;  %s14450_s12 = inlined_call_operand.vmem [shape: bf16[128,128], index: 12, kind: input, shape index: {}]   ;;  %s14451_s13 = inlined_call_operand.vmem [shape: f32[1,128], index: 13, kind: input, shape index: {}]   ;;  %s14452_s14 = inlined_call_operand.vmem [shape: bf16[128,128], index: 14, kind: input, shape index: {}]   ;;  %s14453_s15 = inlined_call_operand.vmem [shape: f32[1,128], index: 15, kind: input, shape index: {}]   ;;  %s14454_s16 = inlined_call_operand.hbm [shape: f32[12,8,128], index: 16, kind: output, shape index: {}]  }
   0x1   :  { %14572 = sst [smem:[#allocation51_spill]] %s14438_s0 }
   0x2   :  { %21 = vsyncpa [#allocation3], 0 }
   0x3   :  { %22 = vsyncpa [#allocation6], 0 }
   0x4   :  { %23 = vsyncpa [#allocation9], 0 }
   0x5   :  { %24 = vsyncpa [#allocation4], 0  ;;  %s11428_s21 = smov [#allocation5]   ;;  %s11429_s23 = smov [#allocation2]  }
   0x6   :  { %s54_s22 = sshll.u32 %s11428_s21, 4  ;;  %s42_s24 = sshll.u32 %s11429_s23, 4  ;;  %s55_s22 = int_to_ptr.vmem [resolvable:$true] %s54_s22  ;;  %s11527_s24 = int_to_ptr.vmem [resolvable:$true] %s42_s24 }
   0x7   :  { %s11310_s27 = scalar_lea.hbm %s14445_s7, 4096 }
   0x8   :  { %p11311_p0 = scmp.ne.s32.totalorder %s14445_s7, %s11310_s27  ;;  %p11314_p1 = scmp.lt.u32.totalorder %s11310_s27, %s14445_s7 }
   0xa   :  { %p11316_p2 = pnand %p11314_p1, %p11311_p0 }
   0xc   :  { %11319 = shalt.err (!%p11316_p2)
}
   0xd   :  { %s11320_s17 = scalar_lea.vmem %s55_s22, 4096  ;;  %p11325_p4 = scmp.lt.s32.totalorder %s55_s22, %s55_s22 }
   0xe   :  { %p11321_p3 = scmp.ne.s32.totalorder %s55_s22, %s11320_s17  ;;  %p11326_p5 = scmp.lt.s32.totalorder %s11320_s17, %s11320_s17 }
  0x10   :  { %p11327_p6 = por %p11326_p5, %p11325_p4 }
  0x12   :  { %p11328_p7 = pnand %p11327_p6, %p11321_p3 }
  0x14   :  { %11331 = shalt.err (!%p11328_p7)
}
  0x15   :  { %s11430_s18 = smov 256   ;;  %s11431_s19 = smov 16  }
  0x16   :  { %60 = dma.hbm_to_vmem [thread:$0]  %s14445_s7, 4096, %s55_s22, [#allocation6], %s11430_s18, %s11430_s18, %s11431_s19  }
  0x17   :  { %s11332_s26 = scalar_lea.hbm %s14444_s6, 4096 }
  0x18   :  { %p11333_p8 = scmp.ne.s32.totalorder %s14444_s6, %s11332_s26  ;;  %p11336_p9 = scmp.lt.u32.totalorder %s11332_s26, %s14444_s6 }
  0x1a   :  { %p11338_p10 = pnand %p11336_p9, %p11333_p8 }
  0x1c   :  { %11341 = shalt.err (!%p11338_p10)
}
  0x1d   :  { %s11342_s0 = scalar_lea.vmem %s11527_s24, 4096  ;;  %p11347_p12 = scmp.lt.s32.totalorder %s11527_s24, %s11527_s24 }
  0x1e   :  { %p11343_p11 = scmp.ne.s32.totalorder %s11527_s24, %s11342_s0  ;;  %p11348_p13 = scmp.lt.s32.totalorder %s11342_s0, %s11342_s0 }
  0x20   :  { %p11349_p0 = por %p11348_p13, %p11347_p12 }
  0x22   :  { %p11350_p1 = pnand %p11349_p0, %p11343_p11 }
  0x24   :  { %11353 = shalt.err (!%p11350_p1)
}
  0x25   :  { %48 = dma.hbm_to_vmem [thread:$0]  %s14444_s6, 4096, %s11527_s24, [#allocation3], %s11430_s18, %s11430_s18, %s11431_s19  }
  0x26   :  { %s11432_s17 = smov [#allocation7]   ;;  %s11433_s21 = smov [#allocation8]  }
  0x27   :  { %s68_s20 = sshll.u32 %s11432_s17, 4  ;;  %s80_s23 = sshll.u32 %s11433_s21, 4  ;;  %s69_s20 = int_to_ptr.vmem [resolvable:$true] %s68_s20  ;;  %s11564_s23 = int_to_ptr.vmem [resolvable:$true] %s80_s23 }
  0x28   :  { %s11354_s27 = scalar_lea.hbm %s14447_s9, 4096 }
  0x29   :  { %p11355_p2 = scmp.ne.s32.totalorder %s14447_s9, %s11354_s27  ;;  %p11358_p3 = scmp.lt.u32.totalorder %s11354_s27, %s14447_s9 }
  0x2b   :  { %p11360_p4 = pnand %p11358_p3, %p11355_p2 }
  0x2d   :  { %11363 = shalt.err (!%p11360_p4)
}
  0x2e   :  { %s11364_s6 = scalar_lea.vmem %s69_s20, 4096  ;;  %p11369_p6 = scmp.lt.s32.totalorder %s69_s20, %s69_s20 }
  0x2f   :  { %p11365_p5 = scmp.ne.s32.totalorder %s69_s20, %s11364_s6  ;;  %p11370_p7 = scmp.lt.s32.totalorder %s11364_s6, %s11364_s6 }
  0x31   :  { %p11371_p8 = por %p11370_p7, %p11369_p6 }
  0x33   :  { %p11372_p9 = pnand %p11371_p8, %p11365_p5 }
  0x35   :  { %11375 = shalt.err (!%p11372_p9)
}
  0x36   :  { %74 = dma.hbm_to_vmem [thread:$0]  %s14447_s9, 4096, %s69_s20, [#allocation6], %s11430_s18, %s11430_s18, %s11431_s19  }
  0x37   :  { %s11376_s21 = scalar_lea.hbm %s14448_s10, 4096 }
  0x38   :  { %p11377_p10 = scmp.ne.s32.totalorder %s14448_s10, %s11376_s21  ;;  %p11380_p11 = scmp.lt.u32.totalorder %s11376_s21, %s14448_s10 }
  0x3a   :  { %p11382_p12 = pnand %p11380_p11, %p11377_p10 }
  0x3c   :  { %11385 = shalt.err (!%p11382_p12)
}
  0x3d   :  { %s11386_s29 = scalar_lea.vmem %s11564_s23, 4096  ;;  %p11391_p0 = scmp.lt.s32.totalorder %s11564_s23, %s11564_s23 }
  0x3e   :  { %p11387_p13 = scmp.ne.s32.totalorder %s11564_s23, %s11386_s29  ;;  %p11392_p1 = scmp.lt.s32.totalorder %s11386_s29, %s11386_s29 }
  0x40   :  { %p11393_p2 = por %p11392_p1, %p11391_p0 }
  0x42   :  { %p11394_p3 = pnand %p11393_p2, %p11387_p13 }
  0x44   :  { %11397 = shalt.err (!%p11394_p3)
}
  0x45   :  { %86 = dma.hbm_to_vmem [thread:$0]  %s14448_s10, 4096, %s11564_s23, [#allocation9], %s11430_s18, %s11430_s18, %s11431_s19  }
  0x46   :  { %11420 = dma.done.wait [#allocation3], 4096  }
  0x47   :  { %11421 = vsyncadd [#allocation3], 4294963200 }
  0x48   :  { %11422 = dma.done.wait [#allocation6], 8192  }
  0x49   :  { %11423 = vsyncadd [#allocation6], 4294959104 }
  0x4a   :  { %11424 = dma.done.wait [#allocation9], 4096  }
  0x4b   :  { %11425 = vsyncadd [#allocation9], 4294963200  ;;  %v14466_v0 = vmov 0   ;;  %s14573_s6 = sld [smem:[#allocation51_spill]]  ;;  %vm11435_vm3 = vmmov 1   ;;  %v14459_v4 = vmov 1   ;;  %v14456_v45 = vlaneseq }
  0x4c   :  { %10377 = vset.pattern.permute.xlu0 %v14466_v0  ;;  %416 = vmatprep.mubr.bf16.mxu0 %v14466_v0  ;;  %v10398_v5 = vld [vmem:[#allocation5 + $0x4] ss:$16 sps:$4 sm:$0xff]   ;;  %v10400_v6 = vld [vmem:[#allocation5 + $0xc] ss:$16 sps:$4 sm:$0xff]   ;;  %v10402_v7 = vld [vmem:[#allocation5] ss:$16 sps:$4 sm:$0xff]  }
  0x4d   :  { %457 = vmatprep.mubr.bf16.mxu1 %v14466_v0  ;;  %10378 = vset.pattern.permute.xlu1 %v14459_v4  ;;  %v10403_v8 = vld [vmem:[#allocation5 + $0x8] ss:$16 sps:$4 sm:$0xff]   ;;  %v10404_v9 = vld [vmem:[#allocation5 + $0x24] ss:$16 sps:$4 sm:$0xff]   ;;  %v10406_v10 = vld [vmem:[#allocation5 + $0x2c] ss:$16 sps:$4 sm:$0xff]  }
  0x4e   :  { %384 = vmatprep.subr.bf16.mxu0 %v10398_v5  ;;  %425 = vmatprep.subr.bf16.mxu1 %v10400_v6  ;;  %v10408_v11 = vld [vmem:[#allocation5 + $0x20] ss:$16 sps:$4 sm:$0xff]   ;;  %v10409_v12 = vld [vmem:[#allocation5 + $0x28] ss:$16 sps:$4 sm:$0xff]   ;;  %v10410_v13 = vld [vmem:[#allocation5 + $0x44] ss:$16 sps:$4 sm:$0xff]  }
  0x4f   :  { %385 = vmatpush1.bf16.msra.mxu0 %v10402_v7  ;;  %426 = vmatpush1.bf16.msra.mxu1 %v10403_v8  ;;  %v10412_v14 = vld [vmem:[#allocation5 + $0x4c] ss:$16 sps:$4 sm:$0xff]   ;;  %v10414_v15 = vld [vmem:[#allocation5 + $0x40] ss:$16 sps:$4 sm:$0xff]   ;;  %v10415_v16 = vld [vmem:[#allocation5 + $0x48] ss:$16 sps:$4 sm:$0xff]  }
  0x50   :  { %386 = vmatprep.subr.bf16.mxu0 %v10404_v9  ;;  %427 = vmatprep.subr.bf16.mxu1 %v10406_v10  ;;  %v10416_v17 = vld [vmem:[#allocation5 + $0x64] ss:$16 sps:$4 sm:$0xff]   ;;  %v10418_v18 = vld [vmem:[#allocation5 + $0x6c] ss:$16 sps:$4 sm:$0xff]   ;;  %v10420_v19 = vld [vmem:[#allocation5 + $0x60] ss:$16 sps:$4 sm:$0xff]  }
  0x51   :  { %v11607_v1 = vld [vmem:[%s14573_s6] sm:$0xff]  ;;  %v11612_v2 = vld [vmem:[%s14573_s6 + $0x8] sm:$0xff]  ;;  %v11627_v29 = vld [vmem:[%s14573_s6 + $0x10] sm:$0xff]  ;;  %v11679_v46 = vshrl.u32 %v14456_v45, 7  ;;  %vm11438_vm14 = vmmov 0  }
  0x52   :  { %vm119_vm0 = vcmp.ne.f32.partialorder %v11607_v1, %v11607_v1  ;;  %vm120_vm1 = vcmp.ne.f32.partialorder %v11612_v2, %v11612_v2  ;;  %v10421_v20 = vld [vmem:[#allocation5 + $0x68] ss:$16 sps:$4 sm:$0xff]   ;;  %v10422_v21 = vld [vmem:[#allocation5 + $0x84] ss:$16 sps:$4 sm:$0xff]   ;;  %v10424_v22 = vld [vmem:[#allocation5 + $0x8c] ss:$16 sps:$4 sm:$0xff]   ;;  %vm892_vm5 = vcmp.ne.f32.partialorder %v11627_v29, %v11627_v29  ;;  %v123_v30 = vsub.f32 %v11612_v2, %v11607_v1 }
  0x53   :  { %vm121_vm2 = vmor %vm119_vm0, %vm120_vm1  ;;  %387 = vmatpush1.bf16.msra.mxu0 %v10408_v11  ;;  %428 = vmatpush1.bf16.msra.mxu1 %v10409_v12  ;;  %v10426_v23 = vld [vmem:[#allocation5 + $0x80] ss:$16 sps:$4 sm:$0xff]   ;;  %v10427_v24 = vld [vmem:[#allocation5 + $0x88] ss:$16 sps:$4 sm:$0xff]   ;;  %14575 = vst [vmem:[#allocation16_spill] sm:$0xff] %v11679_v46  ;;  %v11682_v47 = vsub.s32 1, %v11679_v46 }
  0x54   :  { %vm122_vm4 = vmxor %vm121_vm2, %vm11435_vm3  ;;  %388 = vmatprep.subr.bf16.mxu0 %v10410_v13  ;;  %429 = vmatprep.subr.bf16.mxu1 %v10412_v14  ;;  %v10428_v25 = vld [vmem:[#allocation5 + $0xa4] ss:$16 sps:$4 sm:$0xff]   ;;  %v10430_v26 = vld [vmem:[#allocation5 + $0xac] ss:$16 sps:$4 sm:$0xff]   ;;  %v11685_v48 = vsub.s32 0, %v11679_v46 }
  0x55   :  { %v124_v3 = vsel %vm122_vm4, 1, %v14466_v0  ;;  %v10432_v27 = vld [vmem:[#allocation5 + $0xa0] ss:$16 sps:$4 sm:$0xff]   ;;  %v10433_v28 = vld [vmem:[#allocation5 + $0xa8] ss:$16 sps:$4 sm:$0xff]   ;;  %vm893_vm6 = vmor %vm120_vm1, %vm892_vm5  ;;  %14576 = vst [vmem:[#allocation17_spill] sm:$0xff] %v11682_v47 }
  0x56   :  { %126 = vperm.xlu0 %10377, %v124_v3   ;;  %vm894_vm8 = vmxor %vm893_vm6, %vm11435_vm3  ;;  %v11645_v34 = vld [vmem:[#allocation5 + $0xc4] ss:$16 sps:$4 sm:$0xff]   ;;  %v11647_v35 = vld [vmem:[#allocation5 + $0xcc] ss:$16 sps:$4 sm:$0xff]   ;;  %14577 = vst [vmem:[#allocation18_spill] sm:$0xff] %v11685_v48 }
  0x57   :  { %389 = vmatpush1.bf16.msra.mxu0 %v10414_v15  ;;  %430 = vmatpush1.bf16.msra.mxu1 %v10415_v16  ;;  %v896_v36 = vsel %vm894_vm8, 1, %v14466_v0  ;;  %v11650_v37 = vld [vmem:[#allocation5 + $0xc0] ss:$16 sps:$4 sm:$0xff]   ;;  %v11652_v38 = vld [vmem:[#allocation5 + $0xc8] ss:$16 sps:$4 sm:$0xff]  }
  0x58   :  { %390 = vmatprep.subr.bf16.mxu0 %v10416_v17  ;;  %431 = vmatprep.subr.bf16.mxu1 %v10418_v18  ;;  %v11658_v39 = vld [vmem:[#allocation5 + $0xe4] ss:$16 sps:$4 sm:$0xff]   ;;  %v11660_v40 = vld [vmem:[#allocation5 + $0xec] ss:$16 sps:$4 sm:$0xff]   ;;  %v11663_v41 = vld [vmem:[#allocation5 + $0xe0] ss:$16 sps:$4 sm:$0xff]  }
  0x59   :  { %v11665_v42 = vld [vmem:[#allocation5 + $0xe8] ss:$16 sps:$4 sm:$0xff]   ;;  %v11668_v43 = vld [vmem:[#allocation2 + $0x4] ss:$16 sps:$4 sm:$0xff]   ;;  %v11672_v44 = vld [vmem:[#allocation2 + $0xc] ss:$16 sps:$4 sm:$0xff]  }
  0x5a   :  { %v110_v49 = vld [vmem:[%s14442_s4] sm:$0x3]  ;;  %v11699_v52 = vld [vmem:[%s14573_s6 + $0x18] sm:$0xff]  ;;  %v11270_v59 = vld [vmem:[%s14573_s6 + $0x8] sm:$0xff] }
  0x5b   :  { %391 = vmatpush1.bf16.msra.mxu0 %v10420_v19  ;;  %432 = vmatpush1.bf16.msra.mxu1 %v10421_v20  ;;  %v11691_v50 = vrot.slane %v110_v49, %v11682_v47  ;;  %v11694_v51 = vrot.slane %v110_v49, %v11685_v48  ;;  %v11706_v57 = vld [vmem:[%s14443_s5] ss:$0 sm:$0xff]  ;;  %vm1621_vm9 = vcmp.ne.f32.partialorder %v11699_v52, %v11699_v52  ;;  %v11728_v3 = vld [vmem:[#allocation2 + $0x8] ss:$16 sps:$4 sm:$0xff]   ;;  %v11731_v7 = vld [vmem:[#allocation2 + $0x24] ss:$16 sps:$4 sm:$0xff]  }
  0x5c   :  { %392 = vmatprep.subr.bf16.mxu0 %v10422_v21  ;;  %433 = vmatprep.subr.bf16.mxu1 %v10424_v22  ;;  %v895_v60 = vsub.f32 %v11627_v29, %v11270_v59  ;;  %vm1622_vm10 = vmor %vm892_vm5, %vm1621_vm9  ;;  %v11726_v2 = vld [vmem:[#allocation2] ss:$16 sps:$4 sm:$0xff]   ;;  %v11733_v8 = vld [vmem:[#allocation2 + $0x2c] ss:$16 sps:$4 sm:$0xff]  }
  0x5d   :  { %vm1623_vm12 = vmxor %vm1622_vm10, %vm11435_vm3  ;;  %v11738_v10 = vld [vmem:[#allocation2 + $0x20] ss:$16 sps:$4 sm:$0xff]   ;;  %v11740_v11 = vld [vmem:[#allocation2 + $0x28] ss:$16 sps:$4 sm:$0xff]  }
  0x5e   :  { %v1625_v9 = vsel %vm1623_vm12, 1, %v14466_v0  ;;  %v11744_v12 = vld [vmem:[#allocation2 + $0x44] ss:$16 sps:$4 sm:$0xff]   ;;  %v11746_v13 = vld [vmem:[#allocation2 + $0x4c] ss:$16 sps:$4 sm:$0xff]  }
  0x5f   :  { %393 = vmatpush1.bf16.msra.mxu0 %v10426_v23  ;;  %434 = vmatpush1.bf16.msra.mxu1 %v10427_v24  ;;  %v11753_v14 = vld [vmem:[#allocation2 + $0x40] ss:$16 sps:$4 sm:$0xff]   ;;  %v11755_v15 = vld [vmem:[#allocation2 + $0x48] ss:$16 sps:$4 sm:$0xff]   ;;  %v11759_v16 = vld [vmem:[#allocation2 + $0x64] ss:$16 sps:$4 sm:$0xff]  }
  0x60   :  { %394 = vmatprep.subr.bf16.mxu0 %v10428_v25  ;;  %435 = vmatprep.subr.bf16.mxu1 %v10430_v26  ;;  %v11761_v17 = vld [vmem:[#allocation2 + $0x6c] ss:$16 sps:$4 sm:$0xff]   ;;  %v11766_v18 = vld [vmem:[#allocation2 + $0x60] ss:$16 sps:$4 sm:$0xff]   ;;  %v11768_v19 = vld [vmem:[#allocation2 + $0x68] ss:$16 sps:$4 sm:$0xff]  }
  0x61   :  { %v11772_v20 = vld [vmem:[#allocation2 + $0x84] ss:$16 sps:$4 sm:$0xff]   ;;  %v11774_v21 = vld [vmem:[#allocation2 + $0x8c] ss:$16 sps:$4 sm:$0xff]   ;;  %v11778_v22 = vld [vmem:[#allocation2 + $0x80] ss:$16 sps:$4 sm:$0xff]  }
  0x62   :  { %v11780_v23 = vld [vmem:[#allocation2 + $0x88] ss:$16 sps:$4 sm:$0xff]   ;;  %v11784_v24 = vld [vmem:[#allocation2 + $0xa4] ss:$16 sps:$4 sm:$0xff]   ;;  %v11786_v25 = vld [vmem:[#allocation2 + $0xac] ss:$16 sps:$4 sm:$0xff]  }
  0x63   :  { %395 = vmatpush1.bf16.msra.mxu0 %v10432_v27  ;;  %436 = vmatpush1.bf16.msra.mxu1 %v10433_v28  ;;  %v11790_v26 = vld [vmem:[#allocation2 + $0xa0] ss:$16 sps:$4 sm:$0xff]   ;;  %v11792_v27 = vld [vmem:[#allocation2 + $0xa8] ss:$16 sps:$4 sm:$0xff]   ;;  %v11796_v28 = vld [vmem:[#allocation2 + $0xc4] ss:$16 sps:$4 sm:$0xff]  }
  0x64   :  { %396 = vmatprep.subr.bf16.mxu0 %v11645_v34  ;;  %437 = vmatprep.subr.bf16.mxu1 %v11647_v35  ;;  %v11810_v49 = vld [vmem:[#allocation2 + $0xec] ss:$16 sps:$4 sm:$0xff]   ;;  %v11274_v59 = vld [vmem:[#allocation5 + $0x20] ss:$16 sps:$4 sm:$0xff]  }
  0x67   :  { %397 = vmatpush1.bf16.msra.mxu0 %v11650_v37  ;;  %438 = vmatpush1.bf16.msra.mxu1 %v11652_v38 }
  0x68   :  { %398 = vmatprep.subr.bf16.mxu0 %v11658_v39  ;;  %439 = vmatprep.subr.bf16.mxu1 %v11660_v40 }
  0x6b   :  { %399 = vmatpush1.bf16.msra.mxu0 %v11663_v41  ;;  %440 = vmatpush1.bf16.msra.mxu1 %v11665_v42 }
  0x6c   :  { %626 = vmatprep.subr.bf16.mxu0 %v11668_v43  ;;  %667 = vmatprep.subr.bf16.mxu1 %v11672_v44 }
  0xd5   :  { %v11639_v31 = vpop.permute.xlu0 %126 }
  0xd6   :  { %14574 = vst [vmem:[#allocation15_spill] sm:$0xff] %v11639_v31  ;;  %vm128_vm7 = vcmp.eq.s32.totalorder %v11639_v31, 1  ;;  %v12226_v31 = vld [vmem:[#allocation2 + $0xc] ss:$16 sps:$4 sm:$0xff]  }
  0xd7   :  { %v129_v32 = vsel %vm128_vm7, %v123_v30, 0.0  ;;  %v11798_v30 = vld [vmem:[#allocation2 + $0xcc] ss:$16 sps:$4 sm:$0xff]   ;;  %vm11944_vm2 = vmpackc.low %vm128_vm7, %vm128_vm7  ;;  %14591 = vst [vmem:[#allocation28_spill] sm:$0xff] %v12226_v31 }
  0xd8   :  { %v130_v33 = vmul.f32 4.0, %v129_v32  ;;  %v11802_v32 = vld [vmem:[#allocation2 + $0xc0] ss:$16 sps:$4 sm:$0xff]  }
  0xda   :  { %142 = vperm.xlu1 %10378, %v130_v33   ;;  %133 = vperm.xlu0 %10377, %v130_v33   ;;  %v11804_v33 = vld [vmem:[#allocation2 + $0xc8] ss:$16 sps:$4 sm:$0xff]  }
  0xde   :  { %10379 = vset.pattern.permute.xlu1 %v14466_v0 }
  0xdf   :  { %898 = vperm.xlu1 %10379, %v896_v36   ;;  %v11808_v36 = vld [vmem:[#allocation2 + $0xe4] ss:$16 sps:$4 sm:$0xff]  }
  0xe3   :  { %10380 = vset.pattern.permute.xlu1 %v14459_v4 }
 0x159   :  { %v143_v53 = vpop.permute.xlu1 %142  ;;  %v134_v54 = vpop.permute.xlu0 %133 }
 0x15a   :  { %v149_v55 = vmul.f32 %v11691_v50, %v143_v53  ;;  %v140_v56 = vmul.f32 %v11694_v51, %v134_v54  ;;  %v11814_v53 = vld [vmem:[#allocation2 + $0xe0] ss:$16 sps:$4 sm:$0xff]   ;;  %v11816_v54 = vld [vmem:[#allocation2 + $0xe8] ss:$16 sps:$4 sm:$0xff]  }
 0x15c   :  { %v150_v58 = vadd.f32 %v149_v55, %v140_v56  ;;  %v11271_v55 = vld [vmem:[#allocation5 + $0x4] ss:$16 sps:$4 sm:$0xff]   ;;  %v11272_v56 = vld [vmem:[#allocation5] ss:$16 sps:$4 sm:$0xff]  }
 0x15e   :  { %v157_v61 = vadd.f32 %v11706_v57, %v150_v58  ;;  %v11715_v62 = vpop.permute.xlu1 %898  ;;  %v11273_v58 = vld [vmem:[#allocation5 + $0x24] ss:$16 sps:$4 sm:$0xff]  }
 0x15f   :  { %14578 = vst [vmem:[#allocation19_spill] sm:$0xff] %v11715_v62  ;;  %vm900_vm11 = vcmp.eq.s32.totalorder %v11715_v62, 1  ;;  %v12223_v62 = vld [vmem:[#allocation5 + $0xe8] ss:$16 sps:$4 sm:$0xff]  }
 0x160   :  { %v901_v63 = vsel %vm900_vm11, %v895_v60, 0.0  ;;  %v158_v1 = vmax.f32 %v157_v61, 0.0  ;;  %v11275_v60 = vld [vmem:[#allocation5 + $0x44] ss:$16 sps:$4 sm:$0xff]   ;;  %v11276_v61 = vld [vmem:[#allocation5 + $0x40] ss:$16 sps:$4 sm:$0xff]  }
 0x161   :  { %v902_v5 = vmul.f32 4.0, %v901_v63  ;;  %v11277_v63 = vld [vmem:[#allocation5 + $0x64] ss:$16 sps:$4 sm:$0xff]   ;;  %14590 = vst [vmem:[#allocation27_spill] sm:$0xff] %v12223_v62 }
 0x162   :  { %v191_v6 = vpack.c.bf16 %v158_v1, %v158_v1  ;;  %v11278_v1 = vld [vmem:[#allocation5 + $0x60] ss:$16 sps:$4 sm:$0xff]  }
 0x163   :  { %910 = vperm.xlu1 %10380, %v902_v5   ;;  %905 = vperm.xlu0 %10377, %v902_v5   ;;  %v11279_v5 = vld [vmem:[#allocation5 + $0x84] ss:$16 sps:$4 sm:$0xff]  }
 0x164   :  { %417 = vmatmul.mubr.bf16.vlgmr.msra.gmra.mrb[0].mxu0 %v191_v6  ;;  %458 = vmatmul.mubr.bf16.vlgmr.msra.gmra.mrb[0].mxu1 %v191_v6  ;;  %v11280_v6 = vld [vmem:[#allocation5 + $0x80] ss:$16 sps:$4 sm:$0xff]  }
 0x165   :  { %627 = vmatpush1.bf16.msra.mxu0 %v11726_v2  ;;  %668 = vmatpush1.bf16.msra.mxu1 %v11728_v3 }
 0x166   :  { %628 = vmatprep.subr.bf16.mxu0 %v11731_v7  ;;  %669 = vmatprep.subr.bf16.mxu1 %v11733_v8 }
 0x167   :  { %1627 = vperm.xlu0 %10377, %v1625_v9   ;;  %658 = vmatprep.mubr.bf16.mxu0 %v14466_v0  ;;  %v11281_v9 = vld [vmem:[#allocation5 + $0xa4] ss:$16 sps:$4 sm:$0xff]  }
 0x168   :  { %699 = vmatprep.mubr.bf16.mxu1 %v14466_v0  ;;  %10381 = vset.pattern.permute.xlu1 %v14466_v0 }
 0x169   :  { %629 = vmatpush1.bf16.msra.mxu0 %v11738_v10  ;;  %670 = vmatpush1.bf16.msra.mxu1 %v11740_v11 }
 0x16a   :  { %630 = vmatprep.subr.bf16.mxu0 %v11744_v12  ;;  %671 = vmatprep.subr.bf16.mxu1 %v11746_v13 }
 0x16b   :  { %10382 = vset.pattern.permute.xlu0 %v14459_v4 }
 0x16d   :  { %631 = vmatpush1.bf16.msra.mxu0 %v11753_v14  ;;  %672 = vmatpush1.bf16.msra.mxu1 %v11755_v15 }
 0x16e   :  { %632 = vmatprep.subr.bf16.mxu0 %v11759_v16  ;;  %673 = vmatprep.subr.bf16.mxu1 %v11761_v17 }
 0x171   :  { %633 = vmatpush1.bf16.msra.mxu0 %v11766_v18  ;;  %674 = vmatpush1.bf16.msra.mxu1 %v11768_v19 }
 0x172   :  { %634 = vmatprep.subr.bf16.mxu0 %v11772_v20  ;;  %675 = vmatprep.subr.bf16.mxu1 %v11774_v21 }
 0x175   :  { %635 = vmatpush1.bf16.msra.mxu0 %v11778_v22  ;;  %676 = vmatpush1.bf16.msra.mxu1 %v11780_v23 }
 0x176   :  { %636 = vmatprep.subr.bf16.mxu0 %v11784_v24  ;;  %677 = vmatprep.subr.bf16.mxu1 %v11786_v25 }
 0x179   :  { %637 = vmatpush1.bf16.msra.mxu0 %v11790_v26  ;;  %678 = vmatpush1.bf16.msra.mxu1 %v11792_v27 }
 0x17a   :  { %638 = vmatprep.subr.bf16.mxu0 %v11796_v28  ;;  %679 = vmatprep.subr.bf16.mxu1 %v11798_v30 }
 0x17d   :  { %639 = vmatpush1.bf16.msra.mxu0 %v11802_v32  ;;  %680 = vmatpush1.bf16.msra.mxu1 %v11804_v33 }
 0x17e   :  { %640 = vmatprep.subr.bf16.mxu0 %v11808_v36  ;;  %681 = vmatprep.subr.bf16.mxu1 %v11810_v49 }
 0x181   :  { %641 = vmatpush1.bf16.msra.mxu0 %v11814_v53  ;;  %682 = vmatpush1.bf16.msra.mxu1 %v11816_v54 }
 0x182   :  { %1143 = vmatprep.subr.bf16.mxu1 %v11271_v55  ;;  %v11282_v55 = vld [vmem:[#allocation5 + $0xa0] ss:$16 sps:$4 sm:$0xff]  }
 0x184   :  { %659 = vmatmul.mubr.bf16.vlgmr.msra.gmra.mrb[4].mxu0 %v14466_v0  ;;  %700 = vmatmul.mubr.bf16.vlgmr.msra.gmra.mrb[4].mxu1 %v14466_v0 }
 0x185   :  { %1144 = vmatpush1.bf16.msra.mxu1 %v11272_v56  ;;  %1175 = vmatprep.mubr.bf16.mxu1 %v14466_v0 }
 0x186   :  { %1145 = vmatprep.subr.bf16.mxu1 %v11273_v58 }
 0x189   :  { %1146 = vmatpush1.bf16.msra.mxu1 %v11274_v59 }
 0x18a   :  { %1147 = vmatprep.subr.bf16.mxu1 %v11275_v60 }
 0x18d   :  { %1148 = vmatpush1.bf16.msra.mxu1 %v11276_v61  ;;  %v1624_v61 = vsub.f32 %v11699_v52, %v11627_v29 }
 0x18e   :  { %1149 = vmatprep.subr.bf16.mxu1 %v11277_v63 }
 0x191   :  { %1150 = vmatpush1.bf16.msra.mxu1 %v11278_v1 }
 0x192   :  { %1151 = vmatprep.subr.bf16.mxu1 %v11279_v5  ;;  %v14461_v5 = vmov 0.0  }
 0x193   :  { %10103 = vmatprep.subr.bf16.mxu0 %v14461_v5  ;;  %10119 = vmatprep.mubr.msk.bf16.mxu0 %vm11438_vm14, %v14461_v5 }
 0x195   :  { %1152 = vmatpush1.bf16.msra.mxu1 %v11280_v6  ;;  %v10495_v6 = vld [vmem:[%s14450_s12 + $0x8] sm:$0xff]  }
 0x196   :  { %1153 = vmatprep.subr.bf16.mxu1 %v11281_v9  ;;  %v10496_v9 = vld [vmem:[%s14450_s12 + $0x10] sm:$0xff]  }
 0x199   :  { %1154 = vmatpush1.bf16.msra.mxu1 %v11282_v55 }
 0x19a   :  { %1155 = vmatprep.subr.bf16.mxu1 %v11645_v34 }
 0x19d   :  { %1156 = vmatpush1.bf16.msra.mxu1 %v11650_v37 }
 0x19e   :  { %1157 = vmatprep.subr.bf16.mxu1 %v11658_v39 }
 0x1a1   :  { %1158 = vmatpush1.bf16.msra.mxu1 %v11663_v41 }
 0x1a2   :  { %1385 = vmatprep.subr.bf16.mxu1 %v11668_v43  ;;  %v10494_v43 = vld [vmem:[%s14450_s12] sm:$0xff]  }
 0x1a3   :  { %10104 = vmatpush3.bf16.msra.mxu0 %v10494_v43 }
 0x1a4   :  { %10105 = vmatprep.subr.bf16.mxu0 %v14461_v5 }
 0x1a7   :  { %10106 = vmatpush3.bf16.msra.mxu0 %v10495_v6  ;;  %v14458_v6 = vsub.s32 3, %v11679_v46 }
 0x1a8   :  { %10107 = vmatprep.subr.bf16.mxu0 %v14461_v5 }
 0x1ab   :  { %10108 = vmatpush3.bf16.msra.mxu0 %v10496_v9 }
 0x1ac   :  { %10109 = vmatprep.subr.bf16.mxu0 %v14461_v5 }
 0x1e2   :  { %v911_v56 = vpop.permute.xlu1 %910  ;;  %v906_v58 = vpop.permute.xlu0 %905 }
 0x1e3   :  { %v913_v59 = vmul.f32 %v911_v56, %v11691_v50  ;;  %v908_v60 = vmul.f32 %v906_v58, %v11694_v51 }
 0x1e5   :  { %v914_v63 = vadd.f32 %v913_v59, %v908_v60 }
 0x1e6   :  { %v11834_v1 = vpop.permute.xlu0 %1627 }
 0x1e7   :  { %14579 = vst [vmem:[#allocation20_spill] sm:$0xff] %v11834_v1  ;;  %v915_v34 = vadd.f32 %v11706_v57, %v914_v63  ;;  %vm1629_vm13 = vcmp.eq.s32.totalorder %v11834_v1, 1 }
 0x1e8   :  { %v1630_v37 = vsel %vm1629_vm13, %v1624_v61, 0.0 }
 0x1e9   :  { %v916_v39 = vmax.f32 %v915_v34, 0.0  ;;  %v1631_v41 = vmul.f32 4.0, %v1630_v37 }
 0x1eb   :  { %v11844_v29 = vpack.c.bf16 %v916_v39, %v916_v39  ;;  %1639 = vperm.xlu0 %10382, %v1631_v41   ;;  %1634 = vperm.xlu1 %10381, %v1631_v41  }
 0x1ed   :  { %1176 = vmatmul.mubr.bf16.vlgmr.msra.gmra.mrb[8].mxu1 %v11844_v29 }
 0x1ee   :  { %1386 = vmatpush1.bf16.msra.mxu1 %v11726_v2  ;;  %1417 = vmatprep.mubr.bf16.mxu1 %v14466_v0  ;;  %v10497_v2 = vld [vmem:[%s14450_s12 + $0x18] sm:$0xff]  }
 0x1ef   :  { %1387 = vmatprep.subr.bf16.mxu1 %v11731_v7  ;;  %10110 = vmatpush3.bf16.msra.mxu0 %v10497_v2  ;;  %v10498_v7 = vld [vmem:[%s14450_s12 + $0x20] sm:$0xff]  }
 0x1f0   :  { %10111 = vmatprep.subr.bf16.mxu0 %v14461_v5 }
 0x1f2   :  { %1388 = vmatpush1.bf16.msra.mxu1 %v11738_v10  ;;  %v10499_v10 = vld [vmem:[%s14450_s12 + $0x28] sm:$0xff]  }
 0x1f3   :  { %1389 = vmatprep.subr.bf16.mxu1 %v11744_v12  ;;  %10112 = vmatpush3.bf16.msra.mxu0 %v10498_v7  ;;  %v10500_v12 = vld [vmem:[%s14450_s12 + $0x30] sm:$0xff]  }
 0x1f4   :  { %10113 = vmatprep.subr.bf16.mxu0 %v14461_v5 }
 0x1f6   :  { %1390 = vmatpush1.bf16.msra.mxu1 %v11753_v14  ;;  %v10501_v14 = vld [vmem:[%s14450_s12 + $0x38] sm:$0xff]  }
 0x1f7   :  { %1391 = vmatprep.subr.bf16.mxu1 %v11759_v16  ;;  %10114 = vmatpush3.bf16.msra.mxu0 %v10499_v10  ;;  %v11283_v16 = vld [vmem:[#allocation5 + $0xc] ss:$16 sps:$4 sm:$0xff]  }
 0x1f8   :  { %10115 = vmatprep.subr.bf16.mxu0 %v14461_v5 }
 0x1fa   :  { %1392 = vmatpush1.bf16.msra.mxu1 %v11766_v18 }
 0x1fb   :  { %1393 = vmatprep.subr.bf16.mxu1 %v11772_v20  ;;  %10116 = vmatpush3.bf16.msra.mxu0 %v10500_v12 }
 0x1fc   :  { %10117 = vmatprep.subr.bf16.mxu0 %v14461_v5 }
 0x1fe   :  { %1394 = vmatpush1.bf16.msra.mxu1 %v11778_v22 }
 0x1ff   :  { %1395 = vmatprep.subr.bf16.mxu1 %v11784_v24  ;;  %10118 = vmatpush3.bf16.msra.mxu0 %v10501_v14 }
 0x200   :  { %1184 = vmatprep.subr.bf16.mxu0 %v11283_v16 }
 0x202   :  { %1396 = vmatpush1.bf16.msra.mxu1 %v11790_v26 }
 0x203   :  { %1397 = vmatprep.subr.bf16.mxu1 %v11796_v28 }
 0x206   :  { %1398 = vmatpush1.bf16.msra.mxu1 %v11802_v32  ;;  %v11897_v32 = vld [vmem:[%s14573_s6 + $0x20] sm:$0xff] }
 0x207   :  { %1399 = vmatprep.subr.bf16.mxu1 %v11808_v36  ;;  %vm2350_vm15 = vcmp.ne.f32.partialorder %v11897_v32, %v11897_v32 }
 0x208   :  { %vm2351_vm0 = vmor %vm1621_vm9, %vm2350_vm15 }
 0x209   :  { %vm2352_vm1 = vmxor %vm2351_vm0, %vm11435_vm3 }
 0x20a   :  { %1400 = vmatpush1.bf16.msra.mxu1 %v11814_v53  ;;  %v2354_v36 = vsel %vm2352_vm1, 1, %v14466_v0  ;;  %v115_v53 = vld [vmem:[%s14446_s8] sm:$0xf] }
 0x20b   :  { %10123 = vmatprep.subr.bf16.mxu1 %v14461_v5  ;;  %2356 = vperm.xlu1 %10381, %v2354_v36   ;;  %v11913_v58 = vrot.slane %v115_v53, %v11685_v48  ;;  %v11916_v61 = vrot.slane %v115_v53, %v11682_v47 }
 0x237   :  { %v418_v18 = vpop.f32.mrb[0].mxu0  ;;  %v459_v20 = vpop.f32.mrb[0].mxu1 }
 0x238   :  { %v420_v22 = vpop.f32.mrb[1].mxu0  ;;  %v461_v24 = vpop.f32.mrb[1].mxu1 }
 0x239   :  { %v422_v26 = vpop.f32.mrb[2].mxu0  ;;  %v463_v28 = vpop.f32.mrb[2].mxu1 }
 0x23a   :  { %v423_v55 = vpop.f32.mrb[3].mxu0  ;;  %v464_v56 = vpop.f32.mrb[3].mxu1 }
 0x257   :  { %v660_v59 = vpop.f32.mrb[4].mxu0  ;;  %v701_v60 = vpop.f32.mrb[4].mxu1 }
 0x258   :  { %v661_v63 = vadd.f32 %v660_v59, %v418_v18  ;;  %v702_v34 = vadd.f32 %v701_v60, %v459_v20  ;;  %v662_v37 = vpop.f32.mrb[5].mxu0  ;;  %v703_v39 = vpop.f32.mrb[5].mxu1  ;;  %v11923_v18 = vrot.slane %v115_v53, %v14458_v6  ;;  %v14457_v20 = vsub.s32 2, %v11679_v46 }
 0x259   :  { %v663_v41 = vadd.f32 %v662_v37, %v420_v22  ;;  %v704_v43 = vadd.f32 %v703_v39, %v461_v24  ;;  %v664_v9 = vpop.f32.mrb[6].mxu0  ;;  %v705_v2 = vpop.f32.mrb[6].mxu1 }
 0x25a   :  { %v729_v7 = vadd.f32 %v11913_v58, %v661_v63  ;;  %v665_v10 = vpop.f32.mrb[7].mxu0  ;;  %v706_v12 = vpop.f32.mrb[7].mxu1  ;;  %v11929_v24 = vrot.slane %v115_v53, %v14457_v20 }
 0x25b   :  { %v730_v14 = vadd.f32 %v11916_v61, %v663_v41  ;;  %v732_v22 = vadd.f32 %v11923_v18, %v704_v43 }
 0x25c   :  { %v9120_v16 = vmul.f32 -1.442695, %v729_v7  ;;  %v731_v55 = vadd.f32 %v11929_v24, %v702_v34 }
 0x25d   :  { %v9121_v26 = vmul.f32 -1.442695, %v730_v14  ;;  %v9122_v28 = vmul.f32 -1.442695, %v732_v22  ;;  %v11286_v22 = vld [vmem:[#allocation5 + $0x28] ss:$16 sps:$4 sm:$0xff]  }
 0x25e   :  { %11078 = vpow2.f32 %v9120_v16  ;;  %v11284_v16 = vld [vmem:[#allocation5 + $0x8] ss:$16 sps:$4 sm:$0xff]  }
 0x25f   :  { %11080 = vpow2.f32 %v9121_v26  ;;  %v11285_v26 = vld [vmem:[#allocation5 + $0x2c] ss:$16 sps:$4 sm:$0xff]  }
 0x260   :  { %11082 = vpow2.f32 %v9122_v28  ;;  %v11287_v28 = vld [vmem:[#allocation5 + $0x4c] ss:$16 sps:$4 sm:$0xff]  }
 0x261   :  { %11084 = vtanh.f32 %v731_v55  ;;  %v11288_v55 = vld [vmem:[#allocation5 + $0x48] ss:$16 sps:$4 sm:$0xff]  }
 0x268   :  { %v11079_v56 = vpop.eup %11078 }
 0x269   :  { %v11081_v36 = vpop.eup %11080  ;;  %v736_v59 = vadd.f32 1.0, %v11079_v56  ;;  %v11289_v56 = vld [vmem:[#allocation5 + $0x6c] ss:$16 sps:$4 sm:$0xff]  }
 0x26a   :  { %v742_v60 = vadd.f32 1.0, %v11081_v36  ;;  %v11083_v63 = vpop.eup %11082  ;;  %v11290_v36 = vld [vmem:[#allocation5 + $0x68] ss:$16 sps:$4 sm:$0xff]  }
 0x26b   :  { %11086 = vrcp.f32 %v736_v59  ;;  %v11085_v37 = vpop.eup %11084  ;;  %v749_v9 = vadd.f32 1.0, %v11083_v63  ;;  %v11291_v59 = vld [vmem:[#allocation5 + $0x8c] ss:$16 sps:$4 sm:$0xff]  }
 0x26c   :  { %11088 = vrcp.f32 %v742_v60  ;;  %v11292_v60 = vld [vmem:[#allocation5 + $0x88] ss:$16 sps:$4 sm:$0xff]   ;;  %v11293_v63 = vld [vmem:[#allocation5 + $0xac] ss:$16 sps:$4 sm:$0xff]  }
 0x26d   :  { %11090 = vrcp.f32 %v749_v9  ;;  %v12040_v9 = vld [vmem:[#allocation5 + $0xa0] ss:$16 sps:$4 sm:$0xff]  }
 0x275   :  { %v11087_v39 = vpop.eup %11086 }
 0x276   :  { %v11089_v41 = vpop.eup %11088  ;;  %v753_v43 = vmul.f32 %v11087_v39, %v11085_v37  ;;  %v11294_v37 = vld [vmem:[#allocation5 + $0xa8] ss:$16 sps:$4 sm:$0xff]  }
 0x277   :  { %v752_v2 = vmul.f32 0.0, %v11089_v41  ;;  %v11091_v34 = vpop.eup %11090 }
 0x279   :  { %v11932_v53 = vadd.f32 %v753_v43, %v752_v2  ;;  %v12037_v43 = vld [vmem:[#allocation5 + $0xa4] ss:$16 sps:$4 sm:$0xff]  }
 0x27b   :  { %11092 = vtanh.f32 %v11932_v53 }
 0x285   :  { %v11093_v7 = vpop.eup %11092 }
 0x286   :  { %v11935_v10 = vmul.f32 %v11093_v7, %v11091_v34  ;;  %v12043_v34 = vld [vmem:[#allocation5 + $0xc4] ss:$16 sps:$4 sm:$0xff]   ;;  %v12046_v7 = vld [vmem:[#allocation5 + $0xc0] ss:$16 sps:$4 sm:$0xff]  }
 0x288   :  { %v11939_v12 = vpack.c.bf16 %v11935_v10, %v11935_v10 }
 0x28a   :  { %10120 = vmatmul.mubr.bf16.vlgmr.msra.gmra.mrb[8].mxu0 %v11939_v12  ;;  %9200 = vmatmul.mubr.msk.bf16.vlgmr.msra.gmra.mrb[12].mxu1 %vm11944_vm2, %v11939_v12 }
 0x28b   :  { %1185 = vmatpush1.bf16.msra.mxu0 %v11284_v16  ;;  %1216 = vmatprep.mubr.bf16.mxu0 %v14466_v0  ;;  %v11295_v16 = vld [vmem:[#allocation5 + $0xe4] ss:$16 sps:$4 sm:$0xff]  }
 0x28c   :  { %1186 = vmatprep.subr.bf16.mxu0 %v11285_v26  ;;  %10139 = vmatprep.mubr.msk.bf16.mxu1 %vm11438_vm14, %v14461_v5  ;;  %v11296_v26 = vld [vmem:[#allocation5 + $0xe0] ss:$16 sps:$4 sm:$0xff]  }
 0x28f   :  { %1187 = vmatpush1.bf16.msra.mxu0 %v11286_v22 }
 0x290   :  { %1188 = vmatprep.subr.bf16.mxu0 %v11287_v28  ;;  %v10523_v28 = vld [vmem:[%s14450_s12] sm:$0xff]  }
 0x291   :  { %10124 = vmatpush3.bf16.msra.mxu1 %v10523_v28  ;;  %v12133_v28 = vld [vmem:[#allocation5 + $0xc] ss:$16 sps:$4 sm:$0xff]  }
 0x292   :  { %10125 = vmatprep.subr.bf16.mxu1 %v14461_v5 }
 0x293   :  { %1189 = vmatpush1.bf16.msra.mxu0 %v11288_v55  ;;  %v12060_v55 = vld [vmem:[#allocation2] ss:$16 sps:$4 sm:$0xff]  }
 0x294   :  { %1190 = vmatprep.subr.bf16.mxu0 %v11289_v56  ;;  %v10527_v56 = vld [vmem:[%s14450_s12 + $0x8] sm:$0xff]  }
 0x295   :  { %10126 = vmatpush3.bf16.msra.mxu1 %v10527_v56 }
 0x296   :  { %10127 = vmatprep.subr.bf16.mxu1 %v14461_v5 }
 0x297   :  { %1191 = vmatpush1.bf16.msra.mxu0 %v11290_v36  ;;  %v12068_v36 = vld [vmem:[#allocation2 + $0x24] ss:$16 sps:$4 sm:$0xff]  }
 0x298   :  { %1192 = vmatprep.subr.bf16.mxu0 %v11291_v59  ;;  %v12070_v59 = vld [vmem:[#allocation2 + $0x20] ss:$16 sps:$4 sm:$0xff]  }
 0x29b   :  { %1193 = vmatpush1.bf16.msra.mxu0 %v11292_v60  ;;  %v10531_v60 = vld [vmem:[%s14450_s12 + $0x10] sm:$0xff]  }
 0x29c   :  { %1194 = vmatprep.subr.bf16.mxu0 %v11293_v63  ;;  %v12078_v63 = vld [vmem:[#allocation2 + $0x44] ss:$16 sps:$4 sm:$0xff]   ;;  %10128 = vmatpush3.bf16.msra.mxu1 %v10531_v60 }
 0x29d   :  { %10129 = vmatprep.subr.bf16.mxu1 %v14461_v5 }
 0x29f   :  { %1195 = vmatpush1.bf16.msra.mxu0 %v11294_v37  ;;  %v12080_v37 = vld [vmem:[#allocation2 + $0x40] ss:$16 sps:$4 sm:$0xff]  }
 0x2a0   :  { %1196 = vmatprep.subr.bf16.mxu0 %v11647_v35  ;;  %v11973_v35 = vld [vmem:[%s14573_s6 + $0x28] sm:$0xff] }
 0x2a1   :  { %vm3079_vm4 = vcmp.ne.f32.partialorder %v11973_v35, %v11973_v35 }
 0x2a2   :  { %vm3080_vm5 = vmor %vm2350_vm15, %vm3079_vm4 }
 0x2a3   :  { %1197 = vmatpush1.bf16.msra.mxu0 %v11652_v38  ;;  %v1635_v38 = vpop.permute.xlu1 %1634  ;;  %vm3081_vm8 = vmxor %vm3080_vm5, %vm11435_vm3 }
 0x2a4   :  { %1198 = vmatprep.subr.bf16.mxu0 %v11660_v40  ;;  %v2353_v40 = vsub.f32 %v11897_v32, %v11699_v52  ;;  %v1637_v41 = vmul.f32 %v1635_v38, %v11694_v51  ;;  %v10535_v38 = vld [vmem:[%s14450_s12 + $0x18] sm:$0xff]  }
 0x2a5   :  { %10130 = vmatpush3.bf16.msra.mxu1 %v10535_v38  ;;  %v3082_v38 = vsub.f32 %v11973_v35, %v11897_v32 }
 0x2a6   :  { %10131 = vmatprep.subr.bf16.mxu1 %v14461_v5 }
 0x2a7   :  { %1199 = vmatpush1.bf16.msra.mxu0 %v11665_v42  ;;  %v11982_v42 = vpop.permute.xlu1 %2356 }
 0x2a8   :  { %1426 = vmatprep.subr.bf16.mxu0 %v11672_v44  ;;  %14582 = vst [vmem:[#allocation21_spill] sm:$0xff] %v11982_v42  ;;  %vm2358_vm6 = vcmp.eq.s32.totalorder %v11982_v42, 1  ;;  %v12229_v42 = vld [vmem:[#allocation2 + $0x8] ss:$16 sps:$4 sm:$0xff]  }
 0x2a9   :  { %14592 = vst [vmem:[#allocation29_spill] sm:$0xff] %v12229_v42 }
 0x2aa   :  { %1217 = vmatmul.mubr.bf16.vlgmr.msra.gmra.mrb[12].mxu0 %v11844_v29  ;;  %v12032_v29 = vld [vmem:[#allocation5 + $0x80] ss:$16 sps:$4 sm:$0xff]  }
 0x2ab   :  { %1427 = vmatpush1.bf16.msra.mxu0 %v11728_v3  ;;  %1458 = vmatprep.mubr.bf16.mxu0 %v14466_v0 }
 0x2ac   :  { %1428 = vmatprep.subr.bf16.mxu0 %v11733_v8  ;;  %v2359_v8 = vsel %vm2358_vm6, %v2353_v40, 0.0  ;;  %v12088_v40 = vld [vmem:[#allocation2 + $0x64] ss:$16 sps:$4 sm:$0xff]  }
 0x2af   :  { %1429 = vmatpush1.bf16.msra.mxu0 %v11740_v11  ;;  %v2360_v11 = vmul.f32 4.0, %v2359_v8  ;;  %v12090_v8 = vld [vmem:[#allocation2 + $0x60] ss:$16 sps:$4 sm:$0xff]  }
 0x2b0   :  { %1430 = vmatprep.subr.bf16.mxu0 %v11746_v13 }
 0x2b1   :  { %2363 = vperm.xlu1 %10381, %v2360_v11   ;;  %2368 = vperm.xlu0 %10382, %v2360_v11   ;;  %v12098_v11 = vld [vmem:[#allocation2 + $0x84] ss:$16 sps:$4 sm:$0xff]  }
 0x2b3   :  { %1431 = vmatpush1.bf16.msra.mxu0 %v11755_v15  ;;  %v11998_v15 = vld [vmem:[#allocation5 + $0x4] ss:$16 sps:$4 sm:$0xff]  }
 0x2b4   :  { %1432 = vmatprep.subr.bf16.mxu0 %v11761_v17  ;;  %v3083_v17 = vsel %vm3081_vm8, 1, %v14466_v0 }
 0x2b5   :  { %3085 = vperm.xlu1 %10381, %v3083_v17   ;;  %10383 = vset.pattern.permute.xlu0 %v14466_v0  ;;  %v10543_v17 = vld [vmem:[%s14450_s12 + $0x28] sm:$0xff]  }
 0x2b7   :  { %1433 = vmatpush1.bf16.msra.mxu0 %v11768_v19  ;;  %v12002_v19 = vld [vmem:[#allocation5] ss:$16 sps:$4 sm:$0xff]  }
 0x2b8   :  { %1434 = vmatprep.subr.bf16.mxu0 %v11774_v21  ;;  %v12005_v21 = vld [vmem:[#allocation5 + $0x24] ss:$16 sps:$4 sm:$0xff]  }
 0x2b9   :  { %10384 = vset.pattern.permute.xlu1 %v14459_v4 }
 0x2bb   :  { %1435 = vmatpush1.bf16.msra.mxu0 %v11780_v23  ;;  %v12012_v23 = vld [vmem:[#allocation5 + $0x20] ss:$16 sps:$4 sm:$0xff]  }
 0x2bc   :  { %1436 = vmatprep.subr.bf16.mxu0 %v11786_v25  ;;  %v12016_v25 = vld [vmem:[#allocation5 + $0x44] ss:$16 sps:$4 sm:$0xff]  }
 0x2bf   :  { %1437 = vmatpush1.bf16.msra.mxu0 %v11792_v27  ;;  %v12020_v27 = vld [vmem:[#allocation5 + $0x40] ss:$16 sps:$4 sm:$0xff]  }
 0x2c0   :  { %v11987_v44 = vpop.f32.mrb[8].mxu1  ;;  %1438 = vmatprep.subr.bf16.mxu0 %v11798_v30  ;;  %v12023_v30 = vld [vmem:[#allocation5 + $0x64] ss:$16 sps:$4 sm:$0xff]  }
 0x2c1   :  { %v11991_v3 = vpop.f32.mrb[9].mxu1 }
 0x2c2   :  { %v1181_v52 = vpop.f32.mrb[10].mxu1 }
 0x2c3   :  { %1439 = vmatpush1.bf16.msra.mxu0 %v11804_v33  ;;  %v1182_v13 = vpop.f32.mrb[11].mxu1  ;;  %v12026_v33 = vld [vmem:[#allocation5 + $0x60] ss:$16 sps:$4 sm:$0xff]  }
 0x2c4   :  { %1440 = vmatprep.subr.bf16.mxu0 %v11810_v49  ;;  %v12029_v49 = vld [vmem:[#allocation5 + $0x84] ss:$16 sps:$4 sm:$0xff]   ;;  %v12100_v13 = vld [vmem:[#allocation2 + $0x80] ss:$16 sps:$4 sm:$0xff]  }
 0x2c5   :  { %v10539_v52 = vld [vmem:[%s14450_s12 + $0x20] sm:$0xff]  }
 0x2c6   :  { %10132 = vmatpush3.bf16.msra.mxu1 %v10539_v52 }
 0x2c7   :  { %1441 = vmatpush1.bf16.msra.mxu0 %v11816_v54  ;;  %v1640_v54 = vpop.permute.xlu0 %1639  ;;  %10133 = vmatprep.subr.bf16.mxu1 %v14461_v5 }
 0x2c8   :  { %1872 = vmatprep.subr.bf16.mxu0 %v11998_v15  ;;  %v1642_v39 = vmul.f32 %v1640_v54, %v11691_v50  ;;  %v12107_v54 = vld [vmem:[#allocation2 + $0xa4] ss:$16 sps:$4 sm:$0xff]  }
 0x2ca   :  { %9203 = vmatmul.mubr.msk.bf16.vlgmr.msra.gmra.mrb[16].mxu0 %vm11944_vm2, %v11939_v12  ;;  %v1643_v2 = vadd.f32 %v1642_v39, %v1637_v41  ;;  %v12110_v39 = vld [vmem:[#allocation2 + $0xa0] ss:$16 sps:$4 sm:$0xff]   ;;  %v12113_v41 = vld [vmem:[#allocation2 + $0xc4] ss:$16 sps:$4 sm:$0xff]   ;;  %10134 = vmatpush3.bf16.msra.mxu1 %v10543_v17 }
 0x2cb   :  { %1873 = vmatpush1.bf16.msra.mxu0 %v12002_v19  ;;  %1904 = vmatprep.mubr.bf16.mxu0 %v14466_v0 }
 0x2cc   :  { %1874 = vmatprep.subr.bf16.mxu0 %v12005_v21  ;;  %v1644_v12 = vadd.f32 %v11706_v57, %v1643_v2  ;;  %v12058_v57 = vld [vmem:[#allocation2 + $0x4] ss:$16 sps:$4 sm:$0xff]   ;;  %10135 = vmatprep.subr.bf16.mxu1 %v14461_v5 }
 0x2cd   :  { %v10547_v2 = vld [vmem:[%s14450_s12 + $0x30] sm:$0xff]  }
 0x2ce   :  { %v1645_v14 = vmax.f32 %v1644_v12, 0.0  ;;  %v12120_v12 = vld [vmem:[#allocation2 + $0xc0] ss:$16 sps:$4 sm:$0xff]   ;;  %10136 = vmatpush3.bf16.msra.mxu1 %v10547_v2 }
 0x2cf   :  { %1875 = vmatpush1.bf16.msra.mxu0 %v12012_v23  ;;  %10137 = vmatprep.subr.bf16.mxu1 %v14461_v5 }
 0x2d0   :  { %1876 = vmatprep.subr.bf16.mxu0 %v12016_v25  ;;  %v12051_v22 = vpack.c.bf16 %v1645_v14, %v1645_v14  ;;  %v10551_v14 = vld [vmem:[%s14450_s12 + $0x38] sm:$0xff]  }
 0x2d2   :  { %10138 = vmatpush3.bf16.msra.mxu1 %v10551_v14 }
 0x2d3   :  { %1877 = vmatpush1.bf16.msra.mxu0 %v12020_v27  ;;  %1913 = vmatprep.subr.bf16.mxu1 %v12133_v28 }
 0x2d4   :  { %1878 = vmatprep.subr.bf16.mxu0 %v12023_v30 }
 0x2d7   :  { %1879 = vmatpush1.bf16.msra.mxu0 %v12026_v33 }
 0x2d8   :  { %1880 = vmatprep.subr.bf16.mxu0 %v12029_v49 }
 0x2db   :  { %1881 = vmatpush1.bf16.msra.mxu0 %v12032_v29 }
 0x2dc   :  { %1882 = vmatprep.subr.bf16.mxu0 %v12037_v43 }
 0x2df   :  { %1883 = vmatpush1.bf16.msra.mxu0 %v12040_v9 }
 0x2e0   :  { %1884 = vmatprep.subr.bf16.mxu0 %v12043_v34 }
 0x2e3   :  { %1885 = vmatpush1.bf16.msra.mxu0 %v12046_v7 }
 0x2e4   :  { %1886 = vmatprep.subr.bf16.mxu0 %v11295_v16  ;;  %v12128_v16 = vld [vmem:[#allocation2 + $0xe4] ss:$16 sps:$4 sm:$0xff]  }
 0x2e7   :  { %1887 = vmatpush1.bf16.msra.mxu0 %v11296_v26  ;;  %v12130_v26 = vld [vmem:[#allocation2 + $0xe0] ss:$16 sps:$4 sm:$0xff]  }
 0x2e8   :  { %2114 = vmatprep.subr.bf16.mxu0 %v12058_v57 }
 0x2ea   :  { %1905 = vmatmul.mubr.bf16.vlgmr.msra.gmra.mrb[20].mxu0 %v12051_v22 }
 0x2eb   :  { %2146 = vmatprep.mubr.bf16.mxu0 %v14466_v0  ;;  %2115 = vmatpush1.bf16.msra.mxu0 %v12060_v55 }
 0x2ec   :  { %2116 = vmatprep.subr.bf16.mxu0 %v12068_v36 }
 0x2ef   :  { %2117 = vmatpush1.bf16.msra.mxu0 %v12070_v59 }
 0x2f0   :  { %2118 = vmatprep.subr.bf16.mxu0 %v12078_v63 }
 0x2f3   :  { %2119 = vmatpush1.bf16.msra.mxu0 %v12080_v37 }
 0x2f4   :  { %2120 = vmatprep.subr.bf16.mxu0 %v12088_v40 }
 0x2f7   :  { %2121 = vmatpush1.bf16.msra.mxu0 %v12090_v8 }
 0x2f8   :  { %2122 = vmatprep.subr.bf16.mxu0 %v12098_v11 }
 0x2fb   :  { %2123 = vmatpush1.bf16.msra.mxu0 %v12100_v13 }
 0x2fc   :  { %2124 = vmatprep.subr.bf16.mxu0 %v12107_v54 }
 0x2ff   :  { %2125 = vmatpush1.bf16.msra.mxu0 %v12110_v39 }
 0x300   :  { %2126 = vmatprep.subr.bf16.mxu0 %v12113_v41 }
 0x303   :  { %2127 = vmatpush1.bf16.msra.mxu0 %v12120_v12 }
 0x304   :  { %2128 = vmatprep.subr.bf16.mxu0 %v12128_v16 }
 0x307   :  { %2129 = vmatpush1.bf16.msra.mxu0 %v12130_v26 }
 0x308   :  { %10143 = vmatprep.subr.bf16.mxu0 %v14461_v5 }
 0x330   :  { %v12138_v56 = vpop.permute.xlu1 %2363 }
 0x334   :  { %v12140_v60 = vpop.permute.xlu1 %3085 }
 0x335   :  { %14583 = vst [vmem:[#allocation22_spill] sm:$0xff] %v12140_v60  ;;  %vm3087_vm9 = vcmp.eq.s32.totalorder %v12140_v60, 1 }
 0x336   :  { %v3088_v52 = vsel %vm3087_vm9, %v3082_v38, 0.0 }
 0x337   :  { %v3089_v17 = vmul.f32 4.0, %v3088_v52 }
 0x339   :  { %3097 = vperm.xlu1 %10384, %v3089_v17   ;;  %3092 = vperm.xlu0 %10383, %v3089_v17  }
 0x33d   :  { %10385 = vset.pattern.permute.xlu1 %v14466_v0 }
 0x35d   :  { %v12148_v2 = vpop.f32.mrb[8].mxu0  ;;  %v1419_v14 = vpop.f32.mrb[12].mxu1 }
 0x35e   :  { %14584 = vst [vmem:[#allocation23_spill] sm:$0xff] %v12148_v2  ;;  %v1420_v45 = vadd.f32 %v1419_v14, %v11987_v44  ;;  %v10121_v20 = vpop.f32.mrb[9].mxu0  ;;  %v1421_v6 = vpop.f32.mrb[13].mxu1  ;;  %v870_v44 = vsel %vm128_vm7, %v11932_v53, 0.0 }
 0x35f   :  { %v1422_v4 = vadd.f32 %v1421_v6, %v11991_v3  ;;  %v865_v5 = vpop.f32.mrb[10].mxu0  ;;  %v1423_v46 = vpop.f32.mrb[14].mxu1 }
 0x360   :  { %v10122_v32 = vpop.f32.mrb[11].mxu0  ;;  %v1424_v35 = vpop.f32.mrb[15].mxu1  ;;  %v1467_v46 = vadd.f32 %v1420_v45, %v11913_v58 }
 0x361   :  { %v1468_v38 = vadd.f32 %v1422_v4, %v11916_v61 }
 0x362   :  { %v9204_v3 = vmul.f32 -1.442695, %v1467_v46 }
 0x363   :  { %v9205_v52 = vmul.f32 -1.442695, %v1468_v38 }
 0x365   :  { %11094 = vpow2.f32 %v9205_v52 }
 0x36f   :  { %v11095_v17 = vpop.eup %11094 }
 0x370   :  { %v1480_v47 = vadd.f32 1.0, %v11095_v17 }
 0x372   :  { %11096 = vrcp.f32 %v1480_v47 }
 0x373   :  { %11098 = vpow2.f32 %v9204_v3 }
 0x37c   :  { %v11097_v0 = vpop.eup %11096 }
 0x37d   :  { %v1490_v20 = vmul.f32 %v11097_v0, %v870_v44  ;;  %v1218_v14 = vpop.f32.mrb[12].mxu0  ;;  %v11099_v4 = vpop.eup %11098 }
 0x37e   :  { %v1220_v2 = vpop.f32.mrb[13].mxu0  ;;  %v1474_v32 = vadd.f32 1.0, %v11099_v4 }
 0x37f   :  { %v1222_v6 = vpop.f32.mrb[14].mxu0 }
 0x380   :  { %v1223_v5 = vpop.f32.mrb[15].mxu0  ;;  %11100 = vrcp.f32 %v1474_v32 }
 0x38a   :  { %v11101_v6 = vpop.eup %11100 }
 0x39d   :  { %v1460_v35 = vpop.f32.mrb[16].mxu0 }
 0x39e   :  { %v1461_v38 = vadd.f32 %v1460_v35, %v1218_v14  ;;  %v1462_v52 = vpop.f32.mrb[17].mxu0 }
 0x39f   :  { %v1463_v47 = vadd.f32 %v1462_v52, %v1220_v2  ;;  %v1464_v17 = vpop.f32.mrb[18].mxu0 }
 0x3a0   :  { %v1469_v48 = vadd.f32 %v1461_v38, %v11929_v24  ;;  %v1465_v60 = vpop.f32.mrb[19].mxu0  ;;  %v12167_v38 = vld [vmem:[#allocation5 + $0x8] ss:$16 sps:$4 sm:$0xff]   ;;  %v12176_v17 = vld [vmem:[#allocation5 + $0x2c] ss:$16 sps:$4 sm:$0xff]  }
 0x3a1   :  { %v1470_v0 = vadd.f32 %v1463_v47, %v11923_v18 }
 0x3a2   :  { %11102 = vtanh.f32 %v1469_v48 }
 0x3a3   :  { %v9206_v53 = vmul.f32 -1.442695, %v1470_v0 }
 0x3a5   :  { %11104 = vpow2.f32 %v9206_v53 }
 0x3ac   :  { %v11103_v45 = vpop.eup %11102 }
 0x3ad   :  { %v1491_v5 = vmul.f32 %v11103_v45, %v11101_v6  ;;  %v12184_v6 = vld [vmem:[#allocation5 + $0x28] ss:$16 sps:$4 sm:$0xff]   ;;  %v14585_v45 = vmov 0  }
 0x3af   :  { %v11105_v46 = vpop.eup %11104  ;;  %v1492_v3 = vadd.f32 %v1491_v5, %v1490_v20  ;;  %v869_v20 = vsel %vm128_vm7, %v11935_v10, 0.0  ;;  %v12187_v10 = vld [vmem:[#allocation5 + $0x4c] ss:$16 sps:$4 sm:$0xff]   ;;  %v14586_v5 = vmov 0.0  }
 0x3b0   :  { %v1487_v4 = vadd.f32 1.0, %v11105_v46  ;;  %v12193_v46 = vld [vmem:[#allocation5 + $0x48] ss:$16 sps:$4 sm:$0xff]  }
 0x3b1   :  { %11106 = vtanh.f32 %v1492_v3  ;;  %v12161_v2 = vsel %vm900_vm11, %v1492_v3, %v870_v44  ;;  %v12196_v3 = vld [vmem:[#allocation5 + $0x6c] ss:$16 sps:$4 sm:$0xff]  }
 0x3b2   :  { %11108 = vrcp.f32 %v1487_v4  ;;  %v12199_v4 = vld [vmem:[#allocation5 + $0x68] ss:$16 sps:$4 sm:$0xff]  }
 0x3bb   :  { %v11107_v14 = vpop.eup %11106 }
 0x3bc   :  { %v11109_v60 = vpop.eup %11108 }
 0x3bd   :  { %v12163_v32 = vpop.f32.mrb[20].mxu0  ;;  %v1494_v35 = vmul.f32 %v11109_v60, %v11107_v14  ;;  %v12202_v14 = vld [vmem:[#allocation5 + $0x8c] ss:$16 sps:$4 sm:$0xff]   ;;  %v12205_v60 = vld [vmem:[#allocation5 + $0x88] ss:$16 sps:$4 sm:$0xff]  }
 0x3be   :  { %v12165_v48 = vpop.f32.mrb[21].mxu0 }
 0x3bf   :  { %v1910_v52 = vpop.f32.mrb[22].mxu0  ;;  %v1495_v47 = vpack.c.bf16 %v1494_v35, %v1494_v35  ;;  %v12174_v44 = vsel %vm900_vm11, %v1494_v35, %v869_v20  ;;  %v12208_v35 = vld [vmem:[#allocation5 + $0xac] ss:$16 sps:$4 sm:$0xff]   ;;  %v12211_v20 = vld [vmem:[#allocation5 + $0xa8] ss:$16 sps:$4 sm:$0xff]  }
 0x3c0   :  { %v1911_v0 = vpop.f32.mrb[23].mxu0  ;;  %v12180_v53 = vpack.c.bf16 %v12174_v44, %v12174_v44  ;;  %14587 = vst [vmem:[#allocation24_spill] sm:$0xff] %v12211_v20  ;;  %v12214_v52 = vld [vmem:[#allocation5 + $0xcc] ss:$16 sps:$4 sm:$0xff]  }
 0x3c1   :  { %10140 = vmatmul.mubr.bf16.vlgmr.msra.gmra.mrb[16].mxu1 %v1495_v47  ;;  %14588 = vst [vmem:[#allocation25_spill] sm:$0xff] %v12214_v52  ;;  %v12217_v47 = vld [vmem:[#allocation5 + $0xc8] ss:$16 sps:$4 sm:$0xff]   ;;  %v12220_v0 = vld [vmem:[#allocation5 + $0xec] ss:$16 sps:$4 sm:$0xff]  }
 0x3c2   :  { %1914 = vmatpush1.bf16.msra.mxu1 %v12167_v38  ;;  %2147 = vmatmul.mubr.bf16.vlgmr.msra.gmra.mrb[24].mxu0 %v12180_v53  ;;  %14589 = vst [vmem:[#allocation26_spill] sm:$0xff] %v12220_v0 }
 0x3c3   :  { %1915 = vmatprep.subr.bf16.mxu1 %v12176_v17  ;;  %1945 = vmatprep.mubr.bf16.mxu1 %v14585_v45 }
 0x3c4   :  { %10159 = vmatprep.mubr.msk.bf16.mxu0 %vm11438_vm14, %v14586_v5 }
 0x3c6   :  { %1916 = vmatpush1.bf16.msra.mxu1 %v12184_v6 }
 0x3c7   :  { %1917 = vmatprep.subr.bf16.mxu1 %v12187_v10 }
 0x3ca   :  { %1918 = vmatpush1.bf16.msra.mxu1 %v12193_v46 }
 0x3cb   :  { %1919 = vmatprep.subr.bf16.mxu1 %v12196_v3 }
 0x3ce   :  { %1920 = vmatpush1.bf16.msra.mxu1 %v12199_v4 }
 0x3cf   :  { %1921 = vmatprep.subr.bf16.mxu1 %v12202_v14 }
 0x3d2   :  { %1922 = vmatpush1.bf16.msra.mxu1 %v12205_v60 }
 0x3d3   :  { %1923 = vmatprep.subr.bf16.mxu1 %v12208_v35 }
 0x3d6   :  { %1924 = vmatpush1.bf16.msra.mxu1 %v12211_v20  ;;  %v12232_v20 = vld [vmem:[#allocation2 + $0x2c] ss:$16 sps:$4 sm:$0xff]  }
 0x3d7   :  { %1925 = vmatprep.subr.bf16.mxu1 %v12214_v52  ;;  %14593 = vst [vmem:[#allocation30_spill] sm:$0xff] %v12232_v20  ;;  %v12236_v52 = vld [vmem:[#allocation2 + $0x28] ss:$16 sps:$4 sm:$0xff]  }
 0x3d8   :  { %14594 = vst [vmem:[#allocation31_spill] sm:$0xff] %v12236_v52 }
 0x3da   :  { %1926 = vmatpush1.bf16.msra.mxu1 %v12217_v47 }
 0x3db   :  { %1927 = vmatprep.subr.bf16.mxu1 %v12220_v0  ;;  %v12240_v0 = vld [vmem:[#allocation2 + $0x4c] ss:$16 sps:$4 sm:$0xff]  }
 0x3dc   :  { %14595 = vst [vmem:[#allocation32_spill] sm:$0xff] %v12240_v0 }
 0x3de   :  { %1928 = vmatpush1.bf16.msra.mxu1 %v12223_v62  ;;  %v12243_v62 = vld [vmem:[#allocation2 + $0x48] ss:$16 sps:$4 sm:$0xff]  }
 0x3df   :  { %2155 = vmatprep.subr.bf16.mxu1 %v12226_v31  ;;  %14596 = vst [vmem:[#allocation33_spill] sm:$0xff] %v12243_v62  ;;  %v12246_v31 = vld [vmem:[#allocation2 + $0x6c] ss:$16 sps:$4 sm:$0xff]  }
 0x3e0   :  { %14597 = vst [vmem:[#allocation34_spill] sm:$0xff] %v12246_v31 }
 0x3e1   :  { %1946 = vmatmul.mubr.bf16.vlgmr.msra.gmra.mrb[20].mxu1 %v12051_v22  ;;  %v12249_v22 = vld [vmem:[#allocation2 + $0x68] ss:$16 sps:$4 sm:$0xff]  }
 0x3e2   :  { %2156 = vmatpush1.bf16.msra.mxu1 %v12229_v42  ;;  %2187 = vmatprep.mubr.bf16.mxu1 %v14585_v45  ;;  %14598 = vst [vmem:[#allocation35_spill] sm:$0xff] %v12249_v22  ;;  %v12252_v42 = vld [vmem:[#allocation2 + $0x8c] ss:$16 sps:$4 sm:$0xff]  }
 0x3e3   :  { %2157 = vmatprep.subr.bf16.mxu1 %v12232_v20  ;;  %14599 = vst [vmem:[#allocation36_spill] sm:$0xff] %v12252_v42  ;;  %v12255_v20 = vld [vmem:[#allocation2 + $0x88] ss:$16 sps:$4 sm:$0xff]  }
 0x3e6   :  { %2158 = vmatpush1.bf16.msra.mxu1 %v12236_v52  ;;  %v12258_v52 = vld [vmem:[#allocation2 + $0xac] ss:$16 sps:$4 sm:$0xff]  }
 0x3e7   :  { %2159 = vmatprep.subr.bf16.mxu1 %v12240_v0  ;;  %v12261_v0 = vld [vmem:[#allocation2 + $0xa8] ss:$16 sps:$4 sm:$0xff]  }
 0x3ea   :  { %2160 = vmatpush1.bf16.msra.mxu1 %v12243_v62  ;;  %v12264_v62 = vld [vmem:[#allocation2 + $0xcc] ss:$16 sps:$4 sm:$0xff]  }
 0x3eb   :  { %2161 = vmatprep.subr.bf16.mxu1 %v12246_v31  ;;  %v12267_v31 = vld [vmem:[#allocation2 + $0xc8] ss:$16 sps:$4 sm:$0xff]  }
 0x3ee   :  { %2162 = vmatpush1.bf16.msra.mxu1 %v12249_v22  ;;  %v12270_v22 = vld [vmem:[#allocation2 + $0xec] ss:$16 sps:$4 sm:$0xff]  }
 0x3ef   :  { %2163 = vmatprep.subr.bf16.mxu1 %v12252_v42  ;;  %14600 = vst [vmem:[#allocation37_spill] sm:$0xff] %v12270_v22  ;;  %v12273_v42 = vld [vmem:[#allocation2 + $0xe8] ss:$16 sps:$4 sm:$0xff]  }
 0x3f2   :  { %2164 = vmatpush1.bf16.msra.mxu1 %v12255_v20 }
 0x3f3   :  { %2165 = vmatprep.subr.bf16.mxu1 %v12258_v52 }
 0x3f6   :  { %2166 = vmatpush1.bf16.msra.mxu1 %v12261_v0 }
 0x3f7   :  { %2167 = vmatprep.subr.bf16.mxu1 %v12264_v62 }
 0x3fa   :  { %2168 = vmatpush1.bf16.msra.mxu1 %v12267_v31 }
 0x3fb   :  { %2169 = vmatprep.subr.bf16.mxu1 %v12270_v22  ;;  %v2369_v22 = vpop.permute.xlu0 %2368 }
 0x3fe   :  { %2170 = vmatpush1.bf16.msra.mxu1 %v12273_v42 }
 0x3ff   :  { %2601 = vmatprep.subr.bf16.mxu1 %v11998_v15  ;;  %v2366_v15 = vmul.f32 %v12138_v56, %v11694_v51 }
 0x401   :  { %2188 = vmatmul.mubr.bf16.vlgmr.msra.gmra.mrb[24].mxu1 %v12180_v53  ;;  %v14602_v53 = vmov 1  }
 0x402   :  { %2602 = vmatpush1.bf16.msra.mxu1 %v12002_v19  ;;  %2633 = vmatprep.mubr.bf16.mxu1 %v14585_v45  ;;  %v2371_v19 = vmul.f32 %v2369_v22, %v11691_v50 }
 0x403   :  { %2603 = vmatprep.subr.bf16.mxu1 %v12005_v21 }
 0x404   :  { %v2372_v21 = vadd.f32 %v2371_v19, %v2366_v15 }
 0x406   :  { %2604 = vmatpush1.bf16.msra.mxu1 %v12012_v23  ;;  %v12297_v23 = vld [vmem:[%s14443_s5] ss:$0 sm:$0xff] }
 0x407   :  { %2605 = vmatprep.subr.bf16.mxu1 %v12016_v25  ;;  %v2373_v25 = vadd.f32 %v12297_v23, %v2372_v21 }
 0x40a   :  { %2606 = vmatpush1.bf16.msra.mxu1 %v12020_v27  ;;  %v12301_v27 = vld [vmem:[#allocation5 + $0xe4] ss:$16 sps:$4 sm:$0xff]  }
 0x40b   :  { %2607 = vmatprep.subr.bf16.mxu1 %v12023_v30  ;;  %v12304_v30 = vld [vmem:[#allocation5 + $0xe0] ss:$16 sps:$4 sm:$0xff]  }
 0x40e   :  { %2608 = vmatpush1.bf16.msra.mxu1 %v12026_v33  ;;  %v2374_v33 = vmax.f32 %v2373_v25, 0.0 }
 0x40f   :  { %2609 = vmatprep.subr.bf16.mxu1 %v12029_v49 }
 0x410   :  { %v12308_v49 = vpack.c.bf16 %v2374_v33, %v2374_v33 }
 0x412   :  { %2610 = vmatpush1.bf16.msra.mxu1 %v12032_v29  ;;  %v10606_v29 = vld [vmem:[%s14450_s12] sm:$0xff]  }
 0x413   :  { %2611 = vmatprep.subr.bf16.mxu1 %v12037_v43  ;;  %10144 = vmatpush3.bf16.msra.mxu0 %v10606_v29  ;;  %v10607_v43 = vld [vmem:[%s14450_s12 + $0x8] sm:$0xff]  }
 0x414   :  { %10145 = vmatprep.subr.bf16.mxu0 %v14586_v5 }
 0x416   :  { %2612 = vmatpush1.bf16.msra.mxu1 %v12040_v9  ;;  %v10608_v9 = vld [vmem:[%s14450_s12 + $0x10] sm:$0xff]  }
 0x417   :  { %2613 = vmatprep.subr.bf16.mxu1 %v12043_v34  ;;  %10146 = vmatpush3.bf16.msra.mxu0 %v10607_v43  ;;  %v10609_v34 = vld [vmem:[%s14450_s12 + $0x18] sm:$0xff]  }
 0x418   :  { %10147 = vmatprep.subr.bf16.mxu0 %v14586_v5 }
 0x41a   :  { %2614 = vmatpush1.bf16.msra.mxu1 %v12046_v7  ;;  %v10610_v7 = vld [vmem:[%s14450_s12 + $0x20] sm:$0xff]  }
 0x41b   :  { %2615 = vmatprep.subr.bf16.mxu1 %v12301_v27  ;;  %10148 = vmatpush3.bf16.msra.mxu0 %v10608_v9 }
 0x41c   :  { %10149 = vmatprep.subr.bf16.mxu0 %v14586_v5 }
 0x41e   :  { %2616 = vmatpush1.bf16.msra.mxu1 %v12304_v30 }
 0x41f   :  { %2843 = vmatprep.subr.bf16.mxu1 %v12058_v57  ;;  %10150 = vmatpush3.bf16.msra.mxu0 %v10609_v34  ;;  %v10611_v57 = vld [vmem:[%s14450_s12 + $0x28] sm:$0xff]  }
 0x420   :  { %10151 = vmatprep.subr.bf16.mxu0 %v14586_v5 }
 0x421   :  { %2634 = vmatmul.mubr.bf16.vlgmr.msra.gmra.mrb[28].mxu1 %v12308_v49 }
 0x422   :  { %2844 = vmatpush1.bf16.msra.mxu1 %v12060_v55  ;;  %2875 = vmatprep.mubr.bf16.mxu1 %v14585_v45  ;;  %v10612_v55 = vld [vmem:[%s14450_s12 + $0x30] sm:$0xff]  }
 0x423   :  { %2845 = vmatprep.subr.bf16.mxu1 %v12068_v36  ;;  %10152 = vmatpush3.bf16.msra.mxu0 %v10610_v7  ;;  %v10613_v36 = vld [vmem:[%s14450_s12 + $0x38] sm:$0xff]  }
 0x424   :  { %10153 = vmatprep.subr.bf16.mxu0 %v14586_v5 }
 0x426   :  { %2846 = vmatpush1.bf16.msra.mxu1 %v12070_v59 }
 0x427   :  { %2847 = vmatprep.subr.bf16.mxu1 %v12078_v63  ;;  %10154 = vmatpush3.bf16.msra.mxu0 %v10611_v57 }
 0x428   :  { %10155 = vmatprep.subr.bf16.mxu0 %v14586_v5 }
 0x42a   :  { %2848 = vmatpush1.bf16.msra.mxu1 %v12080_v37 }
 0x42b   :  { %2849 = vmatprep.subr.bf16.mxu1 %v12088_v40  ;;  %10156 = vmatpush3.bf16.msra.mxu0 %v10612_v55 }
 0x42c   :  { %10157 = vmatprep.subr.bf16.mxu0 %v14586_v5 }
 0x42e   :  { %2850 = vmatpush1.bf16.msra.mxu1 %v12090_v8 }
 0x42f   :  { %2851 = vmatprep.subr.bf16.mxu1 %v12098_v11  ;;  %10158 = vmatpush3.bf16.msra.mxu0 %v10613_v36 }
 0x430   :  { %2642 = vmatprep.subr.bf16.mxu0 %v12133_v28  ;;  %v12369_v28 = vld [vmem:[%s14573_s6 + $0x28] sm:$0xff] }
 0x431   :  { %vm3807_vm10 = vcmp.ne.f32.partialorder %v12369_v28, %v12369_v28 }
 0x432   :  { %2852 = vmatpush1.bf16.msra.mxu1 %v12100_v13 }
 0x433   :  { %2853 = vmatprep.subr.bf16.mxu1 %v12107_v54 }
 0x436   :  { %2854 = vmatpush1.bf16.msra.mxu1 %v12110_v39 }
 0x437   :  { %2855 = vmatprep.subr.bf16.mxu1 %v12113_v41 }
 0x43a   :  { %2856 = vmatpush1.bf16.msra.mxu1 %v12120_v12 }
 0x43b   :  { %2857 = vmatprep.subr.bf16.mxu1 %v12128_v16 }
 0x43e   :  { %2858 = vmatpush1.bf16.msra.mxu1 %v12130_v26 }
 0x43f   :  { %10163 = vmatprep.subr.bf16.mxu1 %v14586_v5 }
 0x494   :  { %v12361_v59 = vpop.f32.mrb[16].mxu1 }
 0x495   :  { %14601 = vst [vmem:[#allocation38_spill] sm:$0xff] %v12361_v59  ;;  %v10141_v63 = vpop.f32.mrb[17].mxu1  ;;  %v2148_v37 = vpop.f32.mrb[24].mxu0 }
 0x496   :  { %v2149_v40 = vadd.f32 %v2148_v37, %v12163_v32  ;;  %v1597_v8 = vpop.f32.mrb[18].mxu1  ;;  %v2150_v11 = vpop.f32.mrb[25].mxu0  ;;  %v12374_v32 = vld [vmem:[%s14573_s6 + $0x30] sm:$0xff] }
 0x497   :  { %v2151_v13 = vadd.f32 %v2150_v11, %v12165_v48  ;;  %v10142_v54 = vpop.f32.mrb[19].mxu1  ;;  %v2152_v39 = vpop.f32.mrb[26].mxu0  ;;  %vm3808_vm12 = vcmp.ne.f32.partialorder %v12374_v32, %v12374_v32 }
 0x498   :  { %v2153_v41 = vpop.f32.mrb[27].mxu0  ;;  %vm3809_vm15 = vmor %vm3807_vm10, %vm3808_vm12  ;;  %v2196_v29 = vadd.f32 %v2149_v40, %v11913_v58 }
 0x499   :  { %v2197_v12 = vadd.f32 %v2151_v13, %v11916_v61  ;;  %vm3810_vm0 = vmxor %vm3809_vm15, %vm11435_vm3 }
 0x49a   :  { %v3812_v48 = vsel %vm3810_vm0, 1, %v14585_v45  ;;  %v9281_v43 = vmul.f32 -1.442695, %v2196_v29 }
 0x49b   :  { %v9282_v16 = vmul.f32 -1.442695, %v2197_v12  ;;  %3814 = vperm.xlu1 %10385, %v3812_v48  }
 0x49d   :  { %11110 = vpow2.f32 %v9282_v16 }
 0x49f   :  { %10386 = vset.pattern.permute.xlu1 %v14602_v53 }
 0x4a7   :  { %v11111_v26 = vpop.eup %11110 }
 0x4a8   :  { %v2209_v56 = vadd.f32 1.0, %v11111_v26 }
 0x4aa   :  { %11112 = vrcp.f32 %v2209_v56 }
 0x4ab   :  { %11114 = vpow2.f32 %v9281_v43  ;;  %v14615_v43 = vld [vmem:[#allocation36_spill] sm:$0xff] }
 0x4b4   :  { %v11113_v22 = vpop.eup %11112  ;;  %v1947_v15 = vpop.f32.mrb[20].mxu1 }
 0x4b5   :  { %v2219_v19 = vmul.f32 %v11113_v22, %v12161_v2  ;;  %v1949_v21 = vpop.f32.mrb[21].mxu1  ;;  %v11115_v9 = vpop.eup %11114 }
 0x4b6   :  { %v1951_v25 = vpop.f32.mrb[22].mxu1  ;;  %v2203_v34 = vadd.f32 1.0, %v11115_v9  ;;  %v3098_v9 = vpop.permute.xlu1 %3097 }
 0x4b7   :  { %v1952_v33 = vpop.f32.mrb[23].mxu1 }
 0x4b8   :  { %11116 = vrcp.f32 %v2203_v34  ;;  %v3811_v34 = vsub.f32 %v12374_v32, %v12369_v28  ;;  %v14617_v28 = vld [vmem:[#allocation37_spill] sm:$0xff] }
 0x4c2   :  { %v11117_v54 = vpop.eup %11116 }
 0x4d4   :  { %v2189_v7 = vpop.f32.mrb[24].mxu1 }
 0x4d5   :  { %v2190_v57 = vadd.f32 %v2189_v7, %v1947_v15  ;;  %v2191_v55 = vpop.f32.mrb[25].mxu1 }
 0x4d6   :  { %v2192_v36 = vadd.f32 %v2191_v55, %v1949_v21  ;;  %v2193_v63 = vpop.f32.mrb[26].mxu1  ;;  %v12466_v55 = vld [vmem:[#allocation5 + $0x24] ss:$16 sps:$4 sm:$0xff]  }
 0x4d7   :  { %v2198_v37 = vadd.f32 %v2190_v57, %v11929_v24  ;;  %v2194_v8 = vpop.f32.mrb[27].mxu1  ;;  %v12481_v63 = vld [vmem:[#allocation5 + $0x64] ss:$16 sps:$4 sm:$0xff]  }
 0x4d8   :  { %v2199_v11 = vadd.f32 %v2192_v36, %v11923_v18  ;;  %v12474_v36 = vld [vmem:[#allocation5 + $0x44] ss:$16 sps:$4 sm:$0xff]  }
 0x4d9   :  { %11118 = vtanh.f32 %v2198_v37  ;;  %v12484_v37 = vld [vmem:[#allocation5 + $0x60] ss:$16 sps:$4 sm:$0xff]   ;;  %v12487_v8 = vld [vmem:[#allocation5 + $0x84] ss:$16 sps:$4 sm:$0xff]  }
 0x4da   :  { %v9283_v13 = vmul.f32 -1.442695, %v2199_v11  ;;  %v3093_v11 = vpop.permute.xlu0 %3092 }
 0x4dc   :  { %11120 = vpow2.f32 %v9283_v13  ;;  %v12490_v13 = vld [vmem:[#allocation5 + $0x80] ss:$16 sps:$4 sm:$0xff]  }
 0x4e3   :  { %v11119_v40 = vpop.eup %11118 }
 0x4e4   :  { %v2220_v39 = vmul.f32 %v11119_v40, %v11117_v54  ;;  %v3100_v54 = vmul.f32 %v3098_v9, %v11691_v50  ;;  %v3095_v40 = vmul.f32 %v3093_v11, %v11694_v51  ;;  %v12573_v9 = vld [vmem:[#allocation2 + $0xc4] ss:$16 sps:$4 sm:$0xff]   ;;  %v12593_v11 = vld [vmem:[#allocation5 + $0xc] ss:$16 sps:$4 sm:$0xff]  }
 0x4e6   :  { %v11121_v41 = vpop.eup %11120  ;;  %v2221_v12 = vadd.f32 %v2220_v39, %v2219_v19  ;;  %v12495_v39 = vld [vmem:[#allocation5 + $0xa4] ss:$16 sps:$4 sm:$0xff]  }
 0x4e7   :  { %v2216_v16 = vadd.f32 1.0, %v11121_v41  ;;  %v12498_v41 = vld [vmem:[#allocation5 + $0xa0] ss:$16 sps:$4 sm:$0xff]  }
 0x4e8   :  { %11122 = vtanh.f32 %v2221_v12  ;;  %v12393_v26 = vsel %vm1629_vm13, %v2221_v12, %v12161_v2  ;;  %v3101_v12 = vadd.f32 %v3100_v54, %v3095_v40 }
 0x4e9   :  { %11124 = vrcp.f32 %v2216_v16  ;;  %v12501_v16 = vld [vmem:[#allocation5 + $0xc4] ss:$16 sps:$4 sm:$0xff]  }
 0x4f2   :  { %v11123_v56 = vpop.eup %11122 }
 0x4f3   :  { %v11125_v48 = vpop.eup %11124 }
 0x4f4   :  { %v12395_v22 = vpop.f32.mrb[28].mxu1  ;;  %v2223_v15 = vmul.f32 %v11125_v48, %v11123_v56  ;;  %v12504_v56 = vld [vmem:[#allocation5 + $0xc0] ss:$16 sps:$4 sm:$0xff]   ;;  %v3102_v48 = vadd.f32 %v12297_v23, %v3101_v12 }
 0x4f5   :  { %v12397_v21 = vpop.f32.mrb[29].mxu1 }
 0x4f6   :  { %v2639_v25 = vpop.f32.mrb[30].mxu1  ;;  %v2224_v33 = vpack.c.bf16 %v2223_v15, %v2223_v15  ;;  %v12402_v19 = vsel %vm1629_vm13, %v2223_v15, %v12174_v44  ;;  %v14604_v44 = vld [vmem:[#allocation25_spill] sm:$0xff]  ;;  %v3103_v15 = vmax.f32 %v3102_v48, 0.0 }
 0x4f7   :  { %v2640_v29 = vpop.f32.mrb[31].mxu1  ;;  %v2375_v2 = vpack.c.bf16 %v12402_v19, %v12402_v19 }
 0x4f8   :  { %10160 = vmatmul.mubr.bf16.vlgmr.msra.gmra.mrb[28].mxu0 %v2224_v33  ;;  %v12511_v25 = vpack.c.bf16 %v3103_v15, %v3103_v15  ;;  %v10635_v33 = vld [vmem:[%s14450_s12] sm:$0xff]  }
 0x4f9   :  { %2643 = vmatpush1.bf16.msra.mxu0 %v12167_v38  ;;  %2876 = vmatmul.mubr.bf16.vlgmr.msra.gmra.mrb[32].mxu1 %v2375_v2  ;;  %v14603_v38 = vld [vmem:[#allocation24_spill] sm:$0xff]  ;;  %v12518_v29 = vld [vmem:[#allocation2 + $0x4] ss:$16 sps:$4 sm:$0xff]  }
 0x4fa   :  { %2644 = vmatprep.subr.bf16.mxu0 %v12176_v17  ;;  %2674 = vmatprep.mubr.bf16.mxu0 %v14585_v45  ;;  %v14605_v17 = vld [vmem:[#allocation26_spill] sm:$0xff] }
 0x4fb   :  { %10179 = vmatprep.mubr.msk.bf16.mxu1 %vm11438_vm14, %v14586_v5  ;;  %10164 = vmatpush3.bf16.msra.mxu1 %v10635_v33 }
 0x4fc   :  { %10165 = vmatprep.subr.bf16.mxu1 %v14586_v5 }
 0x4fd   :  { %2645 = vmatpush1.bf16.msra.mxu0 %v12184_v6  ;;  %v14606_v6 = vld [vmem:[#allocation27_spill] sm:$0xff] }
 0x4fe   :  { %2646 = vmatprep.subr.bf16.mxu0 %v12187_v10  ;;  %v14607_v10 = vld [vmem:[#allocation28_spill] sm:$0xff] }
 0x501   :  { %2647 = vmatpush1.bf16.msra.mxu0 %v12193_v46  ;;  %v14608_v46 = vld [vmem:[#allocation29_spill] sm:$0xff] }
 0x502   :  { %2648 = vmatprep.subr.bf16.mxu0 %v12196_v3  ;;  %v14609_v3 = vld [vmem:[#allocation30_spill] sm:$0xff] }
 0x505   :  { %2649 = vmatpush1.bf16.msra.mxu0 %v12199_v4  ;;  %v14610_v4 = vld [vmem:[#allocation31_spill] sm:$0xff] }
 0x506   :  { %2650 = vmatprep.subr.bf16.mxu0 %v12202_v14  ;;  %v14611_v14 = vld [vmem:[#allocation32_spill] sm:$0xff] }
 0x509   :  { %2651 = vmatpush1.bf16.msra.mxu0 %v12205_v60  ;;  %v14612_v60 = vld [vmem:[#allocation33_spill] sm:$0xff] }
 0x50a   :  { %2652 = vmatprep.subr.bf16.mxu0 %v12208_v35  ;;  %v14613_v35 = vld [vmem:[#allocation34_spill] sm:$0xff] }
 0x50d   :  { %2653 = vmatpush1.bf16.msra.mxu0 %v14603_v38  ;;  %v12530_v38 = vld [vmem:[#allocation2 + $0x20] ss:$16 sps:$4 sm:$0xff]  }
 0x50e   :  { %2654 = vmatprep.subr.bf16.mxu0 %v14604_v44  ;;  %v10643_v44 = vld [vmem:[%s14450_s12 + $0x10] sm:$0xff]  }
 0x511   :  { %2655 = vmatpush1.bf16.msra.mxu0 %v12217_v47  ;;  %v14614_v47 = vld [vmem:[#allocation35_spill] sm:$0xff] }
 0x512   :  { %2656 = vmatprep.subr.bf16.mxu0 %v14605_v17  ;;  %v12538_v17 = vld [vmem:[#allocation2 + $0x44] ss:$16 sps:$4 sm:$0xff]  }
 0x515   :  { %2657 = vmatpush1.bf16.msra.mxu0 %v14606_v6  ;;  %v12540_v6 = vld [vmem:[#allocation2 + $0x40] ss:$16 sps:$4 sm:$0xff]  }
 0x516   :  { %2884 = vmatprep.subr.bf16.mxu0 %v14607_v10  ;;  %v10647_v10 = vld [vmem:[%s14450_s12 + $0x18] sm:$0xff]  }
 0x518   :  { %2675 = vmatmul.mubr.bf16.vlgmr.msra.gmra.mrb[32].mxu0 %v12308_v49  ;;  %v12438_v49 = vld [vmem:[%s14573_s6 + $0x38] sm:$0xff] }
 0x519   :  { %2885 = vmatpush1.bf16.msra.mxu0 %v14608_v46  ;;  %2916 = vmatprep.mubr.bf16.mxu0 %v14585_v45  ;;  %vm4537_vm1 = vcmp.ne.f32.partialorder %v12438_v49, %v12438_v49  ;;  %v12548_v46 = vld [vmem:[#allocation2 + $0x64] ss:$16 sps:$4 sm:$0xff]   ;;  %v4540_v12 = vsub.f32 %v12438_v49, %v12374_v32 }
 0x51a   :  { %2886 = vmatprep.subr.bf16.mxu0 %v14609_v3  ;;  %v12447_v7 = vpop.permute.xlu1 %3814  ;;  %vm4538_vm2 = vmor %vm3808_vm12, %vm4537_vm1  ;;  %v12550_v3 = vld [vmem:[#allocation2 + $0x60] ss:$16 sps:$4 sm:$0xff]  }
 0x51b   :  { %14616 = vst [vmem:[#allocation24_spill] sm:$0xff] %v12447_v7  ;;  %vm3816_vm4 = vcmp.eq.s32.totalorder %v12447_v7, 1  ;;  %vm4539_vm5 = vmxor %vm4538_vm2, %vm11435_vm3  ;;  %v12685_v7 = vld [vmem:[#allocation2 + $0x8] ss:$16 sps:$4 sm:$0xff]  }
 0x51c   :  { %v4541_v57 = vsel %vm4539_vm5, 1, %v14585_v45  ;;  %14626 = vst [vmem:[#allocation32_spill] sm:$0xff] %v12685_v7 }
 0x51d   :  { %2887 = vmatpush1.bf16.msra.mxu0 %v14610_v4  ;;  %v10651_v4 = vld [vmem:[%s14450_s12 + $0x20] sm:$0xff]  }
 0x51e   :  { %2888 = vmatprep.subr.bf16.mxu0 %v14611_v14  ;;  %v12558_v14 = vld [vmem:[#allocation2 + $0x84] ss:$16 sps:$4 sm:$0xff]  }
 0x521   :  { %2889 = vmatpush1.bf16.msra.mxu0 %v14612_v60  ;;  %v12560_v60 = vld [vmem:[#allocation2 + $0x80] ss:$16 sps:$4 sm:$0xff]  }
 0x522   :  { %2890 = vmatprep.subr.bf16.mxu0 %v14613_v35  ;;  %v10655_v35 = vld [vmem:[%s14450_s12 + $0x28] sm:$0xff]  }
 0x525   :  { %2891 = vmatpush1.bf16.msra.mxu0 %v14614_v47  ;;  %v12567_v47 = vld [vmem:[#allocation2 + $0xa4] ss:$16 sps:$4 sm:$0xff]  }
 0x526   :  { %2892 = vmatprep.subr.bf16.mxu0 %v14615_v43  ;;  %v12570_v43 = vld [vmem:[#allocation2 + $0xa0] ss:$16 sps:$4 sm:$0xff]  }
 0x529   :  { %2893 = vmatpush1.bf16.msra.mxu0 %v12255_v20  ;;  %v3817_v20 = vsel %vm3816_vm4, %v3811_v34, 0.0  ;;  %v10659_v34 = vld [vmem:[%s14450_s12 + $0x30] sm:$0xff]  }
 0x52a   :  { %2894 = vmatprep.subr.bf16.mxu0 %v12258_v52  ;;  %v3818_v52 = vmul.f32 4.0, %v3817_v20  ;;  %v12580_v20 = vld [vmem:[#allocation2 + $0xc0] ss:$16 sps:$4 sm:$0xff]  }
 0x52c   :  { %3821 = vperm.xlu0 %10383, %v3818_v52   ;;  %3826 = vperm.xlu1 %10386, %v3818_v52   ;;  %v10663_v52 = vld [vmem:[%s14450_s12 + $0x38] sm:$0xff]  }
 0x52d   :  { %2895 = vmatpush1.bf16.msra.mxu0 %v12261_v0  ;;  %v12459_v0 = vld [vmem:[#allocation5 + $0x4] ss:$16 sps:$4 sm:$0xff]  }
 0x52e   :  { %2896 = vmatprep.subr.bf16.mxu0 %v12264_v62  ;;  %v12463_v62 = vld [vmem:[#allocation5] ss:$16 sps:$4 sm:$0xff]  }
 0x530   :  { %4543 = vperm.xlu0 %10383, %v4541_v57   ;;  %10387 = vset.pattern.permute.xlu1 %v14585_v45  ;;  %v12590_v57 = vld [vmem:[#allocation2 + $0xe0] ss:$16 sps:$4 sm:$0xff]  }
 0x531   :  { %2897 = vmatpush1.bf16.msra.mxu0 %v12267_v31  ;;  %v12470_v31 = vld [vmem:[#allocation5 + $0x20] ss:$16 sps:$4 sm:$0xff]  }
 0x532   :  { %2898 = vmatprep.subr.bf16.mxu0 %v14617_v28  ;;  %v12588_v28 = vld [vmem:[#allocation2 + $0xe4] ss:$16 sps:$4 sm:$0xff]  }
 0x534   :  { %10388 = vset.pattern.permute.xlu0 %v14602_v53 }
 0x535   :  { %2899 = vmatpush1.bf16.msra.mxu0 %v12273_v42  ;;  %v12478_v42 = vld [vmem:[#allocation5 + $0x40] ss:$16 sps:$4 sm:$0xff]  }
 0x536   :  { %3330 = vmatprep.subr.bf16.mxu0 %v12459_v0 }
 0x538   :  { %2917 = vmatmul.mubr.bf16.vlgmr.msra.gmra.mrb[36].mxu0 %v2375_v2  ;;  %v12520_v2 = vld [vmem:[#allocation2] ss:$16 sps:$4 sm:$0xff]  }
 0x539   :  { %3331 = vmatpush1.bf16.msra.mxu0 %v12463_v62  ;;  %3362 = vmatprep.mubr.bf16.mxu0 %v14585_v45 }
 0x53a   :  { %3332 = vmatprep.subr.bf16.mxu0 %v12466_v55 }
 0x53d   :  { %3333 = vmatpush1.bf16.msra.mxu0 %v12470_v31 }
 0x53e   :  { %3334 = vmatprep.subr.bf16.mxu0 %v12474_v36 }
 0x541   :  { %3335 = vmatpush1.bf16.msra.mxu0 %v12478_v42 }
 0x542   :  { %3336 = vmatprep.subr.bf16.mxu0 %v12481_v63 }
 0x545   :  { %3337 = vmatpush1.bf16.msra.mxu0 %v12484_v37 }
 0x546   :  { %3338 = vmatprep.subr.bf16.mxu0 %v12487_v8 }
 0x549   :  { %3339 = vmatpush1.bf16.msra.mxu0 %v12490_v13 }
 0x54a   :  { %3340 = vmatprep.subr.bf16.mxu0 %v12495_v39 }
 0x54d   :  { %3341 = vmatpush1.bf16.msra.mxu0 %v12498_v41 }
 0x54e   :  { %3342 = vmatprep.subr.bf16.mxu0 %v12501_v16 }
 0x551   :  { %3343 = vmatpush1.bf16.msra.mxu0 %v12504_v56 }
 0x552   :  { %3344 = vmatprep.subr.bf16.mxu0 %v12301_v27  ;;  %v10639_v27 = vld [vmem:[%s14450_s12 + $0x8] sm:$0xff]  }
 0x553   :  { %10166 = vmatpush3.bf16.msra.mxu1 %v10639_v27 }
 0x554   :  { %10167 = vmatprep.subr.bf16.mxu1 %v14586_v5 }
 0x555   :  { %3345 = vmatpush1.bf16.msra.mxu0 %v12304_v30  ;;  %v12528_v30 = vld [vmem:[#allocation2 + $0x24] ss:$16 sps:$4 sm:$0xff]  }
 0x556   :  { %3572 = vmatprep.subr.bf16.mxu0 %v12518_v29 }
 0x557   :  { %10168 = vmatpush3.bf16.msra.mxu1 %v10643_v44 }
 0x558   :  { %3363 = vmatmul.mubr.bf16.vlgmr.msra.gmra.mrb[40].mxu0 %v12511_v25  ;;  %10169 = vmatprep.subr.bf16.mxu1 %v14586_v5 }
 0x559   :  { %3604 = vmatprep.mubr.bf16.mxu0 %v14585_v45  ;;  %3573 = vmatpush1.bf16.msra.mxu0 %v12520_v2 }
 0x55a   :  { %3574 = vmatprep.subr.bf16.mxu0 %v12528_v30 }
 0x55b   :  { %10170 = vmatpush3.bf16.msra.mxu1 %v10647_v10 }
 0x55c   :  { %10171 = vmatprep.subr.bf16.mxu1 %v14586_v5 }
 0x55d   :  { %3575 = vmatpush1.bf16.msra.mxu0 %v12530_v38 }
 0x55e   :  { %3576 = vmatprep.subr.bf16.mxu0 %v12538_v17 }
 0x55f   :  { %10172 = vmatpush3.bf16.msra.mxu1 %v10651_v4 }
 0x560   :  { %10173 = vmatprep.subr.bf16.mxu1 %v14586_v5 }
 0x561   :  { %3577 = vmatpush1.bf16.msra.mxu0 %v12540_v6 }
 0x562   :  { %3578 = vmatprep.subr.bf16.mxu0 %v12548_v46 }
 0x563   :  { %10174 = vmatpush3.bf16.msra.mxu1 %v10655_v35 }
 0x564   :  { %10175 = vmatprep.subr.bf16.mxu1 %v14586_v5 }
 0x565   :  { %3579 = vmatpush1.bf16.msra.mxu0 %v12550_v3 }
 0x566   :  { %3580 = vmatprep.subr.bf16.mxu0 %v12558_v14 }
 0x567   :  { %10176 = vmatpush3.bf16.msra.mxu1 %v10659_v34 }
 0x568   :  { %10177 = vmatprep.subr.bf16.mxu1 %v14586_v5 }
 0x569   :  { %3581 = vmatpush1.bf16.msra.mxu0 %v12560_v60 }
 0x56a   :  { %3582 = vmatprep.subr.bf16.mxu0 %v12567_v47 }
 0x56b   :  { %10178 = vmatpush3.bf16.msra.mxu1 %v10663_v52 }
 0x56c   :  { %3371 = vmatprep.subr.bf16.mxu1 %v12593_v11 }
 0x56d   :  { %3583 = vmatpush1.bf16.msra.mxu0 %v12570_v43 }
 0x56e   :  { %3584 = vmatprep.subr.bf16.mxu0 %v12573_v9 }
 0x571   :  { %3585 = vmatpush1.bf16.msra.mxu0 %v12580_v20 }
 0x572   :  { %3586 = vmatprep.subr.bf16.mxu0 %v12588_v28 }
 0x575   :  { %3587 = vmatpush1.bf16.msra.mxu0 %v12590_v57 }
 0x576   :  { %10183 = vmatprep.subr.bf16.mxu0 %v14586_v5 }
 0x5ab   :  { %v12598_v54 = vpop.permute.xlu0 %3821 }
 0x5af   :  { %v12600_v40 = vpop.permute.xlu0 %4543 }
 0x5b0   :  { %14618 = vst [vmem:[#allocation25_spill] sm:$0xff] %v12600_v40  ;;  %vm4545_vm8 = vcmp.eq.s32.totalorder %v12600_v40, 1 }
 0x5b1   :  { %v4546_v48 = vsel %vm4545_vm8, %v4540_v12, 0.0 }
 0x5b2   :  { %v4547_v15 = vmul.f32 4.0, %v4546_v48 }
 0x5b4   :  { %4555 = vperm.xlu0 %10388, %v4547_v15   ;;  %4550 = vperm.xlu1 %10387, %v4547_v15  }
 0x5cb   :  { %v12607_v33 = vpop.f32.mrb[28].mxu0 }
 0x5cc   :  { %14619 = vst [vmem:[#allocation26_spill] sm:$0xff] %v12607_v33  ;;  %v10161_v27 = vpop.f32.mrb[29].mxu0  ;;  %v2877_v44 = vpop.f32.mrb[32].mxu1 }
 0x5cd   :  { %v2878_v10 = vadd.f32 %v2877_v44, %v12395_v22  ;;  %v2326_v4 = vpop.f32.mrb[30].mxu0  ;;  %v2879_v35 = vpop.f32.mrb[33].mxu1 }
 0x5ce   :  { %v2880_v34 = vadd.f32 %v2879_v35, %v12397_v21  ;;  %v10162_v52 = vpop.f32.mrb[31].mxu0  ;;  %v2881_v1 = vpop.f32.mrb[34].mxu1 }
 0x5cf   :  { %v2882_v59 = vpop.f32.mrb[35].mxu1  ;;  %v2925_v4 = vadd.f32 %v2878_v10, %v11913_v58 }
 0x5d0   :  { %v2926_v32 = vadd.f32 %v2880_v34, %v11916_v61 }
 0x5d1   :  { %v9358_v21 = vmul.f32 -1.442695, %v2925_v4 }
 0x5d2   :  { %v9359_v49 = vmul.f32 -1.442695, %v2926_v32 }
 0x5d4   :  { %11126 = vpow2.f32 %v9359_v49 }
 0x5de   :  { %v11127_v12 = vpop.eup %11126 }
 0x5df   :  { %v2938_v48 = vadd.f32 1.0, %v11127_v12 }
 0x5e1   :  { %11128 = vrcp.f32 %v2938_v48 }
 0x5e2   :  { %11130 = vpow2.f32 %v9358_v21 }
 0x5eb   :  { %v11129_v15 = vpop.eup %11128  ;;  %v2676_v33 = vpop.f32.mrb[32].mxu0 }
 0x5ec   :  { %v2948_v27 = vmul.f32 %v11129_v15, %v12393_v26  ;;  %v2678_v53 = vpop.f32.mrb[33].mxu0  ;;  %v11131_v1 = vpop.eup %11130 }
 0x5ed   :  { %v2680_v22 = vpop.f32.mrb[34].mxu0  ;;  %v2932_v59 = vadd.f32 1.0, %v11131_v1 }
 0x5ee   :  { %v2681_v44 = vpop.f32.mrb[35].mxu0 }
 0x5ef   :  { %11132 = vrcp.f32 %v2932_v59 }
 0x5f9   :  { %v11133_v44 = vpop.eup %11132 }
 0x60b   :  { %v2918_v35 = vpop.f32.mrb[36].mxu0 }
 0x60c   :  { %v2919_v34 = vadd.f32 %v2918_v35, %v2676_v33  ;;  %v2920_v52 = vpop.f32.mrb[37].mxu0  ;;  %v12682_v33 = vld [vmem:[#allocation2 + $0xc] ss:$16 sps:$4 sm:$0xff]  }
 0x60d   :  { %v2921_v32 = vadd.f32 %v2920_v52, %v2678_v53  ;;  %v2922_v49 = vpop.f32.mrb[38].mxu0  ;;  %14625 = vst [vmem:[#allocation31_spill] sm:$0xff] %v12682_v33 }
 0x60e   :  { %v2927_v12 = vadd.f32 %v2919_v34, %v11929_v24  ;;  %v2923_v48 = vpop.f32.mrb[39].mxu0  ;;  %v12625_v49 = vld [vmem:[#allocation5 + $0x8] ss:$16 sps:$4 sm:$0xff]  }
 0x60f   :  { %v2928_v15 = vadd.f32 %v2921_v32, %v11923_v18 }
 0x610   :  { %11134 = vtanh.f32 %v2927_v12 }
 0x611   :  { %v9360_v22 = vmul.f32 -1.442695, %v2928_v15  ;;  %v12632_v15 = vld [vmem:[#allocation5 + $0x2c] ss:$16 sps:$4 sm:$0xff]  }
 0x613   :  { %11136 = vpow2.f32 %v9360_v22  ;;  %v12640_v22 = vld [vmem:[#allocation5 + $0x28] ss:$16 sps:$4 sm:$0xff]  }
 0x61a   :  { %v11135_v10 = vpop.eup %11134 }
 0x61b   :  { %v2949_v4 = vmul.f32 %v11135_v10, %v11133_v44  ;;  %v12643_v44 = vld [vmem:[#allocation5 + $0x4c] ss:$16 sps:$4 sm:$0xff]  }
 0x61c   :  { %v12652_v10 = vld [vmem:[#allocation5 + $0x6c] ss:$16 sps:$4 sm:$0xff]  }
 0x61d   :  { %v11137_v21 = vpop.eup %11136  ;;  %v2950_v40 = vadd.f32 %v2949_v4, %v2948_v27  ;;  %v12655_v4 = vld [vmem:[#allocation5 + $0x68] ss:$16 sps:$4 sm:$0xff]  }
 0x61e   :  { %v2945_v1 = vadd.f32 1.0, %v11137_v21  ;;  %v12658_v21 = vld [vmem:[#allocation5 + $0x8c] ss:$16 sps:$4 sm:$0xff]  }
 0x61f   :  { %11138 = vtanh.f32 %v2950_v40  ;;  %v12619_v53 = vsel %vm2358_vm6, %v2950_v40, %v12393_v26 }
 0x620   :  { %11140 = vrcp.f32 %v2945_v1  ;;  %v12661_v1 = vld [vmem:[#allocation5 + $0x88] ss:$16 sps:$4 sm:$0xff]  }
 0x629   :  { %v11139_v35 = vpop.eup %11138 }
 0x62a   :  { %v11141_v59 = vpop.eup %11140 }
 0x62b   :  { %v12621_v34 = vpop.f32.mrb[40].mxu0  ;;  %v2952_v52 = vmul.f32 %v11141_v59, %v11139_v35  ;;  %v12664_v35 = vld [vmem:[#allocation5 + $0xac] ss:$16 sps:$4 sm:$0xff]   ;;  %v12667_v59 = vld [vmem:[#allocation5 + $0xa8] ss:$16 sps:$4 sm:$0xff]  }
 0x62c   :  { %v12623_v32 = vpop.f32.mrb[41].mxu0  ;;  %14621 = vst [vmem:[#allocation27_spill] sm:$0xff] %v12667_v59 }
 0x62d   :  { %v3368_v12 = vpop.f32.mrb[42].mxu0  ;;  %v2953_v48 = vpack.c.bf16 %v2952_v52, %v2952_v52  ;;  %v12630_v27 = vsel %vm2358_vm6, %v2952_v52, %v12402_v19  ;;  %v12649_v19 = vld [vmem:[#allocation5 + $0x48] ss:$16 sps:$4 sm:$0xff]   ;;  %v12670_v52 = vld [vmem:[#allocation5 + $0xcc] ss:$16 sps:$4 sm:$0xff]  }
 0x62e   :  { %v3369_v26 = vpop.f32.mrb[43].mxu0  ;;  %v12636_v40 = vpack.c.bf16 %v12630_v27, %v12630_v27  ;;  %14622 = vst [vmem:[#allocation28_spill] sm:$0xff] %v12670_v52  ;;  %v12673_v12 = vld [vmem:[#allocation5 + $0xc8] ss:$16 sps:$4 sm:$0xff]  }
 0x62f   :  { %10180 = vmatmul.mubr.bf16.vlgmr.msra.gmra.mrb[36].mxu1 %v2953_v48  ;;  %v12676_v48 = vld [vmem:[#allocation5 + $0xec] ss:$16 sps:$4 sm:$0xff]   ;;  %v12679_v26 = vld [vmem:[#allocation5 + $0xe8] ss:$16 sps:$4 sm:$0xff]  }
 0x630   :  { %3372 = vmatpush1.bf16.msra.mxu1 %v12625_v49  ;;  %3605 = vmatmul.mubr.bf16.vlgmr.msra.gmra.mrb[44].mxu0 %v12636_v40  ;;  %14623 = vst [vmem:[#allocation29_spill] sm:$0xff] %v12676_v48  ;;  %14624 = vst [vmem:[#allocation30_spill] sm:$0xff] %v12679_v26 }
 0x631   :  { %3373 = vmatprep.subr.bf16.mxu1 %v12632_v15  ;;  %3403 = vmatprep.mubr.bf16.mxu1 %v14585_v45 }
 0x632   :  { %10199 = vmatprep.mubr.msk.bf16.mxu0 %vm11438_vm14, %v14586_v5 }
 0x634   :  { %3374 = vmatpush1.bf16.msra.mxu1 %v12640_v22 }
 0x635   :  { %3375 = vmatprep.subr.bf16.mxu1 %v12643_v44 }
 0x638   :  { %3376 = vmatpush1.bf16.msra.mxu1 %v12649_v19 }
 0x639   :  { %3377 = vmatprep.subr.bf16.mxu1 %v12652_v10 }
 0x63c   :  { %3378 = vmatpush1.bf16.msra.mxu1 %v12655_v4 }
 0x63d   :  { %3379 = vmatprep.subr.bf16.mxu1 %v12658_v21 }
 0x640   :  { %3380 = vmatpush1.bf16.msra.mxu1 %v12661_v1 }
 0x641   :  { %3381 = vmatprep.subr.bf16.mxu1 %v12664_v35 }
 0x644   :  { %3382 = vmatpush1.bf16.msra.mxu1 %v12667_v59  ;;  %v12688_v59 = vld [vmem:[#allocation2 + $0x2c] ss:$16 sps:$4 sm:$0xff]  }
 0x645   :  { %3383 = vmatprep.subr.bf16.mxu1 %v12670_v52  ;;  %14627 = vst [vmem:[#allocation33_spill] sm:$0xff] %v12688_v59  ;;  %v12692_v52 = vld [vmem:[#allocation2 + $0x28] ss:$16 sps:$4 sm:$0xff]  }
 0x646   :  { %14628 = vst [vmem:[#allocation34_spill] sm:$0xff] %v12692_v52 }
 0x648   :  { %3384 = vmatpush1.bf16.msra.mxu1 %v12673_v12 }
 0x649   :  { %3385 = vmatprep.subr.bf16.mxu1 %v12676_v48  ;;  %v12696_v48 = vld [vmem:[#allocation2 + $0x4c] ss:$16 sps:$4 sm:$0xff]  }
 0x64a   :  { %14629 = vst [vmem:[#allocation35_spill] sm:$0xff] %v12696_v48 }
 0x64c   :  { %3386 = vmatpush1.bf16.msra.mxu1 %v12679_v26  ;;  %v12699_v26 = vld [vmem:[#allocation2 + $0x48] ss:$16 sps:$4 sm:$0xff]  }
 0x64d   :  { %3613 = vmatprep.subr.bf16.mxu1 %v12682_v33  ;;  %14630 = vst [vmem:[#allocation36_spill] sm:$0xff] %v12699_v26  ;;  %v12702_v33 = vld [vmem:[#allocation2 + $0x6c] ss:$16 sps:$4 sm:$0xff]  }
 0x64e   :  { %14631 = vst [vmem:[#allocation37_spill] sm:$0xff] %v12702_v33 }
 0x64f   :  { %3404 = vmatmul.mubr.bf16.vlgmr.msra.gmra.mrb[40].mxu1 %v12511_v25  ;;  %v12705_v25 = vld [vmem:[#allocation2 + $0x68] ss:$16 sps:$4 sm:$0xff]  }
 0x650   :  { %3614 = vmatpush1.bf16.msra.mxu1 %v12685_v7  ;;  %3645 = vmatprep.mubr.bf16.mxu1 %v14585_v45  ;;  %14632 = vst [vmem:[#allocation39_spill] sm:$0xff] %v12705_v25  ;;  %v12708_v7 = vld [vmem:[#allocation2 + $0x8c] ss:$16 sps:$4 sm:$0xff]  }
 0x651   :  { %3615 = vmatprep.subr.bf16.mxu1 %v12688_v59  ;;  %14633 = vst [vmem:[#allocation40_spill] sm:$0xff] %v12708_v7  ;;  %v12711_v59 = vld [vmem:[#allocation2 + $0x88] ss:$16 sps:$4 sm:$0xff]  }
 0x654   :  { %3616 = vmatpush1.bf16.msra.mxu1 %v12692_v52  ;;  %v12714_v52 = vld [vmem:[#allocation2 + $0xac] ss:$16 sps:$4 sm:$0xff]  }
 0x655   :  { %3617 = vmatprep.subr.bf16.mxu1 %v12696_v48  ;;  %v12717_v48 = vld [vmem:[#allocation2 + $0xa8] ss:$16 sps:$4 sm:$0xff]  }
 0x658   :  { %3618 = vmatpush1.bf16.msra.mxu1 %v12699_v26  ;;  %v12720_v26 = vld [vmem:[#allocation2 + $0xcc] ss:$16 sps:$4 sm:$0xff]  }
 0x659   :  { %3619 = vmatprep.subr.bf16.mxu1 %v12702_v33  ;;  %v12723_v33 = vld [vmem:[#allocation2 + $0xc8] ss:$16 sps:$4 sm:$0xff]  }
 0x65c   :  { %3620 = vmatpush1.bf16.msra.mxu1 %v12705_v25  ;;  %v12726_v25 = vld [vmem:[#allocation2 + $0xec] ss:$16 sps:$4 sm:$0xff]  }
 0x65d   :  { %3621 = vmatprep.subr.bf16.mxu1 %v12708_v7  ;;  %14634 = vst [vmem:[#allocation41_spill] sm:$0xff] %v12726_v25  ;;  %v12729_v7 = vld [vmem:[#allocation2 + $0xe8] ss:$16 sps:$4 sm:$0xff]  }
 0x660   :  { %3622 = vmatpush1.bf16.msra.mxu1 %v12711_v59 }
 0x661   :  { %3623 = vmatprep.subr.bf16.mxu1 %v12714_v52 }
 0x664   :  { %3624 = vmatpush1.bf16.msra.mxu1 %v12717_v48 }
 0x665   :  { %3625 = vmatprep.subr.bf16.mxu1 %v12720_v26 }
 0x668   :  { %3626 = vmatpush1.bf16.msra.mxu1 %v12723_v33 }
 0x669   :  { %3627 = vmatprep.subr.bf16.mxu1 %v12726_v25  ;;  %v3827_v25 = vpop.permute.xlu1 %3826 }
 0x66c   :  { %3628 = vmatpush1.bf16.msra.mxu1 %v12729_v7 }
 0x66d   :  { %4059 = vmatprep.subr.bf16.mxu1 %v12459_v0  ;;  %v3824_v0 = vmul.f32 %v12598_v54, %v11694_v51 }
 0x66f   :  { %3646 = vmatmul.mubr.bf16.vlgmr.msra.gmra.mrb[44].mxu1 %v12636_v40 }
 0x670   :  { %4060 = vmatpush1.bf16.msra.mxu1 %v12463_v62  ;;  %4091 = vmatprep.mubr.bf16.mxu1 %v14585_v45  ;;  %v3829_v62 = vmul.f32 %v3827_v25, %v11691_v50 }
 0x671   :  { %4061 = vmatprep.subr.bf16.mxu1 %v12466_v55 }
 0x672   :  { %v3830_v55 = vadd.f32 %v3829_v62, %v3824_v0 }
 0x674   :  { %4062 = vmatpush1.bf16.msra.mxu1 %v12470_v31  ;;  %v3831_v31 = vadd.f32 %v12297_v23, %v3830_v55  ;;  %v10718_v23 = vld [vmem:[%s14450_s12] sm:$0xff]  }
 0x675   :  { %4063 = vmatprep.subr.bf16.mxu1 %v12474_v36  ;;  %v12752_v36 = vld [vmem:[#allocation5 + $0xe4] ss:$16 sps:$4 sm:$0xff]   ;;  %10184 = vmatpush3.bf16.msra.mxu0 %v10718_v23 }
 0x676   :  { %10185 = vmatprep.subr.bf16.mxu0 %v14586_v5 }
 0x678   :  { %4064 = vmatpush1.bf16.msra.mxu1 %v12478_v42  ;;  %v12755_v42 = vld [vmem:[#allocation5 + $0xe0] ss:$16 sps:$4 sm:$0xff]  }
 0x679   :  { %4065 = vmatprep.subr.bf16.mxu1 %v12481_v63  ;;  %v3832_v63 = vmax.f32 %v3831_v31, 0.0 }
 0x67c   :  { %4066 = vmatpush1.bf16.msra.mxu1 %v12484_v37  ;;  %v12759_v37 = vpack.c.bf16 %v3832_v63, %v3832_v63 }
 0x67d   :  { %4067 = vmatprep.subr.bf16.mxu1 %v12487_v8  ;;  %v10719_v8 = vld [vmem:[%s14450_s12 + $0x8] sm:$0xff]  }
 0x67e   :  { %10186 = vmatpush3.bf16.msra.mxu0 %v10719_v8 }
 0x67f   :  { %10187 = vmatprep.subr.bf16.mxu0 %v14586_v5 }
 0x680   :  { %4068 = vmatpush1.bf16.msra.mxu1 %v12490_v13  ;;  %v10720_v13 = vld [vmem:[%s14450_s12 + $0x10] sm:$0xff]  }
 0x681   :  { %4069 = vmatprep.subr.bf16.mxu1 %v12495_v39  ;;  %v10721_v39 = vld [vmem:[%s14450_s12 + $0x18] sm:$0xff]  }
 0x682   :  { %10188 = vmatpush3.bf16.msra.mxu0 %v10720_v13 }
 0x683   :  { %10189 = vmatprep.subr.bf16.mxu0 %v14586_v5 }
 0x684   :  { %4070 = vmatpush1.bf16.msra.mxu1 %v12498_v41  ;;  %v10722_v41 = vld [vmem:[%s14450_s12 + $0x20] sm:$0xff]  }
 0x685   :  { %4071 = vmatprep.subr.bf16.mxu1 %v12501_v16  ;;  %v10723_v16 = vld [vmem:[%s14450_s12 + $0x28] sm:$0xff]  }
 0x686   :  { %10190 = vmatpush3.bf16.msra.mxu0 %v10721_v39 }
 0x687   :  { %10191 = vmatprep.subr.bf16.mxu0 %v14586_v5 }
 0x688   :  { %4072 = vmatpush1.bf16.msra.mxu1 %v12504_v56  ;;  %v10724_v56 = vld [vmem:[%s14450_s12 + $0x30] sm:$0xff]  }
 0x689   :  { %4073 = vmatprep.subr.bf16.mxu1 %v12752_v36 }
 0x68a   :  { %10192 = vmatpush3.bf16.msra.mxu0 %v10722_v41 }
 0x68b   :  { %10193 = vmatprep.subr.bf16.mxu0 %v14586_v5 }
 0x68c   :  { %4074 = vmatpush1.bf16.msra.mxu1 %v12755_v42 }
 0x68d   :  { %4301 = vmatprep.subr.bf16.mxu1 %v12518_v29  ;;  %v10725_v29 = vld [vmem:[%s14450_s12 + $0x38] sm:$0xff]  }
 0x68e   :  { %10194 = vmatpush3.bf16.msra.mxu0 %v10723_v16 }
 0x68f   :  { %4092 = vmatmul.mubr.bf16.vlgmr.msra.gmra.mrb[48].mxu1 %v12759_v37  ;;  %10195 = vmatprep.subr.bf16.mxu0 %v14586_v5 }
 0x690   :  { %4302 = vmatpush1.bf16.msra.mxu1 %v12520_v2  ;;  %4333 = vmatprep.mubr.bf16.mxu1 %v14585_v45 }
 0x691   :  { %4303 = vmatprep.subr.bf16.mxu1 %v12528_v30 }
 0x692   :  { %10196 = vmatpush3.bf16.msra.mxu0 %v10724_v56 }
 0x693   :  { %10197 = vmatprep.subr.bf16.mxu0 %v14586_v5 }
 0x694   :  { %4304 = vmatpush1.bf16.msra.mxu1 %v12530_v38 }
 0x695   :  { %4305 = vmatprep.subr.bf16.mxu1 %v12538_v17 }
 0x696   :  { %10198 = vmatpush3.bf16.msra.mxu0 %v10725_v29 }
 0x697   :  { %4100 = vmatprep.subr.bf16.mxu0 %v12593_v11  ;;  %v12825_v11 = vld [vmem:[%s14573_s6 + $0x40] sm:$0xff] }
 0x698   :  { %4306 = vmatpush1.bf16.msra.mxu1 %v12540_v6  ;;  %vm5266_vm12 = vcmp.ne.f32.partialorder %v12825_v11, %v12825_v11 }
 0x699   :  { %4307 = vmatprep.subr.bf16.mxu1 %v12548_v46 }
 0x69c   :  { %4308 = vmatpush1.bf16.msra.mxu1 %v12550_v3 }
 0x69d   :  { %4309 = vmatprep.subr.bf16.mxu1 %v12558_v14 }
 0x6a0   :  { %4310 = vmatpush1.bf16.msra.mxu1 %v12560_v60 }
 0x6a1   :  { %4311 = vmatprep.subr.bf16.mxu1 %v12567_v47 }
 0x6a4   :  { %4312 = vmatpush1.bf16.msra.mxu1 %v12570_v43 }
 0x6a5   :  { %4313 = vmatprep.subr.bf16.mxu1 %v12573_v9 }
 0x6a8   :  { %4314 = vmatpush1.bf16.msra.mxu1 %v12580_v20 }
 0x6a9   :  { %4315 = vmatprep.subr.bf16.mxu1 %v12588_v28 }
 0x6ac   :  { %4316 = vmatpush1.bf16.msra.mxu1 %v12590_v57  ;;  %v12820_v57 = vld [vmem:[%s14573_s6 + $0x38] sm:$0xff] }
 0x6ad   :  { %10203 = vmatprep.subr.bf16.mxu1 %v14586_v5  ;;  %vm5265_vm10 = vcmp.ne.f32.partialorder %v12820_v57, %v12820_v57 }
 0x6ae   :  { %vm5267_vm15 = vmor %vm5265_vm10, %vm5266_vm12 }
 0x6af   :  { %vm5268_vm0 = vmxor %vm5267_vm15, %vm11435_vm3 }
 0x6b0   :  { %v5270_v54 = vsel %vm5268_vm0, 1, %v14585_v45 }
 0x6b1   :  { %5272 = vperm.xlu1 %10387, %v5270_v54  }
 0x702   :  { %v12812_v2 = vpop.f32.mrb[36].mxu1 }
 0x703   :  { %14635 = vst [vmem:[#allocation42_spill] sm:$0xff] %v12812_v2  ;;  %v10181_v30 = vpop.f32.mrb[37].mxu1  ;;  %v3606_v38 = vpop.f32.mrb[44].mxu0  ;;  %v13119_v2 = vld [vmem:[#allocation2 + $0x8] ss:$16 sps:$4 sm:$0xff]  }
 0x704   :  { %v3607_v17 = vadd.f32 %v3606_v38, %v12621_v34  ;;  %v3055_v6 = vpop.f32.mrb[38].mxu1  ;;  %v3608_v46 = vpop.f32.mrb[45].mxu0 }
 0x705   :  { %v3609_v3 = vadd.f32 %v3608_v46, %v12623_v32  ;;  %v10182_v14 = vpop.f32.mrb[39].mxu1  ;;  %v3610_v60 = vpop.f32.mrb[46].mxu0 }
 0x706   :  { %v3611_v47 = vpop.f32.mrb[47].mxu0  ;;  %v3654_v55 = vadd.f32 %v3607_v17, %v11913_v58 }
 0x707   :  { %v3655_v43 = vadd.f32 %v3609_v3, %v11916_v61 }
 0x708   :  { %v9435_v31 = vmul.f32 -1.442695, %v3654_v55  ;;  %v4551_v55 = vpop.permute.xlu1 %4550 }
 0x709   :  { %v9436_v9 = vmul.f32 -1.442695, %v3655_v43 }
 0x70b   :  { %11142 = vpow2.f32 %v9436_v9 }
 0x715   :  { %v11143_v20 = vpop.eup %11142 }
 0x716   :  { %v3667_v28 = vadd.f32 1.0, %v11143_v20 }
 0x718   :  { %11144 = vrcp.f32 %v3667_v28 }
 0x719   :  { %11146 = vpow2.f32 %v9435_v31 }
 0x722   :  { %v11145_v34 = vpop.eup %11144  ;;  %v3405_v32 = vpop.f32.mrb[40].mxu1 }
 0x723   :  { %v3677_v40 = vmul.f32 %v11145_v34, %v12619_v53  ;;  %v3407_v25 = vpop.f32.mrb[41].mxu1  ;;  %v11147_v63 = vpop.eup %11146 }
 0x724   :  { %v3409_v0 = vpop.f32.mrb[42].mxu1  ;;  %v3661_v23 = vadd.f32 1.0, %v11147_v63  ;;  %v113_v63 = vld [vmem:[%s14440_s2] sm:$0xff] }
 0x725   :  { %v3410_v62 = vpop.f32.mrb[43].mxu1  ;;  %vm114_vm2 = vcmp.gt.f32.partialorder %v113_v63, 0.5  ;;  %v13031_v63 = vld [vmem:[#allocation2 + $0xe4] ss:$16 sps:$4 sm:$0xff]  }
 0x726   :  { %11148 = vrcp.f32 %v3661_v23  ;;  %v14649_v62 = vld [vmem:[#allocation40_spill] sm:$0xff] }
 0x730   :  { %v11149_v6 = vpop.eup %11148  ;;  %v12887_v31 = vpop.permute.xlu1 %5272 }
 0x731   :  { %vm5274_vm1 = vcmp.eq.s32.totalorder %v12887_v31, 1 }
 0x742   :  { %v3647_v8 = vpop.f32.mrb[44].mxu1 }
 0x743   :  { %v3648_v13 = vadd.f32 %v3647_v8, %v3405_v32  ;;  %v3649_v39 = vpop.f32.mrb[45].mxu1  ;;  %v12913_v8 = vld [vmem:[#allocation5 + $0x44] ss:$16 sps:$4 sm:$0xff]  }
 0x744   :  { %v3650_v41 = vadd.f32 %v3649_v39, %v3407_v25  ;;  %v3651_v16 = vpop.f32.mrb[46].mxu1  ;;  %v12922_v39 = vld [vmem:[#allocation5 + $0x60] ss:$16 sps:$4 sm:$0xff]  }
 0x745   :  { %v3656_v56 = vadd.f32 %v3648_v13, %v11929_v24  ;;  %v3652_v29 = vpop.f32.mrb[47].mxu1  ;;  %v12919_v13 = vld [vmem:[#allocation5 + $0x64] ss:$16 sps:$4 sm:$0xff]   ;;  %v4556_v16 = vpop.permute.xlu0 %4555 }
 0x746   :  { %v3657_v30 = vadd.f32 %v3650_v41, %v11923_v18  ;;  %v12925_v41 = vld [vmem:[#allocation5 + $0x84] ss:$16 sps:$4 sm:$0xff]   ;;  %v4558_v29 = vmul.f32 %v4556_v16, %v11691_v50 }
 0x747   :  { %11150 = vtanh.f32 %v3656_v56  ;;  %v12928_v56 = vld [vmem:[#allocation5 + $0x80] ss:$16 sps:$4 sm:$0xff]  }
 0x748   :  { %v9437_v38 = vmul.f32 -1.442695, %v3657_v30  ;;  %v4553_v30 = vmul.f32 %v4551_v55, %v11694_v51  ;;  %v13023_v55 = vld [vmem:[#allocation2 + $0xc0] ss:$16 sps:$4 sm:$0xff]  }
 0x74a   :  { %11152 = vpow2.f32 %v9437_v38  ;;  %v12933_v38 = vld [vmem:[#allocation5 + $0xa4] ss:$16 sps:$4 sm:$0xff]  }
 0x751   :  { %v11151_v17 = vpop.eup %11150 }
 0x752   :  { %v3678_v46 = vmul.f32 %v11151_v17, %v11149_v6  ;;  %v12936_v6 = vld [vmem:[#allocation5 + $0xa0] ss:$16 sps:$4 sm:$0xff]   ;;  %v4559_v17 = vadd.f32 %v4558_v29, %v4553_v30 }
 0x754   :  { %v11153_v3 = vpop.eup %11152  ;;  %v3679_v14 = vadd.f32 %v3678_v46, %v3677_v40  ;;  %v12939_v46 = vld [vmem:[#allocation5 + $0xc4] ss:$16 sps:$4 sm:$0xff]  }
 0x755   :  { %v3674_v60 = vadd.f32 1.0, %v11153_v3  ;;  %v12942_v3 = vld [vmem:[#allocation5 + $0xc0] ss:$16 sps:$4 sm:$0xff]  }
 0x756   :  { %11154 = vtanh.f32 %v3679_v14  ;;  %v12840_v43 = vsel %vm3087_vm9, %v3679_v14, %v12619_v53  ;;  %v12947_v14 = vld [vmem:[%s14443_s5] ss:$0 sm:$0xff] }
 0x757   :  { %11156 = vrcp.f32 %v3674_v60  ;;  %v4560_v60 = vadd.f32 %v12947_v14, %v4559_v17 }
 0x760   :  { %v11155_v9 = vpop.eup %11154 }
 0x761   :  { %v11157_v20 = vpop.eup %11156 }
 0x762   :  { %v12842_v28 = vpop.f32.mrb[48].mxu1  ;;  %v3681_v54 = vmul.f32 %v11157_v20, %v11155_v9  ;;  %v4561_v9 = vmax.f32 %v4560_v60, 0.0 }
 0x763   :  { %v12844_v34 = vpop.f32.mrb[49].mxu1 }
 0x764   :  { %v4097_v32 = vpop.f32.mrb[50].mxu1  ;;  %v3682_v25 = vpack.c.bf16 %v3681_v54, %v3681_v54  ;;  %v12849_v40 = vsel %vm3087_vm9, %v3681_v54, %v12630_v27  ;;  %v14638_v27 = vld [vmem:[#allocation28_spill] sm:$0xff]  ;;  %v12954_v20 = vpack.c.bf16 %v4561_v9, %v4561_v9  ;;  %v10747_v54 = vld [vmem:[%s14450_s12] sm:$0xff]  }
 0x765   :  { %v4098_v0 = vpop.f32.mrb[51].mxu1  ;;  %v3833_v53 = vpack.c.bf16 %v12849_v40, %v12849_v40  ;;  %v12961_v32 = vld [vmem:[#allocation2 + $0x4] ss:$16 sps:$4 sm:$0xff]  }
 0x766   :  { %10200 = vmatmul.mubr.bf16.vlgmr.msra.gmra.mrb[48].mxu0 %v3682_v25  ;;  %v12963_v25 = vld [vmem:[#allocation2] ss:$16 sps:$4 sm:$0xff]  }
 0x767   :  { %4101 = vmatpush1.bf16.msra.mxu0 %v12625_v49  ;;  %4334 = vmatmul.mubr.bf16.vlgmr.msra.gmra.mrb[52].mxu1 %v3833_v53  ;;  %v14637_v49 = vld [vmem:[#allocation27_spill] sm:$0xff] }
 0x768   :  { %4102 = vmatprep.subr.bf16.mxu0 %v12632_v15  ;;  %4132 = vmatprep.mubr.bf16.mxu0 %v14585_v45  ;;  %v14639_v15 = vld [vmem:[#allocation29_spill] sm:$0xff]  ;;  %14650 = vst [vmem:[#allocation27_spill] sm:$0xff] %v12887_v31  ;;  %v13122_v31 = vld [vmem:[#allocation2 + $0x2c] ss:$16 sps:$4 sm:$0xff]  }
 0x769   :  { %10219 = vmatprep.mubr.msk.bf16.mxu1 %vm11438_vm14, %v14586_v5  ;;  %10204 = vmatpush3.bf16.msra.mxu1 %v10747_v54  ;;  %v12973_v0 = vld [vmem:[#allocation2 + $0x20] ss:$16 sps:$4 sm:$0xff]  }
 0x76a   :  { %10205 = vmatprep.subr.bf16.mxu1 %v14586_v5 }
 0x76b   :  { %4103 = vmatpush1.bf16.msra.mxu0 %v12640_v22  ;;  %v14640_v22 = vld [vmem:[#allocation30_spill] sm:$0xff] }
 0x76c   :  { %4104 = vmatprep.subr.bf16.mxu0 %v12643_v44  ;;  %v14641_v44 = vld [vmem:[#allocation31_spill] sm:$0xff] }
 0x76f   :  { %4105 = vmatpush1.bf16.msra.mxu0 %v12649_v19  ;;  %v14642_v19 = vld [vmem:[#allocation32_spill] sm:$0xff] }
 0x770   :  { %4106 = vmatprep.subr.bf16.mxu0 %v12652_v10  ;;  %v14643_v10 = vld [vmem:[#allocation33_spill] sm:$0xff] }
 0x771   :  { %14658 = vst [vmem:[#allocation33_spill] sm:$0xff] %v13119_v2 }
 0x773   :  { %4107 = vmatpush1.bf16.msra.mxu0 %v12655_v4  ;;  %v14644_v4 = vld [vmem:[#allocation34_spill] sm:$0xff] }
 0x774   :  { %4108 = vmatprep.subr.bf16.mxu0 %v12658_v21  ;;  %v14645_v21 = vld [vmem:[#allocation35_spill] sm:$0xff]  ;;  %14659 = vst [vmem:[#allocation34_spill] sm:$0xff] %v13122_v31 }
 0x777   :  { %4109 = vmatpush1.bf16.msra.mxu0 %v12661_v1  ;;  %v14646_v1 = vld [vmem:[#allocation36_spill] sm:$0xff] }
 0x778   :  { %4110 = vmatprep.subr.bf16.mxu0 %v12664_v35  ;;  %v14647_v35 = vld [vmem:[#allocation37_spill] sm:$0xff] }
 0x77b   :  { %4111 = vmatpush1.bf16.msra.mxu0 %v14637_v49  ;;  %v12981_v49 = vld [vmem:[#allocation2 + $0x44] ss:$16 sps:$4 sm:$0xff]  }
 0x77c   :  { %4112 = vmatprep.subr.bf16.mxu0 %v14638_v27  ;;  %v12983_v27 = vld [vmem:[#allocation2 + $0x40] ss:$16 sps:$4 sm:$0xff]  }
 0x77f   :  { %4113 = vmatpush1.bf16.msra.mxu0 %v12673_v12  ;;  %v14648_v12 = vld [vmem:[#allocation39_spill] sm:$0xff] }
 0x780   :  { %4114 = vmatprep.subr.bf16.mxu0 %v14639_v15  ;;  %v10759_v15 = vld [vmem:[%s14450_s12 + $0x18] sm:$0xff]  }
 0x783   :  { %4115 = vmatpush1.bf16.msra.mxu0 %v14640_v22  ;;  %v12991_v22 = vld [vmem:[#allocation2 + $0x64] ss:$16 sps:$4 sm:$0xff]  }
 0x784   :  { %4342 = vmatprep.subr.bf16.mxu0 %v14641_v44  ;;  %v12993_v44 = vld [vmem:[#allocation2 + $0x60] ss:$16 sps:$4 sm:$0xff]  }
 0x786   :  { %4133 = vmatmul.mubr.bf16.vlgmr.msra.gmra.mrb[52].mxu0 %v12759_v37  ;;  %v5269_v37 = vsub.f32 %v12825_v11, %v12820_v57  ;;  %v6109_v57 = vsel %vm114_vm2, 1, %v14585_v45  ;;  %v12905_v11 = vld [vmem:[#allocation5 + $0x24] ss:$16 sps:$4 sm:$0xff]  }
 0x787   :  { %4343 = vmatpush1.bf16.msra.mxu0 %v14642_v19  ;;  %4374 = vmatprep.mubr.bf16.mxu0 %v14585_v45  ;;  %v10763_v19 = vld [vmem:[%s14450_s12 + $0x20] sm:$0xff]  }
 0x788   :  { %4344 = vmatprep.subr.bf16.mxu0 %v14643_v10  ;;  %v13001_v10 = vld [vmem:[#allocation2 + $0x84] ss:$16 sps:$4 sm:$0xff]  }
 0x78b   :  { %4345 = vmatpush1.bf16.msra.mxu0 %v14644_v4  ;;  %v13003_v4 = vld [vmem:[#allocation2 + $0x80] ss:$16 sps:$4 sm:$0xff]  }
 0x78c   :  { %4346 = vmatprep.subr.bf16.mxu0 %v14645_v21  ;;  %v10767_v21 = vld [vmem:[%s14450_s12 + $0x28] sm:$0xff]  }
 0x78f   :  { %4347 = vmatpush1.bf16.msra.mxu0 %v14646_v1  ;;  %v13010_v1 = vld [vmem:[#allocation2 + $0xa4] ss:$16 sps:$4 sm:$0xff]  }
 0x790   :  { %4348 = vmatprep.subr.bf16.mxu0 %v14647_v35  ;;  %v13013_v35 = vld [vmem:[#allocation2 + $0xa0] ss:$16 sps:$4 sm:$0xff]  }
 0x793   :  { %4349 = vmatpush1.bf16.msra.mxu0 %v14648_v12  ;;  %v13016_v12 = vld [vmem:[#allocation2 + $0xc4] ss:$16 sps:$4 sm:$0xff]  }
 0x794   :  { %4350 = vmatprep.subr.bf16.mxu0 %v14649_v62  ;;  %v10771_v62 = vld [vmem:[%s14450_s12 + $0x30] sm:$0xff]  }
 0x797   :  { %4351 = vmatpush1.bf16.msra.mxu0 %v12711_v59  ;;  %v5275_v59 = vsel %vm5274_vm1, %v5269_v37, 0.0  ;;  %v10775_v37 = vld [vmem:[%s14450_s12 + $0x38] sm:$0xff]  }
 0x798   :  { %4352 = vmatprep.subr.bf16.mxu0 %v12714_v52  ;;  %v5276_v23 = vmul.f32 4.0, %v5275_v59  ;;  %v14651_v52 = vld [vmem:[#allocation41_spill] sm:$0xff] }
 0x799   :  { %v13033_v59 = vld [vmem:[#allocation2 + $0xe0] ss:$16 sps:$4 sm:$0xff]  }
 0x79a   :  { %5279 = vperm.xlu1 %10387, %v5276_v23   ;;  %5284 = vperm.xlu0 %10388, %v5276_v23   ;;  %v13036_v23 = vld [vmem:[#allocation5 + $0xc] ss:$16 sps:$4 sm:$0xff]  }
 0x79b   :  { %4353 = vmatpush1.bf16.msra.mxu0 %v12717_v48  ;;  %v12898_v48 = vld [vmem:[#allocation5 + $0x4] ss:$16 sps:$4 sm:$0xff]  }
 0x79c   :  { %4354 = vmatprep.subr.bf16.mxu0 %v12720_v26  ;;  %v12902_v26 = vld [vmem:[#allocation5] ss:$16 sps:$4 sm:$0xff]  }
 0x79e   :  { %6111 = vperm.xlu1 %10387, %v6109_v57   ;;  %10389 = vset.pattern.permute.xlu0 %v14585_v45 }
 0x79f   :  { %4355 = vmatpush1.bf16.msra.mxu0 %v12723_v33  ;;  %v12909_v33 = vld [vmem:[#allocation5 + $0x20] ss:$16 sps:$4 sm:$0xff]  }
 0x7a0   :  { %4356 = vmatprep.subr.bf16.mxu0 %v14651_v52 }
 0x7a3   :  { %4357 = vmatpush1.bf16.msra.mxu0 %v12729_v7  ;;  %v12916_v7 = vld [vmem:[#allocation5 + $0x40] ss:$16 sps:$4 sm:$0xff]  }
 0x7a4   :  { %4788 = vmatprep.subr.bf16.mxu0 %v12898_v48 }
 0x7a6   :  { %4375 = vmatmul.mubr.bf16.vlgmr.msra.gmra.mrb[56].mxu0 %v3833_v53  ;;  %v10755_v53 = vld [vmem:[%s14450_s12 + $0x10] sm:$0xff]  }
 0x7a7   :  { %4789 = vmatpush1.bf16.msra.mxu0 %v12902_v26  ;;  %4820 = vmatprep.mubr.bf16.mxu0 %v14585_v45 }
 0x7a8   :  { %4790 = vmatprep.subr.bf16.mxu0 %v12905_v11 }
 0x7ab   :  { %4791 = vmatpush1.bf16.msra.mxu0 %v12909_v33 }
 0x7ac   :  { %4792 = vmatprep.subr.bf16.mxu0 %v12913_v8 }
 0x7af   :  { %4793 = vmatpush1.bf16.msra.mxu0 %v12916_v7 }
 0x7b0   :  { %4794 = vmatprep.subr.bf16.mxu0 %v12919_v13 }
 0x7b3   :  { %4795 = vmatpush1.bf16.msra.mxu0 %v12922_v39 }
 0x7b4   :  { %4796 = vmatprep.subr.bf16.mxu0 %v12925_v41 }
 0x7b7   :  { %4797 = vmatpush1.bf16.msra.mxu0 %v12928_v56 }
 0x7b8   :  { %4798 = vmatprep.subr.bf16.mxu0 %v12933_v38 }
 0x7bb   :  { %4799 = vmatpush1.bf16.msra.mxu0 %v12936_v6 }
 0x7bc   :  { %4800 = vmatprep.subr.bf16.mxu0 %v12939_v46 }
 0x7bf   :  { %4801 = vmatpush1.bf16.msra.mxu0 %v12942_v3 }
 0x7c0   :  { %4802 = vmatprep.subr.bf16.mxu0 %v12752_v36  ;;  %v10751_v36 = vld [vmem:[%s14450_s12 + $0x8] sm:$0xff]  }
 0x7c1   :  { %10206 = vmatpush3.bf16.msra.mxu1 %v10751_v36 }
 0x7c2   :  { %10207 = vmatprep.subr.bf16.mxu1 %v14586_v5 }
 0x7c3   :  { %4803 = vmatpush1.bf16.msra.mxu0 %v12755_v42  ;;  %v12971_v42 = vld [vmem:[#allocation2 + $0x24] ss:$16 sps:$4 sm:$0xff]  }
 0x7c4   :  { %5030 = vmatprep.subr.bf16.mxu0 %v12961_v32 }
 0x7c5   :  { %10208 = vmatpush3.bf16.msra.mxu1 %v10755_v53 }
 0x7c6   :  { %4821 = vmatmul.mubr.bf16.vlgmr.msra.gmra.mrb[60].mxu0 %v12954_v20  ;;  %10209 = vmatprep.subr.bf16.mxu1 %v14586_v5 }
 0x7c7   :  { %5062 = vmatprep.mubr.bf16.mxu0 %v14585_v45  ;;  %5031 = vmatpush1.bf16.msra.mxu0 %v12963_v25 }
 0x7c8   :  { %5032 = vmatprep.subr.bf16.mxu0 %v12971_v42 }
 0x7c9   :  { %10210 = vmatpush3.bf16.msra.mxu1 %v10759_v15 }
 0x7ca   :  { %10211 = vmatprep.subr.bf16.mxu1 %v14586_v5 }
 0x7cb   :  { %5033 = vmatpush1.bf16.msra.mxu0 %v12973_v0 }
 0x7cc   :  { %5034 = vmatprep.subr.bf16.mxu0 %v12981_v49 }
 0x7cd   :  { %10212 = vmatpush3.bf16.msra.mxu1 %v10763_v19 }
 0x7ce   :  { %10213 = vmatprep.subr.bf16.mxu1 %v14586_v5 }
 0x7cf   :  { %5035 = vmatpush1.bf16.msra.mxu0 %v12983_v27 }
 0x7d0   :  { %5036 = vmatprep.subr.bf16.mxu0 %v12991_v22 }
 0x7d1   :  { %10214 = vmatpush3.bf16.msra.mxu1 %v10767_v21 }
 0x7d2   :  { %10215 = vmatprep.subr.bf16.mxu1 %v14586_v5 }
 0x7d3   :  { %5037 = vmatpush1.bf16.msra.mxu0 %v12993_v44 }
 0x7d4   :  { %5038 = vmatprep.subr.bf16.mxu0 %v13001_v10 }
 0x7d5   :  { %10216 = vmatpush3.bf16.msra.mxu1 %v10771_v62 }
 0x7d6   :  { %10217 = vmatprep.subr.bf16.mxu1 %v14586_v5 }
 0x7d7   :  { %5039 = vmatpush1.bf16.msra.mxu0 %v13003_v4 }
 0x7d8   :  { %5040 = vmatprep.subr.bf16.mxu0 %v13010_v1 }
 0x7d9   :  { %10218 = vmatpush3.bf16.msra.mxu1 %v10775_v37 }
 0x7da   :  { %4829 = vmatprep.subr.bf16.mxu1 %v13036_v23 }
 0x7db   :  { %5041 = vmatpush1.bf16.msra.mxu0 %v13013_v35 }
 0x7dc   :  { %5042 = vmatprep.subr.bf16.mxu0 %v13016_v12 }
 0x7df   :  { %5043 = vmatpush1.bf16.msra.mxu0 %v13023_v55 }
 0x7e0   :  { %5044 = vmatprep.subr.bf16.mxu0 %v13031_v63 }
 0x7e3   :  { %5045 = vmatpush1.bf16.msra.mxu0 %v13033_v59 }
 0x7e4   :  { %10223 = vmatprep.subr.bf16.mxu0 %v14586_v5 }
 0x839   :  { %v13041_v52 = vpop.f32.mrb[48].mxu0 }
 0x83a   :  { %14652 = vst [vmem:[#allocation28_spill] sm:$0xff] %v13041_v52  ;;  %v10201_v57 = vpop.f32.mrb[49].mxu0  ;;  %v4335_v16 = vpop.f32.mrb[52].mxu1 }
 0x83b   :  { %v4336_v29 = vadd.f32 %v4335_v16, %v12842_v28  ;;  %v3784_v30 = vpop.f32.mrb[50].mxu0  ;;  %v4337_v17 = vpop.f32.mrb[53].mxu1 }
 0x83c   :  { %v4338_v60 = vadd.f32 %v4337_v17, %v12844_v34  ;;  %v10202_v9 = vpop.f32.mrb[51].mxu0  ;;  %v4339_v54 = vpop.f32.mrb[54].mxu1 }
 0x83d   :  { %v4340_v36 = vpop.f32.mrb[55].mxu1  ;;  %v4383_v30 = vadd.f32 %v4336_v29, %v11913_v58 }
 0x83e   :  { %v4384_v53 = vadd.f32 %v4338_v60, %v11916_v61 }
 0x83f   :  { %v9512_v34 = vmul.f32 -1.442695, %v4383_v30 }
 0x840   :  { %v9513_v15 = vmul.f32 -1.442695, %v4384_v53 }
 0x842   :  { %11158 = vpow2.f32 %v9513_v15 }
 0x84c   :  { %v11159_v19 = vpop.eup %11158 }
 0x84d   :  { %v4396_v21 = vadd.f32 1.0, %v11159_v19 }
 0x84f   :  { %11160 = vrcp.f32 %v4396_v21 }
 0x850   :  { %11162 = vpow2.f32 %v9512_v34 }
 0x859   :  { %v11161_v62 = vpop.eup %11160  ;;  %v4134_v37 = vpop.f32.mrb[52].mxu0 }
 0x85a   :  { %v4406_v57 = vmul.f32 %v11161_v62, %v12840_v43  ;;  %v4136_v47 = vpop.f32.mrb[53].mxu0  ;;  %v11163_v17 = vpop.eup %11162 }
 0x85b   :  { %v4138_v28 = vpop.f32.mrb[54].mxu0  ;;  %v4390_v9 = vadd.f32 1.0, %v11163_v17 }
 0x85c   :  { %v4139_v16 = vpop.f32.mrb[55].mxu0 }
 0x85d   :  { %11164 = vrcp.f32 %v4390_v9 }
 0x867   :  { %v11165_v16 = vpop.eup %11164 }
 0x879   :  { %v4376_v54 = vpop.f32.mrb[56].mxu0 }
 0x87a   :  { %v4377_v60 = vadd.f32 %v4376_v54, %v4134_v37  ;;  %v4378_v36 = vpop.f32.mrb[57].mxu0  ;;  %v13116_v37 = vld [vmem:[#allocation2 + $0xc] ss:$16 sps:$4 sm:$0xff]  }
 0x87b   :  { %v4379_v53 = vadd.f32 %v4378_v36, %v4136_v47  ;;  %v4380_v15 = vpop.f32.mrb[58].mxu0  ;;  %14657 = vst [vmem:[#allocation32_spill] sm:$0xff] %v13116_v37 }
 0x87c   :  { %v4385_v19 = vadd.f32 %v4377_v60, %v11929_v24  ;;  %v4381_v21 = vpop.f32.mrb[59].mxu0  ;;  %v13059_v15 = vld [vmem:[#allocation5 + $0x8] ss:$16 sps:$4 sm:$0xff]  }
 0x87d   :  { %v4386_v62 = vadd.f32 %v4379_v53, %v11923_v18 }
 0x87e   :  { %11166 = vtanh.f32 %v4385_v19 }
 0x87f   :  { %v9514_v28 = vmul.f32 -1.442695, %v4386_v62  ;;  %v13066_v62 = vld [vmem:[#allocation5 + $0x2c] ss:$16 sps:$4 sm:$0xff]  }
 0x881   :  { %11168 = vpow2.f32 %v9514_v28  ;;  %v13074_v28 = vld [vmem:[#allocation5 + $0x28] ss:$16 sps:$4 sm:$0xff]  }
 0x888   :  { %v11167_v29 = vpop.eup %11166 }
 0x889   :  { %v4407_v30 = vmul.f32 %v11167_v29, %v11165_v16  ;;  %v13077_v16 = vld [vmem:[#allocation5 + $0x4c] ss:$16 sps:$4 sm:$0xff]  }
 0x88a   :  { %v13086_v29 = vld [vmem:[#allocation5 + $0x6c] ss:$16 sps:$4 sm:$0xff]  }
 0x88b   :  { %v11169_v34 = vpop.eup %11168  ;;  %v4408_v52 = vadd.f32 %v4407_v30, %v4406_v57  ;;  %v13089_v30 = vld [vmem:[#allocation5 + $0x68] ss:$16 sps:$4 sm:$0xff]  }
 0x88c   :  { %v4403_v17 = vadd.f32 1.0, %v11169_v34  ;;  %v13092_v34 = vld [vmem:[#allocation5 + $0x8c] ss:$16 sps:$4 sm:$0xff]  }
 0x88d   :  { %11170 = vtanh.f32 %v4408_v52  ;;  %v13053_v47 = vsel %vm3816_vm4, %v4408_v52, %v12840_v43 }
 0x88e   :  { %11172 = vrcp.f32 %v4403_v17  ;;  %v13095_v17 = vld [vmem:[#allocation5 + $0x88] ss:$16 sps:$4 sm:$0xff]  }
 0x897   :  { %v11171_v54 = vpop.eup %11170 }
 0x898   :  { %v11173_v9 = vpop.eup %11172 }
 0x899   :  { %v13055_v60 = vpop.f32.mrb[60].mxu0  ;;  %v4410_v36 = vmul.f32 %v11173_v9, %v11171_v54  ;;  %v13098_v54 = vld [vmem:[#allocation5 + $0xac] ss:$16 sps:$4 sm:$0xff]   ;;  %v13101_v9 = vld [vmem:[#allocation5 + $0xa8] ss:$16 sps:$4 sm:$0xff]  }
 0x89a   :  { %v13057_v53 = vpop.f32.mrb[61].mxu0 }
 0x89b   :  { %v4826_v19 = vpop.f32.mrb[62].mxu0  ;;  %v4411_v21 = vpack.c.bf16 %v4410_v36, %v4410_v36  ;;  %v13064_v57 = vsel %vm3816_vm4, %v4410_v36, %v12849_v40  ;;  %v13083_v40 = vld [vmem:[#allocation5 + $0x48] ss:$16 sps:$4 sm:$0xff]   ;;  %v13104_v36 = vld [vmem:[#allocation5 + $0xcc] ss:$16 sps:$4 sm:$0xff]  }
 0x89c   :  { %v4827_v43 = vpop.f32.mrb[63].mxu0  ;;  %v13070_v52 = vpack.c.bf16 %v13064_v57, %v13064_v57  ;;  %14654 = vst [vmem:[#allocation29_spill] sm:$0xff] %v13104_v36  ;;  %v13107_v19 = vld [vmem:[#allocation5 + $0xc8] ss:$16 sps:$4 sm:$0xff]  }
 0x89d   :  { %10220 = vmatmul.mubr.bf16.vlgmr.msra.gmra.mrb[56].mxu1 %v4411_v21  ;;  %v13110_v21 = vld [vmem:[#allocation5 + $0xec] ss:$16 sps:$4 sm:$0xff]   ;;  %v13113_v43 = vld [vmem:[#allocation5 + $0xe8] ss:$16 sps:$4 sm:$0xff]  }
 0x89e   :  { %4830 = vmatpush1.bf16.msra.mxu1 %v13059_v15  ;;  %5063 = vmatmul.mubr.bf16.vlgmr.msra.gmra.mrb[64].mxu0 %v13070_v52  ;;  %14655 = vst [vmem:[#allocation30_spill] sm:$0xff] %v13110_v21  ;;  %14656 = vst [vmem:[#allocation31_spill] sm:$0xff] %v13113_v43 }
 0x89f   :  { %4831 = vmatprep.subr.bf16.mxu1 %v13066_v62  ;;  %4861 = vmatprep.mubr.bf16.mxu1 %v14585_v45 }
 0x8a0   :  { %10239 = vmatprep.mubr.msk.bf16.mxu0 %vm11438_vm14, %v14586_v5 }
 0x8a2   :  { %4832 = vmatpush1.bf16.msra.mxu1 %v13074_v28 }
 0x8a3   :  { %4833 = vmatprep.subr.bf16.mxu1 %v13077_v16 }
 0x8a6   :  { %4834 = vmatpush1.bf16.msra.mxu1 %v13083_v40 }
 0x8a7   :  { %4835 = vmatprep.subr.bf16.mxu1 %v13086_v29 }
 0x8aa   :  { %4836 = vmatpush1.bf16.msra.mxu1 %v13089_v30 }
 0x8ab   :  { %4837 = vmatprep.subr.bf16.mxu1 %v13092_v34 }
 0x8ae   :  { %4838 = vmatpush1.bf16.msra.mxu1 %v13095_v17 }
 0x8af   :  { %4839 = vmatprep.subr.bf16.mxu1 %v13098_v54 }
 0x8b2   :  { %4840 = vmatpush1.bf16.msra.mxu1 %v13101_v9 }
 0x8b3   :  { %4841 = vmatprep.subr.bf16.mxu1 %v13104_v36  ;;  %v13126_v36 = vld [vmem:[#allocation2 + $0x28] ss:$16 sps:$4 sm:$0xff]  }
 0x8b4   :  { %14660 = vst [vmem:[#allocation35_spill] sm:$0xff] %v13126_v36 }
 0x8b6   :  { %4842 = vmatpush1.bf16.msra.mxu1 %v13107_v19 }
 0x8b7   :  { %4843 = vmatprep.subr.bf16.mxu1 %v13110_v21  ;;  %v13130_v21 = vld [vmem:[#allocation2 + $0x4c] ss:$16 sps:$4 sm:$0xff]  }
 0x8b8   :  { %14661 = vst [vmem:[#allocation36_spill] sm:$0xff] %v13130_v21 }
 0x8ba   :  { %4844 = vmatpush1.bf16.msra.mxu1 %v13113_v43  ;;  %v13133_v43 = vld [vmem:[#allocation2 + $0x48] ss:$16 sps:$4 sm:$0xff]  }
 0x8bb   :  { %5071 = vmatprep.subr.bf16.mxu1 %v13116_v37  ;;  %14662 = vst [vmem:[#allocation37_spill] sm:$0xff] %v13133_v43  ;;  %v13136_v37 = vld [vmem:[#allocation2 + $0x6c] ss:$16 sps:$4 sm:$0xff]  }
 0x8bc   :  { %14663 = vst [vmem:[#allocation39_spill] sm:$0xff] %v13136_v37 }
 0x8bd   :  { %4862 = vmatmul.mubr.bf16.vlgmr.msra.gmra.mrb[60].mxu1 %v12954_v20  ;;  %v13139_v20 = vld [vmem:[#allocation2 + $0x68] ss:$16 sps:$4 sm:$0xff]  }
 0x8be   :  { %5072 = vmatpush1.bf16.msra.mxu1 %v13119_v2  ;;  %5103 = vmatprep.mubr.bf16.mxu1 %v14585_v45  ;;  %14664 = vst [vmem:[#allocation40_spill] sm:$0xff] %v13139_v20  ;;  %v13142_v2 = vld [vmem:[#allocation2 + $0x8c] ss:$16 sps:$4 sm:$0xff]  }
 0x8bf   :  { %5073 = vmatprep.subr.bf16.mxu1 %v13122_v31  ;;  %14665 = vst [vmem:[#allocation41_spill] sm:$0xff] %v13142_v2  ;;  %v13145_v31 = vld [vmem:[#allocation2 + $0x88] ss:$16 sps:$4 sm:$0xff]  }
 0x8c2   :  { %5074 = vmatpush1.bf16.msra.mxu1 %v13126_v36  ;;  %v13148_v36 = vld [vmem:[#allocation2 + $0xac] ss:$16 sps:$4 sm:$0xff]  }
 0x8c3   :  { %5075 = vmatprep.subr.bf16.mxu1 %v13130_v21  ;;  %v13151_v21 = vld [vmem:[#allocation2 + $0xa8] ss:$16 sps:$4 sm:$0xff]  }
 0x8c6   :  { %5076 = vmatpush1.bf16.msra.mxu1 %v13133_v43  ;;  %v13154_v43 = vld [vmem:[#allocation2 + $0xcc] ss:$16 sps:$4 sm:$0xff]  }
 0x8c7   :  { %5077 = vmatprep.subr.bf16.mxu1 %v13136_v37  ;;  %v13157_v37 = vld [vmem:[#allocation2 + $0xc8] ss:$16 sps:$4 sm:$0xff]  }
 0x8ca   :  { %5078 = vmatpush1.bf16.msra.mxu1 %v13139_v20  ;;  %v13160_v20 = vld [vmem:[#allocation2 + $0xec] ss:$16 sps:$4 sm:$0xff]  }
 0x8cb   :  { %5079 = vmatprep.subr.bf16.mxu1 %v13142_v2  ;;  %14666 = vst [vmem:[#allocation43_spill] sm:$0xff] %v13160_v20  ;;  %v13163_v2 = vld [vmem:[#allocation2 + $0xe8] ss:$16 sps:$4 sm:$0xff]  }
 0x8cc   :  { %14667 = vst [vmem:[#allocation44_spill] sm:$0xff] %v13163_v2 }
 0x8ce   :  { %5080 = vmatpush1.bf16.msra.mxu1 %v13145_v31 }
 0x8cf   :  { %5081 = vmatprep.subr.bf16.mxu1 %v13148_v36 }
 0x8d2   :  { %5082 = vmatpush1.bf16.msra.mxu1 %v13151_v21 }
 0x8d3   :  { %5083 = vmatprep.subr.bf16.mxu1 %v13154_v43 }
 0x8d6   :  { %5084 = vmatpush1.bf16.msra.mxu1 %v13157_v37 }
 0x8d7   :  { %5085 = vmatprep.subr.bf16.mxu1 %v13160_v20  ;;  %v5285_v20 = vpop.permute.xlu0 %5284 }
 0x8da   :  { %5086 = vmatpush1.bf16.msra.mxu1 %v13163_v2  ;;  %v5280_v2 = vpop.permute.xlu1 %5279 }
 0x8db   :  { %5517 = vmatprep.subr.bf16.mxu1 %v12898_v48  ;;  %v5282_v48 = vmul.f32 %v5280_v2, %v11694_v51 }
 0x8dd   :  { %5104 = vmatmul.mubr.bf16.vlgmr.msra.gmra.mrb[64].mxu1 %v13070_v52 }
 0x8de   :  { %5518 = vmatpush1.bf16.msra.mxu1 %v12902_v26  ;;  %5549 = vmatprep.mubr.bf16.mxu1 %v14585_v45  ;;  %v5287_v26 = vmul.f32 %v5285_v20, %v11691_v50 }
 0x8df   :  { %5519 = vmatprep.subr.bf16.mxu1 %v12905_v11 }
 0x8e0   :  { %v5288_v11 = vadd.f32 %v5287_v26, %v5282_v48 }
 0x8e2   :  { %5520 = vmatpush1.bf16.msra.mxu1 %v12909_v33  ;;  %v5289_v33 = vadd.f32 %v12947_v14, %v5288_v11  ;;  %v10837_v14 = vld [vmem:[%s14450_s12 + $0x38] sm:$0xff]  }
 0x8e3   :  { %5521 = vmatprep.subr.bf16.mxu1 %v12913_v8  ;;  %v10829_v8 = vld [vmem:[#allocation5 + $0xe4] ss:$16 sps:$4 sm:$0xff]  }
 0x8e4   :  { %v5290_v2 = vmax.f32 %v5289_v33, 0.0 }
 0x8e6   :  { %5522 = vmatpush1.bf16.msra.mxu1 %v12916_v7  ;;  %v10827_v7 = vld [vmem:[#allocation5 + $0xe0] ss:$16 sps:$4 sm:$0xff]  }
 0x8e7   :  { %5523 = vmatprep.subr.bf16.mxu1 %v12919_v13  ;;  %v13186_v13 = vpack.c.bf16 %v5290_v2, %v5290_v2 }
 0x8ea   :  { %5524 = vmatpush1.bf16.msra.mxu1 %v12922_v39  ;;  %v10830_v39 = vld [vmem:[%s14450_s12] sm:$0xff]  }
 0x8eb   :  { %5525 = vmatprep.subr.bf16.mxu1 %v12925_v41  ;;  %10224 = vmatpush3.bf16.msra.mxu0 %v10830_v39  ;;  %v10831_v41 = vld [vmem:[%s14450_s12 + $0x8] sm:$0xff]  }
 0x8ec   :  { %10225 = vmatprep.subr.bf16.mxu0 %v14586_v5 }
 0x8ee   :  { %5526 = vmatpush1.bf16.msra.mxu1 %v12928_v56  ;;  %v10832_v56 = vld [vmem:[%s14450_s12 + $0x10] sm:$0xff]  }
 0x8ef   :  { %5527 = vmatprep.subr.bf16.mxu1 %v12933_v38  ;;  %10226 = vmatpush3.bf16.msra.mxu0 %v10831_v41  ;;  %v10833_v38 = vld [vmem:[%s14450_s12 + $0x18] sm:$0xff]  }
 0x8f0   :  { %10227 = vmatprep.subr.bf16.mxu0 %v14586_v5 }
 0x8f2   :  { %5528 = vmatpush1.bf16.msra.mxu1 %v12936_v6  ;;  %v10834_v6 = vld [vmem:[%s14450_s12 + $0x20] sm:$0xff]  }
 0x8f3   :  { %5529 = vmatprep.subr.bf16.mxu1 %v12939_v46  ;;  %10228 = vmatpush3.bf16.msra.mxu0 %v10832_v56  ;;  %v10835_v46 = vld [vmem:[%s14450_s12 + $0x28] sm:$0xff]  }
 0x8f4   :  { %10229 = vmatprep.subr.bf16.mxu0 %v14586_v5 }
 0x8f6   :  { %5530 = vmatpush1.bf16.msra.mxu1 %v12942_v3  ;;  %v10836_v3 = vld [vmem:[%s14450_s12 + $0x30] sm:$0xff]  }
 0x8f7   :  { %5531 = vmatprep.subr.bf16.mxu1 %v10829_v8  ;;  %10230 = vmatpush3.bf16.msra.mxu0 %v10833_v38 }
 0x8f8   :  { %10231 = vmatprep.subr.bf16.mxu0 %v14586_v5 }
 0x8fa   :  { %5532 = vmatpush1.bf16.msra.mxu1 %v10827_v7 }
 0x8fb   :  { %5759 = vmatprep.subr.bf16.mxu1 %v12961_v32  ;;  %10232 = vmatpush3.bf16.msra.mxu0 %v10834_v6 }
 0x8fc   :  { %10233 = vmatprep.subr.bf16.mxu0 %v14586_v5 }
 0x8fd   :  { %5550 = vmatmul.mubr.bf16.vlgmr.msra.gmra.mrb[68].mxu1 %v13186_v13 }
 0x8fe   :  { %5760 = vmatpush1.bf16.msra.mxu1 %v12963_v25  ;;  %5791 = vmatprep.mubr.bf16.mxu1 %v14585_v45 }
 0x8ff   :  { %5761 = vmatprep.subr.bf16.mxu1 %v12971_v42  ;;  %10234 = vmatpush3.bf16.msra.mxu0 %v10835_v46 }
 0x900   :  { %10235 = vmatprep.subr.bf16.mxu0 %v14586_v5 }
 0x902   :  { %5762 = vmatpush1.bf16.msra.mxu1 %v12973_v0 }
 0x903   :  { %5763 = vmatprep.subr.bf16.mxu1 %v12981_v49  ;;  %10236 = vmatpush3.bf16.msra.mxu0 %v10836_v3 }
 0x904   :  { %10237 = vmatprep.subr.bf16.mxu0 %v14586_v5 }
 0x906   :  { %5764 = vmatpush1.bf16.msra.mxu1 %v12983_v27 }
 0x907   :  { %5765 = vmatprep.subr.bf16.mxu1 %v12991_v22  ;;  %10238 = vmatpush3.bf16.msra.mxu0 %v10837_v14 }
 0x908   :  { %5558 = vmatprep.subr.bf16.mxu0 %v13036_v23 }
 0x90a   :  { %5766 = vmatpush1.bf16.msra.mxu1 %v12993_v44 }
 0x90b   :  { %5767 = vmatprep.subr.bf16.mxu1 %v13001_v10 }
 0x90e   :  { %5768 = vmatpush1.bf16.msra.mxu1 %v13003_v4 }
 0x90f   :  { %5769 = vmatprep.subr.bf16.mxu1 %v13010_v1 }
 0x912   :  { %5770 = vmatpush1.bf16.msra.mxu1 %v13013_v35 }
 0x913   :  { %5771 = vmatprep.subr.bf16.mxu1 %v13016_v12 }
 0x916   :  { %5772 = vmatpush1.bf16.msra.mxu1 %v13023_v55 }
 0x917   :  { %5773 = vmatprep.subr.bf16.mxu1 %v13031_v63 }
 0x91a   :  { %5774 = vmatpush1.bf16.msra.mxu1 %v13033_v59 }
 0x91b   :  { %10243 = vmatprep.subr.bf16.mxu1 %v14586_v5 }
 0x970   :  { %v13239_v32 = vpop.f32.mrb[56].mxu1 }
 0x971   :  { %14668 = vst [vmem:[#allocation45_spill] sm:$0xff] %v13239_v32  ;;  %v10221_v25 = vpop.f32.mrb[57].mxu1  ;;  %v5064_v42 = vpop.f32.mrb[64].mxu0  ;;  %v13603_v32 = vld [vmem:[#allocation7 + $0xa4] ss:$16 sps:$4 sm:$0xff]  }
 0x972   :  { %v5065_v0 = vadd.f32 %v5064_v42, %v13055_v60  ;;  %v4513_v49 = vpop.f32.mrb[58].mxu1  ;;  %v5066_v27 = vpop.f32.mrb[65].mxu0 }
 0x973   :  { %v5067_v22 = vadd.f32 %v5066_v27, %v13057_v53  ;;  %v10222_v44 = vpop.f32.mrb[59].mxu1  ;;  %v5068_v10 = vpop.f32.mrb[66].mxu0 }
 0x974   :  { %v5069_v4 = vpop.f32.mrb[67].mxu0  ;;  %v5112_v48 = vadd.f32 %v5065_v0, %v11913_v58 }
 0x975   :  { %v5113_v1 = vadd.f32 %v5067_v22, %v11916_v61 }
 0x976   :  { %v9589_v53 = vmul.f32 -1.442695, %v5112_v48 }
 0x977   :  { %v9590_v35 = vmul.f32 -1.442695, %v5113_v1 }
 0x979   :  { %11174 = vpow2.f32 %v9590_v35 }
 0x983   :  { %v11175_v12 = vpop.eup %11174 }
 0x984   :  { %v5125_v55 = vadd.f32 1.0, %v11175_v12 }
 0x986   :  { %11176 = vrcp.f32 %v5125_v55 }
 0x987   :  { %11178 = vpow2.f32 %v9589_v53  ;;  %v10846_v53 = vld [vmem:[%s14450_s12] sm:$0xff]  }
 0x990   :  { %v11177_v63 = vpop.eup %11176  ;;  %v4863_v59 = vpop.f32.mrb[60].mxu1 }
 0x991   :  { %v5135_v23 = vmul.f32 %v11177_v63, %v13053_v47  ;;  %v4865_v52 = vpop.f32.mrb[61].mxu1  ;;  %v11179_v26 = vpop.eup %11178 }
 0x992   :  { %v4867_v60 = vpop.f32.mrb[62].mxu1  ;;  %v5119_v11 = vadd.f32 1.0, %v11179_v26  ;;  %v10847_v26 = vld [vmem:[%s14450_s12 + $0x8] sm:$0xff]  }
 0x993   :  { %v4868_v20 = vpop.f32.mrb[63].mxu1 }
 0x994   :  { %11180 = vrcp.f32 %v5119_v11  ;;  %v10845_v20 = vld [vmem:[%s14452_s14 + $0x38] sm:$0xff]   ;;  %v10848_v11 = vld [vmem:[%s14450_s12 + $0x10] sm:$0xff]  }
 0x99e   :  { %v11181_v46 = vpop.eup %11180 }
 0x9b0   :  { %v5105_v33 = vpop.f32.mrb[64].mxu1 }
 0x9b1   :  { %v5106_v8 = vadd.f32 %v5105_v33, %v4863_v59  ;;  %v5107_v7 = vpop.f32.mrb[65].mxu1  ;;  %v10838_v59 = vld [vmem:[%s14452_s14] sm:$0xff]   ;;  %v10849_v33 = vld [vmem:[%s14450_s12 + $0x18] sm:$0xff]  }
 0x9b2   :  { %v5108_v2 = vadd.f32 %v5107_v7, %v4865_v52  ;;  %v5109_v39 = vpop.f32.mrb[66].mxu1  ;;  %v5991_v52 = vld [vmem:[%s14441_s3] sm:$0xff]  ;;  %v10851_v7 = vld [vmem:[%s14450_s12 + $0x28] sm:$0xff]  }
 0x9b3   :  { %v5114_v41 = vadd.f32 %v5106_v8, %v11929_v24  ;;  %v5110_v56 = vpop.f32.mrb[67].mxu1  ;;  %v5992_v60 = vmul.f32 1.6487212, %v5991_v52  ;;  %v10850_v8 = vld [vmem:[%s14450_s12 + $0x20] sm:$0xff]   ;;  %v10853_v39 = vld [vmem:[%s14450_s12 + $0x38] sm:$0xff]  }
 0x9b4   :  { %v5115_v38 = vadd.f32 %v5108_v2, %v11923_v18  ;;  %v10852_v2 = vld [vmem:[%s14450_s12 + $0x30] sm:$0xff]  }
 0x9b5   :  { %11182 = vtanh.f32 %v5114_v41  ;;  %v5993_v48 = vpack.c.bf16 %v5992_v60, %v5992_v60 }
 0x9b6   :  { %v9591_v6 = vmul.f32 -1.442695, %v5115_v38 }
 0x9b8   :  { %11184 = vpow2.f32 %v9591_v6 }
 0x9bf   :  { %v11183_v3 = vpop.eup %11182 }
 0x9c0   :  { %v5136_v14 = vmul.f32 %v11183_v3, %v11181_v46 }
 0x9c2   :  { %v11185_v25 = vpop.eup %11184  ;;  %v5137_v42 = vadd.f32 %v5136_v14, %v5135_v23  ;;  %v10844_v23 = vld [vmem:[%s14452_s14 + $0x30] sm:$0xff]  }
 0x9c3   :  { %v5132_v0 = vadd.f32 1.0, %v11185_v25 }
 0x9c4   :  { %11186 = vtanh.f32 %v5137_v42  ;;  %v13251_v27 = vsel %vm4545_vm8, %v5137_v42, %v13053_v47 }
 0x9c5   :  { %11188 = vrcp.f32 %v5132_v0 }
 0x9ce   :  { %v11187_v22 = vpop.eup %11186 }
 0x9cf   :  { %v11189_v44 = vpop.eup %11188 }
 0x9d0   :  { %v13253_v10 = vpop.f32.mrb[68].mxu1  ;;  %v5139_v4 = vmul.f32 %v11189_v44, %v11187_v22 }
 0x9d1   :  { %v13255_v1 = vpop.f32.mrb[69].mxu1 }
 0x9d2   :  { %v5555_v35 = vpop.f32.mrb[70].mxu1  ;;  %v5140_v12 = vpack.c.bf16 %v5139_v4, %v5139_v4  ;;  %v13260_v55 = vsel %vm4545_vm8, %v5139_v4, %v13064_v57  ;;  %v14671_v57 = vld [vmem:[#allocation30_spill] sm:$0xff] }
 0x9d3   :  { %v5556_v63 = vpop.f32.mrb[71].mxu1  ;;  %v5291_v47 = vpack.c.bf16 %v13260_v55, %v13260_v55 }
 0x9d4   :  { %10240 = vmatmul.mubr.bf16.vlgmr.msra.gmra.mrb[68].mxu0 %v5140_v12 }
 0x9d5   :  { %5559 = vmatpush1.bf16.msra.mxu0 %v13059_v15  ;;  %5792 = vmatmul.mubr.bf16.vlgmr.msra.gmra.mrb[72].mxu1 %v5291_v47  ;;  %v14670_v15 = vld [vmem:[#allocation29_spill] sm:$0xff] }
 0x9d6   :  { %5560 = vmatprep.subr.bf16.mxu0 %v13066_v62  ;;  %5590 = vmatprep.mubr.bf16.mxu0 %v14585_v45  ;;  %v14672_v62 = vld [vmem:[#allocation31_spill] sm:$0xff] }
 0x9d7   :  { %10259 = vmatprep.mubr.msk.bf16.mxu1 %vm11438_vm14, %v14586_v5  ;;  %10244 = vmatpush3.bf16.msra.mxu1 %v10846_v53 }
 0x9d8   :  { %10245 = vmatprep.subr.bf16.mxu1 %v14586_v5 }
 0x9d9   :  { %5561 = vmatpush1.bf16.msra.mxu0 %v13074_v28  ;;  %v14673_v28 = vld [vmem:[#allocation32_spill] sm:$0xff] }
 0x9da   :  { %5562 = vmatprep.subr.bf16.mxu0 %v13077_v16  ;;  %v14674_v16 = vld [vmem:[#allocation33_spill] sm:$0xff] }
 0x9db   :  { %10246 = vmatpush3.bf16.msra.mxu1 %v10847_v26 }
 0x9dc   :  { %10247 = vmatprep.subr.bf16.mxu1 %v14586_v5 }
 0x9dd   :  { %5563 = vmatpush1.bf16.msra.mxu0 %v13083_v40  ;;  %v14675_v40 = vld [vmem:[#allocation34_spill] sm:$0xff] }
 0x9de   :  { %5564 = vmatprep.subr.bf16.mxu0 %v13086_v29  ;;  %v14676_v29 = vld [vmem:[#allocation35_spill] sm:$0xff] }
 0x9df   :  { %10248 = vmatpush3.bf16.msra.mxu1 %v10848_v11 }
 0x9e0   :  { %10249 = vmatprep.subr.bf16.mxu1 %v14586_v5 }
 0x9e1   :  { %5565 = vmatpush1.bf16.msra.mxu0 %v13089_v30  ;;  %v14677_v30 = vld [vmem:[#allocation36_spill] sm:$0xff] }
 0x9e2   :  { %5566 = vmatprep.subr.bf16.mxu0 %v13092_v34  ;;  %v14678_v34 = vld [vmem:[#allocation37_spill] sm:$0xff] }
 0x9e3   :  { %10250 = vmatpush3.bf16.msra.mxu1 %v10849_v33 }
 0x9e4   :  { %10251 = vmatprep.subr.bf16.mxu1 %v14586_v5 }
 0x9e5   :  { %5567 = vmatpush1.bf16.msra.mxu0 %v13095_v17  ;;  %v14679_v17 = vld [vmem:[#allocation39_spill] sm:$0xff] }
 0x9e6   :  { %5568 = vmatprep.subr.bf16.mxu0 %v13098_v54  ;;  %v14680_v54 = vld [vmem:[#allocation40_spill] sm:$0xff] }
 0x9e7   :  { %10252 = vmatpush3.bf16.msra.mxu1 %v10850_v8 }
 0x9e8   :  { %10253 = vmatprep.subr.bf16.mxu1 %v14586_v5 }
 0x9e9   :  { %5569 = vmatpush1.bf16.msra.mxu0 %v13101_v9  ;;  %v14681_v9 = vld [vmem:[#allocation41_spill] sm:$0xff] }
 0x9ea   :  { %5570 = vmatprep.subr.bf16.mxu0 %v14670_v15  ;;  %14698 = vst [vmem:[#allocation41_spill] sm:$0xff] %v13603_v32 }
 0x9eb   :  { %10254 = vmatpush3.bf16.msra.mxu1 %v10851_v7  ;;  %v13395_v7 = vld [vmem:[%s14451_s13] ss:$0 sm:$0xff] }
 0x9ec   :  { %10255 = vmatprep.subr.bf16.mxu1 %v14586_v5 }
 0x9ed   :  { %5571 = vmatpush1.bf16.msra.mxu0 %v13107_v19  ;;  %v14682_v19 = vld [vmem:[#allocation43_spill] sm:$0xff] }
 0x9ee   :  { %5572 = vmatprep.subr.bf16.mxu0 %v14671_v57 }
 0x9ef   :  { %10256 = vmatpush3.bf16.msra.mxu1 %v10852_v2 }
 0x9f0   :  { %10257 = vmatprep.subr.bf16.mxu1 %v14586_v5 }
 0x9f1   :  { %5573 = vmatpush1.bf16.msra.mxu0 %v14672_v62 }
 0x9f2   :  { %5800 = vmatprep.subr.bf16.mxu0 %v14673_v28 }
 0x9f3   :  { %10258 = vmatpush3.bf16.msra.mxu1 %v10853_v39 }
 0x9f4   :  { %5591 = vmatmul.mubr.bf16.vlgmr.msra.gmra.mrb[72].mxu0 %v13186_v13  ;;  %v14683_v13 = vld [vmem:[#allocation44_spill] sm:$0xff] }
 0x9f5   :  { %5801 = vmatpush1.bf16.msra.mxu0 %v14674_v16  ;;  %5832 = vmatprep.mubr.bf16.mxu0 %v14585_v45 }
 0x9f6   :  { %5802 = vmatprep.subr.bf16.mxu0 %v14675_v40 }
 0x9f9   :  { %5803 = vmatpush1.bf16.msra.mxu0 %v14676_v29 }
 0x9fa   :  { %5804 = vmatprep.subr.bf16.mxu0 %v14677_v30 }
 0x9fd   :  { %5805 = vmatpush1.bf16.msra.mxu0 %v14678_v34 }
 0x9fe   :  { %5806 = vmatprep.subr.bf16.mxu0 %v14679_v17 }
 0xa01   :  { %5807 = vmatpush1.bf16.msra.mxu0 %v14680_v54 }
 0xa02   :  { %5808 = vmatprep.subr.bf16.mxu0 %v14681_v9 }
 0xa05   :  { %5809 = vmatpush1.bf16.msra.mxu0 %v13145_v31  ;;  %v10839_v31 = vld [vmem:[%s14452_s14 + $0x8] sm:$0xff]  }
 0xa06   :  { %5810 = vmatprep.subr.bf16.mxu0 %v13148_v36  ;;  %v10841_v36 = vld [vmem:[%s14452_s14 + $0x18] sm:$0xff]  }
 0xa09   :  { %5811 = vmatpush1.bf16.msra.mxu0 %v13151_v21  ;;  %v10842_v21 = vld [vmem:[%s14452_s14 + $0x20] sm:$0xff]  }
 0xa0a   :  { %5812 = vmatprep.subr.bf16.mxu0 %v13154_v43  ;;  %v10843_v43 = vld [vmem:[%s14452_s14 + $0x28] sm:$0xff]  }
 0xa0d   :  { %5813 = vmatpush1.bf16.msra.mxu0 %v13157_v37  ;;  %v10840_v37 = vld [vmem:[%s14452_s14 + $0x10] sm:$0xff]  }
 0xa0e   :  { %5814 = vmatprep.subr.bf16.mxu0 %v14682_v19 }
 0xa11   :  { %5815 = vmatpush1.bf16.msra.mxu0 %v14683_v13 }
 0xa12   :  { %10263 = vmatprep.subr.bf16.mxu0 %v14586_v5 }
 0xa14   :  { %5833 = vmatmul.mubr.bf16.vlgmr.msra.gmra.mrb[76].mxu0 %v5291_v47 }
 0xa15   :  { %10264 = vmatpush3.bf16.msra.mxu0 %v10838_v59  ;;  %10279 = vmatprep.mubr.msk.bf16.mxu0 %vm11438_vm14, %v14586_v5 }
 0xa16   :  { %10265 = vmatprep.subr.bf16.mxu0 %v14586_v5 }
 0xa19   :  { %10266 = vmatpush3.bf16.msra.mxu0 %v10839_v31 }
 0xa1a   :  { %10267 = vmatprep.subr.bf16.mxu0 %v14586_v5 }
 0xa1d   :  { %10268 = vmatpush3.bf16.msra.mxu0 %v10840_v37 }
 0xa1e   :  { %10269 = vmatprep.subr.bf16.mxu0 %v14586_v5 }
 0xa21   :  { %10270 = vmatpush3.bf16.msra.mxu0 %v10841_v36 }
 0xa22   :  { %10271 = vmatprep.subr.bf16.mxu0 %v14586_v5 }
 0xa25   :  { %10272 = vmatpush3.bf16.msra.mxu0 %v10842_v21  ;;  %v13503_v21 = vld [vmem:[#allocation8 + $0xac] ss:$16 sps:$4 sm:$0xff]  }
 0xa26   :  { %10273 = vmatprep.subr.bf16.mxu0 %v14586_v5 }
 0xa29   :  { %10274 = vmatpush3.bf16.msra.mxu0 %v10843_v43 }
 0xa2a   :  { %10275 = vmatprep.subr.bf16.mxu0 %v14586_v5 }
 0xa2d   :  { %10276 = vmatpush3.bf16.msra.mxu0 %v10844_v23 }
 0xa2e   :  { %10277 = vmatprep.subr.bf16.mxu0 %v14586_v5 }
 0xa31   :  { %10278 = vmatpush3.bf16.msra.mxu0 %v10845_v20 }
 0xa34   :  { %10280 = vmatmul.mubr.bf16.vlgmr.msra.gmra.mrb[80].mxu0 %v5993_v48 }
 0xa35   :  { %6440 = vmatprep.mubr.bf16.mxu0 %v14585_v45 }
 0xaa7   :  { %v13369_v41 = vpop.f32.mrb[68].mxu0 }
 0xaa8   :  { %v10241_v56 = vpop.f32.mrb[69].mxu0  ;;  %v5793_v38 = vpop.f32.mrb[72].mxu1  ;;  %v5240_v2 = vadd.f32 %v13395_v7, %v13369_v41 }
 0xaa9   :  { %v5794_v6 = vadd.f32 %v5793_v38, %v13253_v10  ;;  %v5242_v46 = vpop.f32.mrb[70].mxu0  ;;  %v5795_v3 = vpop.f32.mrb[73].mxu1 }
 0xaaa   :  { %v5796_v14 = vadd.f32 %v5795_v3, %v13255_v1  ;;  %v10242_v25 = vpop.f32.mrb[71].mxu0  ;;  %v5797_v42 = vpop.f32.mrb[74].mxu1  ;;  %v13401_v39 = vsel %vm4545_vm8, %v5240_v2, nan  ;;  %v6108_v46 = vld [vmem:[%s14439_s1] sm:$0xff] }
 0xaab   :  { %v5798_v0 = vpop.f32.mrb[75].mxu1  ;;  %v5841_v62 = vadd.f32 %v5794_v6, %v11913_v58  ;;  %14686 = vst [vmem:[#allocation29_spill] sm:$0xff] %v13401_v39  ;;  %v6112_v56 = vpop.permute.xlu1 %6111 }
 0xaac   :  { %v5842_v22 = vadd.f32 %v5796_v14, %v11916_v61  ;;  %vm6113_vm5 = vcmp.eq.s32.totalorder %v6112_v56, 1  ;;  %v11300_v0 = vld [vmem:[%s14573_s6 + $0x40] sm:$0xff] }
 0xaad   :  { %v9666_v1 = vmul.f32 -1.442695, %v5841_v62  ;;  %v13452_v62 = vld [vmem:[#allocation8 + $0x44] ss:$16 sps:$4 sm:$0xff]  }
 0xaae   :  { %v9667_v44 = vmul.f32 -1.442695, %v5842_v22 }
 0xab0   :  { %11190 = vpow2.f32 %v9667_v44 }
 0xaba   :  { %v11191_v4 = vpop.eup %11190 }
 0xabb   :  { %v5854_v35 = vadd.f32 1.0, %v11191_v4  ;;  %v13431_v4 = vld [vmem:[#allocation8] ss:$16 sps:$4 sm:$0xff]  }
 0xabd   :  { %11192 = vrcp.f32 %v5854_v35  ;;  %v13433_v35 = vld [vmem:[#allocation8 + $0x4] ss:$16 sps:$4 sm:$0xff]  }
 0xabe   :  { %11194 = vpow2.f32 %v9666_v1  ;;  %6367 = vmatprep.subr.bf16.mxu1 %v13433_v35  ;;  %v13455_v1 = vld [vmem:[#allocation8 + $0x4c] ss:$16 sps:$4 sm:$0xff]  }
 0xac7   :  { %v11193_v12 = vpop.eup %11192  ;;  %v5592_v63 = vpop.f32.mrb[72].mxu0 }
 0xac8   :  { %v5864_v47 = vmul.f32 %v11193_v12, %v13251_v27  ;;  %v5594_v15 = vpop.f32.mrb[73].mxu0  ;;  %v11195_v28 = vpop.eup %11194  ;;  %v13435_v12 = vld [vmem:[#allocation8 + $0x8] ss:$16 sps:$4 sm:$0xff]  }
 0xac9   :  { %v5596_v10 = vpop.f32.mrb[74].mxu0  ;;  %v5848_v16 = vadd.f32 1.0, %v11195_v28  ;;  %v13458_v28 = vld [vmem:[#allocation8 + $0x40] ss:$16 sps:$4 sm:$0xff]  }
 0xaca   :  { %v5597_v57 = vpop.f32.mrb[75].mxu0  ;;  %v13446_v10 = vld [vmem:[#allocation8 + $0x20] ss:$16 sps:$4 sm:$0xff]  }
 0xacb   :  { %11196 = vrcp.f32 %v5848_v16  ;;  %v13450_v57 = vld [vmem:[#allocation8 + $0x28] ss:$16 sps:$4 sm:$0xff]  }
 0xacc   :  { %v13462_v16 = vld [vmem:[#allocation8 + $0x48] ss:$16 sps:$4 sm:$0xff]  }
 0xad5   :  { %v11197_v13 = vpop.eup %11196 }
 0xae7   :  { %v5834_v40 = vpop.f32.mrb[76].mxu0 }
 0xae8   :  { %v5835_v61 = vadd.f32 %v5834_v40, %v5592_v63  ;;  %v5836_v29 = vpop.f32.mrb[77].mxu0  ;;  %v13437_v63 = vld [vmem:[#allocation8 + $0xc] ss:$16 sps:$4 sm:$0xff]   ;;  %v13464_v40 = vld [vmem:[#allocation8 + $0x64] ss:$16 sps:$4 sm:$0xff]  }
 0xae9   :  { %v5837_v30 = vadd.f32 %v5836_v29, %v5594_v15  ;;  %v5838_v34 = vpop.f32.mrb[78].mxu0  ;;  %v13442_v15 = vld [vmem:[#allocation8 + $0x2c] ss:$16 sps:$4 sm:$0xff]   ;;  %6408 = vmatprep.subr.bf16.mxu0 %v13437_v63  ;;  %v13470_v29 = vld [vmem:[#allocation8 + $0x60] ss:$16 sps:$4 sm:$0xff]  }
 0xaea   :  { %v5843_v17 = vadd.f32 %v5835_v61, %v11929_v24  ;;  %v5839_v54 = vpop.f32.mrb[79].mxu0  ;;  %6409 = vmatpush1.bf16.msra.mxu0 %v13435_v12  ;;  %v13467_v61 = vld [vmem:[#allocation8 + $0x6c] ss:$16 sps:$4 sm:$0xff]   ;;  %v13476_v34 = vld [vmem:[#allocation8 + $0x84] ss:$16 sps:$4 sm:$0xff]  }
 0xaeb   :  { %v5844_v9 = vadd.f32 %v5837_v30, %v11923_v18  ;;  %v9677_v18 = vld [vmem:[%s14453_s15] ss:$0 sm:$0xff]  ;;  %6410 = vmatprep.subr.bf16.mxu0 %v13442_v15  ;;  %v13474_v30 = vld [vmem:[#allocation8 + $0x68] ss:$16 sps:$4 sm:$0xff]  }
 0xaec   :  { %11198 = vtanh.f32 %v5843_v17  ;;  %v13479_v17 = vld [vmem:[#allocation8 + $0x8c] ss:$16 sps:$4 sm:$0xff]   ;;  %v13482_v54 = vld [vmem:[#allocation8 + $0x80] ss:$16 sps:$4 sm:$0xff]  }
 0xaed   :  { %v9668_v19 = vmul.f32 -1.442695, %v5844_v9  ;;  %v13486_v9 = vld [vmem:[#allocation8 + $0x88] ss:$16 sps:$4 sm:$0xff]  }
 0xaee   :  { %6411 = vmatpush1.bf16.msra.mxu0 %v13450_v57 }
 0xaef   :  { %11200 = vpow2.f32 %v9668_v19  ;;  %6412 = vmatprep.subr.bf16.mxu0 %v13455_v1 }
 0xaf2   :  { %6413 = vmatpush1.bf16.msra.mxu0 %v13462_v16 }
 0xaf3   :  { %6414 = vmatprep.subr.bf16.mxu0 %v13467_v61 }
 0xaf6   :  { %v11199_v58 = vpop.eup %11198  ;;  %6415 = vmatpush1.bf16.msra.mxu0 %v13474_v30 }
 0xaf7   :  { %v5865_v59 = vmul.f32 %v11199_v58, %v11197_v13  ;;  %6416 = vmatprep.subr.bf16.mxu0 %v13479_v17 }
 0xaf9   :  { %v11201_v31 = vpop.eup %11200  ;;  %v5866_v37 = vadd.f32 %v5865_v59, %v5864_v47  ;;  %v13439_v47 = vld [vmem:[#allocation8 + $0x24] ss:$16 sps:$4 sm:$0xff]  }
 0xafa   :  { %v5861_v36 = vadd.f32 1.0, %v11201_v31  ;;  %6417 = vmatpush1.bf16.msra.mxu0 %v13486_v9  ;;  %v13497_v31 = vld [vmem:[#allocation8 + $0xa0] ss:$16 sps:$4 sm:$0xff]  }
 0xafb   :  { %11202 = vtanh.f32 %v5866_v37  ;;  %v13381_v43 = vsel %vm5274_vm1, %v5866_v37, %v13251_v27  ;;  %v13499_v37 = vld [vmem:[#allocation8 + $0xa4] ss:$16 sps:$4 sm:$0xff]   ;;  %6418 = vmatprep.subr.bf16.mxu0 %v13503_v21 }
 0xafc   :  { %11204 = vrcp.f32 %v5861_v36  ;;  %v13501_v36 = vld [vmem:[#allocation8 + $0xa8] ss:$16 sps:$4 sm:$0xff]  }
 0xafe   :  { %6419 = vmatpush1.bf16.msra.mxu0 %v13501_v36 }
 0xb05   :  { %v11203_v24 = vpop.eup %11202 }
 0xb06   :  { %v11205_v23 = vpop.eup %11204 }
 0xb07   :  { %v5868_v52 = vmul.f32 %v11205_v23, %v11203_v24  ;;  %v6099_v60 = vpop.f32.mrb[80].mxu0  ;;  %v14689_v24 = vmov 1   ;;  %v13512_v23 = vld [vmem:[#allocation8 + $0xcc] ss:$16 sps:$4 sm:$0xff]  }
 0xb08   :  { %v6100_v20 = vadd.f32 %v9677_v18, %v6099_v60  ;;  %v10281_v48 = vpop.f32.mrb[81].mxu0  ;;  %v13510_v18 = vld [vmem:[#allocation8 + $0xc4] ss:$16 sps:$4 sm:$0xff]   ;;  %v13516_v60 = vld [vmem:[#allocation8 + $0xc8] ss:$16 sps:$4 sm:$0xff]   ;;  %6420 = vmatprep.subr.bf16.mxu0 %v13512_v23 }
 0xb09   :  { %v5869_v53 = vpack.c.bf16 %v5868_v52, %v5868_v52  ;;  %v6102_v26 = vpop.f32.mrb[82].mxu0  ;;  %v5975_v27 = vsel %vm5274_vm1, %v5868_v52, %v13260_v55  ;;  %v11299_v55 = vld [vmem:[%s14573_s6 + $0x38] sm:$0xff]  ;;  %v13514_v52 = vld [vmem:[#allocation8 + $0xc0] ss:$16 sps:$4 sm:$0xff]   ;;  %6421 = vmatpush1.bf16.msra.mxu0 %v13516_v60 }
 0xb0a   :  { %v6105_v11 = vmax.f32 %v6100_v20, 0.0  ;;  %v10282_v33 = vpop.f32.mrb[83].mxu0  ;;  %v13407_v38 = vadd.f32 %v11299_v55, %v13401_v39  ;;  %v13522_v20 = vld [vmem:[#allocation8 + $0xe4] ss:$16 sps:$4 sm:$0xff]   ;;  %v13524_v48 = vld [vmem:[#allocation8 + $0xec] ss:$16 sps:$4 sm:$0xff]  }
 0xb0b   :  { %10260 = vmatmul.mubr.bf16.vlgmr.msra.gmra.mrb[76].mxu1 %v5869_v53  ;;  %v13526_v53 = vld [vmem:[#allocation8 + $0xe0] ss:$16 sps:$4 sm:$0xff]   ;;  %v13528_v26 = vld [vmem:[#allocation8 + $0xe8] ss:$16 sps:$4 sm:$0xff]   ;;  %6422 = vmatprep.subr.bf16.mxu0 %v13524_v48  ;;  %v13537_v33 = vld [vmem:[#allocation7 + $0xc] ss:$16 sps:$4 sm:$0xff]  }
 0xb0c   :  { %v13389_v8 = vmul.f32 %v6105_v11, %v5975_v27  ;;  %6399 = vmatprep.mubr.bf16.mxu1 %v14585_v45  ;;  %14687 = vst [vmem:[#allocation30_spill] sm:$0xff] %v13407_v38  ;;  %v6114_v42 = vsel %vm6113_vm5, %v13407_v38, %v6108_v46  ;;  %6368 = vmatpush1.bf16.msra.mxu1 %v13431_v4  ;;  %v13535_v11 = vld [vmem:[#allocation7 + $0x4] ss:$16 sps:$4 sm:$0xff]   ;;  %v13546_v46 = vld [vmem:[%s14443_s5] ss:$0 sm:$0xff] }
 0xb0d   :  { %vm6115_vm8 = vcmp.ne.f32.partialorder %v6114_v42, %v6114_v42  ;;  %6369 = vmatprep.subr.bf16.mxu1 %v13439_v47  ;;  %6423 = vmatpush1.bf16.msra.mxu0 %v13528_v26  ;;  %v13593_v39 = vld [vmem:[#allocation7 + $0x8c] ss:$16 sps:$4 sm:$0xff]   ;;  %v13599_v38 = vld [vmem:[#allocation7 + $0x88] ss:$16 sps:$4 sm:$0xff]  }
 0xb0e   :  { %14685 = vst [vmem:[#allocation25_spill] sm:$0xff] %v13389_v8  ;;  %6650 = vmatprep.subr.bf16.mxu0 %v13537_v33  ;;  %14695 = vst [vmem:[#allocation37_spill] sm:$0xff] %v13593_v39 }
 0xb0f   :  { %14697 = vst [vmem:[#allocation40_spill] sm:$0xff] %v13599_v38 }
 0xb10   :  { %6370 = vmatpush1.bf16.msra.mxu1 %v13446_v10 }
 0xb11   :  { %6371 = vmatprep.subr.bf16.mxu1 %v13452_v62 }
 0xb14   :  { %6372 = vmatpush1.bf16.msra.mxu1 %v13458_v28 }
 0xb15   :  { %6373 = vmatprep.subr.bf16.mxu1 %v13464_v40 }
 0xb18   :  { %6374 = vmatpush1.bf16.msra.mxu1 %v13470_v29 }
 0xb19   :  { %6375 = vmatprep.subr.bf16.mxu1 %v13476_v34 }
 0xb1c   :  { %6376 = vmatpush1.bf16.msra.mxu1 %v13482_v54 }
 0xb1d   :  { %6377 = vmatprep.subr.bf16.mxu1 %v13499_v37 }
 0xb20   :  { %6378 = vmatpush1.bf16.msra.mxu1 %v13497_v31 }
 0xb21   :  { %6379 = vmatprep.subr.bf16.mxu1 %v13510_v18 }
 0xb24   :  { %6380 = vmatpush1.bf16.msra.mxu1 %v13514_v52 }
 0xb25   :  { %6381 = vmatprep.subr.bf16.mxu1 %v13522_v20 }
 0xb28   :  { %6382 = vmatpush1.bf16.msra.mxu1 %v13526_v53 }
 0xb29   :  { %6609 = vmatprep.subr.bf16.mxu1 %v13535_v11 }
 0xbde   :  { %v5968_v6 = vpop.f32.mrb[76].mxu1 }
 0xbdf   :  { %v5969_v3 = vadd.f32 %v13395_v7, %v5968_v6  ;;  %v10261_v41 = vpop.f32.mrb[77].mxu1 }
 0xbe0   :  { %v5971_v49 = vpop.f32.mrb[78].mxu1 }
 0xbe1   :  { %v13415_v14 = vsel %vm5274_vm1, %v5969_v3, nan  ;;  %v10262_v25 = vpop.f32.mrb[79].mxu1  ;;  %v13549_v49 = vld [vmem:[#allocation7] ss:$16 sps:$4 sm:$0xff]  }
 0xbe2   :  { %14688 = vst [vmem:[#allocation31_spill] sm:$0xff] %v13415_v14  ;;  %v13422_v22 = vadd.f32 %v11300_v0, %v13415_v14  ;;  %v13551_v25 = vld [vmem:[#allocation7 + $0x8] ss:$16 sps:$4 sm:$0xff]   ;;  %v13553_v0 = vld [vmem:[#allocation7 + $0x24] ss:$16 sps:$4 sm:$0xff]  }
 0xbe3   :  { %v13597_v14 = vld [vmem:[#allocation7 + $0x80] ss:$16 sps:$4 sm:$0xff]  }
 0xbe4   :  { %vm6116_vm10 = vcmp.ne.f32.partialorder %v13422_v22, %v13422_v22  ;;  %v6119_v13 = vsub.f32 %v13422_v22, %v6114_v42  ;;  %14696 = vst [vmem:[#allocation39_spill] sm:$0xff] %v13597_v14 }
 0xbe5   :  { %vm6117_vm12 = vmor %vm6115_vm8, %vm6116_vm10 }
 0xbe6   :  { %vm6118_vm15 = vmxor %vm6117_vm12, %vm11435_vm3 }
 0xbe7   :  { %v6120_v44 = vsel %vm6118_vm15, 1, %v14585_v45 }
 0xbe8   :  { %6122 = vperm.xlu0 %10389, %v6120_v44   ;;  %v13555_v44 = vld [vmem:[#allocation7 + $0x2c] ss:$16 sps:$4 sm:$0xff]  }
 0xc67   :  { %v13491_v19 = vpop.permute.xlu0 %6122 }
 0xc68   :  { %vm6124_vm0 = vcmp.eq.s32.totalorder %v13491_v19, 1  ;;  %v10958_v19 = vld [vmem:[%s14450_s12] sm:$0xff]  }
 0xc69   :  { %v6125_v58 = vsel %vm6124_vm0, %v6119_v13, 0.0  ;;  %v13559_v13 = vld [vmem:[#allocation7 + $0x20] ss:$16 sps:$4 sm:$0xff]  }
 0xc6a   :  { %v6126_v59 = vmul.f32 4.0, %v6125_v58  ;;  %v13561_v58 = vld [vmem:[#allocation7 + $0x28] ss:$16 sps:$4 sm:$0xff]  }
 0xc6c   :  { %6129 = vperm.xlu1 %10387, %v6126_v59  }
 0xc70   :  { %10390 = vset.pattern.permute.xlu1 %v14689_v24 }
 0xc71   :  { %6134 = vperm.xlu1 %10390, %v6126_v59   ;;  %v13565_v59 = vld [vmem:[#allocation7 + $0x44] ss:$16 sps:$4 sm:$0xff]  }
 0xc75   :  { %10391 = vset.pattern.permute.xlu1 %v14585_v45 }
 0xceb   :  { %v6130_v27 = vpop.permute.xlu1 %6129 }
 0xcec   :  { %v6132_v56 = vmul.f32 %v6130_v27, %v11694_v51  ;;  %v13567_v27 = vld [vmem:[#allocation7 + $0x4c] ss:$16 sps:$4 sm:$0xff]  }
 0xcf0   :  { %v6135_v2 = vpop.permute.xlu1 %6134 }
 0xcf1   :  { %v6137_v55 = vmul.f32 %v6135_v2, %v11691_v50  ;;  %v13573_v2 = vld [vmem:[#allocation7 + $0x40] ss:$16 sps:$4 sm:$0xff]  }
 0xcf3   :  { %v6138_v6 = vadd.f32 %v6137_v55, %v6132_v56  ;;  %v13575_v56 = vld [vmem:[#allocation7 + $0x48] ss:$16 sps:$4 sm:$0xff]   ;;  %v13579_v55 = vld [vmem:[#allocation7 + $0x64] ss:$16 sps:$4 sm:$0xff]  }
 0xcf4   :  { %14690 = vst [vmem:[#allocation32_spill] sm:$0xff] %v13579_v55 }
 0xcf5   :  { %v6139_v3 = vadd.f32 %v13546_v46, %v6138_v6  ;;  %v13581_v6 = vld [vmem:[#allocation7 + $0x6c] ss:$16 sps:$4 sm:$0xff]  }
 0xcf6   :  { %14691 = vst [vmem:[#allocation33_spill] sm:$0xff] %v13581_v6 }
 0xcf7   :  { %v6140_v41 = vmax.f32 %v6139_v3, 0.0  ;;  %v13585_v3 = vld [vmem:[#allocation7 + $0x60] ss:$16 sps:$4 sm:$0xff]  }
 0xcf8   :  { %14692 = vst [vmem:[#allocation34_spill] sm:$0xff] %v13585_v3 }
 0xcf9   :  { %v6174_v42 = vpack.c.bf16 %v6140_v41, %v6140_v41  ;;  %v13587_v41 = vld [vmem:[#allocation7 + $0x68] ss:$16 sps:$4 sm:$0xff]  }
 0xcfa   :  { %14693 = vst [vmem:[#allocation35_spill] sm:$0xff] %v13587_v41 }
 0xcfb   :  { %6400 = vmatmul.mubr.bf16.vlgmr.msra.gmra.mrb[80].mxu1 %v6174_v42  ;;  %6441 = vmatmul.mubr.bf16.vlgmr.msra.gmra.mrb[84].mxu0 %v6174_v42  ;;  %v13591_v42 = vld [vmem:[#allocation7 + $0x84] ss:$16 sps:$4 sm:$0xff]  }
 0xcfc   :  { %6610 = vmatpush1.bf16.msra.mxu1 %v13549_v49  ;;  %6651 = vmatpush1.bf16.msra.mxu0 %v13551_v25  ;;  %14694 = vst [vmem:[#allocation36_spill] sm:$0xff] %v13591_v42 }
 0xcfd   :  { %6611 = vmatprep.subr.bf16.mxu1 %v13553_v0  ;;  %6652 = vmatprep.subr.bf16.mxu0 %v13555_v44 }
 0xcfe   :  { %6641 = vmatprep.mubr.bf16.mxu1 %v14585_v45  ;;  %6682 = vmatprep.mubr.bf16.mxu0 %v14585_v45 }
 0xd00   :  { %6612 = vmatpush1.bf16.msra.mxu1 %v13559_v13  ;;  %6653 = vmatpush1.bf16.msra.mxu0 %v13561_v58 }
 0xd01   :  { %6613 = vmatprep.subr.bf16.mxu1 %v13565_v59  ;;  %6654 = vmatprep.subr.bf16.mxu0 %v13567_v27 }
 0xd04   :  { %6614 = vmatpush1.bf16.msra.mxu1 %v13573_v2  ;;  %6655 = vmatpush1.bf16.msra.mxu0 %v13575_v56 }
 0xd05   :  { %6615 = vmatprep.subr.bf16.mxu1 %v13579_v55  ;;  %6656 = vmatprep.subr.bf16.mxu0 %v13581_v6  ;;  %v13605_v55 = vld [vmem:[#allocation7 + $0xac] ss:$16 sps:$4 sm:$0xff]   ;;  %v13609_v6 = vld [vmem:[#allocation7 + $0xa0] ss:$16 sps:$4 sm:$0xff]  }
 0xd06   :  { %14699 = vst [vmem:[#allocation43_spill] sm:$0xff] %v13605_v55  ;;  %14700 = vst [vmem:[#allocation44_spill] sm:$0xff] %v13609_v6 }
 0xd08   :  { %6616 = vmatpush1.bf16.msra.mxu1 %v13585_v3  ;;  %6657 = vmatpush1.bf16.msra.mxu0 %v13587_v41  ;;  %v13611_v3 = vld [vmem:[#allocation7 + $0xa8] ss:$16 sps:$4 sm:$0xff]   ;;  %v13615_v41 = vld [vmem:[#allocation7 + $0xc4] ss:$16 sps:$4 sm:$0xff]  }
 0xd09   :  { %6617 = vmatprep.subr.bf16.mxu1 %v13591_v42  ;;  %6658 = vmatprep.subr.bf16.mxu0 %v13593_v39  ;;  %v13617_v42 = vld [vmem:[#allocation7 + $0xcc] ss:$16 sps:$4 sm:$0xff]   ;;  %v13621_v39 = vld [vmem:[#allocation7 + $0xc0] ss:$16 sps:$4 sm:$0xff]  }
 0xd0a   :  { %14701 = vst [vmem:[#allocation27_spill] sm:$0xff] %v13617_v42 }
 0xd0c   :  { %6618 = vmatpush1.bf16.msra.mxu1 %v13597_v14  ;;  %6659 = vmatpush1.bf16.msra.mxu0 %v13599_v38  ;;  %v13623_v14 = vld [vmem:[#allocation7 + $0xc8] ss:$16 sps:$4 sm:$0xff]   ;;  %v13627_v38 = vld [vmem:[#allocation7 + $0xe4] ss:$16 sps:$4 sm:$0xff]  }
 0xd0d   :  { %6619 = vmatprep.subr.bf16.mxu1 %v13603_v32  ;;  %6660 = vmatprep.subr.bf16.mxu0 %v13605_v55  ;;  %14702 = vst [vmem:[#allocation46_spill] sm:$0xff] %v13623_v14  ;;  %14703 = vst [vmem:[#allocation47_spill] sm:$0xff] %v13627_v38  ;;  %v13629_v32 = vld [vmem:[#allocation7 + $0xec] ss:$16 sps:$4 sm:$0xff]   ;;  %v13633_v55 = vld [vmem:[#allocation7 + $0xe0] ss:$16 sps:$4 sm:$0xff]  }
 0xd0e   :  { %14704 = vst [vmem:[#allocation48_spill] sm:$0xff] %v13629_v32  ;;  %14705 = vst [vmem:[#allocation49_spill] sm:$0xff] %v13633_v55 }
 0xd10   :  { %6620 = vmatpush1.bf16.msra.mxu1 %v13609_v6  ;;  %6661 = vmatpush1.bf16.msra.mxu0 %v13611_v3  ;;  %v13635_v6 = vld [vmem:[#allocation7 + $0xe8] ss:$16 sps:$4 sm:$0xff]  }
 0xd11   :  { %6621 = vmatprep.subr.bf16.mxu1 %v13615_v41  ;;  %6662 = vmatprep.subr.bf16.mxu0 %v13617_v42  ;;  %14706 = vst [vmem:[#allocation50_spill] sm:$0xff] %v13635_v6  ;;  %v6141_v42 = vpack.c.bf16 %v13389_v8, %v13389_v8 }
 0xd14   :  { %6622 = vmatpush1.bf16.msra.mxu1 %v13621_v39  ;;  %6663 = vmatpush1.bf16.msra.mxu0 %v13623_v14 }
 0xd15   :  { %6623 = vmatprep.subr.bf16.mxu1 %v13627_v38  ;;  %6664 = vmatprep.subr.bf16.mxu0 %v13629_v32  ;;  %v14709_v38 = vld [vmem:[#allocation16_spill] sm:$0xff] }
 0xd16   :  { %v14710_v14 = vsub.s32 3, %v14709_v38 }
 0xd18   :  { %6624 = vmatpush1.bf16.msra.mxu1 %v13633_v55  ;;  %6665 = vmatpush1.bf16.msra.mxu0 %v13635_v6 }
 0xd19   :  { %10283 = vmatprep.subr.bf16.mxu1 %v14586_v5  ;;  %7113 = vmatprep.subr.bf16.mxu0 %v13433_v35  ;;  %v10951_v35 = vld [vmem:[%s14450_s12 + $0x8] sm:$0xff]  }
 0xd1b   :  { %6642 = vmatmul.mubr.bf16.vlgmr.msra.gmra.mrb[84].mxu1 %v6141_v42  ;;  %6683 = vmatmul.mubr.bf16.vlgmr.msra.gmra.mrb[88].mxu0 %v6141_v42  ;;  %v14707_v42 = vld [vmem:[#allocation18_spill] sm:$0xff] }
 0xd1c   :  { %10299 = vmatprep.mubr.msk.bf16.mxu1 %vm11438_vm14, %v14586_v5  ;;  %7114 = vmatpush1.bf16.msra.mxu0 %v13431_v4  ;;  %v10950_v4 = vld [vmem:[%s14450_s12] sm:$0xff]  }
 0xd1d   :  { %7115 = vmatprep.subr.bf16.mxu0 %v13439_v47  ;;  %7145 = vmatprep.mubr.bf16.mxu0 %v14585_v45  ;;  %v10952_v47 = vld [vmem:[%s14450_s12 + $0x10] sm:$0xff]  }
 0xd1e   :  { %10284 = vmatpush3.bf16.msra.mxu1 %v10950_v4 }
 0xd1f   :  { %10285 = vmatprep.subr.bf16.mxu1 %v14586_v5 }
 0xd20   :  { %7116 = vmatpush1.bf16.msra.mxu0 %v13446_v10  ;;  %v10953_v10 = vld [vmem:[%s14450_s12 + $0x18] sm:$0xff]  }
 0xd21   :  { %7117 = vmatprep.subr.bf16.mxu0 %v13452_v62  ;;  %v10954_v62 = vld [vmem:[%s14450_s12 + $0x20] sm:$0xff]  }
 0xd22   :  { %10286 = vmatpush3.bf16.msra.mxu1 %v10951_v35 }
 0xd23   :  { %10287 = vmatprep.subr.bf16.mxu1 %v14586_v5 }
 0xd24   :  { %7118 = vmatpush1.bf16.msra.mxu0 %v13458_v28  ;;  %v10955_v28 = vld [vmem:[%s14450_s12 + $0x28] sm:$0xff]  }
 0xd25   :  { %7119 = vmatprep.subr.bf16.mxu0 %v13464_v40  ;;  %v10956_v40 = vld [vmem:[%s14450_s12 + $0x30] sm:$0xff]  }
 0xd26   :  { %10288 = vmatpush3.bf16.msra.mxu1 %v10952_v47 }
 0xd27   :  { %10289 = vmatprep.subr.bf16.mxu1 %v14586_v5 }
 0xd28   :  { %7120 = vmatpush1.bf16.msra.mxu0 %v13470_v29  ;;  %v10957_v29 = vld [vmem:[%s14450_s12 + $0x38] sm:$0xff]  }
 0xd29   :  { %7121 = vmatprep.subr.bf16.mxu0 %v13476_v34 }
 0xd2a   :  { %10290 = vmatpush3.bf16.msra.mxu1 %v10953_v10  ;;  %v14708_v10 = vld [vmem:[#allocation17_spill] sm:$0xff] }
 0xd2b   :  { %10291 = vmatprep.subr.bf16.mxu1 %v14586_v5 }
 0xd2c   :  { %7122 = vmatpush1.bf16.msra.mxu0 %v13482_v54 }
 0xd2d   :  { %7123 = vmatprep.subr.bf16.mxu0 %v13499_v37 }
 0xd2e   :  { %10292 = vmatpush3.bf16.msra.mxu1 %v10954_v62 }
 0xd2f   :  { %10293 = vmatprep.subr.bf16.mxu1 %v14586_v5 }
 0xd30   :  { %7124 = vmatpush1.bf16.msra.mxu0 %v13497_v31 }
 0xd31   :  { %7125 = vmatprep.subr.bf16.mxu0 %v13510_v18 }
 0xd32   :  { %10294 = vmatpush3.bf16.msra.mxu1 %v10955_v28 }
 0xd33   :  { %10295 = vmatprep.subr.bf16.mxu1 %v14586_v5 }
 0xd34   :  { %7126 = vmatpush1.bf16.msra.mxu0 %v13514_v52 }
 0xd35   :  { %7127 = vmatprep.subr.bf16.mxu0 %v13522_v20 }
 0xd36   :  { %10296 = vmatpush3.bf16.msra.mxu1 %v10956_v40 }
 0xd37   :  { %10297 = vmatprep.subr.bf16.mxu1 %v14586_v5 }
 0xd38   :  { %7128 = vmatpush1.bf16.msra.mxu0 %v13526_v53 }
 0xd39   :  { %7355 = vmatprep.subr.bf16.mxu0 %v13535_v11  ;;  %v6107_v11 = vld [vmem:[%s14449_s11] sm:$0xf] }
 0xd3a   :  { %10298 = vmatpush3.bf16.msra.mxu1 %v10957_v29  ;;  %v13700_v4 = vrot.slane %v6107_v11, %v14707_v42  ;;  %v13703_v62 = vrot.slane %v6107_v11, %v14708_v10  ;;  %v13709_v10 = vrot.slane %v6107_v11, %v14710_v14 }
 0xd3b   :  { %7154 = vmatprep.subr.bf16.mxu1 %v13437_v63 }
 0xdce   :  { %v6401_v34 = vpop.f32.mrb[80].mxu1  ;;  %v6442_v54 = vpop.f32.mrb[84].mxu0 }
 0xdcf   :  { %v6403_v31 = vpop.f32.mrb[81].mxu1  ;;  %v6444_v37 = vpop.f32.mrb[85].mxu0 }
 0xdd0   :  { %v6405_v18 = vpop.f32.mrb[82].mxu1  ;;  %v6446_v52 = vpop.f32.mrb[86].mxu0 }
 0xdd1   :  { %v6406_v20 = vpop.f32.mrb[83].mxu1  ;;  %v6447_v53 = vpop.f32.mrb[87].mxu0 }
 0xdee   :  { %v6643_v35 = vpop.f32.mrb[84].mxu1  ;;  %v6684_v47 = vpop.f32.mrb[88].mxu0 }
 0xdef   :  { %v6644_v63 = vadd.f32 %v6643_v35, %v6401_v34  ;;  %v6685_v28 = vadd.f32 %v6684_v47, %v6442_v54  ;;  %v6645_v40 = vpop.f32.mrb[85].mxu1  ;;  %v6686_v29 = vpop.f32.mrb[89].mxu0  ;;  %v14711_v54 = vsub.s32 2, %v14709_v38 }
 0xdf0   :  { %v6646_v18 = vadd.f32 %v6645_v40, %v6403_v31  ;;  %v6687_v52 = vadd.f32 %v6686_v29, %v6444_v37  ;;  %v6647_v20 = vpop.f32.mrb[86].mxu1  ;;  %v6688_v53 = vpop.f32.mrb[90].mxu0 }
 0xdf1   :  { %v6712_v5 = vadd.f32 %v13700_v4, %v6644_v63  ;;  %v6648_v6 = vpop.f32.mrb[87].mxu1  ;;  %v6689_v55 = vpop.f32.mrb[91].mxu0  ;;  %v13714_v31 = vrot.slane %v6107_v11, %v14711_v54 }
 0xdf2   :  { %v6713_v42 = vadd.f32 %v13703_v62, %v6646_v18  ;;  %v6715_v34 = vadd.f32 %v13709_v10, %v6687_v52 }
 0xdf3   :  { %v9750_v8 = vmul.f32 -1.442695, %v6712_v5  ;;  %v6714_v6 = vadd.f32 %v13714_v31, %v6685_v28 }
 0xdf4   :  { %v9751_v32 = vmul.f32 -1.442695, %v6713_v42  ;;  %v9752_v37 = vmul.f32 -1.442695, %v6715_v34 }
 0xdf5   :  { %11206 = vpow2.f32 %v9750_v8 }
 0xdf6   :  { %11208 = vpow2.f32 %v9751_v32 }
 0xdf7   :  { %11210 = vpow2.f32 %v9752_v37  ;;  %v14717_v37 = vld [vmem:[#allocation36_spill] sm:$0xff] }
 0xdf8   :  { %11212 = vtanh.f32 %v6714_v6  ;;  %v14724_v6 = vld [vmem:[#allocation27_spill] sm:$0xff] }
 0xdff   :  { %v11207_v55 = vpop.eup %11206 }
 0xe00   :  { %v11209_v35 = vpop.eup %11208  ;;  %v6719_v47 = vadd.f32 1.0, %v11207_v55  ;;  %v14725_v55 = vld [vmem:[#allocation46_spill] sm:$0xff] }
 0xe01   :  { %v6725_v5 = vadd.f32 1.0, %v11209_v35  ;;  %v11211_v14 = vpop.eup %11210  ;;  %v14726_v35 = vld [vmem:[#allocation47_spill] sm:$0xff] }
 0xe02   :  { %11214 = vrcp.f32 %v6719_v47  ;;  %v11213_v8 = vpop.eup %11212  ;;  %v6732_v29 = vadd.f32 1.0, %v11211_v14  ;;  %v14727_v47 = vld [vmem:[#allocation48_spill] sm:$0xff] }
 0xe03   :  { %11216 = vrcp.f32 %v6725_v5  ;;  %v14728_v5 = vld [vmem:[#allocation25_spill] sm:$0xff] }
 0xe04   :  { %11218 = vrcp.f32 %v6732_v29  ;;  %v10962_v29 = vld [vmem:[%s14450_s12 + $0x20] sm:$0xff]  }
 0xe0c   :  { %v11215_v32 = vpop.eup %11214 }
 0xe0d   :  { %v11217_v63 = vpop.eup %11216  ;;  %v6736_v40 = vmul.f32 %v11215_v32, %v11213_v8  ;;  %v14729_v8 = vld [vmem:[#allocation49_spill] sm:$0xff]  ;;  %v10959_v32 = vld [vmem:[%s14450_s12 + $0x8] sm:$0xff]  }
 0xe0e   :  { %v6735_v38 = vmul.f32 %v11217_v63, %v13381_v43  ;;  %v11219_v18 = vpop.eup %11218  ;;  %v10960_v63 = vld [vmem:[%s14450_s12 + $0x10] sm:$0xff]  }
 0xe10   :  { %v6737_v11 = vadd.f32 %v6736_v40, %v6735_v38  ;;  %v10961_v40 = vld [vmem:[%s14450_s12 + $0x18] sm:$0xff]   ;;  %v10963_v38 = vld [vmem:[%s14450_s12 + $0x28] sm:$0xff]  }
 0xe12   :  { %11220 = vtanh.f32 %v6737_v11  ;;  %v13721_v28 = vsel %vm6124_vm0, %v6737_v11, %v13381_v43  ;;  %v10964_v11 = vld [vmem:[%s14450_s12 + $0x30] sm:$0xff]  }
 0xe1c   :  { %v11221_v52 = vpop.eup %11220 }
 0xe1d   :  { %v13723_v20 = vmul.f32 %v11221_v52, %v11219_v18  ;;  %v10965_v18 = vld [vmem:[%s14450_s12 + $0x38] sm:$0xff]  }
 0xe1f   :  { %v6740_v53 = vpack.c.bf16 %v13723_v20, %v13723_v20  ;;  %v13808_v14 = vsel %vm6124_vm0, %v13723_v20, %v14728_v5 }
 0xe21   :  { %10300 = vmatmul.mubr.bf16.vlgmr.msra.gmra.mrb[88].mxu1 %v6740_v53 }
 0xe22   :  { %7155 = vmatpush1.bf16.msra.mxu1 %v13435_v12  ;;  %7186 = vmatprep.mubr.bf16.mxu1 %v14585_v45 }
 0xe23   :  { %7156 = vmatprep.subr.bf16.mxu1 %v13442_v15 }
 0xe26   :  { %7157 = vmatpush1.bf16.msra.mxu1 %v13450_v57 }
 0xe27   :  { %7158 = vmatprep.subr.bf16.mxu1 %v13455_v1 }
 0xe2a   :  { %7159 = vmatpush1.bf16.msra.mxu1 %v13462_v16 }
 0xe2b   :  { %7160 = vmatprep.subr.bf16.mxu1 %v13467_v61 }
 0xe2e   :  { %7161 = vmatpush1.bf16.msra.mxu1 %v13474_v30 }
 0xe2f   :  { %7162 = vmatprep.subr.bf16.mxu1 %v13479_v17 }
 0xe32   :  { %7163 = vmatpush1.bf16.msra.mxu1 %v13486_v9 }
 0xe33   :  { %7164 = vmatprep.subr.bf16.mxu1 %v13503_v21 }
 0xe36   :  { %7165 = vmatpush1.bf16.msra.mxu1 %v13501_v36 }
 0xe37   :  { %7166 = vmatprep.subr.bf16.mxu1 %v13512_v23 }
 0xe3a   :  { %7167 = vmatpush1.bf16.msra.mxu1 %v13516_v60 }
 0xe3b   :  { %7168 = vmatprep.subr.bf16.mxu1 %v13524_v48 }
 0xe3e   :  { %7169 = vmatpush1.bf16.msra.mxu1 %v13528_v26 }
 0xe3f   :  { %7396 = vmatprep.subr.bf16.mxu1 %v13537_v33 }
 0xef4   :  { %v6839_v43 = vpop.f32.mrb[88].mxu1 }
 0xef5   :  { %v6840_v12 = vadd.f32 %v13395_v7, %v6839_v43  ;;  %v10301_v15 = vpop.f32.mrb[89].mxu1 }
 0xef6   :  { %v6842_v57 = vpop.f32.mrb[90].mxu1 }
 0xef7   :  { %v13747_v1 = vsel %vm6124_vm0, %v6840_v12, nan  ;;  %v10302_v16 = vpop.f32.mrb[91].mxu1 }
 0xef8   :  { %14712 = vst [vmem:[#allocation18_spill] sm:$0xff] %v13747_v1  ;;  %v13751_v61 = vadd.f32 %v13747_v1, %v13422_v22  ;;  %v14000_v1 = vld [vmem:[#allocation7 + $0x24] ss:$16 sps:$4 sm:$0xff]  }
 0xefa   :  { %vm6862_vm1 = vcmp.ne.f32.partialorder %v13751_v61, %v13751_v61  ;;  %v6865_v9 = vsub.f32 %v13751_v61, %v13422_v22 }
 0xefb   :  { %vm6863_vm2 = vmor %vm6116_vm10, %vm6862_vm1 }
 0xefc   :  { %vm6864_vm5 = vmxor %vm6863_vm2, %vm11435_vm3 }
 0xefd   :  { %v6866_v30 = vsel %vm6864_vm5, 1, %v14585_v45 }
 0xefe   :  { %6868 = vperm.xlu0 %10389, %v6866_v30  }
 0xf02   :  { %10392 = vset.pattern.permute.xlu0 %v14689_v24 }
 0xf7d   :  { %v13764_v17 = vpop.permute.xlu0 %6868 }
 0xf7e   :  { %vm6870_vm8 = vcmp.eq.s32.totalorder %v13764_v17, 1  ;;  %v11062_v17 = vld [vmem:[%s14450_s12] sm:$0xff]  }
 0xf7f   :  { %v6871_v36 = vsel %vm6870_vm8, %v6865_v9, 0.0 }
 0xf80   :  { %v6872_v21 = vmul.f32 4.0, %v6871_v36 }
 0xf82   :  { %6880 = vperm.xlu0 %10392, %v6872_v21   ;;  %6875 = vperm.xlu1 %10391, %v6872_v21  }
0x1001   :  { %v6881_v23 = vpop.permute.xlu0 %6880  ;;  %v6876_v60 = vpop.permute.xlu1 %6875 }
0x1002   :  { %v6883_v48 = vmul.f32 %v6881_v23, %v11691_v50  ;;  %v6878_v26 = vmul.f32 %v6876_v60, %v11694_v51 }
0x1004   :  { %v6884_v33 = vadd.f32 %v6883_v48, %v6878_v26 }
0x1006   :  { %v6885_v42 = vadd.f32 %v13546_v46, %v6884_v33 }
0x1008   :  { %v6886_v34 = vmax.f32 %v6885_v42, 0.0 }
0x100a   :  { %v6920_v54 = vpack.c.bf16 %v6886_v34, %v6886_v34 }
0x100c   :  { %7146 = vmatmul.mubr.bf16.vlgmr.msra.gmra.mrb[92].mxu0 %v6920_v54  ;;  %7187 = vmatmul.mubr.bf16.vlgmr.msra.gmra.mrb[92].mxu1 %v6920_v54 }
0x100d   :  { %7356 = vmatpush1.bf16.msra.mxu0 %v13549_v49  ;;  %7397 = vmatpush1.bf16.msra.mxu1 %v13551_v25  ;;  %v14713_v49 = vld [vmem:[#allocation32_spill] sm:$0xff]  ;;  %v14714_v25 = vld [vmem:[#allocation33_spill] sm:$0xff] }
0x100e   :  { %7357 = vmatprep.subr.bf16.mxu0 %v13553_v0  ;;  %7398 = vmatprep.subr.bf16.mxu1 %v13555_v44  ;;  %v14715_v0 = vld [vmem:[#allocation34_spill] sm:$0xff]  ;;  %v14716_v44 = vld [vmem:[#allocation35_spill] sm:$0xff] }
0x100f   :  { %7387 = vmatprep.mubr.bf16.mxu0 %v14585_v45  ;;  %7428 = vmatprep.mubr.bf16.mxu1 %v14585_v45 }
0x1011   :  { %7358 = vmatpush1.bf16.msra.mxu0 %v13559_v13  ;;  %7399 = vmatpush1.bf16.msra.mxu1 %v13561_v58  ;;  %v14718_v13 = vld [vmem:[#allocation37_spill] sm:$0xff]  ;;  %v14719_v58 = vld [vmem:[#allocation39_spill] sm:$0xff] }
0x1012   :  { %7359 = vmatprep.subr.bf16.mxu0 %v13565_v59  ;;  %7400 = vmatprep.subr.bf16.mxu1 %v13567_v27  ;;  %v14720_v59 = vld [vmem:[#allocation40_spill] sm:$0xff]  ;;  %v14721_v27 = vld [vmem:[#allocation41_spill] sm:$0xff] }
0x1015   :  { %7360 = vmatpush1.bf16.msra.mxu0 %v13573_v2  ;;  %7401 = vmatpush1.bf16.msra.mxu1 %v13575_v56  ;;  %v14722_v2 = vld [vmem:[#allocation43_spill] sm:$0xff]  ;;  %v14723_v56 = vld [vmem:[#allocation44_spill] sm:$0xff] }
0x1016   :  { %7361 = vmatprep.subr.bf16.mxu0 %v14713_v49  ;;  %7402 = vmatprep.subr.bf16.mxu1 %v14714_v25 }
0x1019   :  { %7362 = vmatpush1.bf16.msra.mxu0 %v14715_v0  ;;  %7403 = vmatpush1.bf16.msra.mxu1 %v14716_v44 }
0x101a   :  { %7363 = vmatprep.subr.bf16.mxu0 %v14717_v37  ;;  %7404 = vmatprep.subr.bf16.mxu1 %v14718_v13 }
0x101d   :  { %7364 = vmatpush1.bf16.msra.mxu0 %v14719_v58  ;;  %7405 = vmatpush1.bf16.msra.mxu1 %v14720_v59 }
0x101e   :  { %7365 = vmatprep.subr.bf16.mxu0 %v14721_v27  ;;  %7406 = vmatprep.subr.bf16.mxu1 %v14722_v2 }
0x1021   :  { %7366 = vmatpush1.bf16.msra.mxu0 %v14723_v56  ;;  %7407 = vmatpush1.bf16.msra.mxu1 %v13611_v3  ;;  %v14730_v3 = vld [vmem:[#allocation50_spill] sm:$0xff] }
0x1022   :  { %7367 = vmatprep.subr.bf16.mxu0 %v13615_v41  ;;  %7408 = vmatprep.subr.bf16.mxu1 %v14724_v6  ;;  %v6887_v41 = vpack.c.bf16 %v13808_v14, %v13808_v14 }
0x1025   :  { %7368 = vmatpush1.bf16.msra.mxu0 %v13621_v39  ;;  %7409 = vmatpush1.bf16.msra.mxu1 %v14725_v55  ;;  %v14731_v39 = vmov 0.0  }
0x1026   :  { %7369 = vmatprep.subr.bf16.mxu0 %v14726_v35  ;;  %7410 = vmatprep.subr.bf16.mxu1 %v14727_v47 }
0x1029   :  { %7370 = vmatpush1.bf16.msra.mxu0 %v14729_v8  ;;  %7411 = vmatpush1.bf16.msra.mxu1 %v14730_v3 }
0x102a   :  { %10303 = vmatprep.subr.bf16.mxu0 %v14731_v39 }
0x102c   :  { %7388 = vmatmul.mubr.bf16.vlgmr.msra.gmra.mrb[96].mxu0 %v6887_v41  ;;  %7429 = vmatmul.mubr.bf16.vlgmr.msra.gmra.mrb[96].mxu1 %v6887_v41 }
0x102d   :  { %10319 = vmatprep.mubr.msk.bf16.mxu0 %vm11438_vm14, %v14731_v39  ;;  %7870 = vmatprep.mubr.bf16.mxu1 %v14585_v45 }
0x102e   :  { %10304 = vmatpush3.bf16.msra.mxu0 %v10958_v19 }
0x102f   :  { %10305 = vmatprep.subr.bf16.mxu0 %v14731_v39 }
0x1032   :  { %10306 = vmatpush3.bf16.msra.mxu0 %v10959_v32 }
0x1033   :  { %10307 = vmatprep.subr.bf16.mxu0 %v14731_v39 }
0x1036   :  { %10308 = vmatpush3.bf16.msra.mxu0 %v10960_v63 }
0x1037   :  { %10309 = vmatprep.subr.bf16.mxu0 %v14731_v39 }
0x103a   :  { %10310 = vmatpush3.bf16.msra.mxu0 %v10961_v40 }
0x103b   :  { %10311 = vmatprep.subr.bf16.mxu0 %v14731_v39 }
0x103e   :  { %10312 = vmatpush3.bf16.msra.mxu0 %v10962_v29 }
0x103f   :  { %10313 = vmatprep.subr.bf16.mxu0 %v14731_v39 }
0x1042   :  { %10314 = vmatpush3.bf16.msra.mxu0 %v10963_v38 }
0x1043   :  { %10315 = vmatprep.subr.bf16.mxu0 %v14731_v39 }
0x1046   :  { %10316 = vmatpush3.bf16.msra.mxu0 %v10964_v11 }
0x1047   :  { %10317 = vmatprep.subr.bf16.mxu0 %v14731_v39 }
0x104a   :  { %10318 = vmatpush3.bf16.msra.mxu0 %v10965_v18 }
0x10df   :  { %v7147_v52 = vpop.f32.mrb[92].mxu0  ;;  %v7188_v20 = vpop.f32.mrb[92].mxu1 }
0x10e0   :  { %v7149_v53 = vpop.f32.mrb[93].mxu0  ;;  %v7190_v43 = vpop.f32.mrb[93].mxu1 }
0x10e1   :  { %v7151_v12 = vpop.f32.mrb[94].mxu0  ;;  %v7192_v15 = vpop.f32.mrb[94].mxu1 }
0x10e2   :  { %v7152_v57 = vpop.f32.mrb[95].mxu0  ;;  %v7193_v16 = vpop.f32.mrb[95].mxu1  ;;  %v13885_v12 = vld [vmem:[#allocation8 + $0x4] ss:$16 sps:$4 sm:$0xff]   ;;  %v13887_v15 = vld [vmem:[#allocation8 + $0x8] ss:$16 sps:$4 sm:$0xff]  }
0x10e3   :  { %v13889_v57 = vld [vmem:[#allocation8 + $0xc] ss:$16 sps:$4 sm:$0xff]   ;;  %v13891_v16 = vld [vmem:[#allocation8 + $0x24] ss:$16 sps:$4 sm:$0xff]   ;;  %7838 = vmatprep.subr.bf16.mxu1 %v13885_v12 }
0x10e4   :  { %7879 = vmatprep.subr.bf16.mxu0 %v13889_v57 }
0x10ff   :  { %v7389_v30 = vpop.f32.mrb[96].mxu0  ;;  %v7430_v9 = vpop.f32.mrb[96].mxu1 }
0x1100   :  { %v7390_v36 = vadd.f32 %v7389_v30, %v7147_v52  ;;  %v7431_v21 = vadd.f32 %v7430_v9, %v7188_v20  ;;  %v7391_v23 = vpop.f32.mrb[97].mxu0  ;;  %v7432_v60 = vpop.f32.mrb[97].mxu1  ;;  %v13894_v30 = vld [vmem:[#allocation8 + $0x2c] ss:$16 sps:$4 sm:$0xff]   ;;  %v13898_v9 = vld [vmem:[#allocation8 + $0x20] ss:$16 sps:$4 sm:$0xff]  }
0x1101   :  { %v7392_v48 = vadd.f32 %v7391_v23, %v7149_v53  ;;  %v7433_v26 = vadd.f32 %v7432_v60, %v7190_v43  ;;  %v7393_v33 = vpop.f32.mrb[98].mxu0  ;;  %v7434_v42 = vpop.f32.mrb[98].mxu1  ;;  %v13883_v43 = vld [vmem:[#allocation8] ss:$16 sps:$4 sm:$0xff]   ;;  %v13907_v23 = vld [vmem:[#allocation8 + $0x4c] ss:$16 sps:$4 sm:$0xff]  }
0x1102   :  { %v7437_v34 = vadd.f32 %v7390_v36, %v13700_v4  ;;  %v7394_v54 = vpop.f32.mrb[99].mxu0  ;;  %v7435_v49 = vpop.f32.mrb[99].mxu1  ;;  %v7439_v58 = vadd.f32 %v7431_v21, %v13714_v31  ;;  %7839 = vmatpush1.bf16.msra.mxu1 %v13883_v43  ;;  %v13902_v36 = vld [vmem:[#allocation8 + $0x28] ss:$16 sps:$4 sm:$0xff]   ;;  %v13904_v21 = vld [vmem:[#allocation8 + $0x44] ss:$16 sps:$4 sm:$0xff]  }
0x1103   :  { %v7438_v25 = vadd.f32 %v7392_v48, %v13703_v62  ;;  %v7440_v37 = vadd.f32 %v7433_v26, %v13709_v10  ;;  %7840 = vmatprep.subr.bf16.mxu1 %v13891_v16  ;;  %v13910_v60 = vld [vmem:[#allocation8 + $0x40] ss:$16 sps:$4 sm:$0xff]   ;;  %v13914_v48 = vld [vmem:[#allocation8 + $0x48] ss:$16 sps:$4 sm:$0xff]   ;;  %v13916_v26 = vld [vmem:[#allocation8 + $0x64] ss:$16 sps:$4 sm:$0xff]  }
0x1104   :  { %v9825_v0 = vmul.f32 -1.442695, %v7437_v34  ;;  %v13919_v33 = vld [vmem:[#allocation8 + $0x6c] ss:$16 sps:$4 sm:$0xff]   ;;  %v13922_v42 = vld [vmem:[#allocation8 + $0x60] ss:$16 sps:$4 sm:$0xff]  }
0x1105   :  { %v9826_v44 = vmul.f32 -1.442695, %v7438_v25  ;;  %v9827_v13 = vmul.f32 -1.442695, %v7440_v37  ;;  %v13926_v34 = vld [vmem:[#allocation8 + $0x68] ss:$16 sps:$4 sm:$0xff]  }
0x1106   :  { %11222 = vpow2.f32 %v9825_v0  ;;  %7841 = vmatpush1.bf16.msra.mxu1 %v13898_v9  ;;  %v13928_v54 = vld [vmem:[#allocation8 + $0x84] ss:$16 sps:$4 sm:$0xff]   ;;  %v13931_v49 = vld [vmem:[#allocation8 + $0x8c] ss:$16 sps:$4 sm:$0xff]   ;;  %v13934_v25 = vld [vmem:[#allocation8 + $0x80] ss:$16 sps:$4 sm:$0xff]  }
0x1107   :  { %11224 = vpow2.f32 %v9826_v44  ;;  %7842 = vmatprep.subr.bf16.mxu1 %v13904_v21  ;;  %v13938_v0 = vld [vmem:[#allocation8 + $0x88] ss:$16 sps:$4 sm:$0xff]   ;;  %v13940_v44 = vld [vmem:[#allocation8 + $0xa4] ss:$16 sps:$4 sm:$0xff]   ;;  %v13943_v37 = vld [vmem:[#allocation8 + $0xac] ss:$16 sps:$4 sm:$0xff]  }
0x1108   :  { %11226 = vpow2.f32 %v9827_v13  ;;  %v13946_v13 = vld [vmem:[#allocation8 + $0xa0] ss:$16 sps:$4 sm:$0xff]  }
0x1109   :  { %11228 = vtanh.f32 %v7439_v58  ;;  %v13950_v58 = vld [vmem:[#allocation8 + $0xa8] ss:$16 sps:$4 sm:$0xff]  }
0x110a   :  { %7843 = vmatpush1.bf16.msra.mxu1 %v13910_v60 }
0x110b   :  { %7844 = vmatprep.subr.bf16.mxu1 %v13916_v26 }
0x110e   :  { %7845 = vmatpush1.bf16.msra.mxu1 %v13922_v42 }
0x110f   :  { %7846 = vmatprep.subr.bf16.mxu1 %v13928_v54 }
0x1110   :  { %v11223_v59 = vpop.eup %11222 }
0x1111   :  { %v11225_v27 = vpop.eup %11224  ;;  %v7444_v2 = vadd.f32 1.0, %v11223_v59 }
0x1112   :  { %v7450_v56 = vadd.f32 1.0, %v11225_v27  ;;  %v11227_v6 = vpop.eup %11226  ;;  %7847 = vmatpush1.bf16.msra.mxu1 %v13934_v25 }
0x1113   :  { %11230 = vrcp.f32 %v7444_v2  ;;  %v11229_v55 = vpop.eup %11228  ;;  %v7457_v8 = vadd.f32 1.0, %v11227_v6  ;;  %7848 = vmatprep.subr.bf16.mxu1 %v13940_v44  ;;  %v13962_v6 = vld [vmem:[#allocation8 + $0xc4] ss:$16 sps:$4 sm:$0xff]  }
0x1114   :  { %11232 = vrcp.f32 %v7450_v56 }
0x1115   :  { %11234 = vrcp.f32 %v7457_v8  ;;  %v13976_v8 = vld [vmem:[#allocation8 + $0xec] ss:$16 sps:$4 sm:$0xff]  }
0x1116   :  { %7849 = vmatpush1.bf16.msra.mxu1 %v13946_v13 }
0x1117   :  { %7850 = vmatprep.subr.bf16.mxu1 %v13962_v6 }
0x111d   :  { %v11231_v35 = vpop.eup %11230 }
0x111e   :  { %v11233_v47 = vpop.eup %11232  ;;  %v7461_v5 = vmul.f32 %v11231_v35, %v11229_v55  ;;  %v13964_v55 = vld [vmem:[#allocation8 + $0xcc] ss:$16 sps:$4 sm:$0xff]   ;;  %v13966_v35 = vld [vmem:[#allocation8 + $0xc0] ss:$16 sps:$4 sm:$0xff]  }
0x111f   :  { %v7460_v3 = vmul.f32 %v11233_v47, %v13721_v28  ;;  %v11235_v32 = vpop.eup %11234  ;;  %v13968_v47 = vld [vmem:[#allocation8 + $0xc8] ss:$16 sps:$4 sm:$0xff]   ;;  %7851 = vmatpush1.bf16.msra.mxu1 %v13966_v35 }
0x1121   :  { %v7462_v41 = vadd.f32 %v7461_v5, %v7460_v3  ;;  %v13974_v5 = vld [vmem:[#allocation8 + $0xe4] ss:$16 sps:$4 sm:$0xff]   ;;  %v13979_v3 = vld [vmem:[#allocation8 + $0xe0] ss:$16 sps:$4 sm:$0xff]  }
0x1122   :  { %7852 = vmatprep.subr.bf16.mxu1 %v13974_v5 }
0x1123   :  { %11236 = vtanh.f32 %v7462_v41  ;;  %v13857_v19 = vsel %vm6870_vm8, %v7462_v41, %v13721_v28  ;;  %v13981_v41 = vld [vmem:[#allocation8 + $0xe8] ss:$16 sps:$4 sm:$0xff]   ;;  %7853 = vmatpush1.bf16.msra.mxu1 %v13979_v3 }
0x112d   :  { %v11237_v63 = vpop.eup %11236 }
0x112e   :  { %v13859_v40 = vmul.f32 %v11237_v63, %v11235_v32  ;;  %v13987_v32 = vld [vmem:[#allocation7 + $0x4] ss:$16 sps:$4 sm:$0xff]   ;;  %v13989_v63 = vld [vmem:[#allocation7 + $0xc] ss:$16 sps:$4 sm:$0xff]  }
0x112f   :  { %8080 = vmatprep.subr.bf16.mxu1 %v13987_v32 }
0x1130   :  { %v7465_v29 = vpack.c.bf16 %v13859_v40, %v13859_v40 }
0x1132   :  { %10320 = vmatmul.mubr.bf16.vlgmr.msra.gmra.mrb[100].mxu0 %v7465_v29 }
0x1133   :  { %7911 = vmatprep.mubr.bf16.mxu0 %v14585_v45  ;;  %7880 = vmatpush1.bf16.msra.mxu0 %v13887_v15 }
0x1134   :  { %7881 = vmatprep.subr.bf16.mxu0 %v13894_v30 }
0x1137   :  { %7882 = vmatpush1.bf16.msra.mxu0 %v13902_v36 }
0x1138   :  { %7883 = vmatprep.subr.bf16.mxu0 %v13907_v23 }
0x113b   :  { %7884 = vmatpush1.bf16.msra.mxu0 %v13914_v48 }
0x113c   :  { %7885 = vmatprep.subr.bf16.mxu0 %v13919_v33 }
0x113f   :  { %7886 = vmatpush1.bf16.msra.mxu0 %v13926_v34 }
0x1140   :  { %7887 = vmatprep.subr.bf16.mxu0 %v13931_v49 }
0x1143   :  { %7888 = vmatpush1.bf16.msra.mxu0 %v13938_v0 }
0x1144   :  { %7889 = vmatprep.subr.bf16.mxu0 %v13943_v37 }
0x1147   :  { %7890 = vmatpush1.bf16.msra.mxu0 %v13950_v58 }
0x1148   :  { %7891 = vmatprep.subr.bf16.mxu0 %v13964_v55 }
0x114b   :  { %7892 = vmatpush1.bf16.msra.mxu0 %v13968_v47 }
0x114c   :  { %7893 = vmatprep.subr.bf16.mxu0 %v13976_v8 }
0x114f   :  { %7894 = vmatpush1.bf16.msra.mxu0 %v13981_v41 }
0x1150   :  { %8121 = vmatprep.subr.bf16.mxu0 %v13989_v63 }
0x1205   :  { %v7564_v38 = vpop.f32.mrb[100].mxu0 }
0x1206   :  { %v7565_v11 = vadd.f32 %v13395_v7, %v7564_v38  ;;  %v10321_v18 = vpop.f32.mrb[101].mxu0 }
0x1207   :  { %v7567_v52 = vpop.f32.mrb[102].mxu0 }
0x1208   :  { %v13867_v20 = vsel %vm6870_vm8, %v7565_v11, nan  ;;  %v10322_v28 = vpop.f32.mrb[103].mxu0 }
0x1209   :  { %14732 = vst [vmem:[#allocation17_spill] sm:$0xff] %v13867_v20  ;;  %v13871_v53 = vadd.f32 %v13867_v20, %v13751_v61  ;;  %v14002_v20 = vld [vmem:[#allocation7 + $0x2c] ss:$16 sps:$4 sm:$0xff]  }
0x120b   :  { %vm7587_vm10 = vcmp.ne.f32.partialorder %v13871_v53, %v13871_v53  ;;  %v7590_v27 = vsub.f32 %v13871_v53, %v13751_v61 }
0x120c   :  { %vm7588_vm12 = vmor %vm6862_vm1, %vm7587_vm10 }
0x120d   :  { %vm7589_vm15 = vmxor %vm7588_vm12, %vm11435_vm3 }
0x120e   :  { %v7591_v7 = vsel %vm7589_vm15, 1, %v14585_v45 }
0x120f   :  { %7593 = vperm.xlu1 %10391, %v7591_v7  }
0x128e   :  { %v13955_v59 = vpop.permute.xlu1 %7593 }
0x128f   :  { %vm7595_vm0 = vcmp.eq.s32.totalorder %v13955_v59, 1 }
0x1290   :  { %v7596_v2 = vsel %vm7595_vm0, %v7590_v27, 0.0  ;;  %v13996_v27 = vld [vmem:[#allocation7] ss:$16 sps:$4 sm:$0xff]  }
0x1291   :  { %v7597_v56 = vmul.f32 4.0, %v7596_v2  ;;  %v13998_v2 = vld [vmem:[#allocation7 + $0x8] ss:$16 sps:$4 sm:$0xff]  }
0x1293   :  { %7605 = vperm.xlu0 %10392, %v7597_v56   ;;  %7600 = vperm.xlu1 %10391, %v7597_v56  }
0x1297   :  { %10393 = vset.pattern.permute.xlu0 %v14585_v45 }
0x1312   :  { %v7606_v29 = vpop.permute.xlu0 %7605  ;;  %v7601_v38 = vpop.permute.xlu1 %7600 }
0x1313   :  { %v7608_v11 = vmul.f32 %v7606_v29, %v11691_v50  ;;  %v7603_v18 = vmul.f32 %v7601_v38, %v11694_v51  ;;  %v14006_v29 = vld [vmem:[#allocation7 + $0x20] ss:$16 sps:$4 sm:$0xff]   ;;  %v14008_v38 = vld [vmem:[#allocation7 + $0x28] ss:$16 sps:$4 sm:$0xff]  }
0x1314   :  { %14733 = vst [vmem:[#allocation16_spill] sm:$0xff] %v14006_v29  ;;  %14734 = vst [vmem:[#allocation32_spill] sm:$0xff] %v14008_v38 }
0x1315   :  { %v7609_v52 = vadd.f32 %v7608_v11, %v7603_v18  ;;  %v14014_v11 = vld [vmem:[#allocation7 + $0x4c] ss:$16 sps:$4 sm:$0xff]   ;;  %v14020_v18 = vld [vmem:[#allocation7 + $0x40] ss:$16 sps:$4 sm:$0xff]  }
0x1316   :  { %14736 = vst [vmem:[#allocation34_spill] sm:$0xff] %v14014_v11  ;;  %14737 = vst [vmem:[#allocation35_spill] sm:$0xff] %v14020_v18 }
0x1317   :  { %v7610_v28 = vadd.f32 %v13546_v46, %v7609_v52  ;;  %v14012_v46 = vld [vmem:[#allocation7 + $0x44] ss:$16 sps:$4 sm:$0xff]   ;;  %v14022_v52 = vld [vmem:[#allocation7 + $0x48] ss:$16 sps:$4 sm:$0xff]  }
0x1318   :  { %14735 = vst [vmem:[#allocation33_spill] sm:$0xff] %v14012_v46  ;;  %14738 = vst [vmem:[#allocation36_spill] sm:$0xff] %v14022_v52 }
0x1319   :  { %v7611_v7 = vmax.f32 %v7610_v28, 0.0  ;;  %v14026_v28 = vld [vmem:[#allocation7 + $0x64] ss:$16 sps:$4 sm:$0xff]  }
0x131a   :  { %14739 = vst [vmem:[#allocation37_spill] sm:$0xff] %v14026_v28 }
0x131b   :  { %v7645_v56 = vpack.c.bf16 %v7611_v7, %v7611_v7  ;;  %v14028_v7 = vld [vmem:[#allocation7 + $0x6c] ss:$16 sps:$4 sm:$0xff]  }
0x131c   :  { %14740 = vst [vmem:[#allocation39_spill] sm:$0xff] %v14028_v7 }
0x131d   :  { %7871 = vmatmul.mubr.bf16.vlgmr.msra.gmra.mrb[100].mxu1 %v7645_v56  ;;  %7912 = vmatmul.mubr.bf16.vlgmr.msra.gmra.mrb[104].mxu0 %v7645_v56  ;;  %v14032_v56 = vld [vmem:[#allocation7 + $0x60] ss:$16 sps:$4 sm:$0xff]  }
0x131e   :  { %8081 = vmatpush1.bf16.msra.mxu1 %v13996_v27  ;;  %8122 = vmatpush1.bf16.msra.mxu0 %v13998_v2  ;;  %14741 = vst [vmem:[#allocation40_spill] sm:$0xff] %v14032_v56 }
0x131f   :  { %8082 = vmatprep.subr.bf16.mxu1 %v14000_v1  ;;  %8123 = vmatprep.subr.bf16.mxu0 %v14002_v20 }
0x1320   :  { %8112 = vmatprep.mubr.bf16.mxu1 %v14585_v45  ;;  %8153 = vmatprep.mubr.bf16.mxu0 %v14585_v45 }
0x1322   :  { %8083 = vmatpush1.bf16.msra.mxu1 %v14006_v29  ;;  %8124 = vmatpush1.bf16.msra.mxu0 %v14008_v38  ;;  %v14034_v29 = vld [vmem:[#allocation7 + $0x68] ss:$16 sps:$4 sm:$0xff]   ;;  %v14038_v38 = vld [vmem:[#allocation7 + $0x84] ss:$16 sps:$4 sm:$0xff]  }
0x1323   :  { %8084 = vmatprep.subr.bf16.mxu1 %v14012_v46  ;;  %8125 = vmatprep.subr.bf16.mxu0 %v14014_v11  ;;  %14742 = vst [vmem:[#allocation41_spill] sm:$0xff] %v14034_v29  ;;  %14743 = vst [vmem:[#allocation43_spill] sm:$0xff] %v14038_v38  ;;  %v14040_v46 = vld [vmem:[#allocation7 + $0x8c] ss:$16 sps:$4 sm:$0xff]   ;;  %v14044_v11 = vld [vmem:[#allocation7 + $0x80] ss:$16 sps:$4 sm:$0xff]  }
0x1324   :  { %14744 = vst [vmem:[#allocation44_spill] sm:$0xff] %v14040_v46  ;;  %14745 = vst [vmem:[#allocation27_spill] sm:$0xff] %v14044_v11 }
0x1326   :  { %8085 = vmatpush1.bf16.msra.mxu1 %v14020_v18  ;;  %8126 = vmatpush1.bf16.msra.mxu0 %v14022_v52  ;;  %v14046_v18 = vld [vmem:[#allocation7 + $0x88] ss:$16 sps:$4 sm:$0xff]   ;;  %v14050_v52 = vld [vmem:[#allocation7 + $0xa4] ss:$16 sps:$4 sm:$0xff]  }
0x1327   :  { %8086 = vmatprep.subr.bf16.mxu1 %v14026_v28  ;;  %8127 = vmatprep.subr.bf16.mxu0 %v14028_v7  ;;  %14746 = vst [vmem:[#allocation46_spill] sm:$0xff] %v14046_v18  ;;  %14747 = vst [vmem:[#allocation47_spill] sm:$0xff] %v14050_v52  ;;  %v14052_v28 = vld [vmem:[#allocation7 + $0xac] ss:$16 sps:$4 sm:$0xff]   ;;  %v14056_v7 = vld [vmem:[#allocation7 + $0xa0] ss:$16 sps:$4 sm:$0xff]  }
0x1328   :  { %14748 = vst [vmem:[#allocation48_spill] sm:$0xff] %v14052_v28  ;;  %14749 = vst [vmem:[#allocation25_spill] sm:$0xff] %v14056_v7 }
0x132a   :  { %8087 = vmatpush1.bf16.msra.mxu1 %v14032_v56  ;;  %8128 = vmatpush1.bf16.msra.mxu0 %v14034_v29  ;;  %v14058_v56 = vld [vmem:[#allocation7 + $0xa8] ss:$16 sps:$4 sm:$0xff]   ;;  %v14062_v29 = vld [vmem:[#allocation7 + $0xc4] ss:$16 sps:$4 sm:$0xff]  }
0x132b   :  { %8088 = vmatprep.subr.bf16.mxu1 %v14038_v38  ;;  %8129 = vmatprep.subr.bf16.mxu0 %v14040_v46  ;;  %v14064_v38 = vld [vmem:[#allocation7 + $0xcc] ss:$16 sps:$4 sm:$0xff]   ;;  %v14068_v46 = vld [vmem:[#allocation7 + $0xc0] ss:$16 sps:$4 sm:$0xff]  }
0x132c   :  { %14750 = vst [vmem:[#allocation49_spill] sm:$0xff] %v14064_v38 }
0x132e   :  { %8089 = vmatpush1.bf16.msra.mxu1 %v14044_v11  ;;  %8130 = vmatpush1.bf16.msra.mxu0 %v14046_v18  ;;  %v14070_v11 = vld [vmem:[#allocation7 + $0xc8] ss:$16 sps:$4 sm:$0xff]   ;;  %v14074_v18 = vld [vmem:[#allocation7 + $0xe4] ss:$16 sps:$4 sm:$0xff]  }
0x132f   :  { %8090 = vmatprep.subr.bf16.mxu1 %v14050_v52  ;;  %8131 = vmatprep.subr.bf16.mxu0 %v14052_v28  ;;  %14751 = vst [vmem:[#allocation50_spill] sm:$0xff] %v14070_v11  ;;  %v14076_v52 = vld [vmem:[#allocation7 + $0xec] ss:$16 sps:$4 sm:$0xff]   ;;  %v14080_v28 = vld [vmem:[#allocation7 + $0xe0] ss:$16 sps:$4 sm:$0xff]  }
0x1332   :  { %8091 = vmatpush1.bf16.msra.mxu1 %v14056_v7  ;;  %8132 = vmatpush1.bf16.msra.mxu0 %v14058_v56  ;;  %v14082_v7 = vld [vmem:[#allocation7 + $0xe8] ss:$16 sps:$4 sm:$0xff]  }
0x1333   :  { %8092 = vmatprep.subr.bf16.mxu1 %v14062_v29  ;;  %8133 = vmatprep.subr.bf16.mxu0 %v14064_v38  ;;  %v14090_v38 = vsel %vm6870_vm8, %v13859_v40, %v13808_v14  ;;  %v11063_v14 = vld [vmem:[%s14450_s12 + $0x8] sm:$0xff]   ;;  %v11064_v40 = vld [vmem:[%s14450_s12 + $0x10] sm:$0xff]  }
0x1336   :  { %8093 = vmatpush1.bf16.msra.mxu1 %v14068_v46  ;;  %8134 = vmatpush1.bf16.msra.mxu0 %v14070_v11  ;;  %v7612_v11 = vpack.c.bf16 %v14090_v38, %v14090_v38 }
0x1337   :  { %8094 = vmatprep.subr.bf16.mxu1 %v14074_v18  ;;  %8135 = vmatprep.subr.bf16.mxu0 %v14076_v52 }
0x133a   :  { %8095 = vmatpush1.bf16.msra.mxu1 %v14080_v28  ;;  %8136 = vmatpush1.bf16.msra.mxu0 %v14082_v7 }
0x133b   :  { %10323 = vmatprep.subr.bf16.mxu1 %v14731_v39  ;;  %8563 = vmatprep.subr.bf16.mxu0 %v13885_v12  ;;  %v11066_v12 = vld [vmem:[%s14450_s12 + $0x20] sm:$0xff]  }
0x133d   :  { %8113 = vmatmul.mubr.bf16.vlgmr.msra.gmra.mrb[104].mxu1 %v7612_v11  ;;  %8154 = vmatmul.mubr.bf16.vlgmr.msra.gmra.mrb[108].mxu0 %v7612_v11 }
0x133e   :  { %10339 = vmatprep.mubr.msk.bf16.mxu1 %vm11438_vm14, %v14731_v39  ;;  %8564 = vmatpush1.bf16.msra.mxu0 %v13883_v43  ;;  %v11065_v43 = vld [vmem:[%s14450_s12 + $0x18] sm:$0xff]  }
0x133f   :  { %8565 = vmatprep.subr.bf16.mxu0 %v13891_v16  ;;  %8595 = vmatprep.mubr.bf16.mxu0 %v14585_v45  ;;  %v11067_v16 = vld [vmem:[%s14450_s12 + $0x28] sm:$0xff]  }
0x1340   :  { %10324 = vmatpush3.bf16.msra.mxu1 %v11062_v17 }
0x1341   :  { %10325 = vmatprep.subr.bf16.mxu1 %v14731_v39 }
0x1342   :  { %8566 = vmatpush1.bf16.msra.mxu0 %v13898_v9  ;;  %v11068_v9 = vld [vmem:[%s14450_s12 + $0x30] sm:$0xff]  }
0x1343   :  { %8567 = vmatprep.subr.bf16.mxu0 %v13904_v21  ;;  %v11069_v21 = vld [vmem:[%s14450_s12 + $0x38] sm:$0xff]  }
0x1344   :  { %10326 = vmatpush3.bf16.msra.mxu1 %v11063_v14 }
0x1345   :  { %10327 = vmatprep.subr.bf16.mxu1 %v14731_v39 }
0x1346   :  { %8568 = vmatpush1.bf16.msra.mxu0 %v13910_v60 }
0x1347   :  { %8569 = vmatprep.subr.bf16.mxu0 %v13916_v26 }
0x1348   :  { %10328 = vmatpush3.bf16.msra.mxu1 %v11064_v40 }
0x1349   :  { %10329 = vmatprep.subr.bf16.mxu1 %v14731_v39 }
0x134a   :  { %8570 = vmatpush1.bf16.msra.mxu0 %v13922_v42 }
0x134b   :  { %8571 = vmatprep.subr.bf16.mxu0 %v13928_v54 }
0x134c   :  { %10330 = vmatpush3.bf16.msra.mxu1 %v11065_v43 }
0x134d   :  { %10331 = vmatprep.subr.bf16.mxu1 %v14731_v39 }
0x134e   :  { %8572 = vmatpush1.bf16.msra.mxu0 %v13934_v25 }
0x134f   :  { %8573 = vmatprep.subr.bf16.mxu0 %v13940_v44 }
0x1350   :  { %10332 = vmatpush3.bf16.msra.mxu1 %v11066_v12 }
0x1351   :  { %10333 = vmatprep.subr.bf16.mxu1 %v14731_v39 }
0x1352   :  { %8574 = vmatpush1.bf16.msra.mxu0 %v13946_v13 }
0x1353   :  { %8575 = vmatprep.subr.bf16.mxu0 %v13962_v6 }
0x1354   :  { %10334 = vmatpush3.bf16.msra.mxu1 %v11067_v16 }
0x1355   :  { %10335 = vmatprep.subr.bf16.mxu1 %v14731_v39 }
0x1356   :  { %8576 = vmatpush1.bf16.msra.mxu0 %v13966_v35 }
0x1357   :  { %8577 = vmatprep.subr.bf16.mxu0 %v13974_v5 }
0x1358   :  { %10336 = vmatpush3.bf16.msra.mxu1 %v11068_v9 }
0x1359   :  { %10337 = vmatprep.subr.bf16.mxu1 %v14731_v39 }
0x135a   :  { %8578 = vmatpush1.bf16.msra.mxu0 %v13979_v3 }
0x135b   :  { %8805 = vmatprep.subr.bf16.mxu0 %v13987_v32 }
0x135c   :  { %10338 = vmatpush3.bf16.msra.mxu1 %v11069_v21 }
0x135d   :  { %8604 = vmatprep.subr.bf16.mxu1 %v13889_v57 }
0x13f0   :  { %v7872_v60 = vpop.f32.mrb[100].mxu1  ;;  %v7913_v26 = vpop.f32.mrb[104].mxu0 }
0x13f1   :  { %v7874_v42 = vpop.f32.mrb[101].mxu1  ;;  %v7915_v54 = vpop.f32.mrb[105].mxu0 }
0x13f2   :  { %v7876_v25 = vpop.f32.mrb[102].mxu1  ;;  %v7917_v44 = vpop.f32.mrb[106].mxu0 }
0x13f3   :  { %v7877_v13 = vpop.f32.mrb[103].mxu1  ;;  %v7918_v6 = vpop.f32.mrb[107].mxu0 }
0x1410   :  { %v8114_v35 = vpop.f32.mrb[104].mxu1  ;;  %v8155_v5 = vpop.f32.mrb[108].mxu0 }
0x1411   :  { %v8115_v3 = vadd.f32 %v8114_v35, %v7872_v60  ;;  %v8156_v32 = vadd.f32 %v8155_v5, %v7913_v26  ;;  %v8116_v11 = vpop.f32.mrb[105].mxu1  ;;  %v8157_v17 = vpop.f32.mrb[109].mxu0 }
0x1412   :  { %v8117_v14 = vadd.f32 %v8116_v11, %v7874_v42  ;;  %v8158_v40 = vadd.f32 %v8157_v17, %v7915_v54  ;;  %v8118_v43 = vpop.f32.mrb[106].mxu1  ;;  %v8159_v12 = vpop.f32.mrb[110].mxu0 }
0x1413   :  { %v8162_v57 = vadd.f32 %v8115_v3, %v13700_v4  ;;  %v8119_v16 = vpop.f32.mrb[107].mxu1  ;;  %v8160_v9 = vpop.f32.mrb[111].mxu0  ;;  %v8164_v26 = vadd.f32 %v8156_v32, %v13714_v31 }
0x1414   :  { %v8163_v21 = vadd.f32 %v8117_v14, %v13703_v62  ;;  %v8165_v13 = vadd.f32 %v8158_v40, %v13709_v10 }
0x1415   :  { %v9900_v25 = vmul.f32 -1.442695, %v8162_v57 }
0x1416   :  { %v9901_v44 = vmul.f32 -1.442695, %v8163_v21  ;;  %v9902_v60 = vmul.f32 -1.442695, %v8165_v13  ;;  %v11303_v13 = vld [vmem:[%s14573_s6 + $0x8] sm:$0xff] }
0x1417   :  { %11238 = vpow2.f32 %v9900_v25  ;;  %v14754_v25 = vld [vmem:[#allocation38_spill] sm:$0xff] }
0x1418   :  { %11240 = vpow2.f32 %v9901_v44 }
0x1419   :  { %11242 = vpow2.f32 %v9902_v60 }
0x141a   :  { %11244 = vtanh.f32 %v8164_v26 }
0x1421   :  { %v11239_v6 = vpop.eup %11238 }
0x1422   :  { %v11241_v42 = vpop.eup %11240  ;;  %v8169_v54 = vadd.f32 1.0, %v11239_v6 }
0x1423   :  { %v8175_v35 = vadd.f32 1.0, %v11241_v42  ;;  %v11243_v5 = vpop.eup %11242  ;;  %v14756_v42 = vld [vmem:[#allocation26_spill] sm:$0xff] }
0x1424   :  { %11246 = vrcp.f32 %v8169_v54  ;;  %v11245_v3 = vpop.eup %11244  ;;  %v8182_v43 = vadd.f32 1.0, %v11243_v5 }
0x1425   :  { %11248 = vrcp.f32 %v8175_v35  ;;  %v11304_v35 = vld [vmem:[%s14573_s6 + $0x10] sm:$0xff] }
0x1426   :  { %11250 = vrcp.f32 %v8182_v43  ;;  %v14759_v43 = vld [vmem:[#allocation28_spill] sm:$0xff] }
0x142e   :  { %v11247_v11 = vpop.eup %11246 }
0x142f   :  { %v11249_v17 = vpop.eup %11248  ;;  %v8186_v14 = vmul.f32 %v11247_v11, %v11245_v3 }
0x1430   :  { %v8185_v12 = vmul.f32 %v11249_v17, %v13857_v19  ;;  %v11251_v57 = vpop.eup %11250  ;;  %v14758_v17 = vld [vmem:[#allocation42_spill] sm:$0xff] }
0x1432   :  { %v8187_v40 = vadd.f32 %v8186_v14, %v8185_v12 }
0x1434   :  { %11252 = vtanh.f32 %v8187_v40  ;;  %v14157_v32 = vsel %vm7595_vm0, %v8187_v40, %v13857_v19  ;;  %v11305_v40 = vld [vmem:[%s14573_s6 + $0x18] sm:$0xff] }
0x143e   :  { %v11253_v16 = vpop.eup %11252 }
0x143f   :  { %v14159_v9 = vmul.f32 %v11253_v16, %v11251_v57 }
0x1441   :  { %v8190_v21 = vpack.c.bf16 %v14159_v9, %v14159_v9 }
0x1443   :  { %10340 = vmatmul.mubr.bf16.vlgmr.msra.gmra.mrb[108].mxu1 %v8190_v21 }
0x1444   :  { %8605 = vmatpush1.bf16.msra.mxu1 %v13887_v15  ;;  %8636 = vmatprep.mubr.bf16.mxu1 %v14585_v45  ;;  %v14183_v15 = vld [vmem:[%s14451_s13] ss:$0 sm:$0xff] }
0x1445   :  { %8606 = vmatprep.subr.bf16.mxu1 %v13894_v30  ;;  %v1595_v44 = vadd.f32 %v14183_v15, %v14754_v25  ;;  %v2324_v54 = vadd.f32 %v14183_v15, %v14756_v42  ;;  %v3053_v14 = vadd.f32 %v14183_v15, %v14758_v17  ;;  %v3782_v12 = vadd.f32 %v14183_v15, %v14759_v43  ;;  %v14764_v25 = vld [vmem:[#allocation30_spill] sm:$0xff] }
0x1447   :  { %v14220_v6 = vsel %vm900_vm11, %v1595_v44, nan  ;;  %v14230_v11 = vsel %vm1629_vm13, %v2324_v54, nan  ;;  %v14242_v21 = vsel %vm2358_vm6, %v3053_v14, nan  ;;  %v14765_v44 = vlaneseq }
0x1448   :  { %8607 = vmatpush1.bf16.msra.mxu1 %v13902_v36  ;;  %v1603_v5 = vadd.f32 %v11304_v35, %v14220_v6  ;;  %v2332_v57 = vadd.f32 %v11305_v40, %v14230_v11 }
0x1449   :  { %8608 = vmatprep.subr.bf16.mxu1 %v13907_v23 }
0x144c   :  { %8609 = vmatpush1.bf16.msra.mxu1 %v13914_v48 }
0x144d   :  { %8610 = vmatprep.subr.bf16.mxu1 %v13919_v33 }
0x1450   :  { %8611 = vmatpush1.bf16.msra.mxu1 %v13926_v34 }
0x1451   :  { %8612 = vmatprep.subr.bf16.mxu1 %v13931_v49 }
0x1454   :  { %8613 = vmatpush1.bf16.msra.mxu1 %v13938_v0  ;;  %v14752_v0 = vld [vmem:[#allocation23_spill] sm:$0xff] }
0x1455   :  { %8614 = vmatprep.subr.bf16.mxu1 %v13943_v37  ;;  %v863_v37 = vadd.f32 %v14183_v15, %v14752_v0  ;;  %v11307_v0 = vld [vmem:[%s14573_s6 + $0x28] sm:$0xff] }
0x1458   :  { %8615 = vmatpush1.bf16.msra.mxu1 %v13950_v58 }
0x1459   :  { %8616 = vmatprep.subr.bf16.mxu1 %v13964_v55 }
0x145c   :  { %8617 = vmatpush1.bf16.msra.mxu1 %v13968_v47 }
0x145d   :  { %8618 = vmatprep.subr.bf16.mxu1 %v13976_v8 }
0x1460   :  { %8619 = vmatpush1.bf16.msra.mxu1 %v13981_v41 }
0x1461   :  { %8846 = vmatprep.subr.bf16.mxu1 %v13989_v63  ;;  %v868_v63 = vsel %vm128_vm7, %v863_v37, nan }
0x1462   :  { %v871_v60 = vadd.f32 %v11303_v13, %v868_v63  ;;  %v14279_v13 = vand.u32 127, %v14765_v44  ;;  %v14777_v44 = vld [vmem:[#allocation44_spill] sm:$0xff] }
0x1464   :  { %vm874_vm7 = vcmp.eq.s32.totalorder %v14279_v13, 5 }
0x1516   :  { %v8289_v19 = vpop.f32.mrb[108].mxu1 }
0x1517   :  { %v8290_v30 = vadd.f32 %v14183_v15, %v8289_v19  ;;  %v10341_v36 = vpop.f32.mrb[109].mxu1 }
0x1518   :  { %v8292_v23 = vpop.f32.mrb[110].mxu1  ;;  %v14762_v36 = vld [vmem:[#allocation45_spill] sm:$0xff] }
0x1519   :  { %v14188_v48 = vsel %vm7595_vm0, %v8290_v30, nan  ;;  %v10342_v33 = vpop.f32.mrb[111].mxu1  ;;  %v14246_v30 = vsel %vm3087_vm9, %v3782_v12, nan  ;;  %v4511_v23 = vadd.f32 %v14183_v15, %v14762_v36  ;;  %v14768_v36 = vld [vmem:[#allocation33_spill] sm:$0xff] }
0x151a   :  { %v14192_v34 = vadd.f32 %v14188_v48, %v13871_v53  ;;  %v11306_v33 = vld [vmem:[%s14573_s6 + $0x20] sm:$0xff]  ;;  %v3790_v37 = vadd.f32 %v11307_v0, %v14246_v30 }
0x151b   :  { %v14773_v0 = vld [vmem:[#allocation39_spill] sm:$0xff] }
0x151c   :  { %vm8312_vm1 = vcmp.ne.f32.partialorder %v14192_v34, %v14192_v34  ;;  %v8315_v58 = vsub.f32 %v14192_v34, %v13871_v53 }
0x151d   :  { %vm8313_vm2 = vmor %vm7587_vm10, %vm8312_vm1 }
0x151e   :  { %vm8314_vm5 = vmxor %vm8313_vm2, %vm11435_vm3  ;;  %vm875_vm3 = vcmp.eq.s32.totalorder %v14279_v13, 6 }
0x151f   :  { %v8316_v49 = vsel %vm8314_vm5, 1, %v14585_v45 }
0x1520   :  { %8318 = vperm.xlu1 %10391, %v8316_v49   ;;  %v3061_v49 = vadd.f32 %v11306_v33, %v14242_v21 }
0x1524   :  { %10394 = vset.pattern.permute.xlu1 %v14689_v24 }
0x159f   :  { %v14206_v55 = vpop.permute.xlu1 %8318 }
0x15a0   :  { %vm8320_vm8 = vcmp.eq.s32.totalorder %v14206_v55, 1 }
0x15a1   :  { %v8321_v47 = vsel %vm8320_vm8, %v8315_v58, 0.0  ;;  %v14775_v58 = vld [vmem:[#allocation41_spill] sm:$0xff] }
0x15a2   :  { %v8322_v8 = vmul.f32 4.0, %v8321_v47  ;;  %v14260_v47 = vsel %vm3816_vm4, %v4511_v23, nan }
0x15a4   :  { %8330 = vperm.xlu1 %10394, %v8322_v8   ;;  %8325 = vperm.xlu0 %10393, %v8322_v8   ;;  %v11308_v8 = vld [vmem:[%s14573_s6 + $0x30] sm:$0xff] }
0x15a5   :  { %v4519_v41 = vadd.f32 %v11308_v8, %v14260_v47 }
0x15a8   :  { %878 = vperm.xlu1 %10394, %v871_v60   ;;  %883 = vperm.xlu0 %10393, %v871_v60  }
0x15ac   :  { %1606 = vperm.xlu1 %10394, %v1603_v5   ;;  %1611 = vperm.xlu0 %10393, %v1603_v5  }
0x15b0   :  { %2335 = vperm.xlu1 %10394, %v2332_v57   ;;  %2340 = vperm.xlu0 %10393, %v2332_v57  }
0x15b4   :  { %3064 = vperm.xlu1 %10394, %v3061_v49   ;;  %3798 = vperm.xlu0 %10393, %v3790_v37  }
0x15b8   :  { %4522 = vperm.xlu1 %10394, %v4519_v41   ;;  %5985 = vperm.xlu0 %10393, %v13422_v22  }
0x15bc   :  { %5251 = vperm.xlu1 %10394, %v14764_v25   ;;  %7581 = vperm.xlu0 %10393, %v13871_v53  }
0x15c0   :  { %6851 = vperm.xlu1 %10394, %v13751_v61   ;;  %10396 = vset.pattern.permute.xlu0 %v14689_v24 }
0x15c1   :  { %3793 = vperm.xlu0 %10396, %v3790_v37   ;;  %v14774_v37 = vld [vmem:[#allocation40_spill] sm:$0xff] }
0x15c4   :  { %8301 = vperm.xlu1 %10394, %v14192_v34  }
0x15c5   :  { %5980 = vperm.xlu0 %10396, %v13422_v22  }
0x15c8   :  { %10395 = vset.pattern.permute.xlu1 %v14585_v45 }
0x15c9   :  { %3069 = vperm.xlu1 %10395, %v3061_v49   ;;  %7576 = vperm.xlu0 %10396, %v13871_v53   ;;  %v14772_v49 = vld [vmem:[#allocation37_spill] sm:$0xff] }
0x15cd   :  { %4527 = vperm.xlu1 %10395, %v4519_v41  }
0x15d1   :  { %5256 = vperm.xlu1 %10395, %v14764_v25   ;;  %v14776_v25 = vld [vmem:[#allocation43_spill] sm:$0xff] }
0x15d5   :  { %6856 = vperm.xlu1 %10395, %v13751_v61   ;;  %v11309_v61 = vld [vmem:[%s14443_s5] ss:$0 sm:$0xff] }
0x15d9   :  { %8306 = vperm.xlu1 %10395, %v14192_v34  }
0x1623   :  { %v8331_v24 = vpop.permute.xlu1 %8330  ;;  %v8326_v60 = vpop.permute.xlu0 %8325 }
0x1624   :  { %v8333_v26 = vmul.f32 %v8331_v24, %v11691_v50  ;;  %v8328_v22 = vmul.f32 %v8326_v60, %v11694_v51  ;;  %v14778_v24 = vld [vmem:[#allocation27_spill] sm:$0xff]  ;;  %v14779_v60 = vld [vmem:[#allocation46_spill] sm:$0xff] }
0x1626   :  { %v8334_v42 = vadd.f32 %v8333_v26, %v8328_v22 }
0x1627   :  { %v879_v53 = vpop.permute.xlu1 %878  ;;  %v884_v54 = vpop.permute.xlu0 %883 }
0x1628   :  { %v8335_v35 = vadd.f32 %v11309_v61, %v8334_v42  ;;  %v881_v5 = vsel %vm875_vm3, %v879_v53, %v868_v63  ;;  %v14780_v42 = vld [vmem:[#allocation47_spill] sm:$0xff]  ;;  %v14781_v53 = vld [vmem:[#allocation48_spill] sm:$0xff] }
0x1629   :  { %v886_v50 = vsel %vm874_vm7, %v884_v54, %v881_v5 }
0x162a   :  { %v8336_v3 = vmax.f32 %v8335_v35, 0.0  ;;  %887 = vst [vmem:[#allocation10] sm:$0xff] %v886_v50  ;;  %v14782_v35 = vld [vmem:[#allocation25_spill] sm:$0xff] }
0x162b   :  { %v1607_v51 = vpop.permute.xlu1 %1606  ;;  %v1612_v17 = vpop.permute.xlu0 %1611 }
0x162c   :  { %v8370_v14 = vpack.c.bf16 %v8336_v3, %v8336_v3  ;;  %v1609_v43 = vsel %vm875_vm3, %v1607_v51, %v14220_v6  ;;  %v14783_v3 = vld [vmem:[#allocation49_spill] sm:$0xff]  ;;  %v14784_v51 = vld [vmem:[#allocation31_spill] sm:$0xff] }
0x162d   :  { %v1614_v12 = vsel %vm874_vm7, %v1612_v17, %v1609_v43 }
0x162e   :  { %1616 = vst [vmem:[#allocation10 + $0x8] sm:$0xff] %v1614_v12  ;;  %8596 = vmatmul.mubr.bf16.vlgmr.msra.gmra.mrb[112].mxu0 %v8370_v14  ;;  %8637 = vmatmul.mubr.bf16.vlgmr.msra.gmra.mrb[112].mxu1 %v8370_v14  ;;  %v14785_v14 = vld [vmem:[#allocation50_spill] sm:$0xff] }
0x162f   :  { %8806 = vmatpush1.bf16.msra.mxu0 %v13996_v27  ;;  %8847 = vmatpush1.bf16.msra.mxu1 %v13998_v2  ;;  %v2336_v63 = vpop.permute.xlu1 %2335  ;;  %v2341_v40 = vpop.permute.xlu0 %2340  ;;  %v14766_v27 = vld [vmem:[#allocation16_spill] sm:$0xff] }
0x1630   :  { %v2338_v57 = vsel %vm875_vm3, %v2336_v63, %v14230_v11  ;;  %8807 = vmatprep.subr.bf16.mxu0 %v14000_v1  ;;  %8848 = vmatprep.subr.bf16.mxu1 %v14002_v20  ;;  %v14767_v2 = vld [vmem:[#allocation32_spill] sm:$0xff]  ;;  %v14769_v11 = vld [vmem:[#allocation34_spill] sm:$0xff]  ;;  %v14770_v1 = vld [vmem:[#allocation35_spill] sm:$0xff] }
0x1631   :  { %v2343_v6 = vsel %vm874_vm7, %v2341_v40, %v2338_v57  ;;  %8837 = vmatprep.mubr.bf16.mxu0 %v14585_v45  ;;  %8878 = vmatprep.mubr.bf16.mxu1 %v14585_v45  ;;  %v14771_v20 = vld [vmem:[#allocation36_spill] sm:$0xff]  ;;  %v14786_v63 = vld [vmem:[#allocation17_spill] sm:$0xff] }
0x1632   :  { %2345 = vst [vmem:[#allocation10 + $0x10] sm:$0xff] %v2343_v6 }
0x1633   :  { %8808 = vmatpush1.bf16.msra.mxu0 %v14766_v27  ;;  %8849 = vmatpush1.bf16.msra.mxu1 %v14767_v2  ;;  %v3065_v16 = vpop.permute.xlu1 %3064  ;;  %v3799_v19 = vpop.permute.xlu0 %3798 }
0x1634   :  { %8809 = vmatprep.subr.bf16.mxu0 %v14768_v36  ;;  %8850 = vmatprep.subr.bf16.mxu1 %v14769_v11  ;;  %v11070_v11 = vld [vmem:[%s14450_s12] sm:$0xff]  }
0x1637   :  { %8810 = vmatpush1.bf16.msra.mxu0 %v14770_v1  ;;  %8851 = vmatpush1.bf16.msra.mxu1 %v14771_v20  ;;  %v4523_v23 = vpop.permute.xlu1 %4522  ;;  %v5986_v33 = vpop.permute.xlu0 %5985  ;;  %v11071_v1 = vld [vmem:[%s14450_s12 + $0x8] sm:$0xff]   ;;  %v11073_v20 = vld [vmem:[%s14450_s12 + $0x18] sm:$0xff]  }
0x1638   :  { %8811 = vmatprep.subr.bf16.mxu0 %v14772_v49  ;;  %8852 = vmatprep.subr.bf16.mxu1 %v14773_v0  ;;  %v11076_v49 = vld [vmem:[%s14450_s12 + $0x30] sm:$0xff]   ;;  %v11077_v0 = vld [vmem:[%s14450_s12 + $0x38] sm:$0xff]  }
0x163b   :  { %8812 = vmatpush1.bf16.msra.mxu0 %v14774_v37  ;;  %8853 = vmatpush1.bf16.msra.mxu1 %v14775_v58  ;;  %v5252_v8 = vpop.permute.xlu1 %5251  ;;  %v7582_v41 = vpop.permute.xlu0 %7581 }
0x163c   :  { %8813 = vmatprep.subr.bf16.mxu0 %v14776_v25  ;;  %8854 = vmatprep.subr.bf16.mxu1 %v14777_v44 }
0x163f   :  { %8814 = vmatpush1.bf16.msra.mxu0 %v14778_v24  ;;  %8855 = vmatpush1.bf16.msra.mxu1 %v14779_v60  ;;  %v6852_v26 = vpop.permute.xlu1 %6851 }
0x1640   :  { %v3794_v22 = vpop.permute.xlu0 %3793  ;;  %8815 = vmatprep.subr.bf16.mxu0 %v14780_v42  ;;  %8856 = vmatprep.subr.bf16.mxu1 %v14781_v53 }
0x1641   :  { %v3796_v54 = vsel %vm875_vm3, %v3794_v22, %v14246_v30 }
0x1642   :  { %v3801_v61 = vsel %vm874_vm7, %v3799_v19, %v3796_v54 }
0x1643   :  { %3803 = vst [vmem:[#allocation10 + $0x20] sm:$0xff] %v3801_v61  ;;  %8816 = vmatpush1.bf16.msra.mxu0 %v14782_v35  ;;  %8857 = vmatpush1.bf16.msra.mxu1 %v14058_v56  ;;  %v8302_v5 = vpop.permute.xlu1 %8301  ;;  %v3067_v56 = vsel %vm875_vm3, %v3065_v16, %v14242_v21 }
0x1644   :  { %v5981_v50 = vpop.permute.xlu0 %5980  ;;  %8817 = vmatprep.subr.bf16.mxu0 %v14062_v29  ;;  %8858 = vmatprep.subr.bf16.mxu1 %v14783_v3  ;;  %v8304_v16 = vsel %vm875_vm3, %v8302_v5, %v14188_v48  ;;  %v11072_v48 = vld [vmem:[%s14450_s12 + $0x10] sm:$0xff]  }
0x1645   :  { %v5983_v17 = vsel %vm875_vm3, %v5981_v50, %v14784_v51 }
0x1646   :  { %v5988_v30 = vsel %vm874_vm7, %v5986_v33, %v5983_v17  ;;  %v11075_v33 = vld [vmem:[%s14450_s12 + $0x28] sm:$0xff]  }
0x1647   :  { %5990 = vst [vmem:[#allocation10 + $0x38] sm:$0xff] %v5988_v30  ;;  %8818 = vmatpush1.bf16.msra.mxu0 %v14068_v46  ;;  %8859 = vmatpush1.bf16.msra.mxu1 %v14785_v14  ;;  %v8296_v46 = vsel %vm7595_vm0, %v14159_v9, %v14090_v38  ;;  %v14787_v38 = vld [vmem:[#allocation29_spill] sm:$0xff] }
0x1648   :  { %v3070_v43 = vpop.permute.xlu1 %3069  ;;  %v7577_v29 = vpop.permute.xlu0 %7576  ;;  %8819 = vmatprep.subr.bf16.mxu0 %v14074_v18  ;;  %8860 = vmatprep.subr.bf16.mxu1 %v14076_v52  ;;  %v4525_v18 = vsel %vm875_vm3, %v4523_v23, %v14260_v47  ;;  %v8337_v57 = vpack.c.bf16 %v8296_v46, %v8296_v46  ;;  %v14788_v47 = vld [vmem:[#allocation18_spill] sm:$0xff]  ;;  %v11074_v23 = vld [vmem:[%s14450_s12 + $0x20] sm:$0xff]   ;;  %s11439_s12 = smov [#allocation10]  }
0x1649   :  { %v3072_v12 = vsel %vm874_vm7, %v3070_v43, %v3067_v56  ;;  %v7579_v40 = vsel %vm875_vm3, %v7577_v29, %v14786_v63  ;;  %v6854_v6 = vsel %vm875_vm3, %v6852_v26, %v14788_v47  ;;  %s9040_s23 = sshll.u32 %s11439_s12, 4  ;;  %s9041_s23 = int_to_ptr.vmem [resolvable:$true] %s9040_s23 }
0x164a   :  { %3074 = vst [vmem:[#allocation10 + $0x18] sm:$0xff] %v3072_v12  ;;  %v7584_v21 = vsel %vm874_vm7, %v7582_v41, %v7579_v40  ;;  %s11398_s14 = scalar_lea.vmem %s9041_s23, 1536  ;;  %p11403_p5 = scmp.lt.s32.totalorder %s9041_s23, %s9041_s23 }
0x164b   :  { %7586 = vst [vmem:[#allocation10 + $0x48] sm:$0xff] %v7584_v21  ;;  %8820 = vmatpush1.bf16.msra.mxu0 %v14080_v28  ;;  %8861 = vmatpush1.bf16.msra.mxu1 %v14082_v7  ;;  %v5254_v28 = vsel %vm875_vm3, %v5252_v8, %v14787_v38  ;;  %p11399_p4 = scmp.ne.s32.totalorder %s9041_s23, %s11398_s14  ;;  %p11404_p6 = scmp.lt.s32.totalorder %s11398_s14, %s11398_s14 }
0x164c   :  { %v4528_v52 = vpop.permute.xlu1 %4527  ;;  %10343 = vmatprep.subr.bf16.mxu0 %v14731_v39 }
0x164d   :  { %v4530_v59 = vsel %vm874_vm7, %v4528_v52, %v4525_v18  ;;  %p11405_p7 = por %p11404_p6, %p11403_p5 }
0x164e   :  { %4532 = vst [vmem:[#allocation10 + $0x28] sm:$0xff] %v4530_v59  ;;  %8838 = vmatmul.mubr.bf16.vlgmr.msra.gmra.mrb[116].mxu0 %v8337_v57  ;;  %8879 = vmatmul.mubr.bf16.vlgmr.msra.gmra.mrb[116].mxu1 %v8337_v57 }
0x164f   :  { %10359 = vmatprep.mubr.msk.bf16.mxu0 %vm11438_vm14, %v14731_v39  ;;  %10344 = vmatpush3.bf16.msra.mxu0 %v11070_v11  ;;  %p11406_p8 = pnand %p11405_p7, %p11399_p4 }
0x1650   :  { %v5257_v7 = vpop.permute.xlu1 %5256  ;;  %10345 = vmatprep.subr.bf16.mxu0 %v14731_v39 }
0x1651   :  { %v5259_v9 = vsel %vm874_vm7, %v5257_v7, %v5254_v28 }
0x1652   :  { %5261 = vst [vmem:[#allocation10 + $0x30] sm:$0xff] %v5259_v9 }
0x1653   :  { %10346 = vmatpush3.bf16.msra.mxu0 %v11071_v1 }
0x1654   :  { %v6857_v27 = vpop.permute.xlu1 %6856  ;;  %10347 = vmatprep.subr.bf16.mxu0 %v14731_v39 }
0x1655   :  { %v6859_v2 = vsel %vm874_vm7, %v6857_v27, %v6854_v6 }
0x1656   :  { %6861 = vst [vmem:[#allocation10 + $0x40] sm:$0xff] %v6859_v2 }
0x1657   :  { %10348 = vmatpush3.bf16.msra.mxu0 %v11072_v48 }
0x1658   :  { %v8307_v19 = vpop.permute.xlu1 %8306  ;;  %10349 = vmatprep.subr.bf16.mxu0 %v14731_v39 }
0x1659   :  { %v8309_v36 = vsel %vm874_vm7, %v8307_v19, %v8304_v16 }
0x165a   :  { %8311 = vst [vmem:[#allocation10 + $0x50] sm:$0xff] %v8309_v36 }
0x165b   :  { %10350 = vmatpush3.bf16.msra.mxu0 %v11073_v20 }
0x165c   :  { %10351 = vmatprep.subr.bf16.mxu0 %v14731_v39 }
0x165f   :  { %10352 = vmatpush3.bf16.msra.mxu0 %v11074_v23 }
0x1660   :  { %10353 = vmatprep.subr.bf16.mxu0 %v14731_v39 }
0x1663   :  { %10354 = vmatpush3.bf16.msra.mxu0 %v11075_v33 }
0x1664   :  { %10355 = vmatprep.subr.bf16.mxu0 %v14731_v39 }
0x1667   :  { %10356 = vmatpush3.bf16.msra.mxu0 %v11076_v49 }
0x1668   :  { %10357 = vmatprep.subr.bf16.mxu0 %v14731_v39 }
0x166b   :  { %10358 = vmatpush3.bf16.msra.mxu0 %v11077_v0 }
0x1701   :  { %v8597_v37 = vpop.f32.mrb[112].mxu0  ;;  %v8638_v58 = vpop.f32.mrb[112].mxu1 }
0x1702   :  { %v8599_v8 = vpop.f32.mrb[113].mxu0  ;;  %v8640_v41 = vpop.f32.mrb[113].mxu1 }
0x1703   :  { %v8601_v25 = vpop.f32.mrb[114].mxu0  ;;  %v8642_v44 = vpop.f32.mrb[114].mxu1 }
0x1704   :  { %v8602_v24 = vpop.f32.mrb[115].mxu0  ;;  %v8643_v60 = vpop.f32.mrb[115].mxu1 }
0x1721   :  { %v8839_v26 = vpop.f32.mrb[116].mxu0  ;;  %v8880_v22 = vpop.f32.mrb[116].mxu1 }
0x1722   :  { %v8840_v42 = vadd.f32 %v8839_v26, %v8597_v37  ;;  %v8881_v53 = vadd.f32 %v8880_v22, %v8638_v58  ;;  %v8841_v54 = vpop.f32.mrb[117].mxu0  ;;  %v8882_v61 = vpop.f32.mrb[117].mxu1 }
0x1723   :  { %v8842_v35 = vadd.f32 %v8841_v54, %v8599_v8  ;;  %v8883_v5 = vadd.f32 %v8882_v61, %v8640_v41  ;;  %v8843_v50 = vpop.f32.mrb[118].mxu0  ;;  %v8884_v3 = vpop.f32.mrb[118].mxu1 }
0x1724   :  { %v8887_v39 = vadd.f32 %v8840_v42, %v13700_v4  ;;  %v8844_v51 = vpop.f32.mrb[119].mxu0  ;;  %v8885_v17 = vpop.f32.mrb[119].mxu1  ;;  %v8889_v12 = vadd.f32 %v8881_v53, %v13714_v31 }
0x1725   :  { %v8888_v30 = vadd.f32 %v8842_v35, %v13703_v62  ;;  %v8890_v43 = vadd.f32 %v8883_v5, %v13709_v10 }
0x1726   :  { %v9975_v14 = vmul.f32 -1.442695, %v8887_v39 }
0x1727   :  { %v9976_v56 = vmul.f32 -1.442695, %v8888_v30  ;;  %v9977_v29 = vmul.f32 -1.442695, %v8890_v43 }
0x1728   :  { %11254 = vpow2.f32 %v9975_v14 }
0x1729   :  { %11256 = vpow2.f32 %v9976_v56 }
0x172a   :  { %11258 = vpow2.f32 %v9977_v29 }
0x172b   :  { %11260 = vtanh.f32 %v8889_v12 }
0x1732   :  { %v11255_v63 = vpop.eup %11254 }
0x1733   :  { %v11257_v40 = vpop.eup %11256  ;;  %v8894_v46 = vadd.f32 1.0, %v11255_v63 }
0x1734   :  { %v8900_v21 = vadd.f32 1.0, %v11257_v40  ;;  %v11259_v4 = vpop.eup %11258 }
0x1735   :  { %11262 = vrcp.f32 %v8894_v46  ;;  %v11261_v18 = vpop.eup %11260  ;;  %v8907_v59 = vadd.f32 1.0, %v11259_v4 }
0x1736   :  { %11264 = vrcp.f32 %v8900_v21 }
0x1737   :  { %11266 = vrcp.f32 %v8907_v59 }
0x173f   :  { %v11263_v62 = vpop.eup %11262 }
0x1740   :  { %v11265_v52 = vpop.eup %11264  ;;  %v8911_v57 = vmul.f32 %v11263_v62, %v11261_v18 }
0x1741   :  { %v8910_v38 = vmul.f32 %v11265_v52, %v14157_v32  ;;  %v11267_v31 = vpop.eup %11266 }
0x1743   :  { %v8912_v10 = vadd.f32 %v8911_v57, %v8910_v38 }
0x1745   :  { %11268 = vtanh.f32 %v8912_v10 }
0x174f   :  { %v11269_v28 = vpop.eup %11268 }
0x1750   :  { %v8914_v7 = vmul.f32 %v11269_v28, %v11267_v31 }
0x1752   :  { %v8915_v9 = vpack.c.bf16 %v8914_v7, %v8914_v7 }
0x1754   :  { %10360 = vmatmul.mubr.bf16.vlgmr.msra.gmra.mrb[120].mxu0 %v8915_v9 }
0x1827   :  { %v9014_v47 = vpop.f32.mrb[120].mxu0 }
0x1828   :  { %v9015_v6 = vadd.f32 %v14183_v15, %v9014_v47  ;;  %v10361_v27 = vpop.f32.mrb[121].mxu0 }
0x1829   :  { %v9017_v2 = vpop.f32.mrb[122].mxu0 }
0x182a   :  { %v9020_v16 = vsel %vm8320_vm8, %v9015_v6, nan  ;;  %v10362_v19 = vpop.f32.mrb[123].mxu0 }
0x182b   :  { %v9021_v36 = vadd.f32 %v9020_v16, %v14192_v34 }
0x182d   :  { %9024 = vperm.xlu0 %10396, %v9021_v36  }
0x1831   :  { %10397 = vset.pattern.permute.xlu0 %v14585_v45 }
0x1832   :  { %9029 = vperm.xlu0 %10397, %v9021_v36  }
0x18ac   :  { %v9025_v32 = vpop.permute.xlu0 %9024 }
0x18ad   :  { %v9027_v11 = vsel %vm875_vm3, %v9025_v32, %v9020_v16 }
0x18b1   :  { %v9030_v1 = vpop.permute.xlu0 %9029 }
0x18b2   :  { %v9032_v15 = vsel %vm874_vm7, %v9030_v1, %v9027_v11 }
0x18b3   :  { %9034 = vst [vmem:[#allocation10 + $0x58] sm:$0xff] %v9032_v15 }
0x18b4   :  { %11409 = shalt.err (!%p11406_p8)
}
0x18b5   :  { %s11410_s17 = scalar_lea.hbm %s14454_s16, 1536 }
0x18b6   :  { %p11411_p9 = scmp.ne.s32.totalorder %s14454_s16, %s11410_s17  ;;  %p11414_p10 = scmp.lt.u32.totalorder %s11410_s17, %s14454_s16 }
0x18b8   :  { %p11416_p11 = pnand %p11414_p10, %p11411_p9 }
0x18ba   :  { %11419 = shalt.err (!%p11416_p11)
}
0x18bb   :  { %s11440_s27 = smov 128   ;;  %s11441_s2 = smov 8  }
0x18bc   :  { %9046 = dma.vmem_to_hbm [thread:$0]  %s9041_s23, 1536, %s14454_s16, [#allocation4], %s11440_s27, %s11440_s27, %s11441_s2  }
0x18bd   :  { %11426 = dma.done.wait [#allocation4], 1536  }
0x18be   :  { %11427 = vsyncadd [#allocation4], 4294965760 }
0x18bf   :  { %9050 = vsyncpa [#allocation3], 1 }
0x18c0   :  { %9051 = vsyncpa [#allocation6], 1 }
0x18c1   :  { %9052 = vsyncpa [#allocation9], 1 }
0x18c2   :  { %9053 = vsyncpa [#allocation4], 1 }

</bundles_post_ra>
